<compile_context>
chip_gen: v7x
topology: tpu7x:2x2x1
jax: 0.10.0
libtpu: 0.0.40
codegen_flags: <defaults>
</compile_context>

<pallas_src>
import jax
import jax.numpy as jnp
from jax.experimental import pallas as pl
from jax.experimental.pallas import tpu as pltpu

# ---- model constants (from the PyTorch module) -----------------------------
D_MODEL = 368                  # 128 + 128 + 64 + 32 + 16
N_HEADS = 4
HEAD_DIM = D_MODEL // N_HEADS  # 92
HEAD_PAD = 128                 # lane-aligned padded head dim
ATTN_PAD = N_HEADS * HEAD_PAD  # 512
QKV_PAD = 3 * ATTN_PAD         # 1536
FF_DIM = 2048                  # nn.TransformerEncoderLayer default
N_LAYERS = 2
EPS = 1e-5                     # LayerNorm default eps

ROOT_VOCAB = 12                # HARMONY_ROOT_VOCAB_SIZE
TYPE_VOCAB = 9                 # CHORD_VOCAB_SIZE
STYLE_VOCAB = 2                # HARMONY_STYLE_VOCAB_SIZE
KEY_VOCAB = 24
MODE_VOCAB = 2
MELODY_VOCAB = 128
HEAD_OUT = ROOT_VOCAB + TYPE_VOCAB + STYLE_VOCAB   # 23
HEAD_OUT_PAD = 128                                  # lane-dense output slab


def _layer_norm(x, w, b):
    # PyTorch LayerNorm: biased variance, eps inside rsqrt. fp32 statistics.
    mu = jnp.mean(x, axis=-1, keepdims=True)
    var = jnp.mean(jnp.square(x - mu), axis=-1, keepdims=True)
    return (x - mu) * jax.lax.rsqrt(var + EPS) * w + b


# ---------------------------------------------------------------------------
# Pallas kernel: one grid step == one transformer layer (weights pipelined),
# heads fused + written at the last step.
# ---------------------------------------------------------------------------
def transformer_kernel(x_ref,
                       in_w_ref, in_b_ref, out_w_ref, out_b_ref,
                       lin1_w_ref, lin1_b_ref, lin2_w_ref, lin2_b_ref,
                       ln1_w_ref, ln1_b_ref, ln2_w_ref, ln2_b_ref,
                       head_w_ref, head_b_ref,
                       logits_ref,
                       x_sc, attn_sc):
    layer = pl.program_id(0)
    B, S, D = x_ref.shape
    bf16 = jnp.bfloat16
    scale = 1.0 / (HEAD_DIM ** 0.5)

    @pl.when(layer == 0)
    def _():
        x_sc[...] = x_ref[...].reshape(B * S, D)

    x = x_sc[...]                                            # (B*S, 368) f32

    # ---- self-attention block (post-norm, as in nn.TransformerEncoderLayer)
    qkv = jnp.dot(x.astype(bf16), in_w_ref[...],
                  preferred_element_type=jnp.float32) + in_b_ref[...]
    q = qkv[:, 0 * ATTN_PAD:1 * ATTN_PAD]                    # (B*S, 512), 128-aligned
    k = qkv[:, 1 * ATTN_PAD:2 * ATTN_PAD]
    v = qkv[:, 2 * ATTN_PAD:3 * ATTN_PAD]

    for b in range(B):                                       # static tiny loops
        r0 = b * S
        for h in range(N_HEADS):
            c0 = h * HEAD_PAD                                # 128-aligned slice
            qh = q[r0:r0 + S, c0:c0 + HEAD_PAD] * scale      # (S, 128)
            kh = k[r0:r0 + S, c0:c0 + HEAD_PAD]
            vh = v[r0:r0 + S, c0:c0 + HEAD_PAD]
            scores = jnp.dot(qh, kh.T, preferred_element_type=jnp.float32)
            scores = scores - jnp.max(scores, axis=-1, keepdims=True)
            p = jnp.exp(scores)
            p = p * pl.reciprocal(jnp.sum(p, axis=-1, keepdims=True), approx=True)
            # aligned store into the attention scratch (no concatenates)
            attn_sc[r0:r0 + S, c0:c0 + HEAD_PAD] = jnp.dot(
                p, vh, preferred_element_type=jnp.float32)

    attn = jnp.dot(attn_sc[...].astype(bf16), out_w_ref[...],
                   preferred_element_type=jnp.float32) + out_b_ref[...]
    x = _layer_norm(x + attn, ln1_w_ref[...], ln1_b_ref[...])

    # ---- feed-forward block (ReLU, 2048 hidden)
    h1 = jnp.maximum(
        jnp.dot(x.astype(bf16), lin1_w_ref[...],
                preferred_element_type=jnp.float32) + lin1_b_ref[...], 0.0)
    h2 = jnp.dot(h1.astype(bf16), lin2_w_ref[...],
                 preferred_element_type=jnp.float32) + lin2_b_ref[...]
    x = _layer_norm(x + h2, ln2_w_ref[...], ln2_b_ref[...])

    x_sc[...] = x                                            # carry to next layer

    # ---- fused output heads (single lane-dense matmul), last layer only
    @pl.when(layer == N_LAYERS - 1)
    def _():
        logits = jnp.dot(x.astype(bf16), head_w_ref[...],
                         preferred_element_type=jnp.float32) + head_b_ref[...]
        logits_ref[...] = logits.reshape(B, S, HEAD_OUT_PAD)


# ---------------------------------------------------------------------------
# Parameters: raw (PyTorch-equivalent, (in, out) layout) + packed/padded bf16.
# ---------------------------------------------------------------------------
def init_params(key):
    def nrm(k, shape, scale=0.02):
        return scale * jax.random.normal(k, shape, jnp.float32)

    keys = iter(jax.random.split(key, 24))
    p = {}
    p['embed_roots'] = nrm(next(keys), (ROOT_VOCAB, 128))
    p['embed_types'] = nrm(next(keys), (TYPE_VOCAB, 128))
    p['embed_key'] = nrm(next(keys), (KEY_VOCAB, 32))
    p['embed_mode'] = nrm(next(keys), (MODE_VOCAB, 16))
    p['embed_melody'] = nrm(next(keys), (MELODY_VOCAB, 64))
    # transformer layers; Linear weights stored pre-transposed as (in, out)
    p['in_w'] = nrm(next(keys), (N_LAYERS, D_MODEL, 3 * D_MODEL))
    p['in_b'] = nrm(next(keys), (N_LAYERS, 3 * D_MODEL))
    p['out_w'] = nrm(next(keys), (N_LAYERS, D_MODEL, D_MODEL))
    p['out_b'] = nrm(next(keys), (N_LAYERS, D_MODEL))
    p['lin1_w'] = nrm(next(keys), (N_LAYERS, D_MODEL, FF_DIM))
    p['lin1_b'] = nrm(next(keys), (N_LAYERS, FF_DIM))
    p['lin2_w'] = nrm(next(keys), (N_LAYERS, FF_DIM, D_MODEL))
    p['lin2_b'] = nrm(next(keys), (N_LAYERS, D_MODEL))
    p['ln1_w'] = jnp.ones((N_LAYERS, D_MODEL), jnp.float32)
    p['ln1_b'] = jnp.zeros((N_LAYERS, D_MODEL), jnp.float32)
    p['ln2_w'] = jnp.ones((N_LAYERS, D_MODEL), jnp.float32)
    p['ln2_b'] = jnp.zeros((N_LAYERS, D_MODEL), jnp.float32)
    # heads
    p['root_w'] = nrm(next(keys), (D_MODEL, ROOT_VOCAB))
    p['root_b'] = jnp.zeros((ROOT_VOCAB,), jnp.float32)
    p['type_w'] = nrm(next(keys), (D_MODEL, TYPE_VOCAB))
    p['type_b'] = jnp.zeros((TYPE_VOCAB,), jnp.float32)
    p['style_w'] = nrm(next(keys), (D_MODEL, STYLE_VOCAB))
    p['style_b'] = jnp.zeros((STYLE_VOCAB,), jnp.float32)
    return p


def _pack_qkv_w(w):   # (L, D, 3*D) -> (L, D, QKV_PAD), heads padded 92->128
    L = w.shape[0]
    w = w.reshape(L, D_MODEL, 3, N_HEADS, HEAD_DIM)
    wp = jnp.zeros((L, D_MODEL, 3, N_HEADS, HEAD_PAD), w.dtype)
    wp = wp.at[..., :HEAD_DIM].set(w)
    return wp.reshape(L, D_MODEL, QKV_PAD)


def _pack_qkv_b(b):   # (L, 3*D) -> (L, 1, QKV_PAD)
    L = b.shape[0]
    b = b.reshape(L, 3, N_HEADS, HEAD_DIM)
    bp = jnp.zeros((L, 3, N_HEADS, HEAD_PAD), b.dtype)
    bp = bp.at[..., :HEAD_DIM].set(b)
    return bp.reshape(L, 1, QKV_PAD)


def _pack_out_w(w):   # (L, D, D) -> (L, ATTN_PAD, D), padded rows are zero
    L = w.shape[0]
    w = w.reshape(L, N_HEADS, HEAD_DIM, D_MODEL)
    wp = jnp.zeros((L, N_HEADS, HEAD_PAD, D_MODEL), w.dtype)
    wp = wp.at[:, :, :HEAD_DIM, :].set(w)
    return wp.reshape(L, ATTN_PAD, D_MODEL)


def _pack_heads(p):   # fuse root/type/style heads into one (D, 128) matmul
    w = jnp.concatenate([p['root_w'], p['type_w'], p['style_w']], axis=1)  # (D, 23)
    b = jnp.concatenate([p['root_b'], p['type_b'], p['style_b']], axis=0)  # (23,)
    wp = jnp.zeros((D_MODEL, HEAD_OUT_PAD), w.dtype).at[:, :HEAD_OUT].set(w)
    bp = jnp.zeros((1, HEAD_OUT_PAD), b.dtype).at[0, :HEAD_OUT].set(b)
    return wp, bp


def pack_params(p):
    bf16 = jnp.bfloat16
    head_w, head_b = _pack_heads(p)
    kp = {
        # embeddings (used by the plain-JAX gather glue)
        'embed_roots': p['embed_roots'], 'embed_types': p['embed_types'],
        'embed_key': p['embed_key'], 'embed_mode': p['embed_mode'],
        'embed_melody': p['embed_melody'],
        # transformer weights: big matrices in bf16, biases / LN in fp32
        'in_w': _pack_qkv_w(p['in_w']).astype(bf16),
        'in_b': _pack_qkv_b(p['in_b']),
        'out_w': _pack_out_w(p['out_w']).astype(bf16),
        'out_b': p['out_b'][:, None, :],
        'lin1_w': p['lin1_w'].astype(bf16),
        'lin1_b': p['lin1_b'][:, None, :],
        'lin2_w': p['lin2_w'].astype(bf16),
        'lin2_b': p['lin2_b'][:, None, :],
        'ln1_w': p['ln1_w'][:, None, :], 'ln1_b': p['ln1_b'][:, None, :],
        'ln2_w': p['ln2_w'][:, None, :], 'ln2_b': p['ln2_b'][:, None, :],
        'head_w': head_w.astype(bf16),
        'head_b': head_b,
    }
    return kp


# ---------------------------------------------------------------------------
# Forward pass
# ---------------------------------------------------------------------------
def embed_inputs(p, root_seq, type_seq, melody_seq, key_sig, mode_sig):
    B, S = root_seq.shape
    re = jnp.take(p['embed_roots'], root_seq, axis=0)                      # (B,S,128)
    te = jnp.take(p['embed_types'], type_seq, axis=0)                      # (B,S,128)
    me = jnp.take(p['embed_melody'], melody_seq, axis=0)                   # (B,S,64)
    ke = jnp.broadcast_to(jnp.take(p['embed_key'], key_sig, axis=0)[:, None, :],
                          (B, S, 32))
    mo = jnp.broadcast_to(jnp.take(p['embed_mode'], mode_sig, axis=0)[:, None, :],
                          (B, S, 16))
    return jnp.concatenate([re, te, me, ke, mo], axis=-1).astype(jnp.float32)


def tiny_harmony_forward(kp, root_seq, type_seq, melody_seq, key_sig, mode_sig):
    B, S = root_seq.shape
    x = embed_inputs(kp, root_seq, type_seq, melody_seq, key_sig, mode_sig)  # (B,S,368)

    lw = lambda l: (l, 0, 0)   # per-layer weight block (pipelined over the grid)
    c3 = lambda l: (0, 0, 0)   # constant (resident) 3-D block
    c2 = lambda l: (0, 0)      # constant (resident) 2-D block

    grid_spec = pltpu.PrefetchScalarGridSpec(
        num_scalar_prefetch=0,
        grid=(N_LAYERS,),
        in_specs=[
            pl.BlockSpec((B, S, D_MODEL), c3),                      # x
            pl.BlockSpec((None, D_MODEL, QKV_PAD), lw),             # in_w
            pl.BlockSpec((None, 1, QKV_PAD), lw),                   # in_b
            pl.BlockSpec((None, ATTN_PAD, D_MODEL), lw),            # out_w
            pl.BlockSpec((None, 1, D_MODEL), lw),                   # out_b
            pl.BlockSpec((None, D_MODEL, FF_DIM), lw),              # lin1_w
            pl.BlockSpec((None, 1, FF_DIM), lw),                    # lin1_b
            pl.BlockSpec((None, FF_DIM, D_MODEL), lw),              # lin2_w
            pl.BlockSpec((None, 1, D_MODEL), lw),                   # lin2_b
            pl.BlockSpec((None, 1, D_MODEL), lw),                   # ln1_w
            pl.BlockSpec((None, 1, D_MODEL), lw),                   # ln1_b
            pl.BlockSpec((None, 1, D_MODEL), lw),                   # ln2_w
            pl.BlockSpec((None, 1, D_MODEL), lw),                   # ln2_b
            pl.BlockSpec((D_MODEL, HEAD_OUT_PAD), c2),              # head_w
            pl.BlockSpec((1, HEAD_OUT_PAD), c2),                    # head_b
        ],
        out_specs=pl.BlockSpec((B, S, HEAD_OUT_PAD), c3),
        scratch_shapes=[
            pltpu.VMEM((B * S, D_MODEL), jnp.float32),   # activation carry
            pltpu.VMEM((B * S, ATTN_PAD), jnp.float32),  # aligned head outputs
        ],
    )

    slab = pl.pallas_call(
        transformer_kernel,
        out_shape=jax.ShapeDtypeStruct((B, S, HEAD_OUT_PAD), jnp.float32),
        grid_spec=grid_spec,
        compiler_params=pltpu.CompilerParams(
            dimension_semantics=("arbitrary",),
            vmem_limit_bytes=32 << 20),   # leaves headroom on v7x (64 MiB physical)
    )(x,
      kp['in_w'], kp['in_b'], kp['out_w'], kp['out_b'],
      kp['lin1_w'], kp['lin1_b'], kp['lin2_w'], kp['lin2_b'],
      kp['ln1_w'], kp['ln1_b'], kp['ln2_w'], kp['ln2_b'],
      kp['head_w'], kp['head_b'])

    root = slab[..., :ROOT_VOCAB]
    typ = slab[..., ROOT_VOCAB:ROOT_VOCAB + TYPE_VOCAB]
    sty = slab[..., ROOT_VOCAB + TYPE_VOCAB:HEAD_OUT]
    return root, typ, sty


# ---- pure-JAX fp32 reference (unpadded weights) ----------------------------
def reference_forward(p, root_seq, type_seq, melody_seq, key_sig, mode_sig):
    x = embed_inputs(p, root_seq, type_seq, melody_seq, key_sig, mode_sig)
    B, S, D = x.shape
    for l in range(N_LAYERS):
        qkv = x @ p['in_w'][l] + p['in_b'][l]
        q, k, v = jnp.split(qkv, 3, axis=-1)
        split = lambda t: t.reshape(B, S, N_HEADS, HEAD_DIM).transpose(0, 2, 1, 3)
        qh, kh, vh = split(q), split(k), split(v)
        scores = jnp.einsum('bhqd,bhkd->bhqk', qh, kh) / jnp.sqrt(float(HEAD_DIM))
        probs = jax.nn.softmax(scores, axis=-1)
        attn = jnp.einsum('bhqk,bhkd->bhqd', probs, vh)
        attn = attn.transpose(0, 2, 1, 3).reshape(B, S, D)
        attn = attn @ p['out_w'][l] + p['out_b'][l]
        x = _layer_norm(x + attn, p['ln1_w'][l], p['ln1_b'][l])
        h = jax.nn.relu(x @ p['lin1_w'][l] + p['lin1_b'][l])
        h = h @ p['lin2_w'][l] + p['lin2_b'][l]
        x = _layer_norm(x + h, p['ln2_w'][l], p['ln2_b'][l])
    return (x @ p['root_w'] + p['root_b'],
            x @ p['type_w'] + p['type_b'],
            x @ p['style_w'] + p['style_b'])


if __name__ == "__main__":
    key = jax.random.PRNGKey(0)
    pkey, k1, k2, k3, k4, k5 = jax.random.split(key, 6)
    raw = init_params(pkey)
    kp = pack_params(raw)

    B, S = 2, 8
    root_seq = jax.random.randint(k1, (B, S), 0, ROOT_VOCAB, dtype=jnp.int32)
    type_seq = jax.random.randint(k2, (B, S), 0, TYPE_VOCAB, dtype=jnp.int32)
    melody_seq = jax.random.randint(k3, (B, S), 0, MELODY_VOCAB, dtype=jnp.int32)
    key_sig = jax.random.randint(k4, (B,), 0, KEY_VOCAB, dtype=jnp.int32)
    mode_sig = jax.random.randint(k5, (B,), 0, MODE_VOCAB, dtype=jnp.int32)

    fwd = jax.jit(tiny_harmony_forward)
    root_logits, type_logits, style_logits = fwd(
        kp, root_seq, type_seq, melody_seq, key_sig, mode_sig)
    jax.block_until_ready((root_logits, type_logits, style_logits))

    assert root_logits.shape == (B, S, ROOT_VOCAB)
    assert type_logits.shape == (B, S, TYPE_VOCAB)
    assert style_logits.shape == (B, S, STYLE_VOCAB)
    assert jnp.all(jnp.isfinite(root_logits))
    assert jnp.all(jnp.isfinite(type_logits))
    assert jnp.all(jnp.isfinite(style_logits))

    # correctness vs plain-JAX fp32 reference (bf16 weights -> loose tolerance)
    r_ref, t_ref, s_ref = jax.jit(reference_forward)(
        raw, root_seq, type_seq, melody_seq, key_sig, mode_sig)
    max_err = max(float(jnp.max(jnp.abs(root_logits - r_ref))),
                  float(jnp.max(jnp.abs(type_logits - t_ref))),
                  float(jnp.max(jnp.abs(style_logits - s_ref))))
    assert max_err < 1e-1, f"max abs error vs reference: {max_err}"

    print("KERNEL_OK")
</pallas_src>

<mosaic_0001>
module attributes {stable_mosaic.version = 11 : i64} {
  func.func @transformer_kernel(%arg0: i32, %arg1: memref<2x8x368xf32, #tpu.memory_space<vmem>>, %arg2: memref<1x368x1536xbf16, #tpu.memory_space<vmem>>, %arg3: memref<1x1x1536xf32, #tpu.memory_space<vmem>>, %arg4: memref<1x512x368xbf16, #tpu.memory_space<vmem>>, %arg5: memref<1x1x368xf32, #tpu.memory_space<vmem>>, %arg6: memref<1x368x2048xbf16, #tpu.memory_space<vmem>>, %arg7: memref<1x1x2048xf32, #tpu.memory_space<vmem>>, %arg8: memref<1x2048x368xbf16, #tpu.memory_space<vmem>>, %arg9: memref<1x1x368xf32, #tpu.memory_space<vmem>>, %arg10: memref<1x1x368xf32, #tpu.memory_space<vmem>>, %arg11: memref<1x1x368xf32, #tpu.memory_space<vmem>>, %arg12: memref<1x1x368xf32, #tpu.memory_space<vmem>>, %arg13: memref<1x1x368xf32, #tpu.memory_space<vmem>>, %arg14: memref<368x128xbf16, #tpu.memory_space<vmem>>, %arg15: memref<1x128xf32, #tpu.memory_space<vmem>>, %arg16: memref<2x8x128xf32, #tpu.memory_space<vmem>>, %arg17: memref<16x368xf32, #tpu.memory_space<vmem>>, %arg18: memref<16x512xf32, #tpu.memory_space<vmem>>) attributes {dimension_semantics = [#tpu.dimension_semantics<arbitrary>], iteration_bounds = array<i64: 2>, scalar_prefetch = 0 : i64, scratch_operands = 2 : i64, tpu.core_type = #tpu.core_type<tc>, window_params = [{pipeline_mode = #tpu.pipeline_mode<synchronous>, transform_indices = @transform_0, window_bounds = array<i64: 2, 8, 368>}, {transform_indices = @transform_1, window_bounds = array<i64: 1, 368, 1536>}, {transform_indices = @transform_2, window_bounds = array<i64: 1, 1, 1536>}, {transform_indices = @transform_3, window_bounds = array<i64: 1, 512, 368>}, {transform_indices = @transform_4, window_bounds = array<i64: 1, 1, 368>}, {transform_indices = @transform_5, window_bounds = array<i64: 1, 368, 2048>}, {transform_indices = @transform_6, window_bounds = array<i64: 1, 1, 2048>}, {transform_indices = @transform_7, window_bounds = array<i64: 1, 2048, 368>}, {transform_indices = @transform_8, window_bounds = array<i64: 1, 1, 368>}, {transform_indices = @transform_9, window_bounds = array<i64: 1, 1, 368>}, {transform_indices = @transform_10, window_bounds = array<i64: 1, 1, 368>}, {transform_indices = @transform_11, window_bounds = array<i64: 1, 1, 368>}, {transform_indices = @transform_12, window_bounds = array<i64: 1, 1, 368>}, {pipeline_mode = #tpu.pipeline_mode<synchronous>, transform_indices = @transform_13, window_bounds = array<i64: 368, 128>}, {pipeline_mode = #tpu.pipeline_mode<synchronous>, transform_indices = @transform_14, window_bounds = array<i64: 1, 128>}, {pipeline_mode = #tpu.pipeline_mode<synchronous>, transform_indices = @transform_15, window_bounds = array<i64: 2, 8, 128>}]} {
    %c0_i32 = arith.constant 0 : i32
    %0 = arith.cmpi eq, %arg0, %c0_i32 : i32
    %1 = arith.extui %0 : i1 to i32
    %c0_i32_0 = arith.constant 0 : i32
    %2 = arith.cmpi ne, %1, %c0_i32_0 : i32
    scf.if %2 {
      %c0_109 = arith.constant 0 : index
      %c0_110 = arith.constant 0 : index
      %c0_111 = arith.constant 0 : index
      %252 = vector.load %arg1[%c0_109, %c0_110, %c0_111] : memref<2x8x368xf32, #tpu.memory_space<vmem>>, vector<2x8x368xf32>
      %253 = vector.shape_cast %252 : vector<2x8x368xf32> to vector<16x368xf32>
      %c0_112 = arith.constant 0 : index
      %c0_113 = arith.constant 0 : index
      %254 = vector.load %arg17[%c0_112, %c0_113] : memref<16x368xf32, #tpu.memory_space<vmem>>, vector<16x368xf32>
      tpu.vector_store %arg17[%c0_112, %c0_113], %253 {strides = array<i32>} : memref<16x368xf32, #tpu.memory_space<vmem>>, vector<16x368xf32>,
    } else {
    }
    %c0 = arith.constant 0 : index
    %c0_1 = arith.constant 0 : index
    %3 = vector.load %arg17[%c0, %c0_1] : memref<16x368xf32, #tpu.memory_space<vmem>>, vector<16x368xf32>
    %4 = arith.truncf %3 : vector<16x368xf32> to vector<16x368xbf16>
    %c0_2 = arith.constant 0 : index
    %c0_3 = arith.constant 0 : index
    %c0_4 = arith.constant 0 : index
    %5 = vector.load %arg2[%c0_2, %c0_3, %c0_4] : memref<1x368x1536xbf16, #tpu.memory_space<vmem>>, vector<1x368x1536xbf16>
    %6 = vector.shape_cast %5 : vector<1x368x1536xbf16> to vector<368x1536xbf16>
    %cst = arith.constant dense<0.000000e+00> : vector<16x1536xf32>
    %7 = tpu.matmul %4, %6, %cst {dimension_numbers = #tpu.dot_dimension_numbers<[1], [0], [0], [1], [0, 0, 1, 1], [], []>} : vector<16x368xbf16>, vector<368x1536xbf16>, vector<16x1536xf32> -> vector<16x1536xf32>
    %c0_5 = arith.constant 0 : index
    %c0_6 = arith.constant 0 : index
    %c0_7 = arith.constant 0 : index
    %8 = vector.load %arg3[%c0_5, %c0_6, %c0_7] : memref<1x1x1536xf32, #tpu.memory_space<vmem>>, vector<1x1x1536xf32>
    %9 = vector.shape_cast %8 : vector<1x1x1536xf32> to vector<1x1536xf32>
    %10 = vector.broadcast %9 : vector<1x1536xf32> to vector<16x1536xf32>
    %11 = arith.addf %7, %10 : vector<16x1536xf32>
    %12 = vector.extract_strided_slice %11 {offsets = [0, 0], sizes = [16, 512], strides = [1, 1]} : vector<16x1536xf32> to vector<16x512xf32>
    %13 = vector.extract_strided_slice %11 {offsets = [0, 512], sizes = [16, 512], strides = [1, 1]} : vector<16x1536xf32> to vector<16x512xf32>
    %14 = vector.extract_strided_slice %11 {offsets = [0, 1024], sizes = [16, 512], strides = [1, 1]} : vector<16x1536xf32> to vector<16x512xf32>
    %15 = vector.extract_strided_slice %12 {offsets = [0, 0], sizes = [8, 128], strides = [1, 1]} : vector<16x512xf32> to vector<8x128xf32>
    %cst_8 = arith.constant 0.104257204 : f32
    %16 = vector.broadcast %cst_8 : f32 to vector<8x128xf32>
    %17 = arith.mulf %15, %16 : vector<8x128xf32>
    %18 = vector.extract_strided_slice %13 {offsets = [0, 0], sizes = [8, 128], strides = [1, 1]} : vector<16x512xf32> to vector<8x128xf32>
    %19 = vector.extract_strided_slice %14 {offsets = [0, 0], sizes = [8, 128], strides = [1, 1]} : vector<16x512xf32> to vector<8x128xf32>
    %20 = tpu.transpose %18, [1, 0] : vector<8x128xf32> -> vector<128x8xf32>
    %cst_9 = arith.constant dense<0.000000e+00> : vector<8x8xf32>
    %21 = tpu.matmul %17, %20, %cst_9 {dimension_numbers = #tpu.dot_dimension_numbers<[1], [0], [0], [1], [0, 0, 1, 1], [], []>} : vector<8x128xf32>, vector<128x8xf32>, vector<8x8xf32> -> vector<8x8xf32>
    %cst_10 = arith.constant dense<0xFF800000> : vector<8xf32>
    %22 = vector.multi_reduction <maximumf>, %21, %cst_10 [1] : vector<8x8xf32> to vector<8xf32>
    %23 = vector.shape_cast %22 : vector<8xf32> to vector<8x1xf32>
    %24 = vector.broadcast %23 : vector<8x1xf32> to vector<8x8xf32>
    %25 = arith.subf %21, %24 : vector<8x8xf32>
    %26 = math.exp %25 : vector<8x8xf32>
    %cst_11 = arith.constant dense<0.000000e+00> : vector<8xf32>
    %27 = vector.multi_reduction <add>, %26, %cst_11 [1] : vector<8x8xf32> to vector<8xf32>
    %28 = vector.shape_cast %27 : vector<8xf32> to vector<8x1xf32>
    %29 = tpu.reciprocal %28 {approx = true} : vector<8x1xf32> -> vector<8x1xf32>
    %30 = vector.broadcast %29 : vector<8x1xf32> to vector<8x8xf32>
    %31 = arith.mulf %26, %30 : vector<8x8xf32>
    %cst_12 = arith.constant dense<0.000000e+00> : vector<8x128xf32>
    %32 = tpu.matmul %31, %19, %cst_12 {dimension_numbers = #tpu.dot_dimension_numbers<[1], [0], [0], [1], [0, 0, 1, 1], [], []>} : vector<8x8xf32>, vector<8x128xf32>, vector<8x128xf32> -> vector<8x128xf32>
    %c0_13 = arith.constant 0 : index
    %c0_14 = arith.constant 0 : index
    %33 = vector.load %arg18[%c0_13, %c0_14] : memref<16x512xf32, #tpu.memory_space<vmem>>, vector<8x128xf32>
    tpu.vector_store %arg18[%c0_13, %c0_14], %32 {strides = array<i32>} : memref<16x512xf32, #tpu.memory_space<vmem>>, vector<8x128xf32>,
    %34 = vector.extract_strided_slice %12 {offsets = [0, 128], sizes = [8, 128], strides = [1, 1]} : vector<16x512xf32> to vector<8x128xf32>
    %cst_15 = arith.constant 0.104257204 : f32
    %35 = vector.broadcast %cst_15 : f32 to vector<8x128xf32>
    %36 = arith.mulf %34, %35 : vector<8x128xf32>
    %37 = vector.extract_strided_slice %13 {offsets = [0, 128], sizes = [8, 128], strides = [1, 1]} : vector<16x512xf32> to vector<8x128xf32>
    %38 = vector.extract_strided_slice %14 {offsets = [0, 128], sizes = [8, 128], strides = [1, 1]} : vector<16x512xf32> to vector<8x128xf32>
    %39 = tpu.transpose %37, [1, 0] : vector<8x128xf32> -> vector<128x8xf32>
    %cst_16 = arith.constant dense<0.000000e+00> : vector<8x8xf32>
    %40 = tpu.matmul %36, %39, %cst_16 {dimension_numbers = #tpu.dot_dimension_numbers<[1], [0], [0], [1], [0, 0, 1, 1], [], []>} : vector<8x128xf32>, vector<128x8xf32>, vector<8x8xf32> -> vector<8x8xf32>
    %cst_17 = arith.constant dense<0xFF800000> : vector<8xf32>
    %41 = vector.multi_reduction <maximumf>, %40, %cst_17 [1] : vector<8x8xf32> to vector<8xf32>
    %42 = vector.shape_cast %41 : vector<8xf32> to vector<8x1xf32>
    %43 = vector.broadcast %42 : vector<8x1xf32> to vector<8x8xf32>
    %44 = arith.subf %40, %43 : vector<8x8xf32>
    %45 = math.exp %44 : vector<8x8xf32>
    %cst_18 = arith.constant dense<0.000000e+00> : vector<8xf32>
    %46 = vector.multi_reduction <add>, %45, %cst_18 [1] : vector<8x8xf32> to vector<8xf32>
    %47 = vector.shape_cast %46 : vector<8xf32> to vector<8x1xf32>
    %48 = tpu.reciprocal %47 {approx = true} : vector<8x1xf32> -> vector<8x1xf32>
    %49 = vector.broadcast %48 : vector<8x1xf32> to vector<8x8xf32>
    %50 = arith.mulf %45, %49 : vector<8x8xf32>
    %cst_19 = arith.constant dense<0.000000e+00> : vector<8x128xf32>
    %51 = tpu.matmul %50, %38, %cst_19 {dimension_numbers = #tpu.dot_dimension_numbers<[1], [0], [0], [1], [0, 0, 1, 1], [], []>} : vector<8x8xf32>, vector<8x128xf32>, vector<8x128xf32> -> vector<8x128xf32>
    %c0_20 = arith.constant 0 : index
    %c128 = arith.constant 128 : index
    %52 = vector.load %arg18[%c0_20, %c128] : memref<16x512xf32, #tpu.memory_space<vmem>>, vector<8x128xf32>
    tpu.vector_store %arg18[%c0_20, %c128], %51 {strides = array<i32>} : memref<16x512xf32, #tpu.memory_space<vmem>>, vector<8x128xf32>,
    %53 = vector.extract_strided_slice %12 {offsets = [0, 256], sizes = [8, 128], strides = [1, 1]} : vector<16x512xf32> to vector<8x128xf32>
    %cst_21 = arith.constant 0.104257204 : f32
    %54 = vector.broadcast %cst_21 : f32 to vector<8x128xf32>
    %55 = arith.mulf %53, %54 : vector<8x128xf32>
    %56 = vector.extract_strided_slice %13 {offsets = [0, 256], sizes = [8, 128], strides = [1, 1]} : vector<16x512xf32> to vector<8x128xf32>
    %57 = vector.extract_strided_slice %14 {offsets = [0, 256], sizes = [8, 128], strides = [1, 1]} : vector<16x512xf32> to vector<8x128xf32>
    %58 = tpu.transpose %56, [1, 0] : vector<8x128xf32> -> vector<128x8xf32>
    %cst_22 = arith.constant dense<0.000000e+00> : vector<8x8xf32>
    %59 = tpu.matmul %55, %58, %cst_22 {dimension_numbers = #tpu.dot_dimension_numbers<[1], [0], [0], [1], [0, 0, 1, 1], [], []>} : vector<8x128xf32>, vector<128x8xf32>, vector<8x8xf32> -> vector<8x8xf32>
    %cst_23 = arith.constant dense<0xFF800000> : vector<8xf32>
    %60 = vector.multi_reduction <maximumf>, %59, %cst_23 [1] : vector<8x8xf32> to vector<8xf32>
    %61 = vector.shape_cast %60 : vector<8xf32> to vector<8x1xf32>
    %62 = vector.broadcast %61 : vector<8x1xf32> to vector<8x8xf32>
    %63 = arith.subf %59, %62 : vector<8x8xf32>
    %64 = math.exp %63 : vector<8x8xf32>
    %cst_24 = arith.constant dense<0.000000e+00> : vector<8xf32>
    %65 = vector.multi_reduction <add>, %64, %cst_24 [1] : vector<8x8xf32> to vector<8xf32>
    %66 = vector.shape_cast %65 : vector<8xf32> to vector<8x1xf32>
    %67 = tpu.reciprocal %66 {approx = true} : vector<8x1xf32> -> vector<8x1xf32>
    %68 = vector.broadcast %67 : vector<8x1xf32> to vector<8x8xf32>
    %69 = arith.mulf %64, %68 : vector<8x8xf32>
    %cst_25 = arith.constant dense<0.000000e+00> : vector<8x128xf32>
    %70 = tpu.matmul %69, %57, %cst_25 {dimension_numbers = #tpu.dot_dimension_numbers<[1], [0], [0], [1], [0, 0, 1, 1], [], []>} : vector<8x8xf32>, vector<8x128xf32>, vector<8x128xf32> -> vector<8x128xf32>
    %c0_26 = arith.constant 0 : index
    %c256 = arith.constant 256 : index
    %71 = vector.load %arg18[%c0_26, %c256] : memref<16x512xf32, #tpu.memory_space<vmem>>, vector<8x128xf32>
    tpu.vector_store %arg18[%c0_26, %c256], %70 {strides = array<i32>} : memref<16x512xf32, #tpu.memory_space<vmem>>, vector<8x128xf32>,
    %72 = vector.extract_strided_slice %12 {offsets = [0, 384], sizes = [8, 128], strides = [1, 1]} : vector<16x512xf32> to vector<8x128xf32>
    %cst_27 = arith.constant 0.104257204 : f32
    %73 = vector.broadcast %cst_27 : f32 to vector<8x128xf32>
    %74 = arith.mulf %72, %73 : vector<8x128xf32>
    %75 = vector.extract_strided_slice %13 {offsets = [0, 384], sizes = [8, 128], strides = [1, 1]} : vector<16x512xf32> to vector<8x128xf32>
    %76 = vector.extract_strided_slice %14 {offsets = [0, 384], sizes = [8, 128], strides = [1, 1]} : vector<16x512xf32> to vector<8x128xf32>
    %77 = tpu.transpose %75, [1, 0] : vector<8x128xf32> -> vector<128x8xf32>
    %cst_28 = arith.constant dense<0.000000e+00> : vector<8x8xf32>
    %78 = tpu.matmul %74, %77, %cst_28 {dimension_numbers = #tpu.dot_dimension_numbers<[1], [0], [0], [1], [0, 0, 1, 1], [], []>} : vector<8x128xf32>, vector<128x8xf32>, vector<8x8xf32> -> vector<8x8xf32>
    %cst_29 = arith.constant dense<0xFF800000> : vector<8xf32>
    %79 = vector.multi_reduction <maximumf>, %78, %cst_29 [1] : vector<8x8xf32> to vector<8xf32>
    %80 = vector.shape_cast %79 : vector<8xf32> to vector<8x1xf32>
    %81 = vector.broadcast %80 : vector<8x1xf32> to vector<8x8xf32>
    %82 = arith.subf %78, %81 : vector<8x8xf32>
    %83 = math.exp %82 : vector<8x8xf32>
    %cst_30 = arith.constant dense<0.000000e+00> : vector<8xf32>
    %84 = vector.multi_reduction <add>, %83, %cst_30 [1] : vector<8x8xf32> to vector<8xf32>
    %85 = vector.shape_cast %84 : vector<8xf32> to vector<8x1xf32>
    %86 = tpu.reciprocal %85 {approx = true} : vector<8x1xf32> -> vector<8x1xf32>
    %87 = vector.broadcast %86 : vector<8x1xf32> to vector<8x8xf32>
    %88 = arith.mulf %83, %87 : vector<8x8xf32>
    %cst_31 = arith.constant dense<0.000000e+00> : vector<8x128xf32>
    %89 = tpu.matmul %88, %76, %cst_31 {dimension_numbers = #tpu.dot_dimension_numbers<[1], [0], [0], [1], [0, 0, 1, 1], [], []>} : vector<8x8xf32>, vector<8x128xf32>, vector<8x128xf32> -> vector<8x128xf32>
    %c0_32 = arith.constant 0 : index
    %c384 = arith.constant 384 : index
    %90 = vector.load %arg18[%c0_32, %c384] : memref<16x512xf32, #tpu.memory_space<vmem>>, vector<8x128xf32>
    tpu.vector_store %arg18[%c0_32, %c384], %89 {strides = array<i32>} : memref<16x512xf32, #tpu.memory_space<vmem>>, vector<8x128xf32>,
    %91 = vector.extract_strided_slice %12 {offsets = [8, 0], sizes = [8, 128], strides = [1, 1]} : vector<16x512xf32> to vector<8x128xf32>
    %cst_33 = arith.constant 0.104257204 : f32
    %92 = vector.broadcast %cst_33 : f32 to vector<8x128xf32>
    %93 = arith.mulf %91, %92 : vector<8x128xf32>
    %94 = vector.extract_strided_slice %13 {offsets = [8, 0], sizes = [8, 128], strides = [1, 1]} : vector<16x512xf32> to vector<8x128xf32>
    %95 = vector.extract_strided_slice %14 {offsets = [8, 0], sizes = [8, 128], strides = [1, 1]} : vector<16x512xf32> to vector<8x128xf32>
    %96 = tpu.transpose %94, [1, 0] : vector<8x128xf32> -> vector<128x8xf32>
    %cst_34 = arith.constant dense<0.000000e+00> : vector<8x8xf32>
    %97 = tpu.matmul %93, %96, %cst_34 {dimension_numbers = #tpu.dot_dimension_numbers<[1], [0], [0], [1], [0, 0, 1, 1], [], []>} : vector<8x128xf32>, vector<128x8xf32>, vector<8x8xf32> -> vector<8x8xf32>
    %cst_35 = arith.constant dense<0xFF800000> : vector<8xf32>
    %98 = vector.multi_reduction <maximumf>, %97, %cst_35 [1] : vector<8x8xf32> to vector<8xf32>
    %99 = vector.shape_cast %98 : vector<8xf32> to vector<8x1xf32>
    %100 = vector.broadcast %99 : vector<8x1xf32> to vector<8x8xf32>
    %101 = arith.subf %97, %100 : vector<8x8xf32>
    %102 = math.exp %101 : vector<8x8xf32>
    %cst_36 = arith.constant dense<0.000000e+00> : vector<8xf32>
    %103 = vector.multi_reduction <add>, %102, %cst_36 [1] : vector<8x8xf32> to vector<8xf32>
    %104 = vector.shape_cast %103 : vector<8xf32> to vector<8x1xf32>
    %105 = tpu.reciprocal %104 {approx = true} : vector<8x1xf32> -> vector<8x1xf32>
    %106 = vector.broadcast %105 : vector<8x1xf32> to vector<8x8xf32>
    %107 = arith.mulf %102, %106 : vector<8x8xf32>
    %cst_37 = arith.constant dense<0.000000e+00> : vector<8x128xf32>
    %108 = tpu.matmul %107, %95, %cst_37 {dimension_numbers = #tpu.dot_dimension_numbers<[1], [0], [0], [1], [0, 0, 1, 1], [], []>} : vector<8x8xf32>, vector<8x128xf32>, vector<8x128xf32> -> vector<8x128xf32>
    %c8 = arith.constant 8 : index
    %c0_38 = arith.constant 0 : index
    %109 = vector.load %arg18[%c8, %c0_38] : memref<16x512xf32, #tpu.memory_space<vmem>>, vector<8x128xf32>
    tpu.vector_store %arg18[%c8, %c0_38], %108 {strides = array<i32>} : memref<16x512xf32, #tpu.memory_space<vmem>>, vector<8x128xf32>,
    %110 = vector.extract_strided_slice %12 {offsets = [8, 128], sizes = [8, 128], strides = [1, 1]} : vector<16x512xf32> to vector<8x128xf32>
    %cst_39 = arith.constant 0.104257204 : f32
    %111 = vector.broadcast %cst_39 : f32 to vector<8x128xf32>
    %112 = arith.mulf %110, %111 : vector<8x128xf32>
    %113 = vector.extract_strided_slice %13 {offsets = [8, 128], sizes = [8, 128], strides = [1, 1]} : vector<16x512xf32> to vector<8x128xf32>
    %114 = vector.extract_strided_slice %14 {offsets = [8, 128], sizes = [8, 128], strides = [1, 1]} : vector<16x512xf32> to vector<8x128xf32>
    %115 = tpu.transpose %113, [1, 0] : vector<8x128xf32> -> vector<128x8xf32>
    %cst_40 = arith.constant dense<0.000000e+00> : vector<8x8xf32>
    %116 = tpu.matmul %112, %115, %cst_40 {dimension_numbers = #tpu.dot_dimension_numbers<[1], [0], [0], [1], [0, 0, 1, 1], [], []>} : vector<8x128xf32>, vector<128x8xf32>, vector<8x8xf32> -> vector<8x8xf32>
    %cst_41 = arith.constant dense<0xFF800000> : vector<8xf32>
    %117 = vector.multi_reduction <maximumf>, %116, %cst_41 [1] : vector<8x8xf32> to vector<8xf32>
    %118 = vector.shape_cast %117 : vector<8xf32> to vector<8x1xf32>
    %119 = vector.broadcast %118 : vector<8x1xf32> to vector<8x8xf32>
    %120 = arith.subf %116, %119 : vector<8x8xf32>
    %121 = math.exp %120 : vector<8x8xf32>
    %cst_42 = arith.constant dense<0.000000e+00> : vector<8xf32>
    %122 = vector.multi_reduction <add>, %121, %cst_42 [1] : vector<8x8xf32> to vector<8xf32>
    %123 = vector.shape_cast %122 : vector<8xf32> to vector<8x1xf32>
    %124 = tpu.reciprocal %123 {approx = true} : vector<8x1xf32> -> vector<8x1xf32>
    %125 = vector.broadcast %124 : vector<8x1xf32> to vector<8x8xf32>
    %126 = arith.mulf %121, %125 : vector<8x8xf32>
    %cst_43 = arith.constant dense<0.000000e+00> : vector<8x128xf32>
    %127 = tpu.matmul %126, %114, %cst_43 {dimension_numbers = #tpu.dot_dimension_numbers<[1], [0], [0], [1], [0, 0, 1, 1], [], []>} : vector<8x8xf32>, vector<8x128xf32>, vector<8x128xf32> -> vector<8x128xf32>
    %c8_44 = arith.constant 8 : index
    %c128_45 = arith.constant 128 : index
    %128 = vector.load %arg18[%c8_44, %c128_45] : memref<16x512xf32, #tpu.memory_space<vmem>>, vector<8x128xf32>
    tpu.vector_store %arg18[%c8_44, %c128_45], %127 {strides = array<i32>} : memref<16x512xf32, #tpu.memory_space<vmem>>, vector<8x128xf32>,
    %129 = vector.extract_strided_slice %12 {offsets = [8, 256], sizes = [8, 128], strides = [1, 1]} : vector<16x512xf32> to vector<8x128xf32>
    %cst_46 = arith.constant 0.104257204 : f32
    %130 = vector.broadcast %cst_46 : f32 to vector<8x128xf32>
    %131 = arith.mulf %129, %130 : vector<8x128xf32>
    %132 = vector.extract_strided_slice %13 {offsets = [8, 256], sizes = [8, 128], strides = [1, 1]} : vector<16x512xf32> to vector<8x128xf32>
    %133 = vector.extract_strided_slice %14 {offsets = [8, 256], sizes = [8, 128], strides = [1, 1]} : vector<16x512xf32> to vector<8x128xf32>
    %134 = tpu.transpose %132, [1, 0] : vector<8x128xf32> -> vector<128x8xf32>
    %cst_47 = arith.constant dense<0.000000e+00> : vector<8x8xf32>
    %135 = tpu.matmul %131, %134, %cst_47 {dimension_numbers = #tpu.dot_dimension_numbers<[1], [0], [0], [1], [0, 0, 1, 1], [], []>} : vector<8x128xf32>, vector<128x8xf32>, vector<8x8xf32> -> vector<8x8xf32>
    %cst_48 = arith.constant dense<0xFF800000> : vector<8xf32>
    %136 = vector.multi_reduction <maximumf>, %135, %cst_48 [1] : vector<8x8xf32> to vector<8xf32>
    %137 = vector.shape_cast %136 : vector<8xf32> to vector<8x1xf32>
    %138 = vector.broadcast %137 : vector<8x1xf32> to vector<8x8xf32>
    %139 = arith.subf %135, %138 : vector<8x8xf32>
    %140 = math.exp %139 : vector<8x8xf32>
    %cst_49 = arith.constant dense<0.000000e+00> : vector<8xf32>
    %141 = vector.multi_reduction <add>, %140, %cst_49 [1] : vector<8x8xf32> to vector<8xf32>
    %142 = vector.shape_cast %141 : vector<8xf32> to vector<8x1xf32>
    %143 = tpu.reciprocal %142 {approx = true} : vector<8x1xf32> -> vector<8x1xf32>
    %144 = vector.broadcast %143 : vector<8x1xf32> to vector<8x8xf32>
    %145 = arith.mulf %140, %144 : vector<8x8xf32>
    %cst_50 = arith.constant dense<0.000000e+00> : vector<8x128xf32>
    %146 = tpu.matmul %145, %133, %cst_50 {dimension_numbers = #tpu.dot_dimension_numbers<[1], [0], [0], [1], [0, 0, 1, 1], [], []>} : vector<8x8xf32>, vector<8x128xf32>, vector<8x128xf32> -> vector<8x128xf32>
    %c8_51 = arith.constant 8 : index
    %c256_52 = arith.constant 256 : index
    %147 = vector.load %arg18[%c8_51, %c256_52] : memref<16x512xf32, #tpu.memory_space<vmem>>, vector<8x128xf32>
    tpu.vector_store %arg18[%c8_51, %c256_52], %146 {strides = array<i32>} : memref<16x512xf32, #tpu.memory_space<vmem>>, vector<8x128xf32>,
    %148 = vector.extract_strided_slice %12 {offsets = [8, 384], sizes = [8, 128], strides = [1, 1]} : vector<16x512xf32> to vector<8x128xf32>
    %cst_53 = arith.constant 0.104257204 : f32
    %149 = vector.broadcast %cst_53 : f32 to vector<8x128xf32>
    %150 = arith.mulf %148, %149 : vector<8x128xf32>
    %151 = vector.extract_strided_slice %13 {offsets = [8, 384], sizes = [8, 128], strides = [1, 1]} : vector<16x512xf32> to vector<8x128xf32>
    %152 = vector.extract_strided_slice %14 {offsets = [8, 384], sizes = [8, 128], strides = [1, 1]} : vector<16x512xf32> to vector<8x128xf32>
    %153 = tpu.transpose %151, [1, 0] : vector<8x128xf32> -> vector<128x8xf32>
    %cst_54 = arith.constant dense<0.000000e+00> : vector<8x8xf32>
    %154 = tpu.matmul %150, %153, %cst_54 {dimension_numbers = #tpu.dot_dimension_numbers<[1], [0], [0], [1], [0, 0, 1, 1], [], []>} : vector<8x128xf32>, vector<128x8xf32>, vector<8x8xf32> -> vector<8x8xf32>
    %cst_55 = arith.constant dense<0xFF800000> : vector<8xf32>
    %155 = vector.multi_reduction <maximumf>, %154, %cst_55 [1] : vector<8x8xf32> to vector<8xf32>
    %156 = vector.shape_cast %155 : vector<8xf32> to vector<8x1xf32>
    %157 = vector.broadcast %156 : vector<8x1xf32> to vector<8x8xf32>
    %158 = arith.subf %154, %157 : vector<8x8xf32>
    %159 = math.exp %158 : vector<8x8xf32>
    %cst_56 = arith.constant dense<0.000000e+00> : vector<8xf32>
    %160 = vector.multi_reduction <add>, %159, %cst_56 [1] : vector<8x8xf32> to vector<8xf32>
    %161 = vector.shape_cast %160 : vector<8xf32> to vector<8x1xf32>
    %162 = tpu.reciprocal %161 {approx = true} : vector<8x1xf32> -> vector<8x1xf32>
    %163 = vector.broadcast %162 : vector<8x1xf32> to vector<8x8xf32>
    %164 = arith.mulf %159, %163 : vector<8x8xf32>
    %cst_57 = arith.constant dense<0.000000e+00> : vector<8x128xf32>
    %165 = tpu.matmul %164, %152, %cst_57 {dimension_numbers = #tpu.dot_dimension_numbers<[1], [0], [0], [1], [0, 0, 1, 1], [], []>} : vector<8x8xf32>, vector<8x128xf32>, vector<8x128xf32> -> vector<8x128xf32>
    %c8_58 = arith.constant 8 : index
    %c384_59 = arith.constant 384 : index
    %166 = vector.load %arg18[%c8_58, %c384_59] : memref<16x512xf32, #tpu.memory_space<vmem>>, vector<8x128xf32>
    tpu.vector_store %arg18[%c8_58, %c384_59], %165 {strides = array<i32>} : memref<16x512xf32, #tpu.memory_space<vmem>>, vector<8x128xf32>,
    %c0_60 = arith.constant 0 : index
    %c0_61 = arith.constant 0 : index
    %167 = vector.load %arg18[%c0_60, %c0_61] : memref<16x512xf32, #tpu.memory_space<vmem>>, vector<16x512xf32>
    %168 = arith.truncf %167 : vector<16x512xf32> to vector<16x512xbf16>
    %c0_62 = arith.constant 0 : index
    %c0_63 = arith.constant 0 : index
    %c0_64 = arith.constant 0 : index
    %169 = vector.load %arg4[%c0_62, %c0_63, %c0_64] : memref<1x512x368xbf16, #tpu.memory_space<vmem>>, vector<1x512x368xbf16>
    %170 = vector.shape_cast %169 : vector<1x512x368xbf16> to vector<512x368xbf16>
    %cst_65 = arith.constant dense<0.000000e+00> : vector<16x368xf32>
    %171 = tpu.matmul %168, %170, %cst_65 {dimension_numbers = #tpu.dot_dimension_numbers<[1], [0], [0], [1], [0, 0, 1, 1], [], []>} : vector<16x512xbf16>, vector<512x368xbf16>, vector<16x368xf32> -> vector<16x368xf32>
    %c0_66 = arith.constant 0 : index
    %c0_67 = arith.constant 0 : index
    %c0_68 = arith.constant 0 : index
    %172 = vector.load %arg5[%c0_66, %c0_67, %c0_68] : memref<1x1x368xf32, #tpu.memory_space<vmem>>, vector<1x1x368xf32>
    %173 = vector.shape_cast %172 : vector<1x1x368xf32> to vector<1x368xf32>
    %174 = vector.broadcast %173 : vector<1x368xf32> to vector<16x368xf32>
    %175 = arith.addf %171, %174 : vector<16x368xf32>
    %176 = arith.addf %3, %175 : vector<16x368xf32>
    %c0_69 = arith.constant 0 : index
    %c0_70 = arith.constant 0 : index
    %c0_71 = arith.constant 0 : index
    %177 = vector.load %arg10[%c0_69, %c0_70, %c0_71] : memref<1x1x368xf32, #tpu.memory_space<vmem>>, vector<1x1x368xf32>
    %178 = vector.shape_cast %177 : vector<1x1x368xf32> to vector<1x368xf32>
    %c0_72 = arith.constant 0 : index
    %c0_73 = arith.constant 0 : index
    %c0_74 = arith.constant 0 : index
    %179 = vector.load %arg11[%c0_72, %c0_73, %c0_74] : memref<1x1x368xf32, #tpu.memory_space<vmem>>, vector<1x1x368xf32>
    %180 = vector.shape_cast %179 : vector<1x1x368xf32> to vector<1x368xf32>
    %cst_75 = arith.constant dense<0.000000e+00> : vector<16xf32>
    %181 = vector.multi_reduction <add>, %176, %cst_75 [1] : vector<16x368xf32> to vector<16xf32>
    %182 = vector.shape_cast %181 : vector<16xf32> to vector<16x1xf32>
    %cst_76 = arith.constant 3.680000e+02 : f32
    %183 = vector.broadcast %cst_76 : f32 to vector<16x1xf32>
    %184 = arith.divf %182, %183 : vector<16x1xf32>
    %185 = vector.broadcast %184 : vector<16x1xf32> to vector<16x368xf32>
    %186 = arith.subf %176, %185 : vector<16x368xf32>
    %187 = arith.mulf %186, %186 : vector<16x368xf32>
    %cst_77 = arith.constant dense<0.000000e+00> : vector<16xf32>
    %188 = vector.multi_reduction <add>, %187, %cst_77 [1] : vector<16x368xf32> to vector<16xf32>
    %189 = vector.shape_cast %188 : vector<16xf32> to vector<16x1xf32>
    %cst_78 = arith.constant 3.680000e+02 : f32
    %190 = vector.broadcast %cst_78 : f32 to vector<16x1xf32>
    %191 = arith.divf %189, %190 : vector<16x1xf32>
    %192 = vector.broadcast %184 : vector<16x1xf32> to vector<16x368xf32>
    %193 = arith.subf %176, %192 : vector<16x368xf32>
    %cst_79 = arith.constant 9.99999974E-6 : f32
    %194 = vector.broadcast %cst_79 : f32 to vector<16x1xf32>
    %195 = arith.addf %191, %194 : vector<16x1xf32>
    %196 = math.rsqrt %195 : vector<16x1xf32>
    %197 = vector.broadcast %196 : vector<16x1xf32> to vector<16x368xf32>
    %198 = arith.mulf %193, %197 : vector<16x368xf32>
    %199 = vector.broadcast %178 : vector<1x368xf32> to vector<16x368xf32>
    %200 = arith.mulf %198, %199 : vector<16x368xf32>
    %201 = vector.broadcast %180 : vector<1x368xf32> to vector<16x368xf32>
    %202 = arith.addf %200, %201 : vector<16x368xf32>
    %203 = arith.truncf %202 : vector<16x368xf32> to vector<16x368xbf16>
    %c0_80 = arith.constant 0 : index
    %c0_81 = arith.constant 0 : index
    %c0_82 = arith.constant 0 : index
    %204 = vector.load %arg6[%c0_80, %c0_81, %c0_82] : memref<1x368x2048xbf16, #tpu.memory_space<vmem>>, vector<1x368x2048xbf16>
    %205 = vector.shape_cast %204 : vector<1x368x2048xbf16> to vector<368x2048xbf16>
    %cst_83 = arith.constant dense<0.000000e+00> : vector<16x2048xf32>
    %206 = tpu.matmul %203, %205, %cst_83 {dimension_numbers = #tpu.dot_dimension_numbers<[1], [0], [0], [1], [0, 0, 1, 1], [], []>} : vector<16x368xbf16>, vector<368x2048xbf16>, vector<16x2048xf32> -> vector<16x2048xf32>
    %c0_84 = arith.constant 0 : index
    %c0_85 = arith.constant 0 : index
    %c0_86 = arith.constant 0 : index
    %207 = vector.load %arg7[%c0_84, %c0_85, %c0_86] : memref<1x1x2048xf32, #tpu.memory_space<vmem>>, vector<1x1x2048xf32>
    %208 = vector.shape_cast %207 : vector<1x1x2048xf32> to vector<1x2048xf32>
    %209 = vector.broadcast %208 : vector<1x2048xf32> to vector<16x2048xf32>
    %210 = arith.addf %206, %209 : vector<16x2048xf32>
    %cst_87 = arith.constant 0.000000e+00 : f32
    %211 = vector.broadcast %cst_87 : f32 to vector<16x2048xf32>
    %212 = arith.maximumf %210, %211 : vector<16x2048xf32>
    %213 = arith.truncf %212 : vector<16x2048xf32> to vector<16x2048xbf16>
    %c0_88 = arith.constant 0 : index
    %c0_89 = arith.constant 0 : index
    %c0_90 = arith.constant 0 : index
    %214 = vector.load %arg8[%c0_88, %c0_89, %c0_90] : memref<1x2048x368xbf16, #tpu.memory_space<vmem>>, vector<1x2048x368xbf16>
    %215 = vector.shape_cast %214 : vector<1x2048x368xbf16> to vector<2048x368xbf16>
    %cst_91 = arith.constant dense<0.000000e+00> : vector<16x368xf32>
    %216 = tpu.matmul %213, %215, %cst_91 {dimension_numbers = #tpu.dot_dimension_numbers<[1], [0], [0], [1], [0, 0, 1, 1], [], []>} : vector<16x2048xbf16>, vector<2048x368xbf16>, vector<16x368xf32> -> vector<16x368xf32>
    %c0_92 = arith.constant 0 : index
    %c0_93 = arith.constant 0 : index
    %c0_94 = arith.constant 0 : index
    %217 = vector.load %arg9[%c0_92, %c0_93, %c0_94] : memref<1x1x368xf32, #tpu.memory_space<vmem>>, vector<1x1x368xf32>
    %218 = vector.shape_cast %217 : vector<1x1x368xf32> to vector<1x368xf32>
    %219 = vector.broadcast %218 : vector<1x368xf32> to vector<16x368xf32>
    %220 = arith.addf %216, %219 : vector<16x368xf32>
    %221 = arith.addf %202, %220 : vector<16x368xf32>
    %c0_95 = arith.constant 0 : index
    %c0_96 = arith.constant 0 : index
    %c0_97 = arith.constant 0 : index
    %222 = vector.load %arg12[%c0_95, %c0_96, %c0_97] : memref<1x1x368xf32, #tpu.memory_space<vmem>>, vector<1x1x368xf32>
    %223 = vector.shape_cast %222 : vector<1x1x368xf32> to vector<1x368xf32>
    %c0_98 = arith.constant 0 : index
    %c0_99 = arith.constant 0 : index
    %c0_100 = arith.constant 0 : index
    %224 = vector.load %arg13[%c0_98, %c0_99, %c0_100] : memref<1x1x368xf32, #tpu.memory_space<vmem>>, vector<1x1x368xf32>
    %225 = vector.shape_cast %224 : vector<1x1x368xf32> to vector<1x368xf32>
    %cst_101 = arith.constant dense<0.000000e+00> : vector<16xf32>
    %226 = vector.multi_reduction <add>, %221, %cst_101 [1] : vector<16x368xf32> to vector<16xf32>
    %227 = vector.shape_cast %226 : vector<16xf32> to vector<16x1xf32>
    %cst_102 = arith.constant 3.680000e+02 : f32
    %228 = vector.broadcast %cst_102 : f32 to vector<16x1xf32>
    %229 = arith.divf %227, %228 : vector<16x1xf32>
    %230 = vector.broadcast %229 : vector<16x1xf32> to vector<16x368xf32>
    %231 = arith.subf %221, %230 : vector<16x368xf32>
    %232 = arith.mulf %231, %231 : vector<16x368xf32>
    %cst_103 = arith.constant dense<0.000000e+00> : vector<16xf32>
    %233 = vector.multi_reduction <add>, %232, %cst_103 [1] : vector<16x368xf32> to vector<16xf32>
    %234 = vector.shape_cast %233 : vector<16xf32> to vector<16x1xf32>
    %cst_104 = arith.constant 3.680000e+02 : f32
    %235 = vector.broadcast %cst_104 : f32 to vector<16x1xf32>
    %236 = arith.divf %234, %235 : vector<16x1xf32>
    %237 = vector.broadcast %229 : vector<16x1xf32> to vector<16x368xf32>
    %238 = arith.subf %221, %237 : vector<16x368xf32>
    %cst_105 = arith.constant 9.99999974E-6 : f32
    %239 = vector.broadcast %cst_105 : f32 to vector<16x1xf32>
    %240 = arith.addf %236, %239 : vector<16x1xf32>
    %241 = math.rsqrt %240 : vector<16x1xf32>
    %242 = vector.broadcast %241 : vector<16x1xf32> to vector<16x368xf32>
    %243 = arith.mulf %238, %242 : vector<16x368xf32>
    %244 = vector.broadcast %223 : vector<1x368xf32> to vector<16x368xf32>
    %245 = arith.mulf %243, %244 : vector<16x368xf32>
    %246 = vector.broadcast %225 : vector<1x368xf32> to vector<16x368xf32>
    %247 = arith.addf %245, %246 : vector<16x368xf32>
    %c0_106 = arith.constant 0 : index
    %c0_107 = arith.constant 0 : index
    %248 = vector.load %arg17[%c0_106, %c0_107] : memref<16x368xf32, #tpu.memory_space<vmem>>, vector<16x368xf32>
    tpu.vector_store %arg17[%c0_106, %c0_107], %247 {strides = array<i32>} : memref<16x368xf32, #tpu.memory_space<vmem>>, vector<16x368xf32>,
    %c1_i32 = arith.constant 1 : i32
    %249 = arith.cmpi eq, %arg0, %c1_i32 : i32
    %250 = arith.extui %249 : i1 to i32
    %c0_i32_108 = arith.constant 0 : i32
    %251 = arith.cmpi ne, %250, %c0_i32_108 : i32
    scf.if %251 {
      %252 = arith.truncf %247 : vector<16x368xf32> to vector<16x368xbf16>
      %c0_109 = arith.constant 0 : index
      %c0_110 = arith.constant 0 : index
      %253 = vector.load %arg14[%c0_109, %c0_110] : memref<368x128xbf16, #tpu.memory_space<vmem>>, vector<368x128xbf16>
      %cst_111 = arith.constant dense<0.000000e+00> : vector<16x128xf32>
      %254 = tpu.matmul %252, %253, %cst_111 {dimension_numbers = #tpu.dot_dimension_numbers<[1], [0], [0], [1], [0, 0, 1, 1], [], []>} : vector<16x368xbf16>, vector<368x128xbf16>, vector<16x128xf32> -> vector<16x128xf32>
      %c0_112 = arith.constant 0 : index
      %c0_113 = arith.constant 0 : index
      %255 = vector.load %arg15[%c0_112, %c0_113] : memref<1x128xf32, #tpu.memory_space<vmem>>, vector<1x128xf32>
      %256 = vector.broadcast %255 : vector<1x128xf32> to vector<16x128xf32>
      %257 = arith.addf %254, %256 : vector<16x128xf32>
      %258 = vector.shape_cast %257 : vector<16x128xf32> to vector<2x8x128xf32>
      %c0_114 = arith.constant 0 : index
      %c0_115 = arith.constant 0 : index
      %c0_116 = arith.constant 0 : index
      %259 = vector.load %arg16[%c0_114, %c0_115, %c0_116] : memref<2x8x128xf32, #tpu.memory_space<vmem>>, vector<2x8x128xf32>
      tpu.vector_store %arg16[%c0_114, %c0_115, %c0_116], %258 {strides = array<i32>} : memref<2x8x128xf32, #tpu.memory_space<vmem>>, vector<2x8x128xf32>,
    } else {
    }
    return
  }
  func.func @transform_0(%arg0: i32) -> (i32, i32, i32) {
    %c0_i32 = arith.constant 0 : i32
    %c0_i32_0 = arith.constant 0 : i32
    %c0_i32_1 = arith.constant 0 : i32
    %c0_i32_2 = arith.constant 0 : i32
    return %c0_i32, %c0_i32_0, %c0_i32_1 : i32, i32, i32
  }
  func.func @transform_1(%arg0: i32) -> (i32, i32, i32) {
    %c0_i32 = arith.constant 0 : i32
    %c0_i32_0 = arith.constant 0 : i32
    %c0_i32_1 = arith.constant 0 : i32
    return %arg0, %c0_i32, %c0_i32_0 : i32, i32, i32
  }
  func.func @transform_2(%arg0: i32) -> (i32, i32, i32) {
    %c0_i32 = arith.constant 0 : i32
    %c0_i32_0 = arith.constant 0 : i32
    %c0_i32_1 = arith.constant 0 : i32
    return %arg0, %c0_i32, %c0_i32_0 : i32, i32, i32
  }
  func.func @transform_3(%arg0: i32) -> (i32, i32, i32) {
    %c0_i32 = arith.constant 0 : i32
    %c0_i32_0 = arith.constant 0 : i32
    %c0_i32_1 = arith.constant 0 : i32
    return %arg0, %c0_i32, %c0_i32_0 : i32, i32, i32
  }
  func.func @transform_4(%arg0: i32) -> (i32, i32, i32) {
    %c0_i32 = arith.constant 0 : i32
    %c0_i32_0 = arith.constant 0 : i32
    %c0_i32_1 = arith.constant 0 : i32
    return %arg0, %c0_i32, %c0_i32_0 : i32, i32, i32
  }
  func.func @transform_5(%arg0: i32) -> (i32, i32, i32) {
    %c0_i32 = arith.constant 0 : i32
    %c0_i32_0 = arith.constant 0 : i32
    %c0_i32_1 = arith.constant 0 : i32
    return %arg0, %c0_i32, %c0_i32_0 : i32, i32, i32
  }
  func.func @transform_6(%arg0: i32) -> (i32, i32, i32) {
    %c0_i32 = arith.constant 0 : i32
    %c0_i32_0 = arith.constant 0 : i32
    %c0_i32_1 = arith.constant 0 : i32
    return %arg0, %c0_i32, %c0_i32_0 : i32, i32, i32
  }
  func.func @transform_7(%arg0: i32) -> (i32, i32, i32) {
    %c0_i32 = arith.constant 0 : i32
    %c0_i32_0 = arith.constant 0 : i32
    %c0_i32_1 = arith.constant 0 : i32
    return %arg0, %c0_i32, %c0_i32_0 : i32, i32, i32
  }
  func.func @transform_8(%arg0: i32) -> (i32, i32, i32) {
    %c0_i32 = arith.constant 0 : i32
    %c0_i32_0 = arith.constant 0 : i32
    %c0_i32_1 = arith.constant 0 : i32
    return %arg0, %c0_i32, %c0_i32_0 : i32, i32, i32
  }
  func.func @transform_9(%arg0: i32) -> (i32, i32, i32) {
    %c0_i32 = arith.constant 0 : i32
    %c0_i32_0 = arith.constant 0 : i32
    %c0_i32_1 = arith.constant 0 : i32
    return %arg0, %c0_i32, %c0_i32_0 : i32, i32, i32
  }
  func.func @transform_10(%arg0: i32) -> (i32, i32, i32) {
    %c0_i32 = arith.constant 0 : i32
    %c0_i32_0 = arith.constant 0 : i32
    %c0_i32_1 = arith.constant 0 : i32
    return %arg0, %c0_i32, %c0_i32_0 : i32, i32, i32
  }
  func.func @transform_11(%arg0: i32) -> (i32, i32, i32) {
    %c0_i32 = arith.constant 0 : i32
    %c0_i32_0 = arith.constant 0 : i32
    %c0_i32_1 = arith.constant 0 : i32
    return %arg0, %c0_i32, %c0_i32_0 : i32, i32, i32
  }
  func.func @transform_12(%arg0: i32) -> (i32, i32, i32) {
    %c0_i32 = arith.constant 0 : i32
    %c0_i32_0 = arith.constant 0 : i32
    %c0_i32_1 = arith.constant 0 : i32
    return %arg0, %c0_i32, %c0_i32_0 : i32, i32, i32
  }
  func.func @transform_13(%arg0: i32) -> (i32, i32) {
    %c0_i32 = arith.constant 0 : i32
    %c0_i32_0 = arith.constant 0 : i32
    %c0_i32_1 = arith.constant 0 : i32
    return %c0_i32, %c0_i32_0 : i32, i32
  }
  func.func @transform_14(%arg0: i32) -> (i32, i32) {
    %c0_i32 = arith.constant 0 : i32
    %c0_i32_0 = arith.constant 0 : i32
    %c0_i32_1 = arith.constant 0 : i32
    return %c0_i32, %c0_i32_0 : i32, i32
  }
  func.func @transform_15(%arg0: i32) -> (i32, i32, i32) {
    %c0_i32 = arith.constant 0 : i32
    %c0_i32_0 = arith.constant 0 : i32
    %c0_i32_1 = arith.constant 0 : i32
    %c0_i32_2 = arith.constant 0 : i32
    return %c0_i32, %c0_i32_0, %c0_i32_1 : i32, i32, i32
  }
}

</mosaic_0001>

<bundles_post_ra>
// kernel: tiny_harmony_forward.1
= control target key start
LH: loop header
LB: loop body
LE: loop exit
PB: predicated region body
PF: predicated region fallthrough
CT: control target
= control target key end

     0   :  { %s14911_s18 = smov 0   ;;  %s16807_s0 = inlined_call_operand.vmem [shape: f32[2,8,368], index: 0, kind: input, shape index: {}]   ;;  %s16808_s1 = inlined_call_operand.vmem [shape: bf16[2,368,1536], index: 1, kind: input, shape index: {}]   ;;  %s16809_s2 = inlined_call_operand.vmem [shape: f32[2,1,1536], index: 2, kind: input, shape index: {}]   ;;  %s16810_s3 = inlined_call_operand.vmem [shape: bf16[2,512,368], index: 3, kind: input, shape index: {}]   ;;  %s16811_s4 = inlined_call_operand.vmem [shape: f32[2,1,368], index: 4, kind: input, shape index: {}]   ;;  %s16812_s5 = inlined_call_operand.vmem [shape: bf16[2,368,2048], index: 5, kind: input, shape index: {}]   ;;  %s16813_s6 = inlined_call_operand.vmem [shape: f32[2,1,2048], index: 6, kind: input, shape index: {}]   ;;  %s16814_s7 = inlined_call_operand.vmem [shape: bf16[2,2048,368], index: 7, kind: input, shape index: {}]   ;;  %s16815_s8 = inlined_call_operand.vmem [shape: f32[2,1,368], index: 8, kind: input, shape index: {}]   ;;  %s16816_s9 = inlined_call_operand.vmem [shape: f32[2,1,368], index: 9, kind: input, shape index: {}]   ;;  %s16817_s10 = inlined_call_operand.vmem [shape: f32[2,1,368], index: 10, kind: input, shape index: {}]   ;;  %s16818_s11 = inlined_call_operand.vmem [shape: f32[2,1,368], index: 11, kind: input, shape index: {}]   ;;  %s16819_s12 = inlined_call_operand.vmem [shape: f32[2,1,368], index: 12, kind: input, shape index: {}]   ;;  %s16820_s13 = inlined_call_operand.vmem [shape: bf16[368,128], index: 13, kind: input, shape index: {}]   ;;  %s16821_s14 = inlined_call_operand.vmem [shape: f32[1,128], index: 14, kind: input, shape index: {}]   ;;  %s16822_s15 = inlined_call_operand.vmem [shape: f32[2,8,128], index: 15, kind: output, shape index: {}]  }
   0x1   :  { %16827 = sst [smem:[#allocation6_spill]] %s16808_s1 }
   0x2   :  { %16828 = sst [smem:[#allocation7_spill]] %s16809_s2 }
   0x3   :  { %16829 = sst [smem:[#allocation8_spill]] %s16810_s3 }
   0x4   :  { %16830 = sst [smem:[#allocation9_spill]] %s16812_s5 }
   0x5   :  { %16831 = sst [smem:[#allocation10_spill]] %s16813_s6 }
   0x6   :  { %16832 = sst [smem:[#allocation11_spill]] %s16820_s13 }
   0x7   :  { %16833 = sst [smem:[#allocation12_spill]] %s16821_s14 }
   0x8   :  { %16834 = sst [smem:[#allocation13_spill]] %s16822_s15 }
   0x9 LB: > { %16835 = sst [smem:[#allocation4_spill]] %s14824_s18  ;;  %s14917_s19 = sadd.s32 4294967295, %s14824_s18   ;;  %s14824_s18 = sphi %s14911_s18, %s25_s18  }
   0xa   : > { %p11963_p0 = scmp.ge.s32.totalorder %s14824_s18, 1  ;;  %p534_p1 = scmp.lt.s32.totalorder %s14824_s18, 3 }
   0xc   : > { %p535_p2 = pnand %p11963_p0, %p534_p1 }
   0xe   : > { %538 = sbr.rel (%p535_p2) target bundleno = 3499 (0xdab), region = 80 }
  0x15   : > { %p624_p3 = scmp.lt.s32.totalorder %s14917_s19, 1  ;;  %s16836_s6 = sld [smem:[#allocation10_spill]] }
  0x16   : > { %s16838_s1 = sld [smem:[#allocation6_spill]]  ;;  %s16839_s2 = sld [smem:[#allocation7_spill]] }
  0x17   : > { %s625_s20 = scalar_select %p624_p3, %s14917_s19, 1 }
  0x18   : > { %s16840_s3 = sld [smem:[#allocation8_spill]]  ;;  %s16841_s5 = sld [smem:[#allocation9_spill]] }
  0x19   : > { %s13676_s21 = smul.u32 2208, %s625_s20  ;;  %s11967_s22 = sshll.u32 %s625_s20, 4 }
  0x1a   : > { %s13677_s23 = smul.u32 12, %s625_s20  ;;  %p11969_p4 = scmp.ne.s32.totalorder %s14917_s19, 0 }
  0x1b   : > { %s14926_s26 = scalar_lea.vmem %s16836_s6, %s11967_s22  ;;  %s13678_s30 = smul.u32 768, %s625_s20  ;;  %v681_v0 = vld [vmem:[%s16807_s0] sm:$0xff] (!%p11969_p4)  ;;  %v682_v1 = vld [vmem:[%s16807_s0 + $0x8] sm:$0xff] (!%p11969_p4)  ;;  %v683_v2 = vld [vmem:[%s16807_s0 + $0x10] sm:$0xff] (!%p11969_p4)  ;;  %vm689_vm0 = vcmask (!%p11969_p4), 916480  }
  0x1c   : > { %16837 = sst [smem:[#allocation5_spill]] %s14926_s26  ;;  %s14931_s29 = scalar_lea.vmem %s16838_s1, %s13676_s21  ;;  %687 = vst [vmem:[#allocation2] sm:$0xff] (!%p11969_p4), %v681_v0  ;;  %688 = vst [vmem:[#allocation2 + $0x8] sm:$0xff] (!%p11969_p4), %v682_v1  ;;  %v684_v3 = vld [vmem:[%s16807_s0 + $0x18] sm:$0xff] (!%p11969_p4)  ;;  %v685_v4 = vld [vmem:[%s16807_s0 + $0x20] sm:$0xff] (!%p11969_p4) }
  0x1d   : > { %s14936_s18 = scalar_lea.vmem %s16839_s2, %s13677_s23  ;;  %s14938_s15 = smul.u32 3, %s625_s20  ;;  %690 = vst.msk [vmem:[#allocation2 + $0x10] sm:$0xff] (!%p11969_p4), %vm689_vm0, %v683_v2  ;;  %v686_v5 = vld [vmem:[%s16807_s0 + $0x28] sm:$0xff] (!%p11969_p4)  ;;  %691 = vst [vmem:[#allocation2 + $0x18] sm:$0xff] (!%p11969_p4), %v684_v3 }
  0x1e   : > { %s14943_s22 = scalar_lea.vmem %s16840_s3, %s13678_s30  ;;  %s13680_s21 = smul.u32 2944, %s625_s20  ;;  %692 = vst [vmem:[#allocation2 + $0x20] sm:$0xff] (!%p11969_p4), %v685_v4  ;;  %693 = vst.msk [vmem:[#allocation2 + $0x28] sm:$0xff] (!%p11969_p4), %vm689_vm0, %v686_v5 }
  0x1f   : > { %s13681_s23 = smul.u32 3072, %s625_s20  ;;  %s659_s1 = scalar_lea.vmem %s16815_s8, %s14938_s15 }
  0x20   : > { %s14952_s17 = scalar_lea.vmem %s16841_s5, %s13680_s21  ;;  %s663_s24 = scalar_lea.vmem %s16816_s9, %s14938_s15 }
  0x21   : > { %s14961_s30 = scalar_lea.vmem %s16814_s7, %s13681_s23  ;;  %s667_s27 = scalar_lea.vmem %s16817_s10, %s14938_s15 }
  0x22   : > { %s671_s16 = scalar_lea.vmem %s16818_s11, %s14938_s15  ;;  %s675_s14 = scalar_lea.vmem %s16819_s12, %s14938_s15 }
  0x23   : > { %680 = sbr.rel (%p11969_p4) target bundleno = 42 (0x2a), region = 84 }
  0x2a PF: > { %v13695_v6 = vld [vmem:[%s14931_s29 + $0x4] ss:$48 sps:$4 sm:$0xff]   ;;  %v13697_v7 = vld [vmem:[%s14931_s29] ss:$48 sps:$4 sm:$0xff]   ;;  %v14826_v8 = vmov 0   ;;  %v695_v20 = vld [vmem:[#allocation2 + $0x8] sm:$0xff]  ;;  %s16842_s6 = scalar_lea.vmem %s16811_s4, %s14938_s15 }
  0x2b   : > { %2588 = vmatprep.mubr.bf16.mxu1 %v14826_v8  ;;  %2427 = vmatprep.subr.bf16.mxu0 %v13695_v6  ;;  %v13698_v9 = vld [vmem:[%s14931_s29 + $0x64] ss:$48 sps:$4 sm:$0xff]   ;;  %v13700_v10 = vld [vmem:[%s14931_s29 + $0x60] ss:$48 sps:$4 sm:$0xff]   ;;  %v13779_v33 = vld [vmem:[%s14931_s29 + $0x60c] ss:$48 sps:$4 sm:$0xff]  }
  0x2c   : > { %2428 = vmatpush1.bf16.msra.mxu0 %v13697_v7  ;;  %v13701_v11 = vld [vmem:[%s14931_s29 + $0xc4] ss:$48 sps:$4 sm:$0xff]   ;;  %v13703_v12 = vld [vmem:[%s14931_s29 + $0xc0] ss:$48 sps:$4 sm:$0xff]   ;;  %v13781_v34 = vld [vmem:[%s14931_s29 + $0x608] ss:$48 sps:$4 sm:$0xff]   ;;  %2556 = vmatprep.subr.bf16.mxu1 %v13779_v33 }
  0x2d   : > { %2429 = vmatprep.subr.bf16.mxu0 %v13698_v9  ;;  %v13704_v13 = vld [vmem:[%s14931_s29 + $0x124] ss:$48 sps:$4 sm:$0xff]   ;;  %v13706_v14 = vld [vmem:[%s14931_s29 + $0x120] ss:$48 sps:$4 sm:$0xff]   ;;  %v13785_v36 = vld [vmem:[%s14931_s29 + $0x66c] ss:$48 sps:$4 sm:$0xff]   ;;  %2557 = vmatpush1.bf16.msra.mxu1 %v13781_v34 }
  0x2e   : > { %v13707_v15 = vld [vmem:[%s14931_s29 + $0x184] ss:$48 sps:$4 sm:$0xff]   ;;  %v13709_v16 = vld [vmem:[%s14931_s29 + $0x180] ss:$48 sps:$4 sm:$0xff]   ;;  %v13787_v37 = vld [vmem:[%s14931_s29 + $0x668] ss:$48 sps:$4 sm:$0xff]   ;;  %2558 = vmatprep.subr.bf16.mxu1 %v13785_v36 }
  0x2f   : > { %v13710_v17 = vld [vmem:[%s14931_s29 + $0x1e4] ss:$48 sps:$4 sm:$0xff]   ;;  %v13712_v18 = vld [vmem:[%s14931_s29 + $0x1e0] ss:$48 sps:$4 sm:$0xff]   ;;  %v13791_v39 = vld [vmem:[%s14931_s29 + $0x6cc] ss:$48 sps:$4 sm:$0xff]  }
  0x30   : > { %2430 = vmatpush1.bf16.msra.mxu0 %v13700_v10  ;;  %v13713_v19 = vld [vmem:[%s14931_s29 + $0x244] ss:$48 sps:$4 sm:$0xff]   ;;  %v13715_v23 = vld [vmem:[%s14931_s29 + $0x240] ss:$48 sps:$4 sm:$0xff]   ;;  %v13793_v41 = vld [vmem:[%s14931_s29 + $0x6c8] ss:$48 sps:$4 sm:$0xff]  }
  0x31   : > { %2431 = vmatprep.subr.bf16.mxu0 %v13701_v11  ;;  %v698_v21 = vld [vmem:[#allocation2 + $0x20] sm:$0xff]  ;;  %2559 = vmatpush1.bf16.msra.mxu1 %v13787_v37  ;;  %v13797_v43 = vld [vmem:[%s14931_s29 + $0x72c] ss:$48 sps:$4 sm:$0xff]   ;;  %v13799_v45 = vld [vmem:[%s14931_s29 + $0x728] ss:$48 sps:$4 sm:$0xff]   ;;  %vm2423_vm1 = vcmask 916480  }
  0x32   : > { %v15012_v22 = vpack.c.bf16 %v698_v21, %v695_v20  ;;  %v13716_v24 = vld [vmem:[%s14931_s29 + $0x2a4] ss:$48 sps:$4 sm:$0xff]   ;;  %v13718_v25 = vld [vmem:[%s14931_s29 + $0x2a0] ss:$48 sps:$4 sm:$0xff]   ;;  %2560 = vmatprep.subr.bf16.mxu1 %v13791_v39  ;;  %v13803_v47 = vld [vmem:[%s14931_s29 + $0x78c] ss:$48 sps:$4 sm:$0xff]  }
  0x33   : > { %v13719_v26 = vld [vmem:[%s14931_s29 + $0x304] ss:$48 sps:$4 sm:$0xff]   ;;  %v13721_v27 = vld [vmem:[%s14931_s29 + $0x300] ss:$48 sps:$4 sm:$0xff]   ;;  %v13805_v49 = vld [vmem:[%s14931_s29 + $0x788] ss:$48 sps:$4 sm:$0xff]  }
  0x34   : > { %2432 = vmatpush1.bf16.msra.mxu0 %v13703_v12  ;;  %2459 = vmatprep.mubr.bf16.mxu0 %v15012_v22  ;;  %v13722_v28 = vld [vmem:[%s14931_s29 + $0x364] ss:$48 sps:$4 sm:$0xff]   ;;  %v13724_v29 = vld [vmem:[%s14931_s29 + $0x360] ss:$48 sps:$4 sm:$0xff]   ;;  %v13809_v51 = vld [vmem:[%s14931_s29 + $0x7ec] ss:$48 sps:$4 sm:$0xff]  }
  0x35   : > { %2433 = vmatprep.subr.bf16.mxu0 %v13704_v13  ;;  %v13725_v30 = vld [vmem:[%s14931_s29 + $0x3c4] ss:$48 sps:$4 sm:$0xff]   ;;  %v13727_v31 = vld [vmem:[%s14931_s29 + $0x3c0] ss:$48 sps:$4 sm:$0xff]   ;;  %2561 = vmatpush1.bf16.msra.mxu1 %v13793_v41  ;;  %v697_v54 = vld [vmem:[#allocation2 + $0x18] sm:$0xff]  ;;  %vm14828_vm2 = vmmov 0  }
  0x36   : > { %v13728_v32 = vld [vmem:[%s14931_s29 + $0x424] ss:$48 sps:$4 sm:$0xff]   ;;  %v13730_v35 = vld [vmem:[%s14931_s29 + $0x420] ss:$48 sps:$4 sm:$0xff]   ;;  %2562 = vmatprep.subr.bf16.mxu1 %v13797_v43  ;;  %v13811_v55 = vld [vmem:[%s14931_s29 + $0x7e8] ss:$48 sps:$4 sm:$0xff]  }
  0x37   : > { %v13731_v38 = vld [vmem:[%s14931_s29 + $0x484] ss:$48 sps:$4 sm:$0xff]   ;;  %v13733_v40 = vld [vmem:[%s14931_s29 + $0x480] ss:$48 sps:$4 sm:$0xff]   ;;  %v13815_v57 = vld [vmem:[%s14931_s29 + $0x84c] ss:$48 sps:$4 sm:$0xff]  }
  0x38   : > { %2434 = vmatpush1.bf16.msra.mxu0 %v13706_v14  ;;  %v13734_v42 = vld [vmem:[%s14931_s29 + $0x4e4] ss:$48 sps:$4 sm:$0xff]   ;;  %v13736_v44 = vld [vmem:[%s14931_s29 + $0x4e0] ss:$48 sps:$4 sm:$0xff]   ;;  %v13817_v61 = vld [vmem:[%s14931_s29 + $0x848] ss:$48 sps:$4 sm:$0xff]  }
  0x39   : > { %2435 = vmatprep.subr.bf16.mxu0 %v13707_v15  ;;  %v13737_v46 = vld [vmem:[%s14931_s29 + $0x544] ss:$48 sps:$4 sm:$0xff]   ;;  %v13739_v48 = vld [vmem:[%s14931_s29 + $0x540] ss:$48 sps:$4 sm:$0xff]   ;;  %2563 = vmatpush1.bf16.msra.mxu1 %v13799_v45  ;;  %v13823_v63 = vld [vmem:[%s14931_s29 + $0x1c] ss:$48 sps:$4 sm:$0xff]  }
  0x3a   : > { %v13740_v50 = vld [vmem:[%s14931_s29 + $0x5a4] ss:$48 sps:$4 sm:$0xff]   ;;  %2564 = vmatprep.subr.bf16.mxu1 %v13803_v47  ;;  %v13742_v52 = vld [vmem:[%s14931_s29 + $0x5a0] ss:$48 sps:$4 sm:$0xff]   ;;  %v699_v0 = vld [vmem:[#allocation2 + $0x28] sm:$0xff]  ;;  %vm3014_vm3 = vcmask 64512  }
  0x3b   : > { %v694_v53 = vld [vmem:[#allocation2] sm:$0xff]  ;;  %v696_v62 = vld [vmem:[#allocation2 + $0x10] sm:$0xff]  ;;  %v13821_v3 = vld [vmem:[%s14931_s29 + $0x18] ss:$48 sps:$4 sm:$0xff]   ;;  %p13116_p5 = scmp.ne.s32.totalorder %s14917_s19, 1 }
  0x3c   : > { %2436 = vmatpush1.bf16.msra.mxu0 %v13709_v16  ;;  %v13745_v56 = vld [vmem:[%s14931_s29 + $0x604] ss:$48 sps:$4 sm:$0xff]   ;;  %v15048_v58 = vpack.c.bf16 %v697_v54, %v694_v53  ;;  %v13743_v59 = vld [vmem:[%s14931_s29 + $0x600] ss:$48 sps:$4 sm:$0xff]   ;;  %v15059_v4 = vpack.c.bf16 %v699_v0, %v696_v62  ;;  %v13829_v5 = vld [vmem:[%s14931_s29 + $0x7c] ss:$48 sps:$4 sm:$0xff]  }
  0x3d   : > { %2437 = vmatprep.subr.bf16.mxu0 %v13710_v17  ;;  %2565 = vmatpush1.bf16.msra.mxu1 %v13805_v49  ;;  %v13748_v60 = vld [vmem:[%s14931_s29 + $0x664] ss:$48 sps:$4 sm:$0xff]   ;;  %v13746_v1 = vld [vmem:[%s14931_s29 + $0x660] ss:$48 sps:$4 sm:$0xff]   ;;  %v13827_v9 = vld [vmem:[%s14931_s29 + $0x78] ss:$48 sps:$4 sm:$0xff]  }
  0x3e   : > { %2566 = vmatprep.subr.bf16.mxu1 %v13809_v51  ;;  %v13751_v2 = vld [vmem:[%s14931_s29 + $0x6c4] ss:$48 sps:$4 sm:$0xff]   ;;  %v13749_v6 = vld [vmem:[%s14931_s29 + $0x6c0] ss:$48 sps:$4 sm:$0xff]   ;;  %v13835_v10 = vld [vmem:[%s14931_s29 + $0xdc] ss:$48 sps:$4 sm:$0xff]  }
  0x3f   : > { %v13754_v7 = vld [vmem:[%s14931_s29 + $0x724] ss:$48 sps:$4 sm:$0xff]   ;;  %v13752_v11 = vld [vmem:[%s14931_s29 + $0x720] ss:$48 sps:$4 sm:$0xff]   ;;  %v13833_v13 = vld [vmem:[%s14931_s29 + $0xd8] ss:$48 sps:$4 sm:$0xff]  }
  0x40   : > { %2438 = vmatpush1.bf16.msra.mxu0 %v13712_v18  ;;  %v13757_v12 = vld [vmem:[%s14931_s29 + $0x784] ss:$48 sps:$4 sm:$0xff]   ;;  %v13841_v14 = vld [vmem:[%s14931_s29 + $0x13c] ss:$48 sps:$4 sm:$0xff]   ;;  %v13755_v15 = vld [vmem:[%s14931_s29 + $0x780] ss:$48 sps:$4 sm:$0xff]  }
  0x41   : > { %2439 = vmatprep.subr.bf16.mxu0 %v13713_v19  ;;  %2567 = vmatpush1.bf16.msra.mxu1 %v13811_v55  ;;  %v13760_v16 = vld [vmem:[%s14931_s29 + $0x7e4] ss:$48 sps:$4 sm:$0xff]   ;;  %v13839_v17 = vld [vmem:[%s14931_s29 + $0x138] ss:$48 sps:$4 sm:$0xff]   ;;  %v13847_v18 = vld [vmem:[%s14931_s29 + $0x19c] ss:$48 sps:$4 sm:$0xff]  }
  0x42   : > { %2568 = vmatprep.subr.bf16.mxu1 %v13815_v57  ;;  %v13758_v19 = vld [vmem:[%s14931_s29 + $0x7e0] ss:$48 sps:$4 sm:$0xff]   ;;  %v13763_v20 = vld [vmem:[%s14931_s29 + $0x844] ss:$48 sps:$4 sm:$0xff]   ;;  %v13845_v21 = vld [vmem:[%s14931_s29 + $0x198] ss:$48 sps:$4 sm:$0xff]  }
  0x43   : > { %v13772_v33 = vld [vmem:[%s14931_s29 + $0xcc] ss:$48 sps:$4 sm:$0xff]   ;;  %v13863_v34 = vld [vmem:[%s14931_s29 + $0x2b8] ss:$48 sps:$4 sm:$0xff]   ;;  %vm14830_vm4 = vmmov (!%p13116_p5), 0   ;;  %s16845_s21 = sld [smem:[#allocation12_spill]] (!%p13116_p5) }
  0x44   : > { %2440 = vmatpush1.bf16.msra.mxu0 %v13715_v23  ;;  %v13853_v23 = vld [vmem:[%s14931_s29 + $0x1fc] ss:$48 sps:$4 sm:$0xff]   ;;  %v13770_v36 = vld [vmem:[%s14931_s29 + $0xc8] ss:$48 sps:$4 sm:$0xff]   ;;  %s16846_s2 = sld [smem:[#allocation13_spill]] (!%p13116_p5) }
  0x45   : > { %2441 = vmatprep.subr.bf16.mxu0 %v13716_v24  ;;  %2569 = vmatpush1.bf16.msra.mxu1 %v13817_v61  ;;  %v13761_v24 = vld [vmem:[%s14931_s29 + $0x840] ss:$48 sps:$4 sm:$0xff]   ;;  %v13775_v37 = vld [vmem:[%s14931_s29 + $0x12c] ss:$48 sps:$4 sm:$0xff]   ;;  %v13893_v54 = vld [vmem:[%s14931_s29 + $0x498] ss:$48 sps:$4 sm:$0xff]  }
  0x46   : > { %2685 = vmatprep.subr.bf16.mxu1 %v13823_v63  ;;  %v13877_v39 = vld [vmem:[%s14931_s29 + $0x37c] ss:$48 sps:$4 sm:$0xff]   ;;  %v13800_v61 = vld [vmem:[%s14931_s29 + $0x308] ss:$48 sps:$4 sm:$0xff]  }
  0x47   : > { %v13778_v41 = vld [vmem:[%s14931_s29 + $0x18c] ss:$48 sps:$4 sm:$0xff]   ;;  %v13905_v63 = vld [vmem:[%s14931_s29 + $0x558] ss:$48 sps:$4 sm:$0xff]  }
  0x48   : > { %2442 = vmatpush1.bf16.msra.mxu0 %v13718_v25  ;;  %12247 = vmatmul.mubr.msk.bf16.vlgmr.msra.gmra.mrb[0].mxu1 %vm2423_vm1, %v15059_v4  ;;  %v13766_v25 = vld [vmem:[%s14931_s29 + $0xc] ss:$48 sps:$4 sm:$0xff]  }
  0x49   : > { %2443 = vmatprep.subr.bf16.mxu0 %v13719_v26  ;;  %2686 = vmatpush1.bf16.msra.mxu1 %v13821_v3  ;;  %v13851_v26 = vld [vmem:[%s14931_s29 + $0x1f8] ss:$48 sps:$4 sm:$0xff]   ;;  %v13883_v43 = vld [vmem:[%s14931_s29 + $0x3dc] ss:$48 sps:$4 sm:$0xff]  }
  0x4a   : > { %2687 = vmatprep.subr.bf16.mxu1 %v13829_v5  ;;  %2717 = vmatprep.mubr.bf16.mxu1 %v15012_v22  ;;  %v13784_v45 = vld [vmem:[%s14931_s29 + $0x1ec] ss:$48 sps:$4 sm:$0xff]   ;;  %v13911_v3 = vld [vmem:[%s14931_s29 + $0x5b8] ss:$48 sps:$4 sm:$0xff]  }
  0x4b   : > { %v13889_v47 = vld [vmem:[%s14931_s29 + $0x43c] ss:$48 sps:$4 sm:$0xff]  }
  0x4c   : > { %2444 = vmatpush1.bf16.msra.mxu0 %v13721_v27  ;;  %v13859_v27 = vld [vmem:[%s14931_s29 + $0x25c] ss:$48 sps:$4 sm:$0xff]  }
  0x4d   : > { %2445 = vmatprep.subr.bf16.mxu0 %v13722_v28  ;;  %2688 = vmatpush1.bf16.msra.mxu1 %v13827_v9  ;;  %v13764_v28 = vld [vmem:[%s14931_s29 + $0x8] ss:$48 sps:$4 sm:$0xff]   ;;  %v13790_v49 = vld [vmem:[%s14931_s29 + $0x24c] ss:$48 sps:$4 sm:$0xff]  }
  0x4e   : > { %2689 = vmatprep.subr.bf16.mxu1 %v13835_v10  ;;  %v13895_v51 = vld [vmem:[%s14931_s29 + $0x49c] ss:$48 sps:$4 sm:$0xff]   ;;  %v13917_v9 = vld [vmem:[%s14931_s29 + $0x618] ss:$48 sps:$4 sm:$0xff]  }
  0x4f   : > { %v13796_v53 = vld [vmem:[%s14931_s29 + $0x2ac] ss:$48 sps:$4 sm:$0xff]  }
  0x50   : > { %2446 = vmatpush1.bf16.msra.mxu0 %v13724_v29  ;;  %v13769_v29 = vld [vmem:[%s14931_s29 + $0x6c] ss:$48 sps:$4 sm:$0xff]  }
  0x51   : > { %2447 = vmatprep.subr.bf16.mxu0 %v13725_v30  ;;  %2690 = vmatpush1.bf16.msra.mxu1 %v13833_v13  ;;  %v13857_v30 = vld [vmem:[%s14931_s29 + $0x258] ss:$48 sps:$4 sm:$0xff]   ;;  %v13901_v55 = vld [vmem:[%s14931_s29 + $0x4fc] ss:$48 sps:$4 sm:$0xff]  }
  0x52   : > { %2691 = vmatprep.subr.bf16.mxu1 %v13841_v14  ;;  %v13802_v57 = vld [vmem:[%s14931_s29 + $0x30c] ss:$48 sps:$4 sm:$0xff]   ;;  %v13923_v13 = vld [vmem:[%s14931_s29 + $0x678] ss:$48 sps:$4 sm:$0xff]  }
  0x53   : > { %v13808_v62 = vld [vmem:[%s14931_s29 + $0x36c] ss:$48 sps:$4 sm:$0xff]  }
  0x54   : > { %2448 = vmatpush1.bf16.msra.mxu0 %v13727_v31  ;;  %v13865_v31 = vld [vmem:[%s14931_s29 + $0x2bc] ss:$48 sps:$4 sm:$0xff]  }
  0x55   : > { %2449 = vmatprep.subr.bf16.mxu0 %v13728_v32  ;;  %2692 = vmatpush1.bf16.msra.mxu1 %v13839_v17  ;;  %v13767_v32 = vld [vmem:[%s14931_s29 + $0x68] ss:$48 sps:$4 sm:$0xff]   ;;  %v13913_v0 = vld [vmem:[%s14931_s29 + $0x5bc] ss:$48 sps:$4 sm:$0xff]  }
  0x56   : > { %2693 = vmatprep.subr.bf16.mxu1 %v13847_v18  ;;  %v13919_v5 = vld [vmem:[%s14931_s29 + $0x61c] ss:$48 sps:$4 sm:$0xff]   ;;  %v13929_v17 = vld [vmem:[%s14931_s29 + $0x6d8] ss:$48 sps:$4 sm:$0xff]  }
  0x57   : > { %v13925_v10 = vld [vmem:[%s14931_s29 + $0x67c] ss:$48 sps:$4 sm:$0xff]  }
  0x58   : > { %2450 = vmatpush1.bf16.msra.mxu0 %v13730_v35  ;;  %v13871_v35 = vld [vmem:[%s14931_s29 + $0x31c] ss:$48 sps:$4 sm:$0xff]  }
  0x59   : > { %2451 = vmatprep.subr.bf16.mxu0 %v13731_v38  ;;  %2694 = vmatpush1.bf16.msra.mxu1 %v13845_v21  ;;  %v13869_v38 = vld [vmem:[%s14931_s29 + $0x318] ss:$48 sps:$4 sm:$0xff]   ;;  %v13931_v14 = vld [vmem:[%s14931_s29 + $0x6dc] ss:$48 sps:$4 sm:$0xff]  }
  0x5a   : > { %2695 = vmatprep.subr.bf16.mxu1 %v13853_v23  ;;  %v13937_v18 = vld [vmem:[%s14931_s29 + $0x73c] ss:$48 sps:$4 sm:$0xff]   ;;  %v13935_v21 = vld [vmem:[%s14931_s29 + $0x738] ss:$48 sps:$4 sm:$0xff]  }
  0x5b   : > { %v13943_v23 = vld [vmem:[%s14931_s29 + $0x79c] ss:$48 sps:$4 sm:$0xff]  }
  0x5c   : > { %2452 = vmatpush1.bf16.msra.mxu0 %v13733_v40  ;;  %v13773_v40 = vld [vmem:[%s14931_s29 + $0x128] ss:$48 sps:$4 sm:$0xff]  }
  0x5d   : > { %2453 = vmatprep.subr.bf16.mxu0 %v13734_v42  ;;  %2696 = vmatpush1.bf16.msra.mxu1 %v13851_v26  ;;  %v13875_v42 = vld [vmem:[%s14931_s29 + $0x378] ss:$48 sps:$4 sm:$0xff]  }
  0x5e   : > { %2697 = vmatprep.subr.bf16.mxu1 %v13859_v27  ;;  %v13941_v26 = vld [vmem:[%s14931_s29 + $0x798] ss:$48 sps:$4 sm:$0xff]   ;;  %v13949_v27 = vld [vmem:[%s14931_s29 + $0x7fc] ss:$48 sps:$4 sm:$0xff]  }
  0x60   : > { %2454 = vmatpush1.bf16.msra.mxu0 %v13736_v44  ;;  %v13776_v44 = vld [vmem:[%s14931_s29 + $0x188] ss:$48 sps:$4 sm:$0xff]  }
  0x61   : > { %2455 = vmatprep.subr.bf16.mxu0 %v13737_v46  ;;  %2698 = vmatpush1.bf16.msra.mxu1 %v13857_v30  ;;  %v13881_v46 = vld [vmem:[%s14931_s29 + $0x3d8] ss:$48 sps:$4 sm:$0xff]  }
  0x62   : > { %2699 = vmatprep.subr.bf16.mxu1 %v13865_v31  ;;  %v13947_v30 = vld [vmem:[%s14931_s29 + $0x7f8] ss:$48 sps:$4 sm:$0xff]   ;;  %v13955_v31 = vld [vmem:[%s14931_s29 + $0x85c] ss:$48 sps:$4 sm:$0xff]  }
  0x64   : > { %2456 = vmatpush1.bf16.msra.mxu0 %v13739_v48  ;;  %v13782_v48 = vld [vmem:[%s14931_s29 + $0x1e8] ss:$48 sps:$4 sm:$0xff]  }
  0x65   : > { %2457 = vmatprep.subr.bf16.mxu0 %v13740_v50  ;;  %2700 = vmatpush1.bf16.msra.mxu1 %v13863_v34  ;;  %v13887_v50 = vld [vmem:[%s14931_s29 + $0x438] ss:$48 sps:$4 sm:$0xff]  }
  0x66   : > { %2701 = vmatprep.subr.bf16.mxu1 %v13871_v35  ;;  %v13953_v34 = vld [vmem:[%s14931_s29 + $0x858] ss:$48 sps:$4 sm:$0xff]   ;;  %v13854_v35 = vld [vmem:[%s14931_s29 + $0x70] ss:$48 sps:$4 sm:$0xff]  }
  0x68   : > { %2458 = vmatpush1.bf16.msra.mxu0 %v13742_v52  ;;  %v13788_v52 = vld [vmem:[%s14931_s29 + $0x248] ss:$48 sps:$4 sm:$0xff]  }
  0x69   : > { %2470 = vmatprep.subr.bf16.mxu0 %v13745_v56  ;;  %2702 = vmatpush1.bf16.msra.mxu1 %v13869_v38  ;;  %v13794_v56 = vld [vmem:[%s14931_s29 + $0x2a8] ss:$48 sps:$4 sm:$0xff]   ;;  %v13868_v38 = vld [vmem:[%s14931_s29 + $0x134] ss:$48 sps:$4 sm:$0xff]  }
  0x6a   : > { %2703 = vmatprep.subr.bf16.mxu1 %v13877_v39  ;;  %v13866_v39 = vld [vmem:[%s14931_s29 + $0x130] ss:$48 sps:$4 sm:$0xff]  }
  0x6b   : > { %2460 = vmatmul.mubr.bf16.vlgmr.msra.gmra.mrb[0].mxu0 %v15048_v58 }
  0x6c   : > { %2471 = vmatpush1.bf16.msra.mxu0 %v13743_v59  ;;  %2502 = vmatprep.mubr.bf16.mxu0 %v14826_v8  ;;  %v13899_v59 = vld [vmem:[%s14931_s29 + $0x4f8] ss:$48 sps:$4 sm:$0xff]  }
  0x6d   : > { %2472 = vmatprep.subr.bf16.mxu0 %v13748_v60  ;;  %2704 = vmatpush1.bf16.msra.mxu1 %v13875_v42  ;;  %v13907_v60 = vld [vmem:[%s14931_s29 + $0x55c] ss:$48 sps:$4 sm:$0xff]   ;;  %v13880_v42 = vld [vmem:[%s14931_s29 + $0x1f4] ss:$48 sps:$4 sm:$0xff]  }
  0x6e   : > { %2705 = vmatprep.subr.bf16.mxu1 %v13883_v43  ;;  %v13878_v43 = vld [vmem:[%s14931_s29 + $0x1f0] ss:$48 sps:$4 sm:$0xff]  }
  0x70   : > { %2473 = vmatpush1.bf16.msra.mxu0 %v13746_v1  ;;  %v13806_v1 = vld [vmem:[%s14931_s29 + $0x368] ss:$48 sps:$4 sm:$0xff]  }
  0x71   : > { %2474 = vmatprep.subr.bf16.mxu0 %v13751_v2  ;;  %2706 = vmatpush1.bf16.msra.mxu1 %v13881_v46  ;;  %v13814_v2 = vld [vmem:[%s14931_s29 + $0x3cc] ss:$48 sps:$4 sm:$0xff]   ;;  %v13892_v46 = vld [vmem:[%s14931_s29 + $0x2b4] ss:$48 sps:$4 sm:$0xff]  }
  0x72   : > { %2707 = vmatprep.subr.bf16.mxu1 %v13889_v47  ;;  %v13890_v47 = vld [vmem:[%s14931_s29 + $0x2b0] ss:$48 sps:$4 sm:$0xff]  }
  0x74   : > { %2475 = vmatpush1.bf16.msra.mxu0 %v13749_v6  ;;  %v13812_v6 = vld [vmem:[%s14931_s29 + $0x3c8] ss:$48 sps:$4 sm:$0xff]  }
  0x75   : > { %2476 = vmatprep.subr.bf16.mxu0 %v13754_v7  ;;  %2708 = vmatpush1.bf16.msra.mxu1 %v13887_v50  ;;  %v13820_v7 = vld [vmem:[%s14931_s29 + $0x42c] ss:$48 sps:$4 sm:$0xff]   ;;  %v13904_v50 = vld [vmem:[%s14931_s29 + $0x374] ss:$48 sps:$4 sm:$0xff]  }
  0x76   : > { %2709 = vmatprep.subr.bf16.mxu1 %v13895_v51  ;;  %v13902_v51 = vld [vmem:[%s14931_s29 + $0x370] ss:$48 sps:$4 sm:$0xff]  }
  0x78   : > { %2477 = vmatpush1.bf16.msra.mxu0 %v13752_v11  ;;  %v13818_v11 = vld [vmem:[%s14931_s29 + $0x428] ss:$48 sps:$4 sm:$0xff]  }
  0x79   : > { %2478 = vmatprep.subr.bf16.mxu0 %v13757_v12  ;;  %2710 = vmatpush1.bf16.msra.mxu1 %v13893_v54  ;;  %v13826_v12 = vld [vmem:[%s14931_s29 + $0x48c] ss:$48 sps:$4 sm:$0xff]   ;;  %v13916_v54 = vld [vmem:[%s14931_s29 + $0x434] ss:$48 sps:$4 sm:$0xff]  }
  0x7a   : > { %2711 = vmatprep.subr.bf16.mxu1 %v13901_v55  ;;  %v13914_v55 = vld [vmem:[%s14931_s29 + $0x430] ss:$48 sps:$4 sm:$0xff]  }
  0x7c   : > { %2479 = vmatpush1.bf16.msra.mxu0 %v13755_v15  ;;  %v13824_v15 = vld [vmem:[%s14931_s29 + $0x488] ss:$48 sps:$4 sm:$0xff]  }
  0x7d   : > { %2480 = vmatprep.subr.bf16.mxu0 %v13760_v16  ;;  %2712 = vmatpush1.bf16.msra.mxu1 %v13899_v59  ;;  %v13832_v16 = vld [vmem:[%s14931_s29 + $0x4ec] ss:$48 sps:$4 sm:$0xff]   ;;  %v13928_v59 = vld [vmem:[%s14931_s29 + $0x4f4] ss:$48 sps:$4 sm:$0xff]  }
  0x7e   : > { %2713 = vmatprep.subr.bf16.mxu1 %v13907_v60  ;;  %v13926_v60 = vld [vmem:[%s14931_s29 + $0x4f0] ss:$48 sps:$4 sm:$0xff]  }
  0x80   : > { %2481 = vmatpush1.bf16.msra.mxu0 %v13758_v19  ;;  %v13830_v19 = vld [vmem:[%s14931_s29 + $0x4e8] ss:$48 sps:$4 sm:$0xff]  }
  0x81   : > { %2482 = vmatprep.subr.bf16.mxu0 %v13763_v20  ;;  %2714 = vmatpush1.bf16.msra.mxu1 %v13905_v63  ;;  %v13838_v20 = vld [vmem:[%s14931_s29 + $0x54c] ss:$48 sps:$4 sm:$0xff]   ;;  %v13940_v63 = vld [vmem:[%s14931_s29 + $0x5b4] ss:$48 sps:$4 sm:$0xff]  }
  0x82   : > { %2715 = vmatprep.subr.bf16.mxu1 %v13913_v0  ;;  %v13938_v0 = vld [vmem:[%s14931_s29 + $0x5b0] ss:$48 sps:$4 sm:$0xff]  }
  0x84   : > { %2483 = vmatpush1.bf16.msra.mxu0 %v13761_v24  ;;  %v13836_v24 = vld [vmem:[%s14931_s29 + $0x548] ss:$48 sps:$4 sm:$0xff]  }
  0x85   : > { %2513 = vmatprep.subr.bf16.mxu0 %v13766_v25  ;;  %2716 = vmatpush1.bf16.msra.mxu1 %v13911_v3  ;;  %v13844_v25 = vld [vmem:[%s14931_s29 + $0x5ac] ss:$48 sps:$4 sm:$0xff]   ;;  %v13952_v3 = vld [vmem:[%s14931_s29 + $0x674] ss:$48 sps:$4 sm:$0xff]  }
  0x86   : > { %2728 = vmatprep.subr.bf16.mxu1 %v13919_v5  ;;  %v13950_v5 = vld [vmem:[%s14931_s29 + $0x670] ss:$48 sps:$4 sm:$0xff]  }
  0x87   : > { %12246 = vmatmul.mubr.msk.bf16.vlgmr.msra.gmra.mrb[0].mxu0 %vm2423_vm1, %v15059_v4 }
  0x88   : > { %2514 = vmatpush1.bf16.msra.mxu0 %v13764_v28  ;;  %2545 = vmatprep.mubr.bf16.mxu0 %v15012_v22  ;;  %v13842_v28 = vld [vmem:[%s14931_s29 + $0x5a8] ss:$48 sps:$4 sm:$0xff]  }
  0x89   : > { %2515 = vmatprep.subr.bf16.mxu0 %v13769_v29  ;;  %2718 = vmatmul.mubr.bf16.vlgmr.msra.gmra.mrb[4].mxu1 %v15048_v58  ;;  %v13850_v29 = vld [vmem:[%s14931_s29 + $0x14] ss:$48 sps:$4 sm:$0xff]  }
  0x8a   : > { %2729 = vmatpush1.bf16.msra.mxu1 %v13917_v9  ;;  %2760 = vmatprep.mubr.bf16.mxu1 %v14826_v8  ;;  %v13961_v9 = vld [vmem:[%s14931_s29 + $0x734] ss:$48 sps:$4 sm:$0xff]  }
  0x8b   : > { %2730 = vmatprep.subr.bf16.mxu1 %v13925_v10  ;;  %v13959_v10 = vld [vmem:[%s14931_s29 + $0x730] ss:$48 sps:$4 sm:$0xff]  }
  0x8c   : > { %2516 = vmatpush1.bf16.msra.mxu0 %v13767_v32  ;;  %v13848_v32 = vld [vmem:[%s14931_s29 + $0x10] ss:$48 sps:$4 sm:$0xff]  }
  0x8d   : > { %2517 = vmatprep.subr.bf16.mxu0 %v13772_v33  ;;  %v13856_v33 = vld [vmem:[%s14931_s29 + $0x74] ss:$48 sps:$4 sm:$0xff]  }
  0x8e   : > { %2731 = vmatpush1.bf16.msra.mxu1 %v13923_v13  ;;  %v13967_v13 = vld [vmem:[%s14931_s29 + $0x7f4] ss:$48 sps:$4 sm:$0xff]  }
  0x8f   : > { %2732 = vmatprep.subr.bf16.mxu1 %v13931_v14  ;;  %v13965_v14 = vld [vmem:[%s14931_s29 + $0x7f0] ss:$48 sps:$4 sm:$0xff]  }
  0x90   : > { %2518 = vmatpush1.bf16.msra.mxu0 %v13770_v36  ;;  %v13862_v36 = vld [vmem:[%s14931_s29 + $0xd4] ss:$48 sps:$4 sm:$0xff]  }
  0x91   : > { %2519 = vmatprep.subr.bf16.mxu0 %v13775_v37  ;;  %v13860_v37 = vld [vmem:[%s14931_s29 + $0xd0] ss:$48 sps:$4 sm:$0xff]  }
  0x92   : > { %2733 = vmatpush1.bf16.msra.mxu1 %v13929_v17  ;;  %v13973_v17 = vld [vmem:[%s14931_s29 + $0x24] ss:$48 sps:$4 sm:$0xff]  }
  0x93   : > { %2734 = vmatprep.subr.bf16.mxu1 %v13937_v18  ;;  %v13971_v18 = vld [vmem:[%s14931_s29 + $0x20] ss:$48 sps:$4 sm:$0xff]  }
  0x94   : > { %2520 = vmatpush1.bf16.msra.mxu0 %v13773_v40  ;;  %v13874_v40 = vld [vmem:[%s14931_s29 + $0x194] ss:$48 sps:$4 sm:$0xff]  }
  0x95   : > { %2521 = vmatprep.subr.bf16.mxu0 %v13778_v41  ;;  %v13872_v41 = vld [vmem:[%s14931_s29 + $0x190] ss:$48 sps:$4 sm:$0xff]  }
  0x96   : > { %2735 = vmatpush1.bf16.msra.mxu1 %v13935_v21  ;;  %v13979_v21 = vld [vmem:[%s14931_s29 + $0xe4] ss:$48 sps:$4 sm:$0xff]  }
  0x97   : > { %2736 = vmatprep.subr.bf16.mxu1 %v13943_v23  ;;  %v13977_v23 = vld [vmem:[%s14931_s29 + $0xe0] ss:$48 sps:$4 sm:$0xff]  }
  0x98   : > { %2522 = vmatpush1.bf16.msra.mxu0 %v13776_v44  ;;  %v13886_v44 = vld [vmem:[%s14931_s29 + $0x254] ss:$48 sps:$4 sm:$0xff]  }
  0x99   : > { %2523 = vmatprep.subr.bf16.mxu0 %v13784_v45  ;;  %v13884_v45 = vld [vmem:[%s14931_s29 + $0x250] ss:$48 sps:$4 sm:$0xff]  }
  0x9a   : > { %2737 = vmatpush1.bf16.msra.mxu1 %v13941_v26  ;;  %v13985_v26 = vld [vmem:[%s14931_s29 + $0x1a4] ss:$48 sps:$4 sm:$0xff]  }
  0x9b   : > { %2738 = vmatprep.subr.bf16.mxu1 %v13949_v27  ;;  %v13983_v27 = vld [vmem:[%s14931_s29 + $0x1a0] ss:$48 sps:$4 sm:$0xff]  }
  0x9c   : > { %2524 = vmatpush1.bf16.msra.mxu0 %v13782_v48  ;;  %v13898_v48 = vld [vmem:[%s14931_s29 + $0x314] ss:$48 sps:$4 sm:$0xff]  }
  0x9d   : > { %2525 = vmatprep.subr.bf16.mxu0 %v13790_v49  ;;  %v13896_v49 = vld [vmem:[%s14931_s29 + $0x310] ss:$48 sps:$4 sm:$0xff]  }
  0x9e   : > { %2739 = vmatpush1.bf16.msra.mxu1 %v13947_v30  ;;  %v13989_v30 = vld [vmem:[%s14931_s29 + $0x260] ss:$48 sps:$4 sm:$0xff]  }
  0x9f   : > { %2740 = vmatprep.subr.bf16.mxu1 %v13955_v31  ;;  %v13994_v31 = vld [vmem:[%s14931_s29 + $0x2c4] ss:$48 sps:$4 sm:$0xff]  }
  0xa0   : > { %2526 = vmatpush1.bf16.msra.mxu0 %v13788_v52  ;;  %v13910_v52 = vld [vmem:[%s14931_s29 + $0x3d4] ss:$48 sps:$4 sm:$0xff]  }
  0xa1   : > { %2527 = vmatprep.subr.bf16.mxu0 %v13796_v53  ;;  %v13908_v53 = vld [vmem:[%s14931_s29 + $0x3d0] ss:$48 sps:$4 sm:$0xff]  }
  0xa2   : > { %2741 = vmatpush1.bf16.msra.mxu1 %v13953_v34  ;;  %v13995_v34 = vld [vmem:[%s14931_s29 + $0x320] ss:$48 sps:$4 sm:$0xff]  }
  0xa4   : > { %2528 = vmatpush1.bf16.msra.mxu0 %v13794_v56  ;;  %v13922_v56 = vld [vmem:[%s14931_s29 + $0x494] ss:$48 sps:$4 sm:$0xff]  }
  0xa5   : > { %2529 = vmatprep.subr.bf16.mxu0 %v13802_v57  ;;  %12249 = vmatmul.mubr.msk.bf16.vlgmr.msra.gmra.mrb[4].mxu1 %vm2423_vm1, %v15059_v4  ;;  %v13920_v57 = vld [vmem:[%s14931_s29 + $0x490] ss:$48 sps:$4 sm:$0xff]  }
  0xa6   : > { %2889 = vmatprep.mubr.bf16.mxu1 %v15012_v22 }
  0xa8   : > { %2530 = vmatpush1.bf16.msra.mxu0 %v13800_v61  ;;  %v13934_v61 = vld [vmem:[%s14931_s29 + $0x554] ss:$48 sps:$4 sm:$0xff]  }
  0xa9   : > { %2531 = vmatprep.subr.bf16.mxu0 %v13808_v62  ;;  %v13932_v62 = vld [vmem:[%s14931_s29 + $0x550] ss:$48 sps:$4 sm:$0xff]  }
  0xac   : > { %2532 = vmatpush1.bf16.msra.mxu0 %v13806_v1  ;;  %v13946_v1 = vld [vmem:[%s14931_s29 + $0x614] ss:$48 sps:$4 sm:$0xff]  }
  0xad   : > { %2533 = vmatprep.subr.bf16.mxu0 %v13814_v2  ;;  %v13944_v2 = vld [vmem:[%s14931_s29 + $0x610] ss:$48 sps:$4 sm:$0xff]  }
  0xb0   : > { %2534 = vmatpush1.bf16.msra.mxu0 %v13812_v6  ;;  %v13958_v6 = vld [vmem:[%s14931_s29 + $0x6d4] ss:$48 sps:$4 sm:$0xff]  }
  0xb1   : > { %2535 = vmatprep.subr.bf16.mxu0 %v13820_v7  ;;  %v13956_v7 = vld [vmem:[%s14931_s29 + $0x6d0] ss:$48 sps:$4 sm:$0xff]  }
  0xb4   : > { %2536 = vmatpush1.bf16.msra.mxu0 %v13818_v11  ;;  %v13964_v11 = vld [vmem:[%s14931_s29 + $0x794] ss:$48 sps:$4 sm:$0xff]  }
  0xb5   : > { %2537 = vmatprep.subr.bf16.mxu0 %v13826_v12  ;;  %v13962_v12 = vld [vmem:[%s14931_s29 + $0x790] ss:$48 sps:$4 sm:$0xff]  }
  0xb8   : > { %2538 = vmatpush1.bf16.msra.mxu0 %v13824_v15  ;;  %v13970_v15 = vld [vmem:[%s14931_s29 + $0x854] ss:$48 sps:$4 sm:$0xff]  }
  0xb9   : > { %2539 = vmatprep.subr.bf16.mxu0 %v13832_v16  ;;  %v13968_v16 = vld [vmem:[%s14931_s29 + $0x850] ss:$48 sps:$4 sm:$0xff]  }
  0xbc   : > { %2540 = vmatpush1.bf16.msra.mxu0 %v13830_v19  ;;  %v13976_v19 = vld [vmem:[%s14931_s29 + $0x84] ss:$48 sps:$4 sm:$0xff]  }
  0xbd   : > { %2541 = vmatprep.subr.bf16.mxu0 %v13838_v20  ;;  %v13974_v20 = vld [vmem:[%s14931_s29 + $0x80] ss:$48 sps:$4 sm:$0xff]  }
  0xc0   : > { %2542 = vmatpush1.bf16.msra.mxu0 %v13836_v24  ;;  %v13982_v24 = vld [vmem:[%s14931_s29 + $0x144] ss:$48 sps:$4 sm:$0xff]  }
  0xc1   : > { %2543 = vmatprep.subr.bf16.mxu0 %v13844_v25  ;;  %v13980_v25 = vld [vmem:[%s14931_s29 + $0x140] ss:$48 sps:$4 sm:$0xff]  }
  0xc4   : > { %2544 = vmatpush1.bf16.msra.mxu0 %v13842_v28  ;;  %v13988_v28 = vld [vmem:[%s14931_s29 + $0x204] ss:$48 sps:$4 sm:$0xff]  }
  0xc5   : > { %2599 = vmatprep.subr.bf16.mxu0 %v13850_v29  ;;  %v13991_v29 = vld [vmem:[%s14931_s29 + $0x264] ss:$48 sps:$4 sm:$0xff]  }
  0xc7   : > { %2546 = vmatmul.mubr.bf16.vlgmr.msra.gmra.mrb[4].mxu0 %v15048_v58 }
  0xc8   : > { %2600 = vmatpush1.bf16.msra.mxu0 %v13848_v32  ;;  %2631 = vmatprep.mubr.bf16.mxu0 %v15012_v22  ;;  %v13992_v32 = vld [vmem:[%s14931_s29 + $0x2c0] ss:$48 sps:$4 sm:$0xff]  }
  0xc9   : > { %2601 = vmatprep.subr.bf16.mxu0 %v13856_v33  ;;  %v13997_v33 = vld [vmem:[%s14931_s29 + $0x324] ss:$48 sps:$4 sm:$0xff]  }
  0xcc   : > { %2602 = vmatpush1.bf16.msra.mxu0 %v13854_v35  ;;  %v14000_v35 = vld [vmem:[%s14931_s29 + $0x384] ss:$48 sps:$4 sm:$0xff]  }
  0xcd   : > { %2603 = vmatprep.subr.bf16.mxu0 %v13862_v36  ;;  %v13998_v36 = vld [vmem:[%s14931_s29 + $0x380] ss:$48 sps:$4 sm:$0xff]  }
  0xd0   : > { %2604 = vmatpush1.bf16.msra.mxu0 %v13860_v37 }
  0xd1   : > { %2605 = vmatprep.subr.bf16.mxu0 %v13868_v38  ;;  %v14003_v38 = vld [vmem:[%s14931_s29 + $0x3e4] ss:$48 sps:$4 sm:$0xff]  }
  0xd4   : > { %2606 = vmatpush1.bf16.msra.mxu0 %v13866_v39 }
  0xd5   : > { %2607 = vmatprep.subr.bf16.mxu0 %v13874_v40 }
  0xd8   : > { %2608 = vmatpush1.bf16.msra.mxu0 %v13872_v41 }
  0xd9   : > { %2609 = vmatprep.subr.bf16.mxu0 %v13880_v42  ;;  %v14001_v42 = vld [vmem:[%s14931_s29 + $0x3e0] ss:$48 sps:$4 sm:$0xff]  }
  0xdc   : > { %2610 = vmatpush1.bf16.msra.mxu0 %v13878_v43  ;;  %v14006_v43 = vld [vmem:[%s14931_s29 + $0x444] ss:$48 sps:$4 sm:$0xff]  }
  0xdd   : > { %2611 = vmatprep.subr.bf16.mxu0 %v13886_v44  ;;  %v14004_v44 = vld [vmem:[%s14931_s29 + $0x440] ss:$48 sps:$4 sm:$0xff]  }
  0xe0   : > { %2612 = vmatpush1.bf16.msra.mxu0 %v13884_v45  ;;  %v14009_v45 = vld [vmem:[%s14931_s29 + $0x4a4] ss:$48 sps:$4 sm:$0xff]  }
  0xe1   : > { %2613 = vmatprep.subr.bf16.mxu0 %v13892_v46  ;;  %v14007_v46 = vld [vmem:[%s14931_s29 + $0x4a0] ss:$48 sps:$4 sm:$0xff]  }
  0xe4   : > { %2614 = vmatpush1.bf16.msra.mxu0 %v13890_v47  ;;  %v14012_v47 = vld [vmem:[%s14931_s29 + $0x504] ss:$48 sps:$4 sm:$0xff]  }
  0xe5   : > { %2615 = vmatprep.subr.bf16.mxu0 %v13898_v48  ;;  %v14010_v48 = vld [vmem:[%s14931_s29 + $0x500] ss:$48 sps:$4 sm:$0xff]  }
  0xe8   : > { %2616 = vmatpush1.bf16.msra.mxu0 %v13896_v49  ;;  %v14015_v49 = vld [vmem:[%s14931_s29 + $0x564] ss:$48 sps:$4 sm:$0xff]  }
  0xe9   : > { %2617 = vmatprep.subr.bf16.mxu0 %v13904_v50  ;;  %v14013_v50 = vld [vmem:[%s14931_s29 + $0x560] ss:$48 sps:$4 sm:$0xff]  }
  0xec   : > { %2618 = vmatpush1.bf16.msra.mxu0 %v13902_v51  ;;  %v14018_v51 = vld [vmem:[%s14931_s29 + $0x5c4] ss:$48 sps:$4 sm:$0xff]  }
  0xed   : > { %2619 = vmatprep.subr.bf16.mxu0 %v13910_v52 }
  0xf0   : > { %2620 = vmatpush1.bf16.msra.mxu0 %v13908_v53  ;;  %v14016_v53 = vld [vmem:[%s14931_s29 + $0x5c0] ss:$48 sps:$4 sm:$0xff]  }
  0xf1   : > { %2621 = vmatprep.subr.bf16.mxu0 %v13916_v54 }
  0xf4   : > { %2622 = vmatpush1.bf16.msra.mxu0 %v13914_v55 }
  0xf5   : > { %2623 = vmatprep.subr.bf16.mxu0 %v13922_v56 }
  0xf8   : > { %2624 = vmatpush1.bf16.msra.mxu0 %v13920_v57  ;;  %v14021_v57 = vld [vmem:[%s14931_s29 + $0x624] ss:$48 sps:$4 sm:$0xff]  }
  0xf9   : > { %2625 = vmatprep.subr.bf16.mxu0 %v13928_v59  ;;  %v14019_v59 = vld [vmem:[%s14931_s29 + $0x620] ss:$48 sps:$4 sm:$0xff]  }
  0xfc   : > { %2626 = vmatpush1.bf16.msra.mxu0 %v13926_v60  ;;  %v14024_v60 = vld [vmem:[%s14931_s29 + $0x684] ss:$48 sps:$4 sm:$0xff]  }
  0xfd   : > { %2627 = vmatprep.subr.bf16.mxu0 %v13934_v61  ;;  %v14022_v61 = vld [vmem:[%s14931_s29 + $0x680] ss:$48 sps:$4 sm:$0xff]  }
 0x100   : > { %2628 = vmatpush1.bf16.msra.mxu0 %v13932_v62  ;;  %v14027_v62 = vld [vmem:[%s14931_s29 + $0x6e4] ss:$48 sps:$4 sm:$0xff]  }
 0x101   : > { %2629 = vmatprep.subr.bf16.mxu0 %v13940_v63  ;;  %v14025_v63 = vld [vmem:[%s14931_s29 + $0x6e0] ss:$48 sps:$4 sm:$0xff]  }
 0x104   : > { %2630 = vmatpush1.bf16.msra.mxu0 %v13938_v0  ;;  %v14030_v0 = vld [vmem:[%s14931_s29 + $0x744] ss:$48 sps:$4 sm:$0xff]  }
 0x105   : > { %2642 = vmatprep.subr.bf16.mxu0 %v13946_v1  ;;  %v14028_v1 = vld [vmem:[%s14931_s29 + $0x740] ss:$48 sps:$4 sm:$0xff]  }
 0x107   : > { %2632 = vmatmul.mubr.bf16.vlgmr.msra.gmra.mrb[8].mxu0 %v15048_v58 }
 0x108   : > { %2643 = vmatpush1.bf16.msra.mxu0 %v13944_v2  ;;  %2674 = vmatprep.mubr.bf16.mxu0 %v14826_v8  ;;  %v14033_v2 = vld [vmem:[%s14931_s29 + $0x7a4] ss:$48 sps:$4 sm:$0xff]  }
 0x109   : > { %2644 = vmatprep.subr.bf16.mxu0 %v13952_v3  ;;  %v14031_v3 = vld [vmem:[%s14931_s29 + $0x7a0] ss:$48 sps:$4 sm:$0xff]  }
 0x10c   : > { %2645 = vmatpush1.bf16.msra.mxu0 %v13950_v5  ;;  %v14036_v5 = vld [vmem:[%s14931_s29 + $0x804] ss:$48 sps:$4 sm:$0xff]  }
 0x10d   : > { %2646 = vmatprep.subr.bf16.mxu0 %v13958_v6  ;;  %v14034_v6 = vld [vmem:[%s14931_s29 + $0x800] ss:$48 sps:$4 sm:$0xff]  }
 0x110   : > { %2647 = vmatpush1.bf16.msra.mxu0 %v13956_v7  ;;  %v14039_v7 = vld [vmem:[%s14931_s29 + $0x864] ss:$48 sps:$4 sm:$0xff]  }
 0x111   : > { %2648 = vmatprep.subr.bf16.mxu0 %v13961_v9  ;;  %v14037_v9 = vld [vmem:[%s14931_s29 + $0x860] ss:$48 sps:$4 sm:$0xff]  }
 0x114   : > { %2649 = vmatpush1.bf16.msra.mxu0 %v13959_v10  ;;  %v14827_v10 = vmov 0.0  }
 0x115   : > { %2650 = vmatprep.subr.bf16.mxu0 %v13964_v11  ;;  %v983_v11 = vlaneseq }
 0x118   : > { %2651 = vmatpush1.bf16.msra.mxu0 %v13962_v12  ;;  %v15279_v12 = vshrl.u32 %v983_v11, 7  ;;  %v14088_v11 = vld [vmem:[%s14931_s29 + $0x628] ss:$48 sps:$4 sm:$0xff]  }
 0x119   : > { %2652 = vmatprep.subr.bf16.mxu0 %v13967_v13 }
 0x11a   : > { %v15282_v13 = vsub.s32 2, %v15279_v12 }
 0x11b   : > { %v15230_v37 = vpop.f32.mrb[0].mxu1 }
 0x11c   : > { %2653 = vmatpush1.bf16.msra.mxu0 %v13965_v14  ;;  %v15233_v39 = vpop.f32.mrb[1].mxu1  ;;  %v15285_v14 = vld [vmem:[%s14936_s18] sm:$0xff] }
 0x11d   : > { %2654 = vmatprep.subr.bf16.mxu0 %v13970_v15  ;;  %v15235_v40 = vpop.f32.mrb[2].mxu1  ;;  %v15288_v15 = vsub.s32 3, %v15279_v12 }
 0x11e   : > { %v15237_v41 = vpop.f32.mrb[3].mxu1 }
 0x120   : > { %2655 = vmatpush1.bf16.msra.mxu0 %v13968_v16  ;;  %v994_v16 = vrot.slane %v15285_v14, %v15282_v13 }
 0x121   : > { %2771 = vmatprep.subr.bf16.mxu0 %v13973_v17  ;;  %v998_v17 = vrot.slane %v15285_v14, %v15288_v15 }
 0x123   : > { %12248 = vmatmul.mubr.msk.bf16.vlgmr.msra.gmra.mrb[8].mxu0 %vm2423_vm1, %v15059_v4 }
 0x124   : > { %2772 = vmatpush1.bf16.msra.mxu0 %v13971_v18  ;;  %2803 = vmatprep.mubr.bf16.mxu0 %v15012_v22  ;;  %v13986_v22 = vld [vmem:[%s14931_s29 + $0x200] ss:$48 sps:$4 sm:$0xff]   ;;  %v14040_v18 = vld [vmem:[%s14931_s29 + $0x28] ss:$48 sps:$4 sm:$0xff]  }
 0x125   : > { %2773 = vmatprep.subr.bf16.mxu0 %v13976_v19  ;;  %v14042_v19 = vld [vmem:[%s14931_s29 + $0x2c] ss:$48 sps:$4 sm:$0xff]  }
 0x126   : > { %2857 = vmatprep.subr.bf16.mxu1 %v14042_v19  ;;  %v14094_v19 = vld [vmem:[%s14931_s29 + $0x6e8] ss:$48 sps:$4 sm:$0xff]  }
 0x127   : > { %2858 = vmatpush1.bf16.msra.mxu1 %v14040_v18  ;;  %v14096_v18 = vld [vmem:[%s14931_s29 + $0x6ec] ss:$48 sps:$4 sm:$0xff]  }
 0x128   : > { %2774 = vmatpush1.bf16.msra.mxu0 %v13974_v20  ;;  %v14045_v20 = vld [vmem:[%s14931_s29 + $0x8c] ss:$48 sps:$4 sm:$0xff]  }
 0x129   : > { %2775 = vmatprep.subr.bf16.mxu0 %v13979_v21  ;;  %2859 = vmatprep.subr.bf16.mxu1 %v14045_v20  ;;  %v14099_v20 = vld [vmem:[%s14931_s29 + $0x74c] ss:$48 sps:$4 sm:$0xff]  }
 0x12c   : > { %2776 = vmatpush1.bf16.msra.mxu0 %v13977_v23 }
 0x12d   : > { %2777 = vmatprep.subr.bf16.mxu0 %v13982_v24 }
 0x130   : > { %2778 = vmatpush1.bf16.msra.mxu0 %v13980_v25  ;;  %v14043_v25 = vld [vmem:[%s14931_s29 + $0x88] ss:$48 sps:$4 sm:$0xff]  }
 0x131   : > { %2779 = vmatprep.subr.bf16.mxu0 %v13985_v26  ;;  %2860 = vmatpush1.bf16.msra.mxu1 %v14043_v25  ;;  %v14103_v25 = vld [vmem:[%s14931_s29 + $0x808] ss:$48 sps:$4 sm:$0xff]  }
 0x134   : > { %2780 = vmatpush1.bf16.msra.mxu0 %v13983_v27 }
 0x135   : > { %2781 = vmatprep.subr.bf16.mxu0 %v13988_v28  ;;  %v14048_v28 = vld [vmem:[%s14931_s29 + $0xec] ss:$48 sps:$4 sm:$0xff]  }
 0x136   : > { %2861 = vmatprep.subr.bf16.mxu1 %v14048_v28  ;;  %v15365_v28 = vsub.s32 4, %v15279_v12 }
 0x138   : > { %2782 = vmatpush1.bf16.msra.mxu0 %v13986_v22 }
 0x139   : > { %2783 = vmatprep.subr.bf16.mxu0 %v13991_v29 }
 0x13c   : > { %2784 = vmatpush1.bf16.msra.mxu0 %v13989_v30 }
 0x13d   : > { %2785 = vmatprep.subr.bf16.mxu0 %v13994_v31 }
 0x140   : > { %2786 = vmatpush1.bf16.msra.mxu0 %v13992_v32 }
 0x141   : > { %2787 = vmatprep.subr.bf16.mxu0 %v13997_v33 }
 0x144   : > { %2788 = vmatpush1.bf16.msra.mxu0 %v13995_v34 }
 0x145   : > { %2789 = vmatprep.subr.bf16.mxu0 %v14000_v35  ;;  %v14046_v35 = vld [vmem:[%s14931_s29 + $0xe8] ss:$48 sps:$4 sm:$0xff]  }
 0x146   : > { %2862 = vmatpush1.bf16.msra.mxu1 %v14046_v35  ;;  %v1002_v35 = vrot.slane %v15285_v14, %v15365_v28 }
 0x148   : > { %2790 = vmatpush1.bf16.msra.mxu0 %v13998_v36 }
 0x149   : > { %2791 = vmatprep.subr.bf16.mxu0 %v14003_v38  ;;  %v14051_v38 = vld [vmem:[%s14931_s29 + $0x14c] ss:$48 sps:$4 sm:$0xff]  }
 0x14a   : > { %2863 = vmatprep.subr.bf16.mxu1 %v14051_v38  ;;  %v15376_v38 = vsub.s32 5, %v15279_v12 }
 0x14c   : > { %2792 = vmatpush1.bf16.msra.mxu0 %v14001_v42  ;;  %v14049_v42 = vld [vmem:[%s14931_s29 + $0x148] ss:$48 sps:$4 sm:$0xff]  }
 0x14d   : > { %2793 = vmatprep.subr.bf16.mxu0 %v14006_v43  ;;  %v14054_v43 = vld [vmem:[%s14931_s29 + $0x1ac] ss:$48 sps:$4 sm:$0xff]   ;;  %2864 = vmatpush1.bf16.msra.mxu1 %v14049_v42 }
 0x14e   : > { %2865 = vmatprep.subr.bf16.mxu1 %v14054_v43 }
 0x150   : > { %2794 = vmatpush1.bf16.msra.mxu0 %v14004_v44  ;;  %v14057_v44 = vld [vmem:[%s14931_s29 + $0x20c] ss:$48 sps:$4 sm:$0xff]  }
 0x151   : > { %2795 = vmatprep.subr.bf16.mxu0 %v14009_v45  ;;  %v14055_v45 = vld [vmem:[%s14931_s29 + $0x208] ss:$48 sps:$4 sm:$0xff]  }
 0x154   : > { %2796 = vmatpush1.bf16.msra.mxu0 %v14007_v46  ;;  %v14060_v46 = vld [vmem:[%s14931_s29 + $0x26c] ss:$48 sps:$4 sm:$0xff]  }
 0x155   : > { %2797 = vmatprep.subr.bf16.mxu0 %v14012_v47  ;;  %v14058_v47 = vld [vmem:[%s14931_s29 + $0x268] ss:$48 sps:$4 sm:$0xff]  }
 0x158   : > { %2798 = vmatpush1.bf16.msra.mxu0 %v14010_v48  ;;  %v14063_v48 = vld [vmem:[%s14931_s29 + $0x2cc] ss:$48 sps:$4 sm:$0xff]  }
 0x159   : > { %2799 = vmatprep.subr.bf16.mxu0 %v14015_v49  ;;  %v14061_v49 = vld [vmem:[%s14931_s29 + $0x2c8] ss:$48 sps:$4 sm:$0xff]  }
 0x15a   : > { %v15249_v52 = vpop.f32.mrb[0].mxu0 }
 0x15b   : > { %v15252_v54 = vpop.f32.mrb[1].mxu0 }
 0x15c   : > { %v15254_v55 = vpop.f32.mrb[2].mxu0  ;;  %2800 = vmatpush1.bf16.msra.mxu0 %v14013_v50  ;;  %v14066_v50 = vld [vmem:[%s14931_s29 + $0x32c] ss:$48 sps:$4 sm:$0xff]  }
 0x15d   : > { %v15256_v56 = vpop.f32.mrb[3].mxu0  ;;  %2801 = vmatprep.subr.bf16.mxu0 %v14018_v51  ;;  %v14064_v51 = vld [vmem:[%s14931_s29 + $0x328] ss:$48 sps:$4 sm:$0xff]  }
 0x160   : > { %2802 = vmatpush1.bf16.msra.mxu0 %v14016_v53  ;;  %v14069_v53 = vld [vmem:[%s14931_s29 + $0x38c] ss:$48 sps:$4 sm:$0xff]  }
 0x161   : > { %2814 = vmatprep.subr.bf16.mxu0 %v14021_v57  ;;  %v14067_v57 = vld [vmem:[%s14931_s29 + $0x388] ss:$48 sps:$4 sm:$0xff]  }
 0x163   : > { %2804 = vmatmul.mubr.bf16.vlgmr.msra.gmra.mrb[12].mxu0 %v15048_v58 }
 0x164   : > { %2815 = vmatpush1.bf16.msra.mxu0 %v14019_v59  ;;  %2846 = vmatprep.mubr.bf16.mxu0 %v14826_v8  ;;  %v14072_v59 = vld [vmem:[%s14931_s29 + $0x3ec] ss:$48 sps:$4 sm:$0xff]  }
 0x165   : > { %2816 = vmatprep.subr.bf16.mxu0 %v14024_v60  ;;  %v14070_v60 = vld [vmem:[%s14931_s29 + $0x3e8] ss:$48 sps:$4 sm:$0xff]  }
 0x168   : > { %2817 = vmatpush1.bf16.msra.mxu0 %v14022_v61  ;;  %v14075_v61 = vld [vmem:[%s14931_s29 + $0x44c] ss:$48 sps:$4 sm:$0xff]  }
 0x169   : > { %2818 = vmatprep.subr.bf16.mxu0 %v14027_v62  ;;  %v14073_v62 = vld [vmem:[%s14931_s29 + $0x448] ss:$48 sps:$4 sm:$0xff]  }
 0x16c   : > { %2819 = vmatpush1.bf16.msra.mxu0 %v14025_v63  ;;  %v14078_v63 = vld [vmem:[%s14931_s29 + $0x4ac] ss:$48 sps:$4 sm:$0xff]  }
 0x16d   : > { %2820 = vmatprep.subr.bf16.mxu0 %v14030_v0  ;;  %v14076_v0 = vld [vmem:[%s14931_s29 + $0x4a8] ss:$48 sps:$4 sm:$0xff]  }
 0x170   : > { %2821 = vmatpush1.bf16.msra.mxu0 %v14028_v1  ;;  %v14081_v1 = vld [vmem:[%s14931_s29 + $0x50c] ss:$48 sps:$4 sm:$0xff]  }
 0x171   : > { %2822 = vmatprep.subr.bf16.mxu0 %v14033_v2  ;;  %v14079_v2 = vld [vmem:[%s14931_s29 + $0x508] ss:$48 sps:$4 sm:$0xff]  }
 0x174   : > { %2823 = vmatpush1.bf16.msra.mxu0 %v14031_v3  ;;  %v14084_v3 = vld [vmem:[%s14931_s29 + $0x56c] ss:$48 sps:$4 sm:$0xff]  }
 0x175   : > { %2824 = vmatprep.subr.bf16.mxu0 %v14036_v5  ;;  %v14082_v5 = vld [vmem:[%s14931_s29 + $0x568] ss:$48 sps:$4 sm:$0xff]  }
 0x178   : > { %2825 = vmatpush1.bf16.msra.mxu0 %v14034_v6  ;;  %v15308_v34 = vpop.f32.mrb[4].mxu1  ;;  %v14087_v6 = vld [vmem:[%s14931_s29 + $0x5cc] ss:$48 sps:$4 sm:$0xff]  }
 0x179   : > { %2826 = vmatprep.subr.bf16.mxu0 %v14039_v7  ;;  %v14085_v7 = vld [vmem:[%s14931_s29 + $0x5c8] ss:$48 sps:$4 sm:$0xff]  }
 0x17c   : > { %2827 = vmatpush1.bf16.msra.mxu0 %v14037_v9  ;;  %v14090_v9 = vld [vmem:[%s14931_s29 + $0x62c] ss:$48 sps:$4 sm:$0xff]  }
 0x17d   : > { %13426 = vmatprep.subr.mxu0 %v14827_v10 }
 0x17f   : > { %12250 = vmatmul.mubr.msk.bf16.vlgmr.msra.gmra.mrb[12].mxu0 %vm2423_vm1, %v15059_v4 }
 0x180   : > { %13428 = vmatprep.mubr.msk.f32.mxu0 %vm14828_vm2, %v14827_v10 }
 0x19a   : > { %v2547_v21 = vpop.f32.mrb[4].mxu0 }
 0x19b   : > { %v2548_v23 = vadd.f32 %v2547_v21, %v994_v16  ;;  %v2549_v24 = vpop.f32.mrb[5].mxu0  ;;  %v14097_v21 = vld [vmem:[%s14931_s29 + $0x748] ss:$48 sps:$4 sm:$0xff]  }
 0x19c   : > { %v2550_v26 = vadd.f32 %v2549_v24, %v998_v17  ;;  %v2551_v27 = vpop.f32.mrb[6].mxu0  ;;  %v14105_v24 = vld [vmem:[%s14931_s29 + $0x80c] ss:$48 sps:$4 sm:$0xff]  }
 0x19d   : > { %v2552_v22 = vadd.f32 %v2551_v27, %v994_v16  ;;  %v15300_v29 = vadd.f32 %v15230_v37, %v2548_v23  ;;  %v2553_v30 = vpop.f32.mrb[7].mxu0  ;;  %v15314_v37 = vpop.f32.mrb[5].mxu1  ;;  %v14093_v16 = vld [vmem:[%s14931_s29 + $0x68c] ss:$48 sps:$4 sm:$0xff]   ;;  %v15362_v27 = vsub.s32 0, %v15279_v12 }
 0x19e   : > { %v2554_v31 = vadd.f32 %v2553_v30, %v998_v17  ;;  %v15303_v32 = vadd.f32 %v15233_v39, %v2550_v26  ;;  %v15317_v39 = vpop.f32.mrb[6].mxu1  ;;  %v14091_v17 = vld [vmem:[%s14931_s29 + $0x688] ss:$48 sps:$4 sm:$0xff]   ;;  %v14102_v23 = vld [vmem:[%s14931_s29 + $0x7ac] ss:$48 sps:$4 sm:$0xff]  }
 0x19f   : > { %v15306_v33 = vadd.f32 %v15235_v40, %v2552_v22  ;;  %v15319_v40 = vpop.f32.mrb[7].mxu1  ;;  %v14108_v26 = vld [vmem:[%s14931_s29 + $0x86c] ss:$48 sps:$4 sm:$0xff]   ;;  %v14106_v22 = vld [vmem:[%s14931_s29 + $0x868] ss:$48 sps:$4 sm:$0xff]   ;;  %v986_v30 = vrot.slane %v15285_v14, %v15362_v27 }
 0x1a0   : > { %v15312_v36 = vadd.f32 %v15237_v41, %v2554_v31  ;;  %v14052_v41 = vld [vmem:[%s14931_s29 + $0x1a8] ss:$48 sps:$4 sm:$0xff]   ;;  %v15371_v31 = vsub.s32 1, %v15279_v12 }
 0x1a1   : > { %2866 = vmatpush1.bf16.msra.mxu1 %v14052_v41  ;;  %v13524_v42 = vadd.f32 %v15249_v52, %v986_v30 }
 0x1a2   : > { %2867 = vmatprep.subr.bf16.mxu1 %v14057_v44  ;;  %v990_v43 = vrot.slane %v15285_v14, %v15371_v31  ;;  %v15385_v44 = vsub.s32 6, %v15279_v12 }
 0x1a5   : > { %2868 = vmatpush1.bf16.msra.mxu1 %v14055_v45 }
 0x1a6   : > { %2869 = vmatprep.subr.bf16.mxu1 %v14060_v46  ;;  %v1006_v46 = vrot.slane %v15285_v14, %v15376_v38 }
 0x1a9   : > { %2870 = vmatpush1.bf16.msra.mxu1 %v14058_v47 }
 0x1aa   : > { %2871 = vmatprep.subr.bf16.mxu1 %v14063_v48 }
 0x1ad   : > { %2872 = vmatpush1.bf16.msra.mxu1 %v14061_v49  ;;  %v2943_v49 = vmul.f32 0.1042572, %v13524_v42 }
 0x1ae   : > { %2873 = vmatprep.subr.bf16.mxu1 %v14066_v50  ;;  %v13525_v50 = vadd.f32 %v15252_v54, %v990_v43 }
 0x1b1   : > { %2874 = vmatpush1.bf16.msra.mxu1 %v14064_v51  ;;  %v15396_v51 = vsub.s32 7, %v15279_v12  ;;  %v3256_v12 = vmul.f32 0.1042572, %v15300_v29 }
 0x1b2   : > { %2875 = vmatprep.subr.bf16.mxu1 %v14069_v53 }
 0x1b3   : > { %v1014_v54 = vrot.slane %v15285_v14, %v15396_v51 }
 0x1b5   : > { %2876 = vmatpush1.bf16.msra.mxu1 %v14067_v57  ;;  %v3100_v57 = vmul.f32 0.1042572, %v13525_v50 }
 0x1b6   : > { %2877 = vmatprep.subr.bf16.mxu1 %v14072_v59 }
 0x1b9   : > { %2878 = vmatpush1.bf16.msra.mxu1 %v14070_v60  ;;  %v13541_v60 = vadd.f32 %v15314_v37, %v1014_v54  ;;  %v13527_v37 = vadd.f32 %v15256_v56, %v990_v43  ;;  %v3880_v56 = vmul.f32 0.1042572, %v15306_v33 }
 0x1ba   : > { %2879 = vmatprep.subr.bf16.mxu1 %v14075_v61 }
 0x1bd   : > { %2880 = vmatpush1.bf16.msra.mxu1 %v14073_v62 }
 0x1be   : > { %2881 = vmatprep.subr.bf16.mxu1 %v14078_v63  ;;  %v13543_v63 = vadd.f32 %v15319_v40, %v1014_v54 }
 0x1c1   : > { %2882 = vmatpush1.bf16.msra.mxu1 %v14076_v0  ;;  %v4036_v0 = vmul.f32 0.1042572, %v15312_v36 }
 0x1c2   : > { %2883 = vmatprep.subr.bf16.mxu1 %v14081_v1 }
 0x1c5   : > { %2884 = vmatpush1.bf16.msra.mxu1 %v14079_v2 }
 0x1c6   : > { %2885 = vmatprep.subr.bf16.mxu1 %v14084_v3 }
 0x1c9   : > { %2886 = vmatpush1.bf16.msra.mxu1 %v14082_v5 }
 0x1ca   : > { %2887 = vmatprep.subr.bf16.mxu1 %v14087_v6 }
 0x1cd   : > { %2888 = vmatpush1.bf16.msra.mxu1 %v14085_v7 }
 0x1ce   : > { %2900 = vmatprep.subr.bf16.mxu1 %v14090_v9 }
 0x1d0   : > { %2890 = vmatmul.mubr.bf16.vlgmr.msra.gmra.mrb[8].mxu1 %v15048_v58  ;;  %v14100_v58 = vld [vmem:[%s14931_s29 + $0x7a8] ss:$48 sps:$4 sm:$0xff]  }
 0x1d1   : > { %2901 = vmatpush1.bf16.msra.mxu1 %v14088_v11  ;;  %2932 = vmatprep.mubr.bf16.mxu1 %v14826_v8 }
 0x1d2   : > { %2902 = vmatprep.subr.bf16.mxu1 %v14093_v16 }
 0x1d5   : > { %2903 = vmatpush1.bf16.msra.mxu1 %v14091_v17 }
 0x1d6   : > { %2904 = vmatprep.subr.bf16.mxu1 %v14096_v18 }
 0x1d9   : > { %2905 = vmatpush1.bf16.msra.mxu1 %v14094_v19 }
 0x1da   : > { %2906 = vmatprep.subr.bf16.mxu1 %v14099_v20 }
 0x1dd   : > { %2907 = vmatpush1.bf16.msra.mxu1 %v14097_v21 }
 0x1de   : > { %2908 = vmatprep.subr.bf16.mxu1 %v14102_v23 }
 0x1e1   : > { %2909 = vmatpush1.bf16.msra.mxu1 %v14100_v58 }
 0x1e2   : > { %2910 = vmatprep.subr.bf16.mxu1 %v14105_v24 }
 0x1e5   : > { %2911 = vmatpush1.bf16.msra.mxu1 %v14103_v25 }
 0x1e6   : > { %2912 = vmatprep.subr.bf16.mxu1 %v14108_v26 }
 0x1e9   : > { %2913 = vmatpush1.bf16.msra.mxu1 %v14106_v22 }
 0x1ea   : > { %13431 = vmatprep.subr.mxu1 %v14827_v10 }
 0x1ec   : > { %12251 = vmatmul.mubr.msk.bf16.vlgmr.msra.gmra.mrb[8].mxu1 %vm2423_vm1, %v15059_v4  ;;  %v1010_v4 = vrot.slane %v15285_v14, %v15385_v44  ;;  %v3412_v14 = vmul.f32 0.1042572, %v15303_v32 }
 0x1ed   : > { %13433 = vmatprep.mubr.msk.f32.mxu1 %vm14828_vm2, %v14827_v10 }
 0x1ee   : > { %v13540_v59 = vadd.f32 %v15308_v34, %v1010_v4  ;;  %v13526_v34 = vadd.f32 %v15254_v55, %v986_v30  ;;  %v3724_v55 = vmul.f32 0.1042572, %v13527_v37  ;;  %v13542_v32 = vadd.f32 %v15317_v39, %v1010_v4  ;;  %v15431_v39 = vld [vmem:[%s14936_s18 + $0x8] sm:$0xf] }
 0x1ef   : > { %v1018_v1 = vrot.slane %v15431_v39, %v15362_v27 }
 0x1f0   : > { %v3568_v29 = vmul.f32 0.1042572, %v13526_v34 }
 0x1f6   : > { %v2676_v41 = vpop.f32.mrb[8].mxu0 }
 0x1f7   : > { %v13536_v45 = vadd.f32 %v2676_v41, %v1002_v35  ;;  %v2678_v47 = vpop.f32.mrb[9].mxu0 }
 0x1f8   : > { %v2680_v48 = vpop.f32.mrb[10].mxu0  ;;  %v13537_v53 = vadd.f32 %v2678_v47, %v1006_v46 }
 0x1f9   : > { %v2682_v52 = vpop.f32.mrb[11].mxu0  ;;  %13427 = vmatpush3.xpose.msra.mxu0 %v13536_v45  ;;  %v13538_v61 = vadd.f32 %v2680_v48, %v1002_v35 }
 0x1fa   : > { %13436 = vmatprep.subr.mxu0 %v14827_v10  ;;  %v13539_v62 = vadd.f32 %v2682_v52, %v1006_v46 }
 0x1fc   : > { %13429 = vmatmul.mubr.f32.vlgmr.msra.gmra.mrb[16].mxu0 %v2943_v49 }
 0x1fd   : > { %13437 = vmatpush3.xpose.msra.mxu0 %v13537_v53  ;;  %13438 = vmatprep.mubr.msk.f32.mxu0 %vm14828_vm2, %v14827_v10 }
 0x1fe   : > { %13446 = vmatprep.subr.mxu0 %v14827_v10 }
 0x200   : > { %13439 = vmatmul.mubr.f32.vlgmr.msra.gmra.mrb[18].mxu0 %v3100_v57 }
 0x201   : > { %13447 = vmatpush3.xpose.msra.mxu0 %v13540_v59  ;;  %13448 = vmatprep.mubr.msk.f32.mxu0 %vm14828_vm2, %v14827_v10 }
 0x202   : > { %13456 = vmatprep.subr.mxu0 %v14827_v10 }
 0x204   : > { %13449 = vmatmul.mubr.f32.vlgmr.msra.gmra.mrb[20].mxu0 %v3256_v12 }
 0x205   : > { %13457 = vmatpush3.xpose.msra.mxu0 %v13541_v60  ;;  %13458 = vmatprep.mubr.msk.f32.mxu0 %vm14828_vm2, %v14827_v10 }
 0x206   : > { %13466 = vmatprep.subr.mxu0 %v14827_v10 }
 0x208   : > { %13459 = vmatmul.mubr.f32.vlgmr.msra.gmra.mrb[22].mxu0 %v3412_v14 }
 0x209   : > { %13467 = vmatpush3.xpose.msra.mxu0 %v13538_v61  ;;  %13468 = vmatprep.mubr.msk.f32.mxu0 %vm14828_vm2, %v14827_v10 }
 0x20a   : > { %13476 = vmatprep.subr.mxu0 %v14827_v10 }
 0x20c   : > { %13469 = vmatmul.mubr.f32.vlgmr.msra.gmra.mrb[24].mxu0 %v3568_v29 }
 0x20d   : > { %13477 = vmatpush3.xpose.msra.mxu0 %v13539_v62  ;;  %13478 = vmatprep.mubr.msk.f32.mxu0 %vm14828_vm2, %v14827_v10 }
 0x20e   : > { %13486 = vmatprep.subr.mxu0 %v14827_v10 }
 0x210   : > { %13479 = vmatmul.mubr.f32.vlgmr.msra.gmra.mrb[26].mxu0 %v3724_v55 }
 0x211   : > { %13487 = vmatpush3.xpose.msra.mxu0 %v13542_v32  ;;  %13488 = vmatprep.mubr.msk.f32.mxu0 %vm14828_vm2, %v14827_v10 }
 0x212   : > { %13496 = vmatprep.subr.mxu0 %v14827_v10 }
 0x214   : > { %13489 = vmatmul.mubr.f32.vlgmr.msra.gmra.mrb[28].mxu0 %v3880_v56 }
 0x215   : > { %13497 = vmatpush3.xpose.msra.mxu0 %v13543_v63  ;;  %13498 = vmatprep.mubr.msk.f32.mxu0 %vm14828_vm2, %v14827_v10 }
 0x218   : > { %13499 = vmatmul.mubr.f32.vlgmr.msra.gmra.mrb[30].mxu0 %v4036_v0 }
 0x252   : > { %v2848_v2 = vpop.f32.mrb[12].mxu0 }
 0x253   : > { %v13544_v3 = vadd.f32 %v2848_v2, %v1018_v1  ;;  %v15435_v33 = vpop.f32.mrb[13].mxu0 }
 0x254   : > { %v2852_v5 = vpop.f32.mrb[14].mxu0 }
 0x255   : > { %v15437_v6 = vadd.f32 %v2852_v5, %v1018_v1  ;;  %v15439_v40 = vpop.f32.mrb[15].mxu0  ;;  %13432 = vmatpush3.msra.mxu1 %v13544_v3 }
 0x256   : > { %13441 = vmatprep.subr.mxu1 %v14827_v10 }
 0x2bf   : > { %v15450_v48 = vpop.f32.mrb[8].mxu1 }
 0x2c0   : > { %v15452_v52 = vpop.f32.mrb[9].mxu1 }
 0x2c1   : > { %v15454_v49 = vpop.f32.mrb[10].mxu1 }
 0x2c2   : > { %v15456_v50 = vpop.f32.mrb[11].mxu1 }
 0x2cf   : > { %v3010_v36 = vpop.f32.mrb[16].mxu0 }
 0x2d0   : > { %v13430_v7 = vpop.f32.mrb[17].mxu0  ;;  %v3015_v9 = vsel %vm3014_vm3, %v3010_v36, -inf }
 0x2d1   : > { %3016 = vmax.xlane.f32.xlu0 %v3015_v9 }
 0x2d3   : > { %v3167_v11 = vpop.f32.mrb[18].mxu0 }
 0x2d4   : > { %v13440_v16 = vpop.f32.mrb[19].mxu0  ;;  %v3171_v17 = vsel %vm3014_vm3, %v3167_v11, -inf }
 0x2d5   : > { %3172 = vmax.xlane.f32.xlu0 %v3171_v17 }
 0x2d7   : > { %v3323_v18 = vpop.f32.mrb[20].mxu0 }
 0x2d8   : > { %v13450_v19 = vpop.f32.mrb[21].mxu0  ;;  %v3327_v20 = vsel %vm3014_vm3, %v3323_v18, -inf }
 0x2d9   : > { %3328 = vmax.xlane.f32.xlu1 %v3327_v20 }
 0x2db   : > { %v3479_v21 = vpop.f32.mrb[22].mxu0 }
 0x2dc   : > { %v13460_v23 = vpop.f32.mrb[23].mxu0  ;;  %v3483_v58 = vsel %vm3014_vm3, %v3479_v21, -inf }
 0x2dd   : > { %3484 = vmax.xlane.f32.xlu1 %v3483_v58 }
 0x2df   : > { %v3635_v24 = vpop.f32.mrb[24].mxu0 }
 0x2e0   : > { %v13470_v25 = vpop.f32.mrb[25].mxu0  ;;  %v3639_v26 = vsel %vm3014_vm3, %v3635_v24, -inf }
 0x2e1   : > { %3640 = vmax.xlane.f32.xlu0 %v3639_v26 }
 0x2e3   : > { %v3791_v22 = vpop.f32.mrb[26].mxu0 }
 0x2e4   : > { %v13480_v30 = vpop.f32.mrb[27].mxu0  ;;  %v3795_v35 = vsel %vm3014_vm3, %v3791_v22, -inf }
 0x2e5   : > { %3796 = vmax.xlane.f32.xlu1 %v3795_v35 }
 0x2e7   : > { %v3947_v42 = vpop.f32.mrb[28].mxu0 }
 0x2e8   : > { %v13490_v43 = vpop.f32.mrb[29].mxu0  ;;  %v3951_v41 = vsel %vm3014_vm3, %v3947_v42, -inf }
 0x2e9   : > { %3952 = vmax.xlane.f32.xlu0 %v3951_v41  ;;  %v14111_v43 = vld [vmem:[%s14943_s22 + $0x4] ss:$12 sps:$4 sm:$0xff]   ;;  %v14114_v41 = vld [vmem:[%s14943_s22 + $0x1c] ss:$12 sps:$4 sm:$0xff]  }
 0x2ea   : > { %4861 = vmatprep.subr.bf16.mxu0 %v14111_v43 }
 0x2eb   : > { %v4103_v45 = vpop.f32.mrb[30].mxu0 }
 0x2ec   : > { %v13500_v46 = vpop.f32.mrb[31].mxu0  ;;  %v4107_v47 = vsel %vm3014_vm3, %v4103_v45, -inf }
 0x2ed   : > { %4108 = vmax.xlane.f32.xlu1 %v4107_v47  ;;  %v14117_v46 = vld [vmem:[%s14943_s22 + $0x34] ss:$12 sps:$4 sm:$0xff]   ;;  %v14115_v47 = vld [vmem:[%s14943_s22 + $0x30] ss:$12 sps:$4 sm:$0xff]  }
 0x35e   : > { %v3017_v4 = vpop.xlane.xlu0 %3016 }
 0x35f   : > { %v3018_v53 = vsub.f32 %v3010_v36, %v3017_v4  ;;  %v14120_v4 = vld [vmem:[%s14943_s22 + $0x4c] ss:$12 sps:$4 sm:$0xff]  }
 0x361   : > { %v3019_v57 = vmul.f32 1.442695, %v3018_v53  ;;  %v14118_v53 = vld [vmem:[%s14943_s22 + $0x48] ss:$12 sps:$4 sm:$0xff]  }
 0x362   : > { %v3173_v59 = vpop.xlane.xlu0 %3172 }
 0x363   : > { %14749 = vpow2.f32 %v3019_v57  ;;  %v3174_v54 = vsub.f32 %v3167_v11, %v3173_v59  ;;  %v14123_v57 = vld [vmem:[%s14943_s22 + $0x64] ss:$12 sps:$4 sm:$0xff]   ;;  %v14121_v59 = vld [vmem:[%s14943_s22 + $0x60] ss:$12 sps:$4 sm:$0xff]  }
 0x365   : > { %v3175_v12 = vmul.f32 1.442695, %v3174_v54  ;;  %v14126_v54 = vld [vmem:[%s14943_s22 + $0x7c] ss:$12 sps:$4 sm:$0xff]  }
 0x366   : > { %v3329_v60 = vpop.xlane.xlu1 %3328 }
 0x367   : > { %14751 = vpow2.f32 %v3175_v12  ;;  %v3330_v34 = vsub.f32 %v3323_v18, %v3329_v60  ;;  %v14124_v12 = vld [vmem:[%s14943_s22 + $0x78] ss:$12 sps:$4 sm:$0xff]   ;;  %v14129_v60 = vld [vmem:[%s14943_s22 + $0x94] ss:$12 sps:$4 sm:$0xff]  }
 0x369   : > { %v3331_v14 = vmul.f32 1.442695, %v3330_v34  ;;  %v14127_v34 = vld [vmem:[%s14943_s22 + $0x90] ss:$12 sps:$4 sm:$0xff]  }
 0x36a   : > { %v3485_v61 = vpop.xlane.xlu1 %3484 }
 0x36b   : > { %14753 = vpow2.f32 %v3331_v14  ;;  %v3486_v29 = vsub.f32 %v3479_v21, %v3485_v61  ;;  %v14132_v14 = vld [vmem:[%s14943_s22 + $0xac] ss:$12 sps:$4 sm:$0xff]   ;;  %v14130_v61 = vld [vmem:[%s14943_s22 + $0xa8] ss:$12 sps:$4 sm:$0xff]  }
 0x36d   : > { %v15458_v37 = vpop.eup %14749  ;;  %v3487_v62 = vmul.f32 1.442695, %v3486_v29  ;;  %v14135_v29 = vld [vmem:[%s14943_s22 + $0xc4] ss:$12 sps:$4 sm:$0xff]  }
 0x36e   : > { %v3641_v55 = vpop.xlane.xlu0 %3640  ;;  %v3021_v32 = vsel %vm3014_vm3, %v15458_v37, 0.0 }
 0x36f   : > { %14755 = vpow2.f32 %v3487_v62  ;;  %v3642_v56 = vsub.f32 %v3635_v24, %v3641_v55  ;;  %3022 = vadd.xlane.f32.xlu0 %v3021_v32  ;;  %v14133_v62 = vld [vmem:[%s14943_s22 + $0xc0] ss:$12 sps:$4 sm:$0xff]   ;;  %v14138_v55 = vld [vmem:[%s14943_s22 + $0xdc] ss:$12 sps:$4 sm:$0xff]   ;;  %v14136_v32 = vld [vmem:[%s14943_s22 + $0xd8] ss:$12 sps:$4 sm:$0xff]  }
 0x371   : > { %v15462_v63 = vpop.eup %14751  ;;  %v3643_v0 = vmul.f32 1.442695, %v3642_v56  ;;  %v14141_v56 = vld [vmem:[%s14943_s22 + $0xf4] ss:$12 sps:$4 sm:$0xff]  }
 0x372   : > { %v3797_v1 = vpop.xlane.xlu1 %3796  ;;  %v3177_v2 = vsel %vm3014_vm3, %v15462_v63, 0.0 }
 0x373   : > { %14757 = vpow2.f32 %v3643_v0  ;;  %v3798_v3 = vsub.f32 %v3791_v22, %v3797_v1  ;;  %3178 = vadd.xlane.f32.xlu1 %v3177_v2  ;;  %v14139_v0 = vld [vmem:[%s14943_s22 + $0xf0] ss:$12 sps:$4 sm:$0xff]  }
 0x375   : > { %v15466_v5 = vpop.eup %14753  ;;  %v3799_v36 = vmul.f32 1.442695, %v3798_v3 }
 0x376   : > { %v3953_v7 = vpop.xlane.xlu0 %3952  ;;  %v3333_v9 = vsel %vm3014_vm3, %v15466_v5, 0.0 }
 0x377   : > { %14759 = vpow2.f32 %v3799_v36  ;;  %v3954_v11 = vsub.f32 %v3947_v42, %v3953_v7  ;;  %3334 = vadd.xlane.f32.xlu0 %v3333_v9  ;;  %v14109_v42 = vld [vmem:[%s14943_s22] ss:$12 sps:$4 sm:$0xff]   ;;  %v1022_v36 = vrot.slane %v15431_v39, %v15371_v31 }
 0x378   : > { %4862 = vmatpush1.bf16.msra.mxu0 %v14109_v42 }
 0x379   : > { %v15470_v16 = vpop.eup %14755  ;;  %v3955_v17 = vmul.f32 1.442695, %v3954_v11  ;;  %4863 = vmatprep.subr.bf16.mxu0 %v14114_v41  ;;  %v13547_v43 = vadd.f32 %v15439_v40, %v1022_v36 }
 0x37a   : > { %v4109_v18 = vpop.xlane.xlu1 %4108  ;;  %v3489_v19 = vsel %vm3014_vm3, %v15470_v16, 0.0 }
 0x37b   : > { %14761 = vpow2.f32 %v3955_v17  ;;  %v4110_v20 = vsub.f32 %v4103_v45, %v4109_v18  ;;  %3490 = vadd.xlane.f32.xlu1 %v3489_v19  ;;  %v14112_v45 = vld [vmem:[%s14943_s22 + $0x18] ss:$12 sps:$4 sm:$0xff]   ;;  %v13545_v17 = vadd.f32 %v15435_v33, %v1022_v36  ;;  %v1026_v18 = vrot.slane %v15431_v39, %v15282_v13  ;;  %v14177_v36 = vld [vmem:[%s14943_s22 + $0x2f0] ss:$12 sps:$4 sm:$0xff]  }
 0x37c   : > { %4864 = vmatpush1.bf16.msra.mxu0 %v14112_v45  ;;  %v1030_v33 = vrot.slane %v15431_v39, %v15288_v15 }
 0x37d   : > { %v15474_v21 = vpop.eup %14757  ;;  %v4111_v23 = vmul.f32 1.442695, %v4110_v20  ;;  %4865 = vmatprep.subr.bf16.mxu0 %v14117_v46  ;;  %v14143_v46 = vld [vmem:[%s14943_s22 + $0x188] ss:$12 sps:$4 sm:$0xff]  }
 0x37e   : > { %v3645_v58 = vsel %vm3014_vm3, %v15474_v21, 0.0 }
 0x37f   : > { %14763 = vpow2.f32 %v4111_v23  ;;  %3646 = vadd.xlane.f32.xlu0 %v3645_v58 }
 0x380   : > { %4866 = vmatpush1.bf16.msra.mxu0 %v14115_v47  ;;  %v14146_v47 = vld [vmem:[%s14943_s22 + $0x10c] ss:$12 sps:$4 sm:$0xff]  }
 0x381   : > { %v15478_v24 = vpop.eup %14759  ;;  %4867 = vmatprep.subr.bf16.mxu0 %v14120_v4  ;;  %v14147_v4 = vld [vmem:[%s14943_s22 + $0x260] ss:$12 sps:$4 sm:$0xff]  }
 0x382   : > { %v3801_v25 = vsel %vm3014_vm3, %v15478_v24, 0.0 }
 0x383   : > { %3802 = vadd.xlane.f32.xlu1 %v3801_v25 }
 0x384   : > { %4868 = vmatpush1.bf16.msra.mxu0 %v14118_v53  ;;  %v14148_v53 = vld [vmem:[%s14943_s22 + $0x1a0] ss:$12 sps:$4 sm:$0xff]  }
 0x385   : > { %v15482_v26 = vpop.eup %14761  ;;  %4869 = vmatprep.subr.bf16.mxu0 %v14123_v57  ;;  %v14152_v57 = vld [vmem:[%s14943_s22 + $0x278] ss:$12 sps:$4 sm:$0xff]  }
 0x386   : > { %v3957_v22 = vsel %vm3014_vm3, %v15482_v26, 0.0 }
 0x387   : > { %3958 = vadd.xlane.f32.xlu0 %v3957_v22 }
 0x388   : > { %4870 = vmatpush1.bf16.msra.mxu0 %v14121_v59  ;;  %v14153_v59 = vld [vmem:[%s14943_s22 + $0x1b8] ss:$12 sps:$4 sm:$0xff]  }
 0x389   : > { %v15486_v30 = vpop.eup %14763  ;;  %4871 = vmatprep.subr.bf16.mxu0 %v14126_v54  ;;  %v14154_v54 = vld [vmem:[%s14943_s22 + $0x138] ss:$12 sps:$4 sm:$0xff]  }
 0x38a   : > { %v4113_v35 = vsel %vm3014_vm3, %v15486_v30, 0.0 }
 0x38b   : > { %4114 = vadd.xlane.f32.xlu1 %v4113_v35 }
 0x38c   : > { %4872 = vmatpush1.bf16.msra.mxu0 %v14124_v12  ;;  %v14156_v12 = vld [vmem:[%s14943_s22 + $0x13c] ss:$12 sps:$4 sm:$0xff]  }
 0x38d   : > { %4873 = vmatprep.subr.bf16.mxu0 %v14129_v60  ;;  %v14157_v60 = vld [vmem:[%s14943_s22 + $0x290] ss:$12 sps:$4 sm:$0xff]  }
 0x390   : > { %4874 = vmatpush1.bf16.msra.mxu0 %v14127_v34  ;;  %v14158_v34 = vld [vmem:[%s14943_s22 + $0x1d0] ss:$12 sps:$4 sm:$0xff]  }
 0x391   : > { %4875 = vmatprep.subr.bf16.mxu0 %v14132_v14  ;;  %v14159_v14 = vld [vmem:[%s14943_s22 + $0x150] ss:$12 sps:$4 sm:$0xff]  }
 0x394   : > { %4876 = vmatpush1.bf16.msra.mxu0 %v14130_v61  ;;  %v14161_v61 = vld [vmem:[%s14943_s22 + $0x154] ss:$12 sps:$4 sm:$0xff]  }
 0x395   : > { %4877 = vmatprep.subr.bf16.mxu0 %v14135_v29  ;;  %v14162_v29 = vld [vmem:[%s14943_s22 + $0x2a8] ss:$12 sps:$4 sm:$0xff]  }
 0x398   : > { %4878 = vmatpush1.bf16.msra.mxu0 %v14133_v62  ;;  %v14163_v62 = vld [vmem:[%s14943_s22 + $0x1e8] ss:$12 sps:$4 sm:$0xff]  }
 0x399   : > { %4879 = vmatprep.subr.bf16.mxu0 %v14138_v55  ;;  %v14164_v55 = vld [vmem:[%s14943_s22 + $0x168] ss:$12 sps:$4 sm:$0xff]  }
 0x39c   : > { %4880 = vmatpush1.bf16.msra.mxu0 %v14136_v32  ;;  %v14166_v32 = vld [vmem:[%s14943_s22 + $0x16c] ss:$12 sps:$4 sm:$0xff]  }
 0x39d   : > { %4881 = vmatprep.subr.bf16.mxu0 %v14141_v56  ;;  %v14167_v56 = vld [vmem:[%s14943_s22 + $0x2c0] ss:$12 sps:$4 sm:$0xff]  }
 0x3a0   : > { %4882 = vmatpush1.bf16.msra.mxu0 %v14139_v0  ;;  %v14168_v0 = vld [vmem:[%s14943_s22 + $0x200] ss:$12 sps:$4 sm:$0xff]  }
 0x3a1   : > { %4883 = vmatprep.subr.bf16.mxu0 %v14146_v47  ;;  %v14193_v47 = vld [vmem:[%s14943_s22 + $0x214] ss:$12 sps:$4 sm:$0xff]  }
 0x3fc   : > { %v3023_v1 = vpop.xlane.xlu0 %3022 }
 0x3fd   : > { %14765 = vrcp.f32 %v3023_v1  ;;  %v14171_v1 = vld [vmem:[%s14943_s22 + $0x184] ss:$12 sps:$4 sm:$0xff]  }
 0x400   : > { %v3179_v2 = vpop.xlane.xlu1 %3178 }
 0x401   : > { %14767 = vrcp.f32 %v3179_v2  ;;  %v14172_v2 = vld [vmem:[%s14943_s22 + $0x2d8] ss:$12 sps:$4 sm:$0xff]  }
 0x404   : > { %v3335_v3 = vpop.xlane.xlu0 %3334 }
 0x405   : > { %14769 = vrcp.f32 %v3335_v3  ;;  %v14173_v3 = vld [vmem:[%s14943_s22 + $0x218] ss:$12 sps:$4 sm:$0xff]  }
 0x407   : > { %v14766_v7 = vpop.eup %14765 }
 0x408   : > { %v3025_v9 = vmul.f32 %v14766_v7, %v15458_v37  ;;  %v3491_v11 = vpop.xlane.xlu1 %3490  ;;  %v13548_v37 = vadd.f32 %v15450_v48, %v1026_v18  ;;  %v14178_v7 = vld [vmem:[%s14943_s22 + $0x230] ss:$12 sps:$4 sm:$0xff]  }
 0x409   : > { %14771 = vrcp.f32 %v3491_v11 }
 0x40a   : > { %13434 = vmatmul.mubr.msk.f32.vlgmr.msra.gmra.mrb[12].mxu1 %vm3014_vm3, %v3025_v9 }
 0x40b   : > { %v14768_v19 = vpop.eup %14767  ;;  %13442 = vmatpush3.msra.mxu1 %v13545_v17  ;;  %13443 = vmatprep.mubr.msk.f32.mxu1 %vm14828_vm2, %v14827_v10 }
 0x40c   : > { %v3181_v20 = vmul.f32 %v14768_v19, %v15462_v63  ;;  %v3647_v23 = vpop.xlane.xlu0 %3646  ;;  %13451 = vmatprep.subr.mxu1 %v14827_v10  ;;  %v13549_v63 = vadd.f32 %v15452_v52, %v1030_v33 }
 0x40d   : > { %14773 = vrcp.f32 %v3647_v23 }
 0x40e   : > { %13444 = vmatmul.mubr.msk.f32.vlgmr.msra.gmra.mrb[14].mxu1 %vm3014_vm3, %v3181_v20 }
 0x40f   : > { %v14770_v58 = vpop.eup %14769  ;;  %13452 = vmatpush3.msra.mxu1 %v13548_v37  ;;  %13453 = vmatprep.mubr.msk.f32.mxu1 %vm14828_vm2, %v14827_v10 }
 0x410   : > { %v3337_v25 = vmul.f32 %v14770_v58, %v15466_v5  ;;  %v3803_v22 = vpop.xlane.xlu1 %3802  ;;  %13461 = vmatprep.subr.mxu1 %v14827_v10 }
 0x411   : > { %14775 = vrcp.f32 %v3803_v22 }
 0x412   : > { %13454 = vmatmul.mubr.msk.f32.vlgmr.msra.gmra.mrb[16].mxu1 %vm3014_vm3, %v3337_v25 }
 0x413   : > { %v14772_v48 = vpop.eup %14771  ;;  %13462 = vmatpush3.msra.mxu1 %v13549_v63  ;;  %13463 = vmatprep.mubr.msk.f32.mxu1 %vm14828_vm2, %v14827_v10 }
 0x414   : > { %v3493_v39 = vmul.f32 %v14772_v48, %v15470_v16  ;;  %v3959_v35 = vpop.xlane.xlu0 %3958  ;;  %13471 = vmatprep.subr.mxu1 %v14827_v10 }
 0x415   : > { %14777 = vrcp.f32 %v3959_v35  ;;  %v14176_v35 = vld [vmem:[%s14943_s22 + $0x19c] ss:$12 sps:$4 sm:$0xff]  }
 0x416   : > { %13464 = vmatmul.mubr.msk.f32.vlgmr.msra.gmra.mrb[18].mxu1 %vm3014_vm3, %v3493_v39  ;;  %v14169_v39 = vld [vmem:[%s14943_s22 + $0x180] ss:$12 sps:$4 sm:$0xff]  }
 0x417   : > { %v14774_v5 = vpop.eup %14773  ;;  %13472 = vmatpush3.msra.mxu1 %v15437_v6  ;;  %13473 = vmatprep.mubr.msk.f32.mxu1 %vm14828_vm2, %v14827_v10 }
 0x418   : > { %v3649_v52 = vmul.f32 %v14774_v5, %v15474_v21  ;;  %v4115_v42 = vpop.xlane.xlu1 %4114  ;;  %13481 = vmatprep.subr.mxu1 %v14827_v10  ;;  %v13550_v21 = vadd.f32 %v15454_v49, %v1026_v18 }
 0x419   : > { %14779 = vrcp.f32 %v4115_v42 }
 0x41a   : > { %13474 = vmatmul.mubr.msk.f32.vlgmr.msra.gmra.mrb[20].mxu1 %vm3014_vm3, %v3649_v52 }
 0x41b   : > { %v14776_v16 = vpop.eup %14775  ;;  %13482 = vmatpush3.msra.mxu1 %v13547_v43  ;;  %13483 = vmatprep.mubr.msk.f32.mxu1 %vm14828_vm2, %v14827_v10  ;;  %v14174_v43 = vld [vmem:[%s14943_s22 + $0x198] ss:$12 sps:$4 sm:$0xff]  }
 0x41c   : > { %v3805_v6 = vmul.f32 %v14776_v16, %v15478_v24  ;;  %13491 = vmatprep.subr.mxu1 %v14827_v10  ;;  %v13551_v24 = vadd.f32 %v15456_v50, %v1030_v33  ;;  %v14144_v50 = vld [vmem:[%s14943_s22 + $0x108] ss:$12 sps:$4 sm:$0xff]  }
 0x41d   : > { %4884 = vmatpush1.bf16.msra.mxu0 %v14144_v50  ;;  %v14181_v16 = vld [vmem:[%s14943_s22 + $0x1b4] ss:$12 sps:$4 sm:$0xff]   ;;  %v14188_v50 = vld [vmem:[%s14943_s22 + $0x1f8] ss:$12 sps:$4 sm:$0xff]  }
 0x41e   : > { %13484 = vmatmul.mubr.msk.f32.vlgmr.msra.gmra.mrb[22].mxu1 %vm3014_vm3, %v3805_v6 }
 0x41f   : > { %v14778_v40 = vpop.eup %14777  ;;  %13492 = vmatpush3.msra.mxu1 %v13550_v21  ;;  %13493 = vmatprep.mubr.msk.f32.mxu1 %vm14828_vm2, %v14827_v10 }
 0x420   : > { %v3961_v41 = vmul.f32 %v14778_v40, %v15482_v26  ;;  %13501 = vmatprep.subr.mxu1 %v14827_v10  ;;  %v14142_v26 = vld [vmem:[%s14943_s22 + $0x248] ss:$12 sps:$4 sm:$0xff]  }
 0x422   : > { %13494 = vmatmul.mubr.msk.f32.vlgmr.msra.gmra.mrb[24].mxu1 %vm3014_vm3, %v3961_v41  ;;  %v14179_v41 = vld [vmem:[%s14943_s22 + $0x1b0] ss:$12 sps:$4 sm:$0xff]  }
 0x423   : > { %v14780_v49 = vpop.eup %14779  ;;  %13502 = vmatpush3.msra.mxu1 %v13551_v24  ;;  %13503 = vmatprep.mubr.msk.f32.mxu1 %vm14828_vm2, %v14827_v10  ;;  %v14149_v10 = vld [vmem:[%s14943_s22 + $0x120] ss:$12 sps:$4 sm:$0xff]  }
 0x424   : > { %v4117_v45 = vmul.f32 %v14780_v49, %v15486_v30  ;;  %13198 = vmatprep.subr.bf16.mxu1 %v14142_v26  ;;  %v14151_v30 = vld [vmem:[%s14943_s22 + $0x124] ss:$12 sps:$4 sm:$0xff]   ;;  %v14184_v24 = vld [vmem:[%s14943_s22 + $0x1cc] ss:$12 sps:$4 sm:$0xff]   ;;  %v14182_v49 = vld [vmem:[%s14943_s22 + $0x1c8] ss:$12 sps:$4 sm:$0xff]  }
 0x425   : > { %4885 = vmatprep.subr.bf16.mxu0 %v14151_v30  ;;  %v14185_v26 = vld [vmem:[%s14943_s22 + $0x1e0] ss:$12 sps:$4 sm:$0xff]   ;;  %v14199_v30 = vld [vmem:[%s14943_s22 + $0x244] ss:$12 sps:$4 sm:$0xff]  }
 0x426   : > { %13504 = vmatmul.mubr.msk.f32.vlgmr.msra.gmra.mrb[26].mxu1 %vm3014_vm3, %v4117_v45  ;;  %4886 = vmatpush1.bf16.msra.mxu0 %v14149_v10  ;;  %v14187_v45 = vld [vmem:[%s14943_s22 + $0x1e4] ss:$12 sps:$4 sm:$0xff]   ;;  %v14194_v10 = vld [vmem:[%s14943_s22 + $0x228] ss:$12 sps:$4 sm:$0xff]  }
 0x427   : > { %13199 = vmatpush3.bf16.msra.mxu1 %v14143_v46  ;;  %4887 = vmatprep.subr.bf16.mxu0 %v14156_v12  ;;  %v14190_v46 = vld [vmem:[%s14943_s22 + $0x1fc] ss:$12 sps:$4 sm:$0xff]   ;;  %v14205_v12 = vld [vmem:[%s14943_s22 + $0x274] ss:$12 sps:$4 sm:$0xff]  }
 0x428   : > { %13200 = vmatprep.subr.bf16.mxu1 %v14147_v4  ;;  %v14191_v4 = vld [vmem:[%s14943_s22 + $0x210] ss:$12 sps:$4 sm:$0xff]  }
 0x42a   : > { %4888 = vmatpush1.bf16.msra.mxu0 %v14154_v54  ;;  %v14200_v54 = vld [vmem:[%s14943_s22 + $0x258] ss:$12 sps:$4 sm:$0xff]  }
 0x42b   : > { %13201 = vmatpush3.bf16.msra.mxu1 %v14148_v53  ;;  %4889 = vmatprep.subr.bf16.mxu0 %v14161_v61  ;;  %v14196_v53 = vld [vmem:[%s14943_s22 + $0x22c] ss:$12 sps:$4 sm:$0xff]   ;;  %v14211_v61 = vld [vmem:[%s14943_s22 + $0x2a4] ss:$12 sps:$4 sm:$0xff]  }
 0x42c   : > { %13202 = vmatprep.subr.bf16.mxu1 %v14152_v57  ;;  %v14197_v57 = vld [vmem:[%s14943_s22 + $0x240] ss:$12 sps:$4 sm:$0xff]  }
 0x42e   : > { %4890 = vmatpush1.bf16.msra.mxu0 %v14159_v14  ;;  %v14206_v14 = vld [vmem:[%s14943_s22 + $0x288] ss:$12 sps:$4 sm:$0xff]  }
 0x42f   : > { %13203 = vmatpush3.bf16.msra.mxu1 %v14153_v59  ;;  %4891 = vmatprep.subr.bf16.mxu0 %v14166_v32  ;;  %v14202_v59 = vld [vmem:[%s14943_s22 + $0x25c] ss:$12 sps:$4 sm:$0xff]   ;;  %v14217_v32 = vld [vmem:[%s14943_s22 + $0x2d4] ss:$12 sps:$4 sm:$0xff]  }
 0x430   : > { %13204 = vmatprep.subr.bf16.mxu1 %v14157_v60  ;;  %v14203_v60 = vld [vmem:[%s14943_s22 + $0x270] ss:$12 sps:$4 sm:$0xff]  }
 0x432   : > { %4892 = vmatpush1.bf16.msra.mxu0 %v14164_v55  ;;  %v14212_v55 = vld [vmem:[%s14943_s22 + $0x2b8] ss:$12 sps:$4 sm:$0xff]  }
 0x433   : > { %13205 = vmatpush3.bf16.msra.mxu1 %v14158_v34  ;;  %4904 = vmatprep.subr.bf16.mxu0 %v14171_v1  ;;  %v14208_v34 = vld [vmem:[%s14943_s22 + $0x28c] ss:$12 sps:$4 sm:$0xff]   ;;  %v14218_v1 = vld [vmem:[%s14943_s22 + $0x2e8] ss:$12 sps:$4 sm:$0xff]  }
 0x434   : > { %13206 = vmatprep.subr.bf16.mxu1 %v14162_v29  ;;  %v14209_v29 = vld [vmem:[%s14943_s22 + $0x2a0] ss:$12 sps:$4 sm:$0xff]  }
 0x437   : > { %13207 = vmatpush3.bf16.msra.mxu1 %v14163_v62  ;;  %v14214_v62 = vld [vmem:[%s14943_s22 + $0x2bc] ss:$12 sps:$4 sm:$0xff]  }
 0x438   : > { %13208 = vmatprep.subr.bf16.mxu1 %v14167_v56  ;;  %v14215_v56 = vld [vmem:[%s14943_s22 + $0x2d0] ss:$12 sps:$4 sm:$0xff]  }
 0x43b   : > { %13209 = vmatpush3.bf16.msra.mxu1 %v14168_v0  ;;  %v14220_v0 = vld [vmem:[%s14943_s22 + $0x2ec] ss:$12 sps:$4 sm:$0xff]  }
 0x43c   : > { %13210 = vmatprep.subr.bf16.mxu1 %v14172_v2  ;;  %v14221_v2 = vld [vmem:[%s14943_s22 + $0xc8] ss:$12 sps:$4 sm:$0xff]  }
 0x43f   : > { %13211 = vmatpush3.bf16.msra.mxu1 %v14173_v3  ;;  %v14222_v3 = vld [vmem:[%s14943_s22 + $0x8] ss:$12 sps:$4 sm:$0xff]  }
 0x440   : > { %13212 = vmatprep.subr.bf16.mxu1 %v14177_v36  ;;  %v14223_v36 = vld [vmem:[%s14943_s22 + $0xe0] ss:$12 sps:$4 sm:$0xff]  }
 0x443   : > { %13213 = vmatpush3.bf16.msra.mxu1 %v14178_v7  ;;  %v14224_v7 = vld [vmem:[%s14943_s22 + $0x20] ss:$12 sps:$4 sm:$0xff]  }
 0x4dd   : > { %v3095_v9 = vpop.f32.mrb[12].mxu1 }
 0x4de   : > { %v13435_v11 = vpop.f32.mrb[13].mxu1 }
 0x4df   : > { %v14226_v11 = vld [vmem:[%s14943_s22 + $0x38] ss:$12 sps:$4 sm:$0xff]  }
 0x4e1   : > { %v3251_v17 = vpop.f32.mrb[14].mxu1 }
 0x4e2   : > { %v13445_v18 = vpop.f32.mrb[15].mxu1 }
 0x4e3   : > { %v14228_v18 = vld [vmem:[%s14943_s22 + $0x50] ss:$12 sps:$4 sm:$0xff]  }
 0x4e5   : > { %v3407_v19 = vpop.f32.mrb[16].mxu1 }
 0x4e6   : > { %v13455_v20 = vpop.f32.mrb[17].mxu1 }
 0x4e7   : > { %v14230_v20 = vld [vmem:[%s14943_s22 + $0x68] ss:$12 sps:$4 sm:$0xff]  }
 0x4e9   : > { %v3563_v23 = vpop.f32.mrb[18].mxu1 }
 0x4ea   : > { %v13465_v37 = vpop.f32.mrb[19].mxu1 }
 0x4eb   : > { %v14232_v37 = vld [vmem:[%s14943_s22 + $0x80] ss:$12 sps:$4 sm:$0xff]  }
 0x4ed   : > { %v3719_v33 = vpop.f32.mrb[20].mxu1 }
 0x4ee   : > { %v15588_v58 = vpack.c.bf16 %v3719_v33, %v3095_v9  ;;  %v13475_v25 = vpop.f32.mrb[21].mxu1  ;;  %v14225_v9 = vld [vmem:[%s14943_s22 + $0xf8] ss:$12 sps:$4 sm:$0xff]  }
 0x4ef   : > { %v14233_v33 = vld [vmem:[%s14943_s22 + $0x158] ss:$12 sps:$4 sm:$0xff]  }
 0x4f0   : > { %v14234_v25 = vld [vmem:[%s14943_s22 + $0x98] ss:$12 sps:$4 sm:$0xff]  }
 0x4f1   : > { %v3875_v22 = vpop.f32.mrb[22].mxu1 }
 0x4f2   : > { %v15590_v63 = vpack.c.bf16 %v3875_v22, %v3251_v17  ;;  %v13485_v48 = vpop.f32.mrb[23].mxu1  ;;  %v14227_v17 = vld [vmem:[%s14943_s22 + $0x110] ss:$12 sps:$4 sm:$0xff]  }
 0x4f3   : > { %v14235_v22 = vld [vmem:[%s14943_s22 + $0x170] ss:$12 sps:$4 sm:$0xff]  }
 0x4f4   : > { %4893 = vmatprep.mubr.bf16.mxu0 %v15590_v63 }
 0x4f5   : > { %v4031_v5 = vpop.f32.mrb[24].mxu1  ;;  %4894 = vmatmul.mubr.bf16.vlgmr.msra.gmra.mrb[32].mxu0 %v15588_v58 }
 0x4f6   : > { %v15596_v52 = vpack.c.bf16 %v4031_v5, %v3407_v19  ;;  %4905 = vmatpush1.bf16.msra.mxu0 %v14169_v39  ;;  %v13495_v42 = vpop.f32.mrb[25].mxu1  ;;  %v14229_v19 = vld [vmem:[%s14943_s22 + $0x128] ss:$12 sps:$4 sm:$0xff]  }
 0x4f7   : > { %4906 = vmatprep.subr.bf16.mxu0 %v14176_v35 }
 0x4f9   : > { %v4187_v6 = vpop.f32.mrb[26].mxu1 }
 0x4fa   : > { %v4203_v21 = vpack.c.bf16 %v4187_v6, %v3563_v23  ;;  %4907 = vmatpush1.bf16.msra.mxu0 %v14174_v43  ;;  %v13505_v40 = vpop.f32.mrb[27].mxu1  ;;  %v14231_v23 = vld [vmem:[%s14943_s22 + $0x140] ss:$12 sps:$4 sm:$0xff]  }
 0x4fb   : > { %4908 = vmatprep.subr.bf16.mxu0 %v14181_v16  ;;  %v4332_v40 = vld [vmem:[%s16842_s6] sm:$0x7] }
 0x4fc   : > { %4936 = vmatprep.mubr.bf16.mxu0 %v4203_v21  ;;  %5020 = vmatprep.mubr.bf16.mxu1 %v4203_v21 }
 0x4fd   : > { %5021 = vmatmul.mubr.bf16.vlgmr.msra.gmra.mrb[28].mxu1 %v15596_v52 }
 0x4fe   : > { %4909 = vmatpush1.bf16.msra.mxu0 %v14179_v41  ;;  %v4337_v41 = vrot.slane %v4332_v40, %v15362_v27 }
 0x4ff   : > { %4910 = vmatprep.subr.bf16.mxu0 %v14184_v24  ;;  %v4341_v24 = vrot.slane %v4332_v40, %v15371_v31 }
 0x502   : > { %4911 = vmatpush1.bf16.msra.mxu0 %v14182_v49  ;;  %v4345_v49 = vrot.slane %v4332_v40, %v15282_v13 }
 0x503   : > { %4912 = vmatprep.subr.bf16.mxu0 %v14187_v45 }
 0x506   : > { %4913 = vmatpush1.bf16.msra.mxu0 %v14185_v26 }
 0x507   : > { %4914 = vmatprep.subr.bf16.mxu0 %v14190_v46 }
 0x50a   : > { %4915 = vmatpush1.bf16.msra.mxu0 %v14188_v50 }
 0x50b   : > { %4916 = vmatprep.subr.bf16.mxu0 %v14193_v47 }
 0x50e   : > { %4917 = vmatpush1.bf16.msra.mxu0 %v14191_v4 }
 0x50f   : > { %4918 = vmatprep.subr.bf16.mxu0 %v14196_v53 }
 0x512   : > { %4919 = vmatpush1.bf16.msra.mxu0 %v14194_v10 }
 0x513   : > { %4920 = vmatprep.subr.bf16.mxu0 %v14199_v30 }
 0x516   : > { %4921 = vmatpush1.bf16.msra.mxu0 %v14197_v57 }
 0x517   : > { %4922 = vmatprep.subr.bf16.mxu0 %v14202_v59  ;;  %v14789_v59 = vld [vmem:[#allocation2] sm:$0xff] }
 0x51a   : > { %4923 = vmatpush1.bf16.msra.mxu0 %v14200_v54 }
 0x51b   : > { %4924 = vmatprep.subr.bf16.mxu0 %v14205_v12  ;;  %v14790_v12 = vld [vmem:[#allocation2 + $0x8] sm:$0xff] }
 0x51e   : > { %4925 = vmatpush1.bf16.msra.mxu0 %v14203_v60 }
 0x51f   : > { %4926 = vmatprep.subr.bf16.mxu0 %v14208_v34 }
 0x522   : > { %4927 = vmatpush1.bf16.msra.mxu0 %v14206_v14 }
 0x523   : > { %4928 = vmatprep.subr.bf16.mxu0 %v14211_v61  ;;  %v14791_v61 = vld [vmem:[#allocation2 + $0x18] sm:$0xff] }
 0x526   : > { %4929 = vmatpush1.bf16.msra.mxu0 %v14209_v29 }
 0x527   : > { %4930 = vmatprep.subr.bf16.mxu0 %v14214_v62  ;;  %v14792_v62 = vld [vmem:[#allocation2 + $0x20] sm:$0xff] }
 0x52a   : > { %4931 = vmatpush1.bf16.msra.mxu0 %v14212_v55 }
 0x52b   : > { %4932 = vmatprep.subr.bf16.mxu0 %v14217_v32 }
 0x52e   : > { %4933 = vmatpush1.bf16.msra.mxu0 %v14215_v56  ;;  %v14793_v56 = vld [vmem:[#allocation2 + $0x10] sm:$0xff] }
 0x52f   : > { %4934 = vmatprep.subr.bf16.mxu0 %v14220_v0 }
 0x532   : > { %4935 = vmatpush1.bf16.msra.mxu0 %v14218_v1 }
 0x533   : > { %13176 = vmatprep.subr.bf16.mxu0 %v14221_v2 }
 0x535   : > { %4937 = vmatmul.mubr.bf16.vlgmr.msra.gmra.mrb[32].mxu0 %v15596_v52 }
 0x536   : > { %13177 = vmatpush3.bf16.msra.mxu0 %v14222_v3  ;;  %4979 = vmatprep.mubr.bf16.mxu0 %v15590_v63  ;;  %v14236_v63 = vld [vmem:[%s14943_s22 + $0xb0] ss:$12 sps:$4 sm:$0xff]   ;;  %v14794_v3 = vld [vmem:[#allocation2 + $0x28] sm:$0xff] }
 0x537   : > { %13178 = vmatprep.subr.bf16.mxu0 %v14223_v36 }
 0x53a   : > { %13179 = vmatpush3.bf16.msra.mxu0 %v14224_v7 }
 0x53b   : > { %13180 = vmatprep.subr.bf16.mxu0 %v14225_v9 }
 0x53e   : > { %13181 = vmatpush3.bf16.msra.mxu0 %v14226_v11 }
 0x53f   : > { %13182 = vmatprep.subr.bf16.mxu0 %v14227_v17 }
 0x542   : > { %13183 = vmatpush3.bf16.msra.mxu0 %v14228_v18  ;;  %v5131_v18 = vld [vmem:[%s14952_s17] sm:$0xff] }
 0x543   : > { %13184 = vmatprep.subr.bf16.mxu0 %v14229_v19  ;;  %v5139_v19 = vld [vmem:[%s14952_s17 + $0x40] sm:$0xff] }
 0x546   : > { %13185 = vmatpush3.bf16.msra.mxu0 %v14230_v20  ;;  %v5132_v20 = vld [vmem:[%s14952_s17 + $0x8] sm:$0xff] }
 0x547   : > { %13186 = vmatprep.subr.bf16.mxu0 %v14231_v23  ;;  %v12356_v23 = vcombine.low %v5131_v18, %v5139_v19 }
 0x54a   : > { %13187 = vmatpush3.bf16.msra.mxu0 %v14232_v37  ;;  %v12357_v37 = vcombine.high %v5131_v18, %v5139_v19  ;;  %v5236_v18 = vld [vmem:[%s14952_s17 + $0x348] sm:$0xff] }
 0x54b   : > { %13188 = vmatprep.subr.bf16.mxu0 %v14233_v33  ;;  %v5140_v33 = vld [vmem:[%s14952_s17 + $0x48] sm:$0xff] }
 0x54c   : > { %7426 = vmatprep.subr.bf16.mxu1 %v12357_v37 }
 0x54d   : > { %7427 = vmatpush1.bf16.msra.mxu1 %v12356_v23 }
 0x54e   : > { %13189 = vmatpush3.bf16.msra.mxu0 %v14234_v25  ;;  %v5147_v25 = vld [vmem:[%s14952_s17 + $0x80] sm:$0xff] }
 0x54f   : > { %13190 = vmatprep.subr.bf16.mxu0 %v14235_v22  ;;  %v5155_v22 = vld [vmem:[%s14952_s17 + $0xc0] sm:$0xff] }
 0x552   : > { %13191 = vmatpush3.bf16.msra.mxu0 %v14236_v63  ;;  %v12358_v63 = vcombine.low %v5132_v20, %v5140_v33 }
 0x555   : > { %4980 = vmatmul.mubr.bf16.vlgmr.msra.gmra.mrb[36].mxu0 %v15588_v58 }
 0x5d0   : > { %v13214_v48 = vpop.f32.mrb[28].mxu1 }
 0x5d1   : > { %v13215_v39 = vpop.f32.mrb[29].mxu1 }
 0x5d2   : > { %v13216_v35 = vadd.f32 %v13215_v39, %v13214_v48  ;;  %v13217_v5 = vpop.f32.mrb[30].mxu1  ;;  %v12359_v48 = vcombine.high %v5132_v20, %v5140_v33  ;;  %v12373_v39 = vcombine.high %v5147_v25, %v5155_v22  ;;  %v5243_v33 = vld [vmem:[%s14952_s17 + $0x380] sm:$0xff] }
 0x5d3   : > { %v13218_v52 = vpop.f32.mrb[31].mxu1 }
 0x5d4   : > { %v13219_v42 = vadd.f32 %v13218_v52, %v13217_v5  ;;  %v5156_v5 = vld [vmem:[%s14952_s17 + $0xc8] sm:$0xff]  ;;  %v5163_v52 = vld [vmem:[%s14952_s17 + $0x100] sm:$0xff]  ;;  %7512 = vmatprep.subr.bf16.mxu0 %v12359_v48  ;;  %7428 = vmatprep.subr.bf16.mxu1 %v12373_v39 }
 0x5d5   : > { %7513 = vmatpush1.bf16.msra.mxu0 %v12358_v63  ;;  %v5252_v63 = vld [vmem:[%s14952_s17 + $0x3c8] sm:$0xff] }
 0x608   : > { %v4938_v43 = vpop.f32.mrb[32].mxu0 }
 0x609   : > { %v4940_v16 = vpop.f32.mrb[33].mxu0  ;;  %v13552_v45 = vadd.f32 %v4938_v43, %v4337_v41  ;;  %v5171_v43 = vld [vmem:[%s14952_s17 + $0x140] sm:$0xff] }
 0x60a   : > { %v4942_v6 = vpop.f32.mrb[34].mxu0  ;;  %v13553_v26 = vadd.f32 %v4940_v16, %v4341_v24  ;;  %v5164_v16 = vld [vmem:[%s14952_s17 + $0x108] sm:$0xff] }
 0x60b   : > { %v4944_v21 = vpop.f32.mrb[35].mxu0  ;;  %v13554_v4 = vadd.f32 %v4942_v6, %v4337_v41  ;;  %v15655_v54 = vadd.f32 %v14789_v59, %v13552_v45  ;;  %v5172_v6 = vld [vmem:[%s14952_s17 + $0x148] sm:$0xff]  ;;  %v12389_v41 = vcombine.high %v5163_v52, %v5171_v43 }
 0x60c   : > { %v13555_v53 = vadd.f32 %v4944_v21, %v4341_v24  ;;  %v15657_v60 = vadd.f32 %v14790_v12, %v13553_v26  ;;  %v12372_v21 = vcombine.low %v5147_v25, %v5155_v22  ;;  %v12391_v24 = vcombine.high %v5164_v16, %v5172_v6  ;;  %v5180_v45 = vld [vmem:[%s14952_s17 + $0x188] sm:$0xff]  ;;  %v5251_v25 = vld [vmem:[%s14952_s17 + $0x3c0] sm:$0xff] }
 0x60d   : > { %v15659_v29 = vadd.f32 %v14791_v61, %v13554_v4  ;;  %v5188_v26 = vld [vmem:[%s14952_s17 + $0x1c8] sm:$0xff]  ;;  %v5211_v61 = vld [vmem:[%s14952_s17 + $0x280] sm:$0xff] }
 0x60e   : > { %v15661_v55 = vadd.f32 %v14792_v62, %v13555_v53  ;;  %v5037_v1 = vadd.f32 %v15657_v60, %v15655_v54  ;;  %7429 = vmatpush1.bf16.msra.mxu1 %v12372_v21  ;;  %v12407_v4 = vcombine.high %v5180_v45, %v5188_v26  ;;  %v5195_v53 = vld [vmem:[%s14952_s17 + $0x200] sm:$0xff]  ;;  %v12406_v12 = vcombine.low %v5180_v45, %v5188_v26  ;;  %v5244_v22 = vld [vmem:[%s14952_s17 + $0x388] sm:$0xff] }
 0x60f   : > { %7430 = vmatprep.subr.bf16.mxu1 %v12389_v41  ;;  %v5219_v62 = vld [vmem:[%s14952_s17 + $0x2c0] sm:$0xff]  ;;  %v12470_v21 = vcombine.low %v5244_v22, %v5252_v63  ;;  %v5284_v45 = vld [vmem:[%s14952_s17 + $0x4c8] sm:$0xff] }
 0x610   : > { %v5042_v9 = vadd.f32 %v15661_v55, %v15659_v29  ;;  %v12436_v19 = vcombine.low %v5211_v61, %v5219_v62 }
 0x628   : > { %v13192_v58 = vpop.f32.mrb[36].mxu0 }
 0x629   : > { %v13193_v46 = vpop.f32.mrb[37].mxu0 }
 0x62a   : > { %v13194_v50 = vadd.f32 %v13193_v46, %v13192_v58  ;;  %v13195_v47 = vpop.f32.mrb[38].mxu0  ;;  %v5179_v58 = vld [vmem:[%s14952_s17 + $0x180] sm:$0xff]  ;;  %v12388_v46 = vcombine.low %v5163_v52, %v5171_v43  ;;  %v5260_v43 = vld [vmem:[%s14952_s17 + $0x408] sm:$0xff] }
 0x62b   : > { %v13196_v10 = vpop.f32.mrb[39].mxu0  ;;  %v5259_v52 = vld [vmem:[%s14952_s17 + $0x400] sm:$0xff] }
 0x62c   : > { %v4982_v30 = vadd.f32 %v13194_v50, %v4345_v49  ;;  %v13197_v57 = vadd.f32 %v13196_v10, %v13195_v47  ;;  %v12390_v50 = vcombine.low %v5164_v16, %v5172_v6  ;;  %v5203_v10 = vld [vmem:[%s14952_s17 + $0x240] sm:$0xff]  ;;  %7431 = vmatpush1.bf16.msra.mxu1 %v12388_v46  ;;  %v5268_v16 = vld [vmem:[%s14952_s17 + $0x448] sm:$0xff]  ;;  %v12468_v6 = vcombine.low %v5243_v33, %v5251_v25 }
 0x62d   : > { %v12487_v41 = vcombine.high %v5260_v43, %v5268_v16  ;;  %v12486_v46 = vcombine.low %v5260_v43, %v5268_v16  ;;  %v5331_v43 = vld [vmem:[%s14952_s17 + $0x640] sm:$0xff]  ;;  %v5324_v16 = vld [vmem:[%s14952_s17 + $0x608] sm:$0xff] }
 0x62e   : > { %v5023_v34 = vadd.f32 %v13216_v35, %v4982_v30  ;;  %v4985_v14 = vadd.f32 %v13197_v57, %v4345_v49  ;;  %v5148_v35 = vld [vmem:[%s14952_s17 + $0x88] sm:$0xff]  ;;  %v5187_v49 = vld [vmem:[%s14952_s17 + $0x1c0] sm:$0xff] }
 0x62f   : > { %v12374_v40 = vcombine.low %v5148_v35, %v5156_v5  ;;  %v12405_v47 = vcombine.high %v5179_v58, %v5187_v49  ;;  %v5196_v30 = vld [vmem:[%s14952_s17 + $0x208] sm:$0xff]  ;;  %v12404_v59 = vcombine.low %v5179_v58, %v5187_v49  ;;  %v5283_v58 = vld [vmem:[%s14952_s17 + $0x4c0] sm:$0xff] }
 0x630   : > { %v5026_v32 = vadd.f32 %v13219_v42, %v4985_v14  ;;  %v15663_v0 = vadd.f32 %v14793_v56, %v5023_v34  ;;  %v12375_v42 = vcombine.high %v5148_v35, %v5156_v5  ;;  %v5204_v57 = vld [vmem:[%s14952_s17 + $0x248] sm:$0xff]  ;;  %v12421_v34 = vcombine.high %v5195_v53, %v5203_v10 }
 0x631   : > { %7432 = vmatprep.subr.bf16.mxu1 %v12405_v47  ;;  %v12423_v14 = vcombine.high %v5196_v30, %v5204_v57  ;;  %v5220_v56 = vld [vmem:[%s14952_s17 + $0x2c8] sm:$0xff]  ;;  %v12469_v35 = vcombine.high %v5243_v33, %v5251_v25  ;;  %v12471_v5 = vcombine.high %v5244_v22, %v5252_v63  ;;  %v5307_v25 = vld [vmem:[%s14952_s17 + $0x580] sm:$0xff] }
 0x632   : > { %v5038_v2 = vsel %vm2423_vm1, %v15663_v0, 0.0  ;;  %v15669_v36 = vadd.f32 %v14794_v3, %v5026_v32  ;;  %7514 = vmatprep.subr.bf16.mxu0 %v12375_v42  ;;  %v5212_v32 = vld [vmem:[%s14952_s17 + $0x288] sm:$0xff]  ;;  %7433 = vmatpush1.bf16.msra.mxu1 %v12404_v59  ;;  %v12437_v3 = vcombine.high %v5211_v61, %v5219_v62  ;;  %v5267_v42 = vld [vmem:[%s14952_s17 + $0x440] sm:$0xff] }
 0x633   : > { %v5039_v7 = vadd.f32 %v5038_v2, %v5037_v1  ;;  %7515 = vmatpush1.bf16.msra.mxu0 %v12374_v40  ;;  %v12420_v1 = vcombine.low %v5195_v53, %v5203_v10  ;;  %7434 = vmatprep.subr.bf16.mxu1 %v12421_v34  ;;  %v12422_v2 = vcombine.low %v5196_v30, %v5204_v57  ;;  %v5276_v49 = vld [vmem:[%s14952_s17 + $0x488] sm:$0xff]  ;;  %v5315_v22 = vld [vmem:[%s14952_s17 + $0x5c0] sm:$0xff] }
 0x634   : > { %v5043_v11 = vsel %vm2423_vm1, %v15669_v36, 0.0  ;;  %7516 = vmatprep.subr.bf16.mxu0 %v12391_v24  ;;  %v12438_v20 = vcombine.low %v5212_v32, %v5220_v56  ;;  %v12485_v40 = vcombine.high %v5259_v52, %v5267_v42  ;;  %v5275_v24 = vld [vmem:[%s14952_s17 + $0x480] sm:$0xff]  ;;  %v12484_v26 = vcombine.low %v5259_v52, %v5267_v42  ;;  %v5308_v63 = vld [vmem:[%s14952_s17 + $0x588] sm:$0xff] }
 0x635   : > { %5040 = vadd.xlane.f32.xlu0 %v5039_v7  ;;  %v5044_v17 = vadd.f32 %v5043_v11, %v5042_v9  ;;  %v12439_v7 = vcombine.high %v5212_v32, %v5220_v56  ;;  %v5227_v9 = vld [vmem:[%s14952_s17 + $0x300] sm:$0xff]  ;;  %v12503_v47 = vcombine.high %v5276_v49, %v5284_v45  ;;  %v12502_v53 = vcombine.low %v5276_v49, %v5284_v45  ;;  %v5340_v45 = vld [vmem:[%s14952_s17 + $0x688] sm:$0xff] }
 0x636   : > { %v5235_v11 = vld [vmem:[%s14952_s17 + $0x340] sm:$0xff]  ;;  %7435 = vmatpush1.bf16.msra.mxu1 %v12420_v1 }
 0x637   : > { %5045 = vadd.xlane.f32.xlu1 %v5044_v17  ;;  %7517 = vmatpush1.bf16.msra.mxu0 %v12390_v50  ;;  %v5228_v17 = vld [vmem:[%s14952_s17 + $0x308] sm:$0xff]  ;;  %v12453_v23 = vcombine.high %v5227_v9, %v5235_v11  ;;  %v12452_v48 = vcombine.low %v5227_v9, %v5235_v11  ;;  %v12501_v50 = vcombine.high %v5275_v24, %v5283_v58  ;;  %v5291_v11 = vld [vmem:[%s14952_s17 + $0x500] sm:$0xff] }
 0x638   : > { %7518 = vmatprep.subr.bf16.mxu0 %v12407_v4  ;;  %7436 = vmatprep.subr.bf16.mxu1 %v12437_v3  ;;  %v12455_v37 = vcombine.high %v5228_v17, %v5236_v18  ;;  %v12454_v39 = vcombine.low %v5228_v17, %v5236_v18  ;;  %v12500_v4 = vcombine.low %v5275_v24, %v5283_v58  ;;  %v5299_v17 = vld [vmem:[%s14952_s17 + $0x540] sm:$0xff]  ;;  %v5292_v18 = vld [vmem:[%s14952_s17 + $0x508] sm:$0xff] }
 0x639   : > { %v5323_v42 = vld [vmem:[%s14952_s17 + $0x600] sm:$0xff] }
 0x63a   : > { %7437 = vmatpush1.bf16.msra.mxu1 %v12436_v19  ;;  %v12517_v19 = vcombine.high %v5291_v11, %v5299_v17  ;;  %v5339_v58 = vld [vmem:[%s14952_s17 + $0x680] sm:$0xff] }
 0x63b   : > { %7519 = vmatpush1.bf16.msra.mxu0 %v12406_v12  ;;  %7438 = vmatprep.subr.bf16.mxu1 %v12453_v23  ;;  %v12516_v23 = vcombine.low %v5291_v11, %v5299_v17  ;;  %v5347_v49 = vld [vmem:[%s14952_s17 + $0x6c0] sm:$0xff]  ;;  %v5388_v17 = vld [vmem:[%s14952_s17 + $0x808] sm:$0xff] }
 0x63c   : > { %7520 = vmatprep.subr.bf16.mxu0 %v12423_v14  ;;  %v5395_v11 = vld [vmem:[%s14952_s17 + $0x840] sm:$0xff] }
 0x63e   : > { %7439 = vmatpush1.bf16.msra.mxu1 %v12452_v48  ;;  %v12533_v48 = vcombine.high %v5307_v25, %v5315_v22 }
 0x63f   : > { %7521 = vmatpush1.bf16.msra.mxu0 %v12422_v2  ;;  %7440 = vmatprep.subr.bf16.mxu1 %v12469_v35  ;;  %v12532_v35 = vcombine.low %v5307_v25, %v5315_v22 }
 0x640   : > { %7522 = vmatprep.subr.bf16.mxu0 %v12439_v7 }
 0x642   : > { %7441 = vmatpush1.bf16.msra.mxu1 %v12468_v6  ;;  %v12549_v6 = vcombine.high %v5323_v42, %v5331_v43 }
 0x643   : > { %7523 = vmatpush1.bf16.msra.mxu0 %v12438_v20  ;;  %7442 = vmatprep.subr.bf16.mxu1 %v12485_v40  ;;  %v5300_v20 = vld [vmem:[%s14952_s17 + $0x548] sm:$0xff]  ;;  %v12548_v40 = vcombine.low %v5323_v42, %v5331_v43 }
 0x644   : > { %7524 = vmatprep.subr.bf16.mxu0 %v12455_v37  ;;  %v12518_v37 = vcombine.low %v5292_v18, %v5300_v20  ;;  %v12519_v33 = vcombine.high %v5292_v18, %v5300_v20 }
 0x646   : > { %7443 = vmatpush1.bf16.msra.mxu1 %v12484_v26  ;;  %v12565_v26 = vcombine.high %v5339_v58, %v5347_v49 }
 0x647   : > { %7525 = vmatpush1.bf16.msra.mxu0 %v12454_v39  ;;  %7444 = vmatprep.subr.bf16.mxu1 %v12501_v50  ;;  %v5316_v39 = vld [vmem:[%s14952_s17 + $0x5c8] sm:$0xff]  ;;  %v12564_v50 = vcombine.low %v5339_v58, %v5347_v49 }
 0x648   : > { %7526 = vmatprep.subr.bf16.mxu0 %v12471_v5  ;;  %v12534_v5 = vcombine.low %v5308_v63, %v5316_v39  ;;  %v12535_v52 = vcombine.high %v5308_v63, %v5316_v39 }
 0x64a   : > { %7445 = vmatpush1.bf16.msra.mxu1 %v12500_v4 }
 0x64b   : > { %7527 = vmatpush1.bf16.msra.mxu0 %v12470_v21  ;;  %7446 = vmatprep.subr.bf16.mxu1 %v12517_v19  ;;  %v5332_v21 = vld [vmem:[%s14952_s17 + $0x648] sm:$0xff] }
 0x64c   : > { %7528 = vmatprep.subr.bf16.mxu0 %v12487_v41  ;;  %v12550_v41 = vcombine.low %v5324_v16, %v5332_v21  ;;  %v12551_v24 = vcombine.high %v5324_v16, %v5332_v21  ;;  %v5396_v19 = vld [vmem:[%s14952_s17 + $0x848] sm:$0xff] }
 0x64e   : > { %7447 = vmatpush1.bf16.msra.mxu1 %v12516_v23  ;;  %v12614_v23 = vcombine.low %v5388_v17, %v5396_v19 }
 0x64f   : > { %7529 = vmatpush1.bf16.msra.mxu0 %v12486_v46  ;;  %7448 = vmatprep.subr.bf16.mxu1 %v12533_v48  ;;  %v5348_v46 = vld [vmem:[%s14952_s17 + $0x6c8] sm:$0xff] }
 0x650   : > { %7530 = vmatprep.subr.bf16.mxu0 %v12503_v47  ;;  %v12566_v47 = vcombine.low %v5340_v45, %v5348_v46  ;;  %v12567_v4 = vcombine.high %v5340_v45, %v5348_v46 }
 0x652   : > { %7449 = vmatpush1.bf16.msra.mxu1 %v12532_v35  ;;  %v15780_v35 = vld [vmem:[%s663_s24] sm:$0x7] }
 0x653   : > { %7531 = vmatpush1.bf16.msra.mxu0 %v12502_v53  ;;  %7450 = vmatprep.subr.bf16.mxu1 %v12549_v6  ;;  %v5355_v53 = vld [vmem:[%s14952_s17 + $0x700] sm:$0xff]  ;;  %v5092_v42 = vrot.slane %v15780_v35, %v15371_v31 }
 0x654   : > { %7532 = vmatprep.subr.bf16.mxu0 %v12519_v33 }
 0x656   : > { %7451 = vmatpush1.bf16.msra.mxu1 %v12548_v40 }
 0x657   : > { %7533 = vmatpush1.bf16.msra.mxu0 %v12518_v37  ;;  %7452 = vmatprep.subr.bf16.mxu1 %v12565_v26  ;;  %v12615_v37 = vcombine.high %v5388_v17, %v5396_v19 }
 0x658   : > { %7534 = vmatprep.subr.bf16.mxu0 %v12535_v52  ;;  %v5088_v52 = vrot.slane %v15780_v35, %v15362_v27 }
 0x65a   : > { %7453 = vmatpush1.bf16.msra.mxu1 %v12564_v50 }
 0x65b   : > { %7535 = vmatpush1.bf16.msra.mxu0 %v12534_v5  ;;  %v15787_v5 = vld [vmem:[%s667_s27] sm:$0x7]  ;;  %s16843_s27 = sld [smem:[#allocation5_spill]] }
 0x65c   : > { %7536 = vmatprep.subr.bf16.mxu0 %v12551_v24  ;;  %v5110_v40 = vrot.slane %v15787_v5, %v15362_v27 }
 0x65f   : > { %7537 = vmatpush1.bf16.msra.mxu0 %v12550_v41  ;;  %v5114_v41 = vrot.slane %v15787_v5, %v15371_v31 }
 0x660   : > { %7538 = vmatprep.subr.bf16.mxu0 %v12567_v4 }
 0x663   : > { %7539 = vmatpush1.bf16.msra.mxu0 %v12566_v47 }
 0x6c2   : > { %v5041_v10 = vpop.xlane.xlu0 %5040 }
 0x6c3   : > { %v5048_v30 = vmul.f32 0.0027173914, %v5041_v10  ;;  %v5363_v10 = vld [vmem:[%s14952_s17 + $0x740] sm:$0xff] }
 0x6c4   : > { %v5046_v57 = vpop.xlane.xlu1 %5045 }
 0x6c5   : > { %v15716_v59 = vsub.f32 %v15655_v54, %v5048_v30  ;;  %v15719_v12 = vsub.f32 %v15657_v60, %v5048_v30  ;;  %v15722_v34 = vsub.f32 %v15663_v0, %v5048_v30  ;;  %v5049_v14 = vmul.f32 0.0027173914, %v5046_v57  ;;  %v5356_v30 = vld [vmem:[%s14952_s17 + $0x708] sm:$0xff] }
 0x6c6   : > { %v12581_v57 = vcombine.high %v5355_v53, %v5363_v10 }
 0x6c7   : > { %v15725_v61 = vsub.f32 %v15659_v29, %v5049_v14  ;;  %v15728_v62 = vsub.f32 %v15661_v55, %v5049_v14  ;;  %v15731_v32 = vsub.f32 %v15669_v36, %v5049_v14  ;;  %v5056_v54 = vmul.f32 %v15716_v59, %v15716_v59  ;;  %v5364_v14 = vld [vmem:[%s14952_s17 + $0x748] sm:$0xff] }
 0x6c8   : > { %v5057_v60 = vmul.f32 %v15719_v12, %v15719_v12  ;;  %v5058_v0 = vmul.f32 %v15722_v34, %v15722_v34  ;;  %7454 = vmatprep.subr.bf16.mxu1 %v12581_v57 }
 0x6c9   : > { %v5059_v29 = vmul.f32 %v15725_v61, %v15725_v61  ;;  %v5060_v55 = vmul.f32 %v15728_v62, %v15728_v62  ;;  %v5061_v36 = vmul.f32 %v15731_v32, %v15731_v32 }
 0x6ca   : > { %v5062_v56 = vadd.f32 %v5057_v60, %v5056_v54  ;;  %v5063_v1 = vsel %vm2423_vm1, %v5058_v0, 0.0  ;;  %v12580_v54 = vcombine.low %v5355_v53, %v5363_v10  ;;  %v12582_v60 = vcombine.low %v5356_v30, %v5364_v14  ;;  %v5404_v53 = vld [vmem:[%s14952_s17 + $0x888] sm:$0xff] }
 0x6cb   : > { %v5067_v2 = vadd.f32 %v5060_v55, %v5059_v29  ;;  %v5068_v3 = vsel %vm2423_vm1, %v5061_v36, 0.0  ;;  %v12583_v0 = vcombine.high %v5356_v30, %v5364_v14  ;;  %v5371_v29 = vld [vmem:[%s14952_s17 + $0x780] sm:$0xff]  ;;  %v5372_v36 = vld [vmem:[%s14952_s17 + $0x788] sm:$0xff] }
 0x6cc   : > { %v5064_v7 = vadd.f32 %v5063_v1, %v5062_v56  ;;  %7455 = vmatpush1.bf16.msra.mxu1 %v12580_v54  ;;  %v5379_v55 = vld [vmem:[%s14952_s17 + $0x7c0] sm:$0xff]  ;;  %v5380_v1 = vld [vmem:[%s14952_s17 + $0x7c8] sm:$0xff] }
 0x6cd   : > { %v5069_v9 = vadd.f32 %v5068_v3, %v5067_v2  ;;  %7540 = vmatprep.subr.bf16.mxu0 %v12583_v0  ;;  %v12597_v56 = vcombine.high %v5371_v29, %v5379_v55  ;;  %v12596_v2 = vcombine.low %v5371_v29, %v5379_v55  ;;  %v12598_v3 = vcombine.low %v5372_v36, %v5380_v1  ;;  %v5419_v54 = vld [vmem:[%s14952_s17 + $0x900] sm:$0xff]  ;;  %v5420_v0 = vld [vmem:[%s14952_s17 + $0x908] sm:$0xff] }
 0x6ce   : > { %5065 = vadd.xlane.f32.xlu0 %v5064_v7  ;;  %7541 = vmatpush1.bf16.msra.mxu0 %v12582_v60  ;;  %v12599_v7 = vcombine.high %v5372_v36, %v5380_v1  ;;  %v5427_v60 = vld [vmem:[%s14952_s17 + $0x940] sm:$0xff]  ;;  %v5428_v29 = vld [vmem:[%s14952_s17 + $0x948] sm:$0xff] }
 0x6cf   : > { %5070 = vadd.xlane.f32.xlu1 %v5069_v9  ;;  %7456 = vmatprep.subr.bf16.mxu1 %v12597_v56  ;;  %v5387_v9 = vld [vmem:[%s14952_s17 + $0x800] sm:$0xff]  ;;  %v12645_v56 = vcombine.high %v5419_v54, %v5427_v60  ;;  %v12647_v1 = vcombine.high %v5420_v0, %v5428_v29  ;;  %v12646_v17 = vcombine.low %v5420_v0, %v5428_v29  ;;  %v5142_v0 = vld [vmem:[%s14952_s17 + $0x58] sm:$0xff] }
 0x6d0   : > { %7542 = vmatprep.subr.bf16.mxu0 %v12599_v7  ;;  %7457 = vmatpush1.bf16.msra.mxu1 %v12596_v2  ;;  %v12613_v18 = vcombine.high %v5387_v9, %v5395_v11  ;;  %v12612_v20 = vcombine.low %v5387_v9, %v5395_v11  ;;  %v5435_v2 = vld [vmem:[%s14952_s17 + $0x980] sm:$0xff]  ;;  %v5436_v7 = vld [vmem:[%s14952_s17 + $0x988] sm:$0xff]  ;;  %v12644_v11 = vcombine.low %v5419_v54, %v5427_v60  ;;  %v5141_v54 = vld [vmem:[%s14952_s17 + $0x50] sm:$0xff] }
 0x6d1   : > { %v5444_v9 = vld [vmem:[%s14952_s17 + $0x9c8] sm:$0xff]  ;;  %v5134_v60 = vld [vmem:[%s14952_s17 + $0x18] sm:$0xff] }
 0x6d2   : > { %7543 = vmatpush1.bf16.msra.mxu0 %v12598_v3  ;;  %7469 = vmatprep.subr.bf16.mxu1 %v12613_v18  ;;  %v5443_v3 = vld [vmem:[%s14952_s17 + $0x9c0] sm:$0xff]  ;;  %v12663_v19 = vcombine.high %v5436_v7, %v5444_v9 }
 0x6d3   : > { %7555 = vmatprep.subr.bf16.mxu0 %v12615_v37  ;;  %v12661_v18 = vcombine.high %v5435_v2, %v5443_v3  ;;  %v5452_v37 = vld [vmem:[%s14952_s17 + $0xa08] sm:$0xff] }
 0x75b   : > { %v5066_v33 = vpop.xlane.xlu0 %5065 }
 0x75c   : > { %v5072_v25 = vmul.f32 0.0027173914, %v5066_v33  ;;  %v5071_v22 = vpop.xlane.xlu1 %5070  ;;  %v5460_v33 = vld [vmem:[%s14952_s17 + $0xa48] sm:$0xff] }
 0x75d   : > { %v5073_v63 = vmul.f32 0.0027173914, %v5071_v22  ;;  %v12662_v22 = vcombine.low %v5436_v7, %v5444_v9  ;;  %v5150_v7 = vld [vmem:[%s14952_s17 + $0x98] sm:$0xff] }
 0x75e   : > { %v5074_v48 = vadd.f32 1e-05, %v5072_v25  ;;  %v12660_v25 = vcombine.low %v5435_v2, %v5443_v3  ;;  %v5157_v3 = vld [vmem:[%s14952_s17 + $0xd0] sm:$0xff] }
 0x75f   : > { %v5075_v39 = vadd.f32 1e-05, %v5073_v63 }
 0x760   : > { %14781 = vrsqrt.f32 %v5074_v48  ;;  %v12679_v48 = vcombine.high %v5452_v37, %v5460_v33 }
 0x761   : > { %14783 = vrsqrt.f32 %v5075_v39  ;;  %v5467_v39 = vld [vmem:[%s14952_s17 + $0xa80] sm:$0xff] }
 0x76a   : > { %v15793_v43 = vpop.eup %14781 }
 0x76b   : > { %v15795_v16 = vpop.eup %14783  ;;  %v5078_v6 = vmul.f32 %v15793_v43, %v15716_v59  ;;  %v5079_v21 = vmul.f32 %v15793_v43, %v15719_v12  ;;  %v5403_v12 = vld [vmem:[%s14952_s17 + $0x880] sm:$0xff] }
 0x76c   : > { %v5081_v24 = vmul.f32 %v15795_v16, %v15725_v61  ;;  %v5082_v58 = vmul.f32 %v15795_v16, %v15728_v62  ;;  %v5411_v61 = vld [vmem:[%s14952_s17 + $0x8c0] sm:$0xff]  ;;  %v5412_v62 = vld [vmem:[%s14952_s17 + $0x8c8] sm:$0xff] }
 0x76d   : > { %v5100_v49 = vmul.f32 %v5088_v52, %v5078_v6  ;;  %v5101_v59 = vmul.f32 %v5092_v42, %v5079_v21  ;;  %v12629_v57 = vcombine.high %v5403_v12, %v5411_v61  ;;  %v12631_v14 = vcombine.high %v5404_v53, %v5412_v62  ;;  %v5476_v6 = vld [vmem:[%s14952_s17 + $0xac8] sm:$0xff] }
 0x76e   : > { %v5103_v45 = vmul.f32 %v5088_v52, %v5081_v24  ;;  %v5104_v26 = vmul.f32 %v5092_v42, %v5082_v58  ;;  %v12628_v55 = vcombine.low %v5403_v12, %v5411_v61  ;;  %v12630_v36 = vcombine.low %v5404_v53, %v5412_v62  ;;  %v5475_v52 = vld [vmem:[%s14952_s17 + $0xac0] sm:$0xff]  ;;  %v5468_v42 = vld [vmem:[%s14952_s17 + $0xa88] sm:$0xff] }
 0x76f   : > { %v15810_v46 = vadd.f32 %v5110_v40, %v5100_v49  ;;  %v15812_v50 = vadd.f32 %v5114_v41, %v5101_v59  ;;  %v12693_v24 = vcombine.high %v5467_v39, %v5475_v52  ;;  %v12695_v58 = vcombine.high %v5468_v42, %v5476_v6  ;;  %v5483_v49 = vld [vmem:[%s14952_s17 + $0xb00] sm:$0xff] }
 0x770   : > { %v15814_v47 = vadd.f32 %v5110_v40, %v5103_v45  ;;  %v15816_v4 = vadd.f32 %v5114_v41, %v5104_v26  ;;  %v12678_v40 = vcombine.low %v5452_v37, %v5460_v33  ;;  %v5083_v41 = vmul.f32 %v15795_v16, %v15731_v32  ;;  %v5491_v59 = vld [vmem:[%s14952_s17 + $0xb40] sm:$0xff]  ;;  %v5484_v45 = vld [vmem:[%s14952_s17 + $0xb08] sm:$0xff]  ;;  %v5166_v37 = vld [vmem:[%s14952_s17 + $0x118] sm:$0xff] }
 0x771   : > { %v5492_v26 = vld [vmem:[%s14952_s17 + $0xb48] sm:$0xff]  ;;  %v5096_v12 = vrot.slane %v15780_v35, %v15282_v13  ;;  %v5080_v61 = vmul.f32 %v15793_v43, %v15722_v34  ;;  %v12692_v32 = vcombine.low %v5467_v39, %v5475_v52  ;;  %v12694_v16 = vcombine.low %v5468_v42, %v5476_v6  ;;  %v5174_v33 = vld [vmem:[%s14952_s17 + $0x158] sm:$0xff]  ;;  %v5181_v39 = vld [vmem:[%s14952_s17 + $0x190] sm:$0xff] }
 0x772   : > { %v15823_v10 = vpack.c.bf16 %v15816_v4, %v15812_v50  ;;  %v15827_v30 = vpack.c.bf16 %v15814_v47, %v15810_v46  ;;  %v12709_v62 = vcombine.high %v5483_v49, %v5491_v59  ;;  %v5118_v34 = vrot.slane %v15787_v5, %v15282_v13  ;;  %v5158_v5 = vld [vmem:[%s14952_s17 + $0xd8] sm:$0xff]  ;;  %v5189_v52 = vld [vmem:[%s14952_s17 + $0x1d0] sm:$0xff] }
 0x773   : > { %v5105_v53 = vmul.f32 %v5096_v12, %v5083_v41  ;;  %v5102_v35 = vmul.f32 %v5096_v12, %v5080_v61  ;;  %v12708_v43 = vcombine.low %v5483_v49, %v5491_v59  ;;  %v12710_v29 = vcombine.low %v5484_v45, %v5492_v26  ;;  %v5182_v42 = vld [vmem:[%s14952_s17 + $0x198] sm:$0xff]  ;;  %v5205_v49 = vld [vmem:[%s14952_s17 + $0x250] sm:$0xff] }
 0x774   : > { %7458 = vmatprep.mubr.bf16.mxu1 %v15823_v10  ;;  %7544 = vmatprep.mubr.bf16.mxu0 %v15823_v10  ;;  %v5190_v6 = vld [vmem:[%s14952_s17 + $0x1d8] sm:$0xff]  ;;  %v12409_v41 = vcombine.high %v5181_v39, %v5189_v52 }
 0x775   : > { %7459 = vmatmul.mubr.bf16.vlgmr.msra.gmra.mrb[32].mxu1 %v15827_v30  ;;  %7545 = vmatmul.mubr.bf16.vlgmr.msra.gmra.mrb[40].mxu0 %v15827_v30  ;;  %v15870_v2 = vadd.f32 %v5118_v34, %v5102_v35  ;;  %v5198_v59 = vld [vmem:[%s14952_s17 + $0x218] sm:$0xff]  ;;  %v12410_v12 = vcombine.low %v5182_v42, %v5190_v6  ;;  %v5237_v35 = vld [vmem:[%s14952_s17 + $0x350] sm:$0xff] }
 0x776   : > { %7470 = vmatpush1.bf16.msra.mxu1 %v12612_v20  ;;  %7556 = vmatpush1.bf16.msra.mxu0 %v12614_v23  ;;  %v5451_v20 = vld [vmem:[%s14952_s17 + $0xa00] sm:$0xff] }
 0x777   : > { %7471 = vmatprep.subr.bf16.mxu1 %v12629_v57  ;;  %7557 = vmatprep.subr.bf16.mxu0 %v12631_v14  ;;  %v5459_v23 = vld [vmem:[%s14952_s17 + $0xa40] sm:$0xff]  ;;  %v12711_v57 = vcombine.high %v5484_v45, %v5492_v26  ;;  %v5133_v14 = vld [vmem:[%s14952_s17 + $0x10] sm:$0xff]  ;;  %v5206_v45 = vld [vmem:[%s14952_s17 + $0x258] sm:$0xff]  ;;  %v12408_v26 = vcombine.low %v5181_v39, %v5189_v52 }
 0x778   : > { %7501 = vmatprep.mubr.bf16.mxu1 %v14826_v8  ;;  %7587 = vmatprep.mubr.bf16.mxu0 %v14826_v8  ;;  %v12677_v63 = vcombine.high %v5451_v20, %v5459_v23  ;;  %v12676_v21 = vcombine.low %v5451_v20, %v5459_v23  ;;  %v12360_v9 = vcombine.low %v5133_v14, %v5141_v54  ;;  %v5165_v20 = vld [vmem:[%s14952_s17 + $0x110] sm:$0xff] }
 0x779   : > { %v5173_v23 = vld [vmem:[%s14952_s17 + $0x150] sm:$0xff] }
 0x77a   : > { %7472 = vmatpush1.bf16.msra.mxu1 %v12628_v55  ;;  %7558 = vmatpush1.bf16.msra.mxu0 %v12630_v36  ;;  %v15867_v55 = vadd.f32 %v5118_v34, %v5105_v53  ;;  %v12361_v36 = vcombine.high %v5133_v14, %v5141_v54  ;;  %v5221_v53 = vld [vmem:[%s14952_s17 + $0x2d0] sm:$0xff]  ;;  %v12426_v54 = vcombine.low %v5198_v59, %v5206_v45 }
 0x77b   : > { %7473 = vmatprep.subr.bf16.mxu1 %v12645_v56  ;;  %7559 = vmatprep.subr.bf16.mxu0 %v12647_v1  ;;  %v12363_v56 = vcombine.high %v5134_v60, %v5142_v0  ;;  %v5149_v1 = vld [vmem:[%s14952_s17 + $0x90] sm:$0xff] }
 0x77c   : > { %v5229_v34 = vld [vmem:[%s14952_s17 + $0x310] sm:$0xff] }
 0x77e   : > { %7474 = vmatpush1.bf16.msra.mxu1 %v12644_v11  ;;  %7560 = vmatpush1.bf16.msra.mxu0 %v12646_v17  ;;  %v15877_v11 = vpack.c.bf16 %v15867_v55, %v15870_v2  ;;  %v12362_v17 = vcombine.low %v5134_v60, %v5142_v0 }
 0x77f   : > { %7475 = vmatprep.subr.bf16.mxu1 %v12661_v18  ;;  %7561 = vmatprep.subr.bf16.mxu0 %v12663_v19  ;;  %v12377_v18 = vcombine.high %v5149_v1, %v5157_v3  ;;  %v12379_v19 = vcombine.high %v5150_v7, %v5158_v5 }
 0x782   : > { %7476 = vmatpush1.bf16.msra.mxu1 %v12660_v25  ;;  %7562 = vmatpush1.bf16.msra.mxu0 %v12662_v22  ;;  %v12376_v25 = vcombine.low %v5149_v1, %v5157_v3  ;;  %v12378_v22 = vcombine.low %v5150_v7, %v5158_v5  ;;  %v12457_v1 = vcombine.high %v5229_v34, %v5237_v35  ;;  %v5245_v7 = vld [vmem:[%s14952_s17 + $0x390] sm:$0xff] }
 0x783   : > { %7477 = vmatprep.subr.bf16.mxu1 %v12677_v63  ;;  %7563 = vmatprep.subr.bf16.mxu0 %v12679_v48  ;;  %v12393_v63 = vcombine.high %v5165_v20, %v5173_v23  ;;  %v12395_v48 = vcombine.high %v5166_v37, %v5174_v33  ;;  %v5253_v5 = vld [vmem:[%s14952_s17 + $0x3d0] sm:$0xff] }
 0x786   : > { %7478 = vmatpush1.bf16.msra.mxu1 %v12676_v21  ;;  %7564 = vmatpush1.bf16.msra.mxu0 %v12678_v40  ;;  %v12392_v21 = vcombine.low %v5165_v20, %v5173_v23  ;;  %v12394_v40 = vcombine.low %v5166_v37, %v5174_v33  ;;  %v12473_v20 = vcombine.high %v5245_v7, %v5253_v5  ;;  %v5261_v37 = vld [vmem:[%s14952_s17 + $0x410] sm:$0xff] }
 0x787   : > { %7479 = vmatprep.subr.bf16.mxu1 %v12693_v24  ;;  %7565 = vmatprep.subr.bf16.mxu0 %v12695_v58  ;;  %v12411_v24 = vcombine.high %v5182_v42, %v5190_v6  ;;  %v5197_v58 = vld [vmem:[%s14952_s17 + $0x210] sm:$0xff] }
 0x788   : > { %v12425_v61 = vcombine.high %v5197_v58, %v5205_v49  ;;  %v12424_v14 = vcombine.low %v5197_v58, %v5205_v49  ;;  %v5269_v33 = vld [vmem:[%s14952_s17 + $0x450] sm:$0xff] }
 0x789   : > { %v12489_v39 = vcombine.high %v5261_v37, %v5269_v33  ;;  %v5277_v42 = vld [vmem:[%s14952_s17 + $0x490] sm:$0xff] }
 0x78a   : > { %7480 = vmatpush1.bf16.msra.mxu1 %v12692_v32  ;;  %7566 = vmatpush1.bf16.msra.mxu0 %v12694_v16  ;;  %v12427_v32 = vcombine.high %v5198_v59, %v5206_v45  ;;  %v5213_v16 = vld [vmem:[%s14952_s17 + $0x290] sm:$0xff] }
 0x78b   : > { %7481 = vmatprep.subr.bf16.mxu1 %v12709_v62  ;;  %7567 = vmatprep.subr.bf16.mxu0 %v12711_v57  ;;  %v5214_v62 = vld [vmem:[%s14952_s17 + $0x298] sm:$0xff]  ;;  %v12441_v60 = vcombine.high %v5213_v16, %v5221_v53  ;;  %v5285_v6 = vld [vmem:[%s14952_s17 + $0x4d0] sm:$0xff] }
 0x78c   : > { %v5222_v57 = vld [vmem:[%s14952_s17 + $0x2d8] sm:$0xff]  ;;  %v12505_v58 = vcombine.high %v5277_v42, %v5285_v6  ;;  %v5293_v59 = vld [vmem:[%s14952_s17 + $0x510] sm:$0xff] }
 0x78d   : > { %v12443_v0 = vcombine.high %v5214_v62, %v5222_v57  ;;  %v5301_v45 = vld [vmem:[%s14952_s17 + $0x550] sm:$0xff] }
 0x78e   : > { %7482 = vmatpush1.bf16.msra.mxu1 %v12708_v43  ;;  %7568 = vmatpush1.bf16.msra.mxu0 %v12710_v29  ;;  %v5230_v43 = vld [vmem:[%s14952_s17 + $0x318] sm:$0xff] }
 0x78f   : > { %7598 = vmatprep.subr.bf16.mxu1 %v12361_v36  ;;  %7684 = vmatprep.subr.bf16.mxu0 %v12363_v56  ;;  %v5238_v29 = vld [vmem:[%s14952_s17 + $0x358] sm:$0xff]  ;;  %v12440_v36 = vcombine.low %v5213_v16, %v5221_v53  ;;  %v12442_v56 = vcombine.low %v5214_v62, %v5222_v57  ;;  %v12521_v16 = vcombine.high %v5293_v59, %v5301_v45  ;;  %v5309_v62 = vld [vmem:[%s14952_s17 + $0x590] sm:$0xff] }
 0x790   : > { %v12459_v3 = vcombine.high %v5230_v43, %v5238_v29  ;;  %v5317_v57 = vld [vmem:[%s14952_s17 + $0x5d0] sm:$0xff] }
 0x791   : > { %12724 = vmatmul.mubr.msk.bf16.vlgmr.msra.gmra.mrb[32].mxu1 %vm2423_vm1, %v15877_v11  ;;  %12725 = vmatmul.mubr.msk.bf16.vlgmr.msra.gmra.mrb[40].mxu0 %vm2423_vm1, %v15877_v11 }
 0x792   : > { %7599 = vmatpush1.bf16.msra.mxu1 %v12360_v9  ;;  %7630 = vmatprep.mubr.bf16.mxu1 %v15823_v10  ;;  %v5246_v9 = vld [vmem:[%s14952_s17 + $0x398] sm:$0xff] }
 0x793   : > { %7685 = vmatpush1.bf16.msra.mxu0 %v12362_v17  ;;  %7716 = vmatprep.mubr.bf16.mxu0 %v15823_v10  ;;  %v5254_v17 = vld [vmem:[%s14952_s17 + $0x3d8] sm:$0xff] }
 0x794   : > { %7600 = vmatprep.subr.bf16.mxu1 %v12377_v18  ;;  %7686 = vmatprep.subr.bf16.mxu0 %v12379_v19  ;;  %v12456_v18 = vcombine.low %v5229_v34, %v5237_v35  ;;  %v12458_v19 = vcombine.low %v5230_v43, %v5238_v29  ;;  %v12475_v23 = vcombine.high %v5246_v9, %v5254_v17  ;;  %v5325_v43 = vld [vmem:[%s14952_s17 + $0x610] sm:$0xff] }
 0x795   : > { %v12537_v34 = vcombine.high %v5309_v62, %v5317_v57  ;;  %v5333_v29 = vld [vmem:[%s14952_s17 + $0x650] sm:$0xff] }
 0x796   : > { %7601 = vmatpush1.bf16.msra.mxu1 %v12376_v25  ;;  %v5262_v25 = vld [vmem:[%s14952_s17 + $0x418] sm:$0xff] }
 0x797   : > { %7687 = vmatpush1.bf16.msra.mxu0 %v12378_v22  ;;  %7602 = vmatprep.subr.bf16.mxu1 %v12393_v63  ;;  %v5270_v22 = vld [vmem:[%s14952_s17 + $0x458] sm:$0xff]  ;;  %v12472_v63 = vcombine.low %v5245_v7, %v5253_v5  ;;  %v12553_v7 = vcombine.high %v5325_v43, %v5333_v29 }
 0x798   : > { %7688 = vmatprep.subr.bf16.mxu0 %v12395_v48  ;;  %v12474_v48 = vcombine.low %v5246_v9, %v5254_v17  ;;  %v12491_v52 = vcombine.high %v5262_v25, %v5270_v22  ;;  %v5341_v9 = vld [vmem:[%s14952_s17 + $0x690] sm:$0xff] }
 0x799   : > { %v5349_v17 = vld [vmem:[%s14952_s17 + $0x6d0] sm:$0xff] }
 0x79a   : > { %7603 = vmatpush1.bf16.msra.mxu1 %v12392_v21  ;;  %v5278_v21 = vld [vmem:[%s14952_s17 + $0x498] sm:$0xff] }
 0x79b   : > { %7689 = vmatpush1.bf16.msra.mxu0 %v12394_v40  ;;  %7604 = vmatprep.subr.bf16.mxu1 %v12409_v41  ;;  %v5286_v40 = vld [vmem:[%s14952_s17 + $0x4d8] sm:$0xff]  ;;  %v12488_v41 = vcombine.low %v5261_v37, %v5269_v33  ;;  %v12569_v37 = vcombine.high %v5341_v9, %v5349_v17 }
 0x79c   : > { %7690 = vmatprep.subr.bf16.mxu0 %v12411_v24  ;;  %v12490_v24 = vcombine.low %v5262_v25, %v5270_v22  ;;  %v12507_v49 = vcombine.high %v5278_v21, %v5286_v40  ;;  %v5357_v25 = vld [vmem:[%s14952_s17 + $0x710] sm:$0xff] }
 0x79d   : > { %v5365_v22 = vld [vmem:[%s14952_s17 + $0x750] sm:$0xff] }
 0x79e   : > { %7605 = vmatpush1.bf16.msra.mxu1 %v12408_v26  ;;  %v5294_v26 = vld [vmem:[%s14952_s17 + $0x518] sm:$0xff] }
 0x79f   : > { %7691 = vmatpush1.bf16.msra.mxu0 %v12410_v12  ;;  %7606 = vmatprep.subr.bf16.mxu1 %v12425_v61  ;;  %v5302_v12 = vld [vmem:[%s14952_s17 + $0x558] sm:$0xff]  ;;  %v12504_v61 = vcombine.low %v5277_v42, %v5285_v6  ;;  %v12585_v42 = vcombine.high %v5357_v25, %v5365_v22 }
 0x7a0   : > { %7692 = vmatprep.subr.bf16.mxu0 %v12427_v32  ;;  %v12506_v32 = vcombine.low %v5278_v21, %v5286_v40  ;;  %v12523_v53 = vcombine.high %v5294_v26, %v5302_v12  ;;  %v5373_v21 = vld [vmem:[%s14952_s17 + $0x790] sm:$0xff] }
 0x7a1   : > { %v5381_v40 = vld [vmem:[%s14952_s17 + $0x7d0] sm:$0xff] }
 0x7a2   : > { %7607 = vmatpush1.bf16.msra.mxu1 %v12424_v14  ;;  %v5310_v14 = vld [vmem:[%s14952_s17 + $0x598] sm:$0xff] }
 0x7a3   : > { %7693 = vmatpush1.bf16.msra.mxu0 %v12426_v54  ;;  %7608 = vmatprep.subr.bf16.mxu1 %v12441_v60  ;;  %v5318_v54 = vld [vmem:[%s14952_s17 + $0x5d8] sm:$0xff]  ;;  %v12520_v60 = vcombine.low %v5293_v59, %v5301_v45  ;;  %v12601_v59 = vcombine.high %v5373_v21, %v5381_v40 }
 0x7a4   : > { %7694 = vmatprep.subr.bf16.mxu0 %v12443_v0  ;;  %v12522_v0 = vcombine.low %v5294_v26, %v5302_v12  ;;  %v12539_v35 = vcombine.high %v5310_v14, %v5318_v54  ;;  %v5389_v26 = vld [vmem:[%s14952_s17 + $0x810] sm:$0xff] }
 0x7a5   : > { %v5397_v12 = vld [vmem:[%s14952_s17 + $0x850] sm:$0xff] }
 0x7a6   : > { %7609 = vmatpush1.bf16.msra.mxu1 %v12440_v36  ;;  %v5326_v36 = vld [vmem:[%s14952_s17 + $0x618] sm:$0xff] }
 0x7a7   : > { %7695 = vmatpush1.bf16.msra.mxu0 %v12442_v56  ;;  %7610 = vmatprep.subr.bf16.mxu1 %v12457_v1  ;;  %v5334_v56 = vld [vmem:[%s14952_s17 + $0x658] sm:$0xff]  ;;  %v12536_v1 = vcombine.low %v5309_v62, %v5317_v57  ;;  %v12617_v62 = vcombine.high %v5389_v26, %v5397_v12 }
 0x7a8   : > { %7696 = vmatprep.subr.bf16.mxu0 %v12459_v3  ;;  %v12538_v3 = vcombine.low %v5310_v14, %v5318_v54  ;;  %v12555_v5 = vcombine.high %v5326_v36, %v5334_v56  ;;  %v5405_v14 = vld [vmem:[%s14952_s17 + $0x890] sm:$0xff] }
 0x7a9   : > { %v5413_v54 = vld [vmem:[%s14952_s17 + $0x8d0] sm:$0xff] }
 0x7aa   : > { %7611 = vmatpush1.bf16.msra.mxu1 %v12456_v18  ;;  %v5342_v18 = vld [vmem:[%s14952_s17 + $0x698] sm:$0xff] }
 0x7ab   : > { %7697 = vmatpush1.bf16.msra.mxu0 %v12458_v19  ;;  %7612 = vmatprep.subr.bf16.mxu1 %v12473_v20  ;;  %v5350_v19 = vld [vmem:[%s14952_s17 + $0x6d8] sm:$0xff]  ;;  %v12552_v20 = vcombine.low %v5325_v43, %v5333_v29  ;;  %v12633_v43 = vcombine.high %v5405_v14, %v5413_v54 }
 0x7ac   : > { %7698 = vmatprep.subr.bf16.mxu0 %v12475_v23  ;;  %v12554_v23 = vcombine.low %v5326_v36, %v5334_v56  ;;  %v12571_v33 = vcombine.high %v5342_v18, %v5350_v19  ;;  %v5421_v36 = vld [vmem:[%s14952_s17 + $0x910] sm:$0xff] }
 0x7ad   : > { %v5429_v56 = vld [vmem:[%s14952_s17 + $0x950] sm:$0xff] }
 0x7ae   : > { %7613 = vmatpush1.bf16.msra.mxu1 %v12472_v63  ;;  %v5358_v63 = vld [vmem:[%s14952_s17 + $0x718] sm:$0xff] }
 0x7af   : > { %7699 = vmatpush1.bf16.msra.mxu0 %v12474_v48  ;;  %7614 = vmatprep.subr.bf16.mxu1 %v12489_v39  ;;  %v5366_v48 = vld [vmem:[%s14952_s17 + $0x758] sm:$0xff]  ;;  %v12568_v39 = vcombine.low %v5341_v9, %v5349_v17  ;;  %v12649_v9 = vcombine.high %v5421_v36, %v5429_v56 }
 0x7b0   : > { %7700 = vmatprep.subr.bf16.mxu0 %v12491_v52  ;;  %v12570_v52 = vcombine.low %v5342_v18, %v5350_v19  ;;  %v12587_v6 = vcombine.high %v5358_v63, %v5366_v48  ;;  %v5437_v18 = vld [vmem:[%s14952_s17 + $0x990] sm:$0xff] }
 0x7b1   : > { %v5445_v19 = vld [vmem:[%s14952_s17 + $0x9d0] sm:$0xff] }
 0x7b2   : > { %7615 = vmatpush1.bf16.msra.mxu1 %v12488_v41  ;;  %v5374_v41 = vld [vmem:[%s14952_s17 + $0x798] sm:$0xff] }
 0x7b3   : > { %7701 = vmatpush1.bf16.msra.mxu0 %v12490_v24  ;;  %7616 = vmatprep.subr.bf16.mxu1 %v12505_v58  ;;  %v5382_v24 = vld [vmem:[%s14952_s17 + $0x7d8] sm:$0xff]  ;;  %v12584_v58 = vcombine.low %v5357_v25, %v5365_v22  ;;  %v12665_v25 = vcombine.high %v5437_v18, %v5445_v19 }
 0x7b4   : > { %7702 = vmatprep.subr.bf16.mxu0 %v12507_v49  ;;  %v12586_v49 = vcombine.low %v5358_v63, %v5366_v48  ;;  %v12603_v45 = vcombine.high %v5374_v41, %v5382_v24  ;;  %v5453_v63 = vld [vmem:[%s14952_s17 + $0xa10] sm:$0xff] }
 0x7b5   : > { %v5461_v48 = vld [vmem:[%s14952_s17 + $0xa50] sm:$0xff] }
 0x7b6   : > { %7617 = vmatpush1.bf16.msra.mxu1 %v12504_v61  ;;  %v5390_v61 = vld [vmem:[%s14952_s17 + $0x818] sm:$0xff] }
 0x7b7   : > { %7703 = vmatpush1.bf16.msra.mxu0 %v12506_v32  ;;  %7618 = vmatprep.subr.bf16.mxu1 %v12521_v16  ;;  %v5398_v32 = vld [vmem:[%s14952_s17 + $0x858] sm:$0xff]  ;;  %v12600_v16 = vcombine.low %v5373_v21, %v5381_v40  ;;  %v12681_v21 = vcombine.high %v5453_v63, %v5461_v48 }
 0x7b8   : > { %7704 = vmatprep.subr.bf16.mxu0 %v12523_v53  ;;  %v12602_v53 = vcombine.low %v5374_v41, %v5382_v24  ;;  %v12619_v57 = vcombine.high %v5390_v61, %v5398_v32  ;;  %v5469_v41 = vld [vmem:[%s14952_s17 + $0xa90] sm:$0xff] }
 0x7b9   : > { %v5477_v24 = vld [vmem:[%s14952_s17 + $0xad0] sm:$0xff] }
 0x7ba   : > { %7619 = vmatpush1.bf16.msra.mxu1 %v12520_v60  ;;  %v5406_v60 = vld [vmem:[%s14952_s17 + $0x898] sm:$0xff] }
 0x7bb   : > { %7705 = vmatpush1.bf16.msra.mxu0 %v12522_v0  ;;  %7620 = vmatprep.subr.bf16.mxu1 %v12537_v34  ;;  %v5414_v0 = vld [vmem:[%s14952_s17 + $0x8d8] sm:$0xff]  ;;  %v12616_v34 = vcombine.low %v5389_v26, %v5397_v12  ;;  %v12697_v26 = vcombine.high %v5469_v41, %v5477_v24 }
 0x7bc   : > { %7706 = vmatprep.subr.bf16.mxu0 %v12539_v35  ;;  %v12618_v35 = vcombine.low %v5390_v61, %v5398_v32  ;;  %v12635_v29 = vcombine.high %v5406_v60, %v5414_v0  ;;  %v5485_v61 = vld [vmem:[%s14952_s17 + $0xb10] sm:$0xff] }
 0x7bd   : > { %v5493_v32 = vld [vmem:[%s14952_s17 + $0xb50] sm:$0xff] }
 0x7be   : > { %7621 = vmatpush1.bf16.msra.mxu1 %v12536_v1  ;;  %v5422_v1 = vld [vmem:[%s14952_s17 + $0x918] sm:$0xff] }
 0x7bf   : > { %7707 = vmatpush1.bf16.msra.mxu0 %v12538_v3  ;;  %7622 = vmatprep.subr.bf16.mxu1 %v12553_v7  ;;  %v5430_v3 = vld [vmem:[%s14952_s17 + $0x958] sm:$0xff]  ;;  %v12632_v7 = vcombine.low %v5405_v14, %v5413_v54  ;;  %v12713_v14 = vcombine.high %v5485_v61, %v5493_v32 }
 0x7c0   : > { %7708 = vmatprep.subr.bf16.mxu0 %v12555_v5  ;;  %v12634_v5 = vcombine.low %v5406_v60, %v5414_v0  ;;  %v12651_v17 = vcombine.high %v5422_v1, %v5430_v3  ;;  %v5135_v60 = vld [vmem:[%s14952_s17 + $0x20] sm:$0xff] }
 0x7c1   : > { %v5143_v0 = vld [vmem:[%s14952_s17 + $0x60] sm:$0xff] }
 0x7c2   : > { %7623 = vmatpush1.bf16.msra.mxu1 %v12552_v20  ;;  %v5438_v20 = vld [vmem:[%s14952_s17 + $0x998] sm:$0xff] }
 0x7c3   : > { %7709 = vmatpush1.bf16.msra.mxu0 %v12554_v23  ;;  %7624 = vmatprep.subr.bf16.mxu1 %v12569_v37  ;;  %v5446_v23 = vld [vmem:[%s14952_s17 + $0x9d8] sm:$0xff]  ;;  %v12648_v37 = vcombine.low %v5421_v36, %v5429_v56  ;;  %v12365_v36 = vcombine.high %v5135_v60, %v5143_v0 }
 0x7c4   : > { %7710 = vmatprep.subr.bf16.mxu0 %v12571_v33  ;;  %v12650_v33 = vcombine.low %v5422_v1, %v5430_v3  ;;  %v12667_v22 = vcombine.high %v5438_v20, %v5446_v23  ;;  %v5151_v1 = vld [vmem:[%s14952_s17 + $0xa0] sm:$0xff] }
 0x7c5   : > { %v5159_v3 = vld [vmem:[%s14952_s17 + $0xe0] sm:$0xff] }
 0x7c6   : > { %7625 = vmatpush1.bf16.msra.mxu1 %v12568_v39  ;;  %v5454_v39 = vld [vmem:[%s14952_s17 + $0xa18] sm:$0xff] }
 0x7c7   : > { %7711 = vmatpush1.bf16.msra.mxu0 %v12570_v52  ;;  %7626 = vmatprep.subr.bf16.mxu1 %v12585_v42  ;;  %v5462_v52 = vld [vmem:[%s14952_s17 + $0xa58] sm:$0xff]  ;;  %v12664_v42 = vcombine.low %v5437_v18, %v5445_v19  ;;  %v12381_v18 = vcombine.high %v5151_v1, %v5159_v3  ;;  %v5167_v19 = vld [vmem:[%s14952_s17 + $0x120] sm:$0xff] }
 0x7c8   : > { %7712 = vmatprep.subr.bf16.mxu0 %v12587_v6  ;;  %v12666_v6 = vcombine.low %v5438_v20, %v5446_v23  ;;  %v12683_v40 = vcombine.high %v5454_v39, %v5462_v52  ;;  %v5175_v20 = vld [vmem:[%s14952_s17 + $0x160] sm:$0xff] }
 0x7ca   : > { %7627 = vmatpush1.bf16.msra.mxu1 %v12584_v58  ;;  %v5470_v58 = vld [vmem:[%s14952_s17 + $0xa98] sm:$0xff] }
 0x7cb   : > { %7713 = vmatpush1.bf16.msra.mxu0 %v12586_v49  ;;  %7628 = vmatprep.subr.bf16.mxu1 %v12601_v59  ;;  %v5478_v49 = vld [vmem:[%s14952_s17 + $0xad8] sm:$0xff]  ;;  %v12680_v59 = vcombine.low %v5453_v63, %v5461_v48  ;;  %v12397_v63 = vcombine.high %v5167_v19, %v5175_v20 }
 0x7cc   : > { %7714 = vmatprep.subr.bf16.mxu0 %v12603_v45  ;;  %v12682_v45 = vcombine.low %v5454_v39, %v5462_v52  ;;  %v12699_v12 = vcombine.high %v5470_v58, %v5478_v49  ;;  %v5183_v39 = vld [vmem:[%s14952_s17 + $0x1a0] sm:$0xff] }
 0x7cd   : > { %v5191_v52 = vld [vmem:[%s14952_s17 + $0x1e0] sm:$0xff] }
 0x7ce   : > { %7629 = vmatpush1.bf16.msra.mxu1 %v12600_v16  ;;  %v5486_v16 = vld [vmem:[%s14952_s17 + $0xb18] sm:$0xff] }
 0x7cf   : > { %7715 = vmatpush1.bf16.msra.mxu0 %v12602_v53  ;;  %7641 = vmatprep.subr.bf16.mxu1 %v12617_v62  ;;  %v5494_v53 = vld [vmem:[%s14952_s17 + $0xb58] sm:$0xff]  ;;  %v12696_v62 = vcombine.low %v5469_v41, %v5477_v24  ;;  %v12413_v41 = vcombine.high %v5183_v39, %v5191_v52 }
 0x7d0   : > { %7727 = vmatprep.subr.bf16.mxu0 %v12619_v57  ;;  %v12698_v57 = vcombine.low %v5470_v58, %v5478_v49  ;;  %v12715_v54 = vcombine.high %v5486_v16, %v5494_v53  ;;  %v5199_v58 = vld [vmem:[%s14952_s17 + $0x220] sm:$0xff] }
 0x7d1   : > { %7631 = vmatmul.mubr.bf16.vlgmr.msra.gmra.mrb[36].mxu1 %v15827_v30  ;;  %v5207_v49 = vld [vmem:[%s14952_s17 + $0x260] sm:$0xff] }
 0x7d2   : > { %7717 = vmatmul.mubr.bf16.vlgmr.msra.gmra.mrb[44].mxu0 %v15827_v30  ;;  %7642 = vmatpush1.bf16.msra.mxu1 %v12616_v34  ;;  %v5136_v34 = vld [vmem:[%s14952_s17 + $0x28] sm:$0xff] }
 0x7d3   : > { %7728 = vmatpush1.bf16.msra.mxu0 %v12618_v35  ;;  %7643 = vmatprep.subr.bf16.mxu1 %v12633_v43  ;;  %v5144_v35 = vld [vmem:[%s14952_s17 + $0x68] sm:$0xff]  ;;  %v12712_v43 = vcombine.low %v5485_v61, %v5493_v32  ;;  %v12429_v61 = vcombine.high %v5199_v58, %v5207_v49 }
 0x7d4   : > { %7729 = vmatprep.subr.bf16.mxu0 %v12635_v29  ;;  %7673 = vmatprep.mubr.bf16.mxu1 %v14826_v8  ;;  %v12714_v29 = vcombine.low %v5486_v16, %v5494_v53  ;;  %v12367_v56 = vcombine.high %v5136_v34, %v5144_v35  ;;  %v5215_v16 = vld [vmem:[%s14952_s17 + $0x2a0] sm:$0xff] }
 0x7d5   : > { %7759 = vmatprep.mubr.bf16.mxu0 %v14826_v8  ;;  %v5223_v53 = vld [vmem:[%s14952_s17 + $0x2e0] sm:$0xff] }
 0x7d6   : > { %7644 = vmatpush1.bf16.msra.mxu1 %v12632_v7  ;;  %v12364_v7 = vcombine.low %v5135_v60, %v5143_v0  ;;  %v12445_v60 = vcombine.high %v5215_v16, %v5223_v53 }
 0x7d7   : > { %7730 = vmatpush1.bf16.msra.mxu0 %v12634_v5  ;;  %7645 = vmatprep.subr.bf16.mxu1 %v12649_v9  ;;  %v5152_v5 = vld [vmem:[%s14952_s17 + $0xa8] sm:$0xff] }
 0x7d8   : > { %7731 = vmatprep.subr.bf16.mxu0 %v12651_v17  ;;  %v5160_v9 = vld [vmem:[%s14952_s17 + $0xe8] sm:$0xff]  ;;  %v12366_v17 = vcombine.low %v5136_v34, %v5144_v35  ;;  %v5231_v34 = vld [vmem:[%s14952_s17 + $0x320] sm:$0xff] }
 0x7d9   : > { %v12383_v23 = vcombine.high %v5152_v5, %v5160_v9  ;;  %v5239_v35 = vld [vmem:[%s14952_s17 + $0x360] sm:$0xff] }
 0x7da   : > { %7646 = vmatpush1.bf16.msra.mxu1 %v12648_v37  ;;  %v5168_v37 = vld [vmem:[%s14952_s17 + $0x128] sm:$0xff] }
 0x7db   : > { %7732 = vmatpush1.bf16.msra.mxu0 %v12650_v33  ;;  %7647 = vmatprep.subr.bf16.mxu1 %v12665_v25  ;;  %v5176_v33 = vld [vmem:[%s14952_s17 + $0x168] sm:$0xff]  ;;  %v12380_v25 = vcombine.low %v5151_v1, %v5159_v3  ;;  %v12461_v1 = vcombine.high %v5231_v34, %v5239_v35 }
 0x7dc   : > { %7733 = vmatprep.subr.bf16.mxu0 %v12667_v22  ;;  %v12382_v22 = vcombine.low %v5152_v5, %v5160_v9  ;;  %v12399_v48 = vcombine.high %v5168_v37, %v5176_v33  ;;  %v5255_v5 = vld [vmem:[%s14952_s17 + $0x3e0] sm:$0xff]  ;;  %v5248_v9 = vld [vmem:[%s14952_s17 + $0x3a8] sm:$0xff] }
 0x7de   : > { %7648 = vmatpush1.bf16.msra.mxu1 %v12664_v42  ;;  %v5184_v42 = vld [vmem:[%s14952_s17 + $0x1a8] sm:$0xff] }
 0x7df   : > { %7734 = vmatpush1.bf16.msra.mxu0 %v12666_v6  ;;  %7649 = vmatprep.subr.bf16.mxu1 %v12681_v21  ;;  %v5192_v6 = vld [vmem:[%s14952_s17 + $0x1e8] sm:$0xff]  ;;  %v12396_v21 = vcombine.low %v5167_v19, %v5175_v20 }
 0x7e0   : > { %7735 = vmatprep.subr.bf16.mxu0 %v12683_v40  ;;  %v12398_v40 = vcombine.low %v5168_v37, %v5176_v33  ;;  %v12415_v24 = vcombine.high %v5184_v42, %v5192_v6  ;;  %v5263_v37 = vld [vmem:[%s14952_s17 + $0x420] sm:$0xff] }
 0x7e1   : > { %v5271_v33 = vld [vmem:[%s14952_s17 + $0x460] sm:$0xff] }
 0x7e2   : > { %7650 = vmatpush1.bf16.msra.mxu1 %v12680_v59  ;;  %v5200_v59 = vld [vmem:[%s14952_s17 + $0x228] sm:$0xff] }
 0x7e3   : > { %7736 = vmatpush1.bf16.msra.mxu0 %v12682_v45  ;;  %7651 = vmatprep.subr.bf16.mxu1 %v12697_v26  ;;  %v5208_v45 = vld [vmem:[%s14952_s17 + $0x268] sm:$0xff]  ;;  %v12412_v26 = vcombine.low %v5183_v39, %v5191_v52  ;;  %v12493_v39 = vcombine.high %v5263_v37, %v5271_v33 }
 0x7e4   : > { %7737 = vmatprep.subr.bf16.mxu0 %v12699_v12  ;;  %v12414_v12 = vcombine.low %v5184_v42, %v5192_v6  ;;  %v12431_v32 = vcombine.high %v5200_v59, %v5208_v45  ;;  %v5279_v42 = vld [vmem:[%s14952_s17 + $0x4a0] sm:$0xff] }
 0x7e5   : > { %v5287_v6 = vld [vmem:[%s14952_s17 + $0x4e0] sm:$0xff] }
 0x7e6   : > { %7652 = vmatpush1.bf16.msra.mxu1 %v12696_v62  ;;  %v5216_v62 = vld [vmem:[%s14952_s17 + $0x2a8] sm:$0xff] }
 0x7e7   : > { %7738 = vmatpush1.bf16.msra.mxu0 %v12698_v57  ;;  %7653 = vmatprep.subr.bf16.mxu1 %v12713_v14  ;;  %v5224_v57 = vld [vmem:[%s14952_s17 + $0x2e8] sm:$0xff]  ;;  %v12428_v14 = vcombine.low %v5199_v58, %v5207_v49  ;;  %v12509_v58 = vcombine.high %v5279_v42, %v5287_v6 }
 0x7e8   : > { %7739 = vmatprep.subr.bf16.mxu0 %v12715_v54  ;;  %v12430_v54 = vcombine.low %v5200_v59, %v5208_v45  ;;  %v12447_v0 = vcombine.high %v5216_v62, %v5224_v57  ;;  %v5295_v59 = vld [vmem:[%s14952_s17 + $0x520] sm:$0xff] }
 0x7e9   : > { %v5303_v45 = vld [vmem:[%s14952_s17 + $0x560] sm:$0xff] }
 0x7ea   : > { %7654 = vmatpush1.bf16.msra.mxu1 %v12712_v43  ;;  %v5232_v43 = vld [vmem:[%s14952_s17 + $0x328] sm:$0xff] }
 0x7eb   : > { %7740 = vmatpush1.bf16.msra.mxu0 %v12714_v29  ;;  %7770 = vmatprep.subr.bf16.mxu1 %v12365_v36  ;;  %v5240_v29 = vld [vmem:[%s14952_s17 + $0x368] sm:$0xff]  ;;  %v12444_v36 = vcombine.low %v5215_v16, %v5223_v53  ;;  %v12525_v16 = vcombine.high %v5295_v59, %v5303_v45 }
 0x7ec   : > { %7856 = vmatprep.subr.bf16.mxu0 %v12367_v56  ;;  %v12446_v56 = vcombine.low %v5216_v62, %v5224_v57  ;;  %v12463_v3 = vcombine.high %v5232_v43, %v5240_v29  ;;  %v12462_v19 = vcombine.low %v5232_v43, %v5240_v29  ;;  %v5311_v62 = vld [vmem:[%s14952_s17 + $0x5a0] sm:$0xff] }
 0x7ed   : > { %12726 = vmatmul.mubr.msk.bf16.vlgmr.msra.gmra.mrb[36].mxu1 %vm2423_vm1, %v15877_v11  ;;  %v5319_v57 = vld [vmem:[%s14952_s17 + $0x5e0] sm:$0xff] }
 0x7ee   : > { %12727 = vmatmul.mubr.msk.bf16.vlgmr.msra.gmra.mrb[44].mxu0 %vm2423_vm1, %v15877_v11  ;;  %7771 = vmatpush1.bf16.msra.mxu1 %v12364_v7  ;;  %v5247_v7 = vld [vmem:[%s14952_s17 + $0x3a0] sm:$0xff] }
 0x7ef   : > { %7802 = vmatprep.mubr.bf16.mxu1 %v15823_v10  ;;  %7857 = vmatpush1.bf16.msra.mxu0 %v12366_v17  ;;  %v5256_v17 = vld [vmem:[%s14952_s17 + $0x3e8] sm:$0xff]  ;;  %v12477_v20 = vcombine.high %v5247_v7, %v5255_v5  ;;  %v5327_v43 = vld [vmem:[%s14952_s17 + $0x620] sm:$0xff] }
 0x7f0   : > { %7888 = vmatprep.mubr.bf16.mxu0 %v15823_v10  ;;  %7772 = vmatprep.subr.bf16.mxu1 %v12381_v18  ;;  %v12460_v18 = vcombine.low %v5231_v34, %v5239_v35  ;;  %v12541_v34 = vcombine.high %v5311_v62, %v5319_v57  ;;  %v5335_v29 = vld [vmem:[%s14952_s17 + $0x660] sm:$0xff] }
 0x7f1   : > { %7858 = vmatprep.subr.bf16.mxu0 %v12383_v23  ;;  %v12479_v23 = vcombine.high %v5248_v9, %v5256_v17 }
 0x7f2   : > { %7773 = vmatpush1.bf16.msra.mxu1 %v12380_v25  ;;  %v5264_v25 = vld [vmem:[%s14952_s17 + $0x428] sm:$0xff] }
 0x7f3   : > { %7859 = vmatpush1.bf16.msra.mxu0 %v12382_v22  ;;  %7774 = vmatprep.subr.bf16.mxu1 %v12397_v63  ;;  %v5272_v22 = vld [vmem:[%s14952_s17 + $0x468] sm:$0xff]  ;;  %v12476_v63 = vcombine.low %v5247_v7, %v5255_v5  ;;  %v12557_v7 = vcombine.high %v5327_v43, %v5335_v29 }
 0x7f4   : > { %7860 = vmatprep.subr.bf16.mxu0 %v12399_v48  ;;  %v12478_v48 = vcombine.low %v5248_v9, %v5256_v17  ;;  %v12495_v52 = vcombine.high %v5264_v25, %v5272_v22  ;;  %v5343_v9 = vld [vmem:[%s14952_s17 + $0x6a0] sm:$0xff] }
 0x7f5   : > { %v5351_v17 = vld [vmem:[%s14952_s17 + $0x6e0] sm:$0xff] }
 0x7f6   : > { %7775 = vmatpush1.bf16.msra.mxu1 %v12396_v21  ;;  %v5280_v21 = vld [vmem:[%s14952_s17 + $0x4a8] sm:$0xff] }
 0x7f7   : > { %7861 = vmatpush1.bf16.msra.mxu0 %v12398_v40  ;;  %7776 = vmatprep.subr.bf16.mxu1 %v12413_v41  ;;  %v5288_v40 = vld [vmem:[%s14952_s17 + $0x4e8] sm:$0xff]  ;;  %v12492_v41 = vcombine.low %v5263_v37, %v5271_v33  ;;  %v12573_v37 = vcombine.high %v5343_v9, %v5351_v17 }
 0x7f8   : > { %7862 = vmatprep.subr.bf16.mxu0 %v12415_v24  ;;  %v12494_v24 = vcombine.low %v5264_v25, %v5272_v22  ;;  %v12511_v49 = vcombine.high %v5280_v21, %v5288_v40  ;;  %v5359_v25 = vld [vmem:[%s14952_s17 + $0x720] sm:$0xff] }
 0x7f9   : > { %v5367_v22 = vld [vmem:[%s14952_s17 + $0x760] sm:$0xff] }
 0x7fa   : > { %7777 = vmatpush1.bf16.msra.mxu1 %v12412_v26  ;;  %v5296_v26 = vld [vmem:[%s14952_s17 + $0x528] sm:$0xff] }
 0x7fb   : > { %7863 = vmatpush1.bf16.msra.mxu0 %v12414_v12  ;;  %7778 = vmatprep.subr.bf16.mxu1 %v12429_v61  ;;  %v5304_v12 = vld [vmem:[%s14952_s17 + $0x568] sm:$0xff]  ;;  %v12508_v61 = vcombine.low %v5279_v42, %v5287_v6  ;;  %v12589_v42 = vcombine.high %v5359_v25, %v5367_v22 }
 0x7fc   : > { %7864 = vmatprep.subr.bf16.mxu0 %v12431_v32  ;;  %v12510_v32 = vcombine.low %v5280_v21, %v5288_v40  ;;  %v12527_v53 = vcombine.high %v5296_v26, %v5304_v12  ;;  %v5375_v21 = vld [vmem:[%s14952_s17 + $0x7a0] sm:$0xff] }
 0x7fd   : > { %v5383_v40 = vld [vmem:[%s14952_s17 + $0x7e0] sm:$0xff] }
 0x7fe   : > { %7779 = vmatpush1.bf16.msra.mxu1 %v12428_v14  ;;  %v5312_v14 = vld [vmem:[%s14952_s17 + $0x5a8] sm:$0xff] }
 0x7ff   : > { %7865 = vmatpush1.bf16.msra.mxu0 %v12430_v54  ;;  %7780 = vmatprep.subr.bf16.mxu1 %v12445_v60  ;;  %v5320_v54 = vld [vmem:[%s14952_s17 + $0x5e8] sm:$0xff]  ;;  %v12524_v60 = vcombine.low %v5295_v59, %v5303_v45  ;;  %v12605_v59 = vcombine.high %v5375_v21, %v5383_v40 }
 0x800   : > { %7866 = vmatprep.subr.bf16.mxu0 %v12447_v0  ;;  %v12526_v0 = vcombine.low %v5296_v26, %v5304_v12  ;;  %v12543_v35 = vcombine.high %v5312_v14, %v5320_v54  ;;  %v5391_v26 = vld [vmem:[%s14952_s17 + $0x820] sm:$0xff] }
 0x801   : > { %v5399_v12 = vld [vmem:[%s14952_s17 + $0x860] sm:$0xff] }
 0x802   : > { %7781 = vmatpush1.bf16.msra.mxu1 %v12444_v36  ;;  %v5328_v36 = vld [vmem:[%s14952_s17 + $0x628] sm:$0xff] }
 0x803   : > { %7867 = vmatpush1.bf16.msra.mxu0 %v12446_v56  ;;  %7782 = vmatprep.subr.bf16.mxu1 %v12461_v1  ;;  %v5336_v56 = vld [vmem:[%s14952_s17 + $0x668] sm:$0xff]  ;;  %v12540_v1 = vcombine.low %v5311_v62, %v5319_v57  ;;  %v12621_v62 = vcombine.high %v5391_v26, %v5399_v12 }
 0x804   : > { %7868 = vmatprep.subr.bf16.mxu0 %v12463_v3  ;;  %v12542_v3 = vcombine.low %v5312_v14, %v5320_v54  ;;  %v12559_v5 = vcombine.high %v5328_v36, %v5336_v56  ;;  %v5407_v14 = vld [vmem:[%s14952_s17 + $0x8a0] sm:$0xff] }
 0x805   : > { %v5415_v54 = vld [vmem:[%s14952_s17 + $0x8e0] sm:$0xff] }
 0x806   : > { %7783 = vmatpush1.bf16.msra.mxu1 %v12460_v18  ;;  %v5344_v18 = vld [vmem:[%s14952_s17 + $0x6a8] sm:$0xff] }
 0x807   : > { %7869 = vmatpush1.bf16.msra.mxu0 %v12462_v19  ;;  %7784 = vmatprep.subr.bf16.mxu1 %v12477_v20  ;;  %v5352_v19 = vld [vmem:[%s14952_s17 + $0x6e8] sm:$0xff]  ;;  %v12556_v20 = vcombine.low %v5327_v43, %v5335_v29  ;;  %v12637_v43 = vcombine.high %v5407_v14, %v5415_v54 }
 0x808   : > { %7870 = vmatprep.subr.bf16.mxu0 %v12479_v23  ;;  %v12558_v23 = vcombine.low %v5328_v36, %v5336_v56  ;;  %v12575_v33 = vcombine.high %v5344_v18, %v5352_v19  ;;  %v5423_v36 = vld [vmem:[%s14952_s17 + $0x920] sm:$0xff] }
 0x809   : > { %v5431_v56 = vld [vmem:[%s14952_s17 + $0x960] sm:$0xff] }
 0x80a   : > { %7785 = vmatpush1.bf16.msra.mxu1 %v12476_v63  ;;  %v5360_v63 = vld [vmem:[%s14952_s17 + $0x728] sm:$0xff] }
 0x80b   : > { %7871 = vmatpush1.bf16.msra.mxu0 %v12478_v48  ;;  %7786 = vmatprep.subr.bf16.mxu1 %v12493_v39  ;;  %v5368_v48 = vld [vmem:[%s14952_s17 + $0x768] sm:$0xff]  ;;  %v12572_v39 = vcombine.low %v5343_v9, %v5351_v17  ;;  %v12653_v9 = vcombine.high %v5423_v36, %v5431_v56 }
 0x80c   : > { %7872 = vmatprep.subr.bf16.mxu0 %v12495_v52  ;;  %v12574_v52 = vcombine.low %v5344_v18, %v5352_v19  ;;  %v12591_v6 = vcombine.high %v5360_v63, %v5368_v48  ;;  %v5439_v18 = vld [vmem:[%s14952_s17 + $0x9a0] sm:$0xff] }
 0x80d   : > { %v5447_v19 = vld [vmem:[%s14952_s17 + $0x9e0] sm:$0xff] }
 0x80e   : > { %7787 = vmatpush1.bf16.msra.mxu1 %v12492_v41  ;;  %v5376_v41 = vld [vmem:[%s14952_s17 + $0x7a8] sm:$0xff] }
 0x80f   : > { %7873 = vmatpush1.bf16.msra.mxu0 %v12494_v24  ;;  %7788 = vmatprep.subr.bf16.mxu1 %v12509_v58  ;;  %v5384_v24 = vld [vmem:[%s14952_s17 + $0x7e8] sm:$0xff]  ;;  %v12588_v58 = vcombine.low %v5359_v25, %v5367_v22  ;;  %v12669_v25 = vcombine.high %v5439_v18, %v5447_v19 }
 0x810   : > { %7874 = vmatprep.subr.bf16.mxu0 %v12511_v49  ;;  %v12590_v49 = vcombine.low %v5360_v63, %v5368_v48  ;;  %v12607_v45 = vcombine.high %v5376_v41, %v5384_v24  ;;  %v5455_v63 = vld [vmem:[%s14952_s17 + $0xa20] sm:$0xff] }
 0x811   : > { %v5463_v48 = vld [vmem:[%s14952_s17 + $0xa60] sm:$0xff] }
 0x812   : > { %7789 = vmatpush1.bf16.msra.mxu1 %v12508_v61  ;;  %v5392_v61 = vld [vmem:[%s14952_s17 + $0x828] sm:$0xff] }
 0x813   : > { %7875 = vmatpush1.bf16.msra.mxu0 %v12510_v32  ;;  %7790 = vmatprep.subr.bf16.mxu1 %v12525_v16  ;;  %v5400_v32 = vld [vmem:[%s14952_s17 + $0x868] sm:$0xff]  ;;  %v12604_v16 = vcombine.low %v5375_v21, %v5383_v40  ;;  %v12685_v21 = vcombine.high %v5455_v63, %v5463_v48 }
 0x814   : > { %7876 = vmatprep.subr.bf16.mxu0 %v12527_v53  ;;  %v12606_v53 = vcombine.low %v5376_v41, %v5384_v24  ;;  %v12623_v57 = vcombine.high %v5392_v61, %v5400_v32  ;;  %v5471_v41 = vld [vmem:[%s14952_s17 + $0xaa0] sm:$0xff] }
 0x815   : > { %v5479_v24 = vld [vmem:[%s14952_s17 + $0xae0] sm:$0xff] }
 0x816   : > { %7791 = vmatpush1.bf16.msra.mxu1 %v12524_v60  ;;  %v5408_v60 = vld [vmem:[%s14952_s17 + $0x8a8] sm:$0xff] }
 0x817   : > { %7877 = vmatpush1.bf16.msra.mxu0 %v12526_v0  ;;  %7792 = vmatprep.subr.bf16.mxu1 %v12541_v34  ;;  %v5416_v0 = vld [vmem:[%s14952_s17 + $0x8e8] sm:$0xff]  ;;  %v12620_v34 = vcombine.low %v5391_v26, %v5399_v12  ;;  %v12701_v26 = vcombine.high %v5471_v41, %v5479_v24 }
 0x818   : > { %7878 = vmatprep.subr.bf16.mxu0 %v12543_v35  ;;  %v12622_v35 = vcombine.low %v5392_v61, %v5400_v32  ;;  %v12639_v29 = vcombine.high %v5408_v60, %v5416_v0  ;;  %v5487_v61 = vld [vmem:[%s14952_s17 + $0xb20] sm:$0xff] }
 0x819   : > { %v5495_v32 = vld [vmem:[%s14952_s17 + $0xb60] sm:$0xff] }
 0x81a   : > { %7793 = vmatpush1.bf16.msra.mxu1 %v12540_v1  ;;  %v5424_v1 = vld [vmem:[%s14952_s17 + $0x928] sm:$0xff] }
 0x81b   : > { %7879 = vmatpush1.bf16.msra.mxu0 %v12542_v3  ;;  %7794 = vmatprep.subr.bf16.mxu1 %v12557_v7  ;;  %v5432_v3 = vld [vmem:[%s14952_s17 + $0x968] sm:$0xff]  ;;  %v12636_v7 = vcombine.low %v5407_v14, %v5415_v54  ;;  %v12717_v14 = vcombine.high %v5487_v61, %v5495_v32 }
 0x81c   : > { %7880 = vmatprep.subr.bf16.mxu0 %v12559_v5  ;;  %v12638_v5 = vcombine.low %v5408_v60, %v5416_v0  ;;  %v12655_v17 = vcombine.high %v5424_v1, %v5432_v3  ;;  %v5137_v60 = vld [vmem:[%s14952_s17 + $0x30] sm:$0xff] }
 0x81d   : > { %v5145_v0 = vld [vmem:[%s14952_s17 + $0x70] sm:$0xff] }
 0x81e   : > { %7795 = vmatpush1.bf16.msra.mxu1 %v12556_v20  ;;  %v5440_v20 = vld [vmem:[%s14952_s17 + $0x9a8] sm:$0xff] }
 0x81f   : > { %7881 = vmatpush1.bf16.msra.mxu0 %v12558_v23  ;;  %7796 = vmatprep.subr.bf16.mxu1 %v12573_v37  ;;  %v5448_v23 = vld [vmem:[%s14952_s17 + $0x9e8] sm:$0xff]  ;;  %v12652_v37 = vcombine.low %v5423_v36, %v5431_v56  ;;  %v12369_v36 = vcombine.high %v5137_v60, %v5145_v0 }
 0x820   : > { %7882 = vmatprep.subr.bf16.mxu0 %v12575_v33  ;;  %v12654_v33 = vcombine.low %v5424_v1, %v5432_v3  ;;  %v12671_v22 = vcombine.high %v5440_v20, %v5448_v23  ;;  %v5153_v1 = vld [vmem:[%s14952_s17 + $0xb0] sm:$0xff] }
 0x821   : > { %v5161_v3 = vld [vmem:[%s14952_s17 + $0xf0] sm:$0xff] }
 0x822   : > { %7797 = vmatpush1.bf16.msra.mxu1 %v12572_v39  ;;  %v5456_v39 = vld [vmem:[%s14952_s17 + $0xa28] sm:$0xff] }
 0x823   : > { %7883 = vmatpush1.bf16.msra.mxu0 %v12574_v52  ;;  %7798 = vmatprep.subr.bf16.mxu1 %v12589_v42  ;;  %v5464_v52 = vld [vmem:[%s14952_s17 + $0xa68] sm:$0xff]  ;;  %v12668_v42 = vcombine.low %v5439_v18, %v5447_v19  ;;  %v12385_v18 = vcombine.high %v5153_v1, %v5161_v3  ;;  %v5169_v19 = vld [vmem:[%s14952_s17 + $0x130] sm:$0xff] }
 0x824   : > { %7884 = vmatprep.subr.bf16.mxu0 %v12591_v6  ;;  %v12670_v6 = vcombine.low %v5440_v20, %v5448_v23  ;;  %v12687_v40 = vcombine.high %v5456_v39, %v5464_v52  ;;  %v5177_v20 = vld [vmem:[%s14952_s17 + $0x170] sm:$0xff] }
 0x826   : > { %7799 = vmatpush1.bf16.msra.mxu1 %v12588_v58  ;;  %v5472_v58 = vld [vmem:[%s14952_s17 + $0xaa8] sm:$0xff] }
 0x827   : > { %7885 = vmatpush1.bf16.msra.mxu0 %v12590_v49  ;;  %7800 = vmatprep.subr.bf16.mxu1 %v12605_v59  ;;  %v5480_v49 = vld [vmem:[%s14952_s17 + $0xae8] sm:$0xff]  ;;  %v12684_v59 = vcombine.low %v5455_v63, %v5463_v48  ;;  %v12401_v63 = vcombine.high %v5169_v19, %v5177_v20 }
 0x828   : > { %7886 = vmatprep.subr.bf16.mxu0 %v12607_v45  ;;  %v12686_v45 = vcombine.low %v5456_v39, %v5464_v52  ;;  %v12703_v12 = vcombine.high %v5472_v58, %v5480_v49  ;;  %v5185_v39 = vld [vmem:[%s14952_s17 + $0x1b0] sm:$0xff] }
 0x829   : > { %v5193_v52 = vld [vmem:[%s14952_s17 + $0x1f0] sm:$0xff] }
 0x82a   : > { %7801 = vmatpush1.bf16.msra.mxu1 %v12604_v16  ;;  %v5488_v16 = vld [vmem:[%s14952_s17 + $0xb28] sm:$0xff] }
 0x82b   : > { %7887 = vmatpush1.bf16.msra.mxu0 %v12606_v53  ;;  %7813 = vmatprep.subr.bf16.mxu1 %v12621_v62  ;;  %v5496_v53 = vld [vmem:[%s14952_s17 + $0xb68] sm:$0xff]  ;;  %v12700_v62 = vcombine.low %v5471_v41, %v5479_v24  ;;  %v12417_v41 = vcombine.high %v5185_v39, %v5193_v52  ;;  %v5201_v24 = vld [vmem:[%s14952_s17 + $0x230] sm:$0xff] }
 0x82c   : > { %7899 = vmatprep.subr.bf16.mxu0 %v12623_v57  ;;  %v12702_v57 = vcombine.low %v5472_v58, %v5480_v49  ;;  %v12719_v54 = vcombine.high %v5488_v16, %v5496_v53  ;;  %v5209_v58 = vld [vmem:[%s14952_s17 + $0x270] sm:$0xff]  ;;  %v5202_v49 = vld [vmem:[%s14952_s17 + $0x238] sm:$0xff] }
 0x82d   : > { %7803 = vmatmul.mubr.bf16.vlgmr.msra.gmra.mrb[40].mxu1 %v15827_v30 }
 0x82e   : > { %7889 = vmatmul.mubr.bf16.vlgmr.msra.gmra.mrb[48].mxu0 %v15827_v30  ;;  %7814 = vmatpush1.bf16.msra.mxu1 %v12620_v34  ;;  %v5138_v34 = vld [vmem:[%s14952_s17 + $0x38] sm:$0xff] }
 0x82f   : > { %7900 = vmatpush1.bf16.msra.mxu0 %v12622_v35  ;;  %7815 = vmatprep.subr.bf16.mxu1 %v12637_v43  ;;  %v5146_v35 = vld [vmem:[%s14952_s17 + $0x78] sm:$0xff]  ;;  %v12716_v43 = vcombine.low %v5487_v61, %v5495_v32  ;;  %v5217_v32 = vld [vmem:[%s14952_s17 + $0x2b0] sm:$0xff] }
 0x830   : > { %7901 = vmatprep.subr.bf16.mxu0 %v12639_v29  ;;  %7845 = vmatprep.mubr.bf16.mxu1 %v14826_v8  ;;  %v12718_v29 = vcombine.low %v5488_v16, %v5496_v53  ;;  %v12371_v56 = vcombine.high %v5138_v34, %v5146_v35  ;;  %v5225_v16 = vld [vmem:[%s14952_s17 + $0x2f0] sm:$0xff]  ;;  %v5218_v53 = vld [vmem:[%s14952_s17 + $0x2b8] sm:$0xff] }
 0x831   : > { %7931 = vmatprep.mubr.bf16.mxu0 %v14826_v8 }
 0x832   : > { %7816 = vmatpush1.bf16.msra.mxu1 %v12636_v7  ;;  %v12368_v7 = vcombine.low %v5137_v60, %v5145_v0  ;;  %v5233_v0 = vld [vmem:[%s14952_s17 + $0x330] sm:$0xff] }
 0x833   : > { %7902 = vmatpush1.bf16.msra.mxu0 %v12638_v5  ;;  %7817 = vmatprep.subr.bf16.mxu1 %v12653_v9  ;;  %v5154_v5 = vld [vmem:[%s14952_s17 + $0xb8] sm:$0xff] }
 0x834   : > { %7903 = vmatprep.subr.bf16.mxu0 %v12655_v17  ;;  %v5162_v9 = vld [vmem:[%s14952_s17 + $0xf8] sm:$0xff]  ;;  %v12370_v17 = vcombine.low %v5138_v34, %v5146_v35  ;;  %v5241_v34 = vld [vmem:[%s14952_s17 + $0x370] sm:$0xff] }
 0x835   : > { %v12387_v23 = vcombine.high %v5154_v5, %v5162_v9  ;;  %v5234_v35 = vld [vmem:[%s14952_s17 + $0x338] sm:$0xff] }
 0x836   : > { %7818 = vmatpush1.bf16.msra.mxu1 %v12652_v37  ;;  %v5170_v37 = vld [vmem:[%s14952_s17 + $0x138] sm:$0xff] }
 0x837   : > { %7904 = vmatpush1.bf16.msra.mxu0 %v12654_v33  ;;  %7819 = vmatprep.subr.bf16.mxu1 %v12669_v25  ;;  %v5178_v33 = vld [vmem:[%s14952_s17 + $0x178] sm:$0xff]  ;;  %v12384_v25 = vcombine.low %v5153_v1, %v5161_v3  ;;  %v5249_v3 = vld [vmem:[%s14952_s17 + $0x3b0] sm:$0xff] }
 0x838   : > { %7905 = vmatprep.subr.bf16.mxu0 %v12671_v22  ;;  %v12386_v22 = vcombine.low %v5154_v5, %v5162_v9  ;;  %v12403_v48 = vcombine.high %v5170_v37, %v5178_v33  ;;  %v5250_v5 = vld [vmem:[%s14952_s17 + $0x3b8] sm:$0xff] }
 0x839   : > { %v5258_v9 = vld [vmem:[%s14952_s17 + $0x3f8] sm:$0xff] }
 0x83a   : > { %7820 = vmatpush1.bf16.msra.mxu1 %v12668_v42  ;;  %v5186_v42 = vld [vmem:[%s14952_s17 + $0x1b8] sm:$0xff] }
 0x83b   : > { %7906 = vmatpush1.bf16.msra.mxu0 %v12670_v6  ;;  %7821 = vmatprep.subr.bf16.mxu1 %v12685_v21  ;;  %v5194_v6 = vld [vmem:[%s14952_s17 + $0x1f8] sm:$0xff]  ;;  %v12400_v21 = vcombine.low %v5169_v19, %v5177_v20 }
 0x83c   : > { %7907 = vmatprep.subr.bf16.mxu0 %v12687_v40  ;;  %v12402_v40 = vcombine.low %v5170_v37, %v5178_v33  ;;  %v5265_v37 = vld [vmem:[%s14952_s17 + $0x430] sm:$0xff] }
 0x83d   : > { %v5273_v33 = vld [vmem:[%s14952_s17 + $0x470] sm:$0xff] }
 0x83e   : > { %7822 = vmatpush1.bf16.msra.mxu1 %v12684_v59  ;;  %v5210_v59 = vld [vmem:[%s14952_s17 + $0x278] sm:$0xff] }
 0x83f   : > { %7908 = vmatpush1.bf16.msra.mxu0 %v12686_v45  ;;  %7823 = vmatprep.subr.bf16.mxu1 %v12701_v26  ;;  %v12416_v45 = vcombine.low %v5185_v39, %v5193_v52  ;;  %v12418_v26 = vcombine.low %v5186_v42, %v5194_v6  ;;  %v12435_v61 = vcombine.high %v5202_v49, %v5210_v59 }
 0x840   : > { %7909 = vmatprep.subr.bf16.mxu0 %v12703_v12  ;;  %v12433_v12 = vcombine.high %v5201_v24, %v5209_v58 }
 0x842   : > { %7824 = vmatpush1.bf16.msra.mxu1 %v12700_v62  ;;  %v5226_v62 = vld [vmem:[%s14952_s17 + $0x2f8] sm:$0xff] }
 0x843   : > { %7910 = vmatpush1.bf16.msra.mxu0 %v12702_v57  ;;  %7825 = vmatprep.subr.bf16.mxu1 %v12717_v14  ;;  %v12432_v57 = vcombine.low %v5201_v24, %v5209_v58  ;;  %v12434_v14 = vcombine.low %v5202_v49, %v5210_v59  ;;  %v12451_v60 = vcombine.high %v5218_v53, %v5226_v62 }
 0x844   : > { %7911 = vmatprep.subr.bf16.mxu0 %v12719_v54  ;;  %v12449_v54 = vcombine.high %v5217_v32, %v5225_v16 }
 0x846   : > { %7826 = vmatpush1.bf16.msra.mxu1 %v12716_v43  ;;  %v5242_v43 = vld [vmem:[%s14952_s17 + $0x378] sm:$0xff] }
 0x847   : > { %7912 = vmatpush1.bf16.msra.mxu0 %v12718_v29  ;;  %7942 = vmatprep.subr.bf16.mxu1 %v12369_v36  ;;  %v12448_v29 = vcombine.low %v5217_v32, %v5225_v16  ;;  %v12450_v36 = vcombine.low %v5218_v53, %v5226_v62  ;;  %v12467_v1 = vcombine.high %v5234_v35, %v5242_v43  ;;  %v5290_v32 = vld [vmem:[%s14952_s17 + $0x4f8] sm:$0xff] }
 0x848   : > { %8028 = vmatprep.subr.bf16.mxu0 %v12371_v56  ;;  %v12465_v56 = vcombine.high %v5233_v0, %v5241_v34  ;;  %v12466_v19 = vcombine.low %v5234_v35, %v5242_v43 }
 0x849   : > { %12728 = vmatmul.mubr.msk.bf16.vlgmr.msra.gmra.mrb[40].mxu1 %vm2423_vm1, %v15877_v11 }
 0x84a   : > { %12729 = vmatmul.mubr.msk.bf16.vlgmr.msra.gmra.mrb[48].mxu0 %vm2423_vm1, %v15877_v11  ;;  %7943 = vmatpush1.bf16.msra.mxu1 %v12368_v7  ;;  %v5257_v7 = vld [vmem:[%s14952_s17 + $0x3f0] sm:$0xff] }
 0x84b   : > { %7974 = vmatprep.mubr.bf16.mxu1 %v15823_v10  ;;  %8029 = vmatpush1.bf16.msra.mxu0 %v12370_v17  ;;  %v12464_v17 = vcombine.low %v5233_v0, %v5241_v34  ;;  %v12481_v20 = vcombine.high %v5249_v3, %v5257_v7 }
 0x84c   : > { %8060 = vmatprep.mubr.bf16.mxu0 %v15823_v10  ;;  %7944 = vmatprep.subr.bf16.mxu1 %v12385_v18  ;;  %v12419_v10 = vcombine.high %v5186_v42, %v5194_v6  ;;  %v16114_v18 = vld [vmem:[%s16843_s27] sm:$0xff]  ;;  %v12480_v42 = vcombine.low %v5249_v3, %v5257_v7  ;;  %v12482_v6 = vcombine.low %v5250_v5, %v5258_v9  ;;  %v5297_v3 = vld [vmem:[%s14952_s17 + $0x530] sm:$0xff] }
 0x84d   : > { %8030 = vmatprep.subr.bf16.mxu0 %v12387_v23  ;;  %v12483_v23 = vcombine.high %v5250_v5, %v5258_v9  ;;  %v5510_v39 = vrot.slane %v16114_v18, %v15371_v31  ;;  %v5518_v52 = vrot.slane %v16114_v18, %v15288_v15  ;;  %v5305_v7 = vld [vmem:[%s14952_s17 + $0x570] sm:$0xff] }
 0x84e   : > { %7945 = vmatpush1.bf16.msra.mxu1 %v12384_v25  ;;  %v5506_v25 = vrot.slane %v16114_v18, %v15362_v27 }
 0x84f   : > { %8031 = vmatpush1.bf16.msra.mxu0 %v12386_v22  ;;  %7946 = vmatprep.subr.bf16.mxu1 %v12401_v63  ;;  %v5514_v22 = vrot.slane %v16114_v18, %v15282_v13  ;;  %v5266_v63 = vld [vmem:[%s14952_s17 + $0x438] sm:$0xff] }
 0x850   : > { %8032 = vmatprep.subr.bf16.mxu0 %v12403_v48  ;;  %v5274_v48 = vld [vmem:[%s14952_s17 + $0x478] sm:$0xff] }
 0x851   : > { %v12499_v58 = vcombine.high %v5266_v63, %v5274_v48 }
 0x852   : > { %7947 = vmatpush1.bf16.msra.mxu1 %v12400_v21  ;;  %v12497_v21 = vcombine.high %v5265_v37, %v5273_v33 }
 0x853   : > { %8033 = vmatpush1.bf16.msra.mxu0 %v12402_v40  ;;  %7948 = vmatprep.subr.bf16.mxu1 %v12417_v41  ;;  %v5281_v40 = vld [vmem:[%s14952_s17 + $0x4b0] sm:$0xff] }
 0x854   : > { %8034 = vmatprep.subr.bf16.mxu0 %v12419_v10  ;;  %v5289_v41 = vld [vmem:[%s14952_s17 + $0x4f0] sm:$0xff] }
 0x855   : > { %v12513_v43 = vcombine.high %v5281_v40, %v5289_v41 }
 0x856   : > { %7949 = vmatpush1.bf16.msra.mxu1 %v12416_v45 }
 0x857   : > { %8035 = vmatpush1.bf16.msra.mxu0 %v12418_v26  ;;  %7950 = vmatprep.subr.bf16.mxu1 %v12433_v12  ;;  %v12496_v12 = vcombine.low %v5265_v37, %v5273_v33 }
 0x858   : > { %8036 = vmatprep.subr.bf16.mxu0 %v12435_v61  ;;  %v5282_v61 = vld [vmem:[%s14952_s17 + $0x4b8] sm:$0xff] }
 0x85a   : > { %7951 = vmatpush1.bf16.msra.mxu1 %v12432_v57 }
 0x85b   : > { %8037 = vmatpush1.bf16.msra.mxu0 %v12434_v14  ;;  %7952 = vmatprep.subr.bf16.mxu1 %v12449_v54  ;;  %v12498_v14 = vcombine.low %v5266_v63, %v5274_v48  ;;  %v12512_v54 = vcombine.low %v5281_v40, %v5289_v41  ;;  %v5321_v40 = vld [vmem:[%s14952_s17 + $0x5f0] sm:$0xff]  ;;  %v5314_v41 = vld [vmem:[%s14952_s17 + $0x5b8] sm:$0xff] }
 0x85c   : > { %8038 = vmatprep.subr.bf16.mxu0 %v12451_v60 }
 0x85e   : > { %7953 = vmatpush1.bf16.msra.mxu1 %v12448_v29 }
 0x85f   : > { %8039 = vmatpush1.bf16.msra.mxu0 %v12450_v36  ;;  %7954 = vmatprep.subr.bf16.mxu1 %v12465_v56  ;;  %v12514_v56 = vcombine.low %v5282_v61, %v5290_v32 }
 0x860   : > { %8040 = vmatprep.subr.bf16.mxu0 %v12467_v1  ;;  %v12515_v1 = vcombine.high %v5282_v61, %v5290_v32  ;;  %v5338_v61 = vld [vmem:[%s14952_s17 + $0x678] sm:$0xff] }
 0x862   : > { %7955 = vmatpush1.bf16.msra.mxu1 %v12464_v17 }
 0x863   : > { %8041 = vmatpush1.bf16.msra.mxu0 %v12466_v19  ;;  %7956 = vmatprep.subr.bf16.mxu1 %v12481_v20  ;;  %v5298_v20 = vld [vmem:[%s14952_s17 + $0x538] sm:$0xff] }
 0x864   : > { %v7503_v10 = vpop.f32.mrb[32].mxu1  ;;  %v7589_v24 = vpop.f32.mrb[40].mxu0  ;;  %8042 = vmatprep.subr.bf16.mxu0 %v12483_v23  ;;  %v5306_v23 = vld [vmem:[%s14952_s17 + $0x578] sm:$0xff] }
 0x865   : > { %v13556_v49 = vadd.f32 %v7503_v10, %v5506_v25  ;;  %v13560_v59 = vadd.f32 %v7589_v24, %v5514_v22  ;;  %v7505_v45 = vpop.f32.mrb[33].mxu1  ;;  %v7591_v26 = vpop.f32.mrb[41].mxu0  ;;  %v5322_v10 = vld [vmem:[%s14952_s17 + $0x5f8] sm:$0xff]  ;;  %v12528_v24 = vcombine.low %v5297_v3, %v5305_v7 }
 0x866   : > { %v13557_v16 = vadd.f32 %v7505_v45, %v5510_v39  ;;  %v13561_v53 = vadd.f32 %v7591_v26, %v5518_v52  ;;  %v7507_v62 = vpop.f32.mrb[34].mxu1  ;;  %v7593_v57 = vpop.f32.mrb[42].mxu0  ;;  %7957 = vmatpush1.bf16.msra.mxu1 %v12480_v42  ;;  %v5329_v45 = vld [vmem:[%s14952_s17 + $0x630] sm:$0xff] }
 0x867   : > { %v13558_v60 = vadd.f32 %v7507_v62, %v5506_v25  ;;  %v13562_v0 = vadd.f32 %v7593_v57, %v5514_v22  ;;  %8043 = vmatpush1.bf16.msra.mxu0 %v12482_v6  ;;  %v7509_v34 = vpop.f32.mrb[35].mxu1  ;;  %v7595_v35 = vpop.f32.mrb[43].mxu0  ;;  %7958 = vmatprep.subr.bf16.mxu1 %v12497_v21  ;;  %v8114_v5 = vmax.f32 %v13556_v49, 0.0  ;;  %v8116_v9 = vmax.f32 %v13560_v59, 0.0  ;;  %v5313_v21 = vld [vmem:[%s14952_s17 + $0x5b0] sm:$0xff] }
 0x868   : > { %v13559_v29 = vadd.f32 %v7509_v34, %v5510_v39  ;;  %v13563_v36 = vadd.f32 %v7595_v35, %v5518_v52  ;;  %8044 = vmatprep.subr.bf16.mxu0 %v12499_v58  ;;  %v8115_v37 = vmax.f32 %v13557_v16, 0.0  ;;  %v8117_v33 = vmax.f32 %v13561_v53, 0.0  ;;  %v5337_v26 = vld [vmem:[%s14952_s17 + $0x670] sm:$0xff] }
 0x869   : > { %v8130_v17 = vmax.f32 %v13558_v60, 0.0  ;;  %v8132_v19 = vmax.f32 %v13562_v0, 0.0  ;;  %v12529_v39 = vcombine.high %v5297_v3, %v5305_v7  ;;  %v12531_v6 = vcombine.high %v5298_v20, %v5306_v23  ;;  %v5345_v57 = vld [vmem:[%s14952_s17 + $0x6b0] sm:$0xff]  ;;  %v5354_v60 = vld [vmem:[%s14952_s17 + $0x6f8] sm:$0xff] }
 0x86a   : > { %v8131_v25 = vmax.f32 %v13559_v29, 0.0  ;;  %v8133_v22 = vmax.f32 %v13563_v36, 0.0  ;;  %7959 = vmatpush1.bf16.msra.mxu1 %v12496_v12  ;;  %v12530_v58 = vcombine.low %v5298_v20, %v5306_v23  ;;  %v12545_v49 = vcombine.high %v5313_v21, %v5321_v40  ;;  %v5330_v12 = vld [vmem:[%s14952_s17 + $0x638] sm:$0xff]  ;;  %v5361_v29 = vld [vmem:[%s14952_s17 + $0x730] sm:$0xff] }
 0x86b   : > { %v16136_v63 = vpack.c.bf16 %v8130_v17, %v8114_v5  ;;  %v16138_v48 = vpack.c.bf16 %v8132_v19, %v8116_v9  ;;  %8045 = vmatpush1.bf16.msra.mxu0 %v12498_v14  ;;  %7960 = vmatprep.subr.bf16.mxu1 %v12513_v43  ;;  %v12547_v59 = vcombine.high %v5314_v41, %v5322_v10  ;;  %v5353_v14 = vld [vmem:[%s14952_s17 + $0x6f0] sm:$0xff]  ;;  %v5378_v20 = vld [vmem:[%s14952_s17 + $0x7b8] sm:$0xff] }
 0x86c   : > { %v16140_v52 = vpack.c.bf16 %v8131_v25, %v8115_v37  ;;  %v16142_v42 = vpack.c.bf16 %v8133_v22, %v8117_v33  ;;  %8046 = vmatprep.subr.bf16.mxu0 %v12515_v1  ;;  %v12544_v32 = vcombine.low %v5313_v21, %v5321_v40  ;;  %v12546_v16 = vcombine.low %v5314_v41, %v5322_v10  ;;  %v5369_v36 = vld [vmem:[%s14952_s17 + $0x770] sm:$0xff]  ;;  %v5370_v1 = vld [vmem:[%s14952_s17 + $0x778] sm:$0xff] }
 0x86d   : > { %v12561_v53 = vcombine.high %v5329_v45, %v5337_v26  ;;  %v12563_v62 = vcombine.high %v5330_v12, %v5338_v61  ;;  %v12560_v0 = vcombine.low %v5329_v45, %v5337_v26  ;;  %v12562_v34 = vcombine.low %v5330_v12, %v5338_v61  ;;  %v5377_v17 = vld [vmem:[%s14952_s17 + $0x7b0] sm:$0xff]  ;;  %v5386_v23 = vld [vmem:[%s14952_s17 + $0x7f8] sm:$0xff] }
 0x86e   : > { %7961 = vmatpush1.bf16.msra.mxu1 %v12512_v54  ;;  %v5346_v54 = vld [vmem:[%s14952_s17 + $0x6b8] sm:$0xff]  ;;  %v12577_v35 = vcombine.high %v5345_v57, %v5353_v14  ;;  %v12576_v3 = vcombine.low %v5345_v57, %v5353_v14  ;;  %v12593_v5 = vcombine.high %v5361_v29, %v5369_v36  ;;  %v5385_v19 = vld [vmem:[%s14952_s17 + $0x7f0] sm:$0xff]  ;;  %v12592_v37 = vcombine.low %v5361_v29, %v5369_v36 }
 0x86f   : > { %8047 = vmatpush1.bf16.msra.mxu0 %v12514_v56  ;;  %7962 = vmatprep.subr.bf16.mxu1 %v12529_v39  ;;  %v12579_v43 = vcombine.high %v5346_v54, %v5354_v60  ;;  %v5362_v56 = vld [vmem:[%s14952_s17 + $0x738] sm:$0xff]  ;;  %v12578_v7 = vcombine.low %v5346_v54, %v5354_v60  ;;  %v12609_v25 = vcombine.high %v5377_v17, %v5385_v19  ;;  %v5393_v39 = vld [vmem:[%s14952_s17 + $0x830] sm:$0xff] }
 0x870   : > { %8048 = vmatprep.subr.bf16.mxu0 %v12531_v6  ;;  %v12595_v9 = vcombine.high %v5362_v56, %v5370_v1  ;;  %v12594_v33 = vcombine.low %v5362_v56, %v5370_v1  ;;  %v12611_v22 = vcombine.high %v5378_v20, %v5386_v23  ;;  %v5401_v6 = vld [vmem:[%s14952_s17 + $0x870] sm:$0xff]  ;;  %v5394_v21 = vld [vmem:[%s14952_s17 + $0x838] sm:$0xff]  ;;  %v12608_v41 = vcombine.low %v5377_v17, %v5385_v19 }
 0x871   : > { %v5402_v40 = vld [vmem:[%s14952_s17 + $0x878] sm:$0xff]  ;;  %v12610_v10 = vcombine.low %v5378_v20, %v5386_v23  ;;  %v12624_v12 = vcombine.low %v5393_v39, %v5401_v6 }
 0x872   : > { %7963 = vmatpush1.bf16.msra.mxu1 %v12528_v24  ;;  %v12625_v24 = vcombine.high %v5393_v39, %v5401_v6  ;;  %v5410_v45 = vld [vmem:[%s14952_s17 + $0x8b8] sm:$0xff]  ;;  %v12626_v61 = vcombine.low %v5394_v21, %v5402_v40 }
 0x873   : > { %8049 = vmatpush1.bf16.msra.mxu0 %v12530_v58  ;;  %7964 = vmatprep.subr.bf16.mxu1 %v12545_v49  ;;  %v12627_v58 = vcombine.high %v5394_v21, %v5402_v40  ;;  %v5409_v49 = vld [vmem:[%s14952_s17 + $0x8b0] sm:$0xff]  ;;  %v5418_v26 = vld [vmem:[%s14952_s17 + $0x8f8] sm:$0xff] }
 0x874   : > { %8050 = vmatprep.subr.bf16.mxu0 %v12547_v59  ;;  %v5417_v59 = vld [vmem:[%s14952_s17 + $0x8f0] sm:$0xff]  ;;  %v5426_v57 = vld [vmem:[%s14952_s17 + $0x938] sm:$0xff]  ;;  %v12642_v60 = vcombine.low %v5410_v45, %v5418_v26 }
 0x875   : > { %v5434_v14 = vld [vmem:[%s14952_s17 + $0x978] sm:$0xff]  ;;  %v12640_v54 = vcombine.low %v5409_v49, %v5417_v59 }
 0x876   : > { %7965 = vmatpush1.bf16.msra.mxu1 %v12544_v32  ;;  %v12641_v32 = vcombine.high %v5409_v49, %v5417_v59  ;;  %v5442_v29 = vld [vmem:[%s14952_s17 + $0x9b8] sm:$0xff]  ;;  %v12658_v56 = vcombine.low %v5426_v57, %v5434_v14 }
 0x877   : > { %8051 = vmatpush1.bf16.msra.mxu0 %v12546_v16  ;;  %7966 = vmatprep.subr.bf16.mxu1 %v12561_v53  ;;  %v12643_v16 = vcombine.high %v5410_v45, %v5418_v26  ;;  %v5425_v53 = vld [vmem:[%s14952_s17 + $0x930] sm:$0xff]  ;;  %v5450_v36 = vld [vmem:[%s14952_s17 + $0x9f8] sm:$0xff] }
 0x878   : > { %8052 = vmatprep.subr.bf16.mxu0 %v12563_v62  ;;  %v5433_v62 = vld [vmem:[%s14952_s17 + $0x970] sm:$0xff]  ;;  %v5466_v17 = vld [vmem:[%s14952_s17 + $0xa78] sm:$0xff] }
 0x87a   : > { %7967 = vmatpush1.bf16.msra.mxu1 %v12560_v0  ;;  %v12657_v0 = vcombine.high %v5425_v53, %v5433_v62 }
 0x87b   : > { %8053 = vmatpush1.bf16.msra.mxu0 %v12562_v34  ;;  %7968 = vmatprep.subr.bf16.mxu1 %v12577_v35  ;;  %v12659_v34 = vcombine.high %v5426_v57, %v5434_v14  ;;  %v5441_v35 = vld [vmem:[%s14952_s17 + $0x9b0] sm:$0xff]  ;;  %v14244_v57 = vld [vmem:[%s14961_s30 + $0x1c] ss:$12 sps:$4 sm:$0xff]   ;;  %v14245_v14 = vld [vmem:[%s14961_s30 + $0xe0] ss:$12 sps:$4 sm:$0xff]  }
 0x87c   : > { %8054 = vmatprep.subr.bf16.mxu0 %v12579_v43  ;;  %v5449_v43 = vld [vmem:[%s14952_s17 + $0x9f0] sm:$0xff] }
 0x87d   : > { %v12673_v1 = vcombine.high %v5441_v35, %v5449_v43  ;;  %v12672_v19 = vcombine.low %v5441_v35, %v5449_v43  ;;  %v14251_v35 = vld [vmem:[%s14961_s30 + $0x38] ss:$12 sps:$4 sm:$0xff]  }
 0x87e   : > { %7969 = vmatpush1.bf16.msra.mxu1 %v12576_v3  ;;  %v12675_v3 = vcombine.high %v5442_v29, %v5450_v36  ;;  %v14254_v43 = vld [vmem:[%s14961_s30 + $0x4c] ss:$12 sps:$4 sm:$0xff]  }
 0x87f   : > { %8055 = vmatpush1.bf16.msra.mxu0 %v12578_v7  ;;  %7970 = vmatprep.subr.bf16.mxu1 %v12593_v5  ;;  %v5457_v7 = vld [vmem:[%s14952_s17 + $0xa30] sm:$0xff] }
 0x880   : > { %8056 = vmatprep.subr.bf16.mxu0 %v12595_v9  ;;  %v5465_v5 = vld [vmem:[%s14952_s17 + $0xa70] sm:$0xff]  ;;  %v5458_v9 = vld [vmem:[%s14952_s17 + $0xa38] sm:$0xff] }
 0x881   : > { %v12689_v20 = vcombine.high %v5457_v7, %v5465_v5  ;;  %v12691_v23 = vcombine.high %v5458_v9, %v5466_v17  ;;  %v12688_v39 = vcombine.low %v5457_v7, %v5465_v5  ;;  %v12690_v6 = vcombine.low %v5458_v9, %v5466_v17  ;;  %v14264_v7 = vld [vmem:[%s14961_s30 + $0x7c] ss:$12 sps:$4 sm:$0xff]   ;;  %v14265_v5 = vld [vmem:[%s14961_s30 + $0x140] ss:$12 sps:$4 sm:$0xff]   ;;  %v14262_v9 = vld [vmem:[%s14961_s30 + $0x78] ss:$12 sps:$4 sm:$0xff]  }
 0x882   : > { %7971 = vmatpush1.bf16.msra.mxu1 %v12592_v37  ;;  %v5473_v37 = vld [vmem:[%s14952_s17 + $0xab0] sm:$0xff]  ;;  %v14266_v17 = vld [vmem:[%s14961_s30 + $0x80] ss:$12 sps:$4 sm:$0xff]  }
 0x883   : > { %8057 = vmatpush1.bf16.msra.mxu0 %v12594_v33  ;;  %7972 = vmatprep.subr.bf16.mxu1 %v12609_v25  ;;  %v5481_v33 = vld [vmem:[%s14952_s17 + $0xaf0] sm:$0xff]  ;;  %v5474_v25 = vld [vmem:[%s14952_s17 + $0xab8] sm:$0xff] }
 0x884   : > { %8058 = vmatprep.subr.bf16.mxu0 %v12611_v22  ;;  %v5482_v22 = vld [vmem:[%s14952_s17 + $0xaf8] sm:$0xff]  ;;  %v12705_v21 = vcombine.high %v5473_v37, %v5481_v33  ;;  %v12704_v49 = vcombine.low %v5473_v37, %v5481_v33 }
 0x885   : > { %v12707_v40 = vcombine.high %v5474_v25, %v5482_v22  ;;  %v12706_v59 = vcombine.low %v5474_v25, %v5482_v22  ;;  %v14274_v37 = vld [vmem:[%s14961_s30 + $0xac] ss:$12 sps:$4 sm:$0xff]   ;;  %v14275_v33 = vld [vmem:[%s14961_s30 + $0x170] ss:$12 sps:$4 sm:$0xff]   ;;  %v5522_v25 = vrot.slane %v16114_v18, %v15365_v28  ;;  %v5530_v22 = vrot.slane %v16114_v18, %v15385_v44 }
 0x886   : > { %7973 = vmatpush1.bf16.msra.mxu1 %v12608_v41  ;;  %v5489_v41 = vld [vmem:[%s14952_s17 + $0xb30] sm:$0xff] }
 0x887   : > { %8059 = vmatpush1.bf16.msra.mxu0 %v12610_v10  ;;  %7985 = vmatprep.subr.bf16.mxu1 %v12625_v24  ;;  %v5497_v10 = vld [vmem:[%s14952_s17 + $0xb70] sm:$0xff]  ;;  %v5490_v24 = vld [vmem:[%s14952_s17 + $0xb38] sm:$0xff] }
 0x888   : > { %8071 = vmatprep.subr.bf16.mxu0 %v12627_v58  ;;  %v5498_v58 = vld [vmem:[%s14952_s17 + $0xb78] sm:$0xff]  ;;  %v12721_v45 = vcombine.high %v5489_v41, %v5497_v10 }
 0x889   : > { %7975 = vmatmul.mubr.bf16.vlgmr.msra.gmra.mrb[44].mxu1 %v15827_v30  ;;  %v12723_v26 = vcombine.high %v5490_v24, %v5498_v58 }
 0x88a   : > { %8061 = vmatmul.mubr.bf16.vlgmr.msra.gmra.mrb[52].mxu0 %v15827_v30  ;;  %7986 = vmatpush1.bf16.msra.mxu1 %v12624_v12  ;;  %v12656_v30 = vcombine.low %v5425_v53, %v5433_v62  ;;  %v12720_v12 = vcombine.low %v5489_v41, %v5497_v10  ;;  %v14237_v53 = vld [vmem:[%s14961_s30] ss:$12 sps:$4 sm:$0xff]   ;;  %v14241_v62 = vld [vmem:[%s14961_s30 + $0x8] ss:$12 sps:$4 sm:$0xff]   ;;  %v14279_v41 = vld [vmem:[%s14961_s30 + $0xc4] ss:$12 sps:$4 sm:$0xff]  }
 0x88b   : > { %8072 = vmatpush1.bf16.msra.mxu0 %v12626_v61  ;;  %7987 = vmatprep.subr.bf16.mxu1 %v12641_v32  ;;  %v12722_v61 = vcombine.low %v5490_v24, %v5498_v58  ;;  %v14239_v32 = vld [vmem:[%s14961_s30 + $0x4] ss:$12 sps:$4 sm:$0xff]   ;;  %v14280_v24 = vld [vmem:[%s14961_s30 + $0x248] ss:$12 sps:$4 sm:$0xff]  }
 0x88c   : > { %8073 = vmatprep.subr.bf16.mxu0 %v12643_v16  ;;  %8017 = vmatprep.mubr.bf16.mxu1 %v14826_v8  ;;  %v14240_v16 = vld [vmem:[%s14961_s30 + $0xc8] ss:$12 sps:$4 sm:$0xff]  }
 0x88d   : > { %8103 = vmatprep.mubr.bf16.mxu0 %v14826_v8  ;;  %v12674_v8 = vcombine.low %v5442_v29, %v5450_v36  ;;  %v14255_v29 = vld [vmem:[%s14961_s30 + $0x110] ss:$12 sps:$4 sm:$0xff]  }
 0x88e   : > { %7988 = vmatpush1.bf16.msra.mxu1 %v12640_v54  ;;  %v14242_v54 = vld [vmem:[%s14961_s30 + $0x18] ss:$12 sps:$4 sm:$0xff]   ;;  %v14256_v36 = vld [vmem:[%s14961_s30 + $0x50] ss:$12 sps:$4 sm:$0xff]  }
 0x88f   : > { %8074 = vmatpush1.bf16.msra.mxu0 %v12642_v60  ;;  %7989 = vmatprep.subr.bf16.mxu1 %v12657_v0  ;;  %v14246_v60 = vld [vmem:[%s14961_s30 + $0x20] ss:$12 sps:$4 sm:$0xff]  }
 0x890   : > { %8075 = vmatprep.subr.bf16.mxu0 %v12659_v34  ;;  %v14249_v0 = vld [vmem:[%s14961_s30 + $0x34] ss:$12 sps:$4 sm:$0xff]   ;;  %v14250_v34 = vld [vmem:[%s14961_s30 + $0xf8] ss:$12 sps:$4 sm:$0xff]  }
 0x892   : > { %7990 = vmatpush1.bf16.msra.mxu1 %v12656_v30  ;;  %v14259_v30 = vld [vmem:[%s14961_s30 + $0x64] ss:$12 sps:$4 sm:$0xff]  }
 0x893   : > { %8076 = vmatpush1.bf16.msra.mxu0 %v12658_v56  ;;  %7991 = vmatprep.subr.bf16.mxu1 %v12673_v1  ;;  %v14260_v56 = vld [vmem:[%s14961_s30 + $0x128] ss:$12 sps:$4 sm:$0xff]   ;;  %v14257_v1 = vld [vmem:[%s14961_s30 + $0x60] ss:$12 sps:$4 sm:$0xff]  }
 0x894   : > { %8077 = vmatprep.subr.bf16.mxu0 %v12675_v3  ;;  %v14261_v3 = vld [vmem:[%s14961_s30 + $0x68] ss:$12 sps:$4 sm:$0xff]  }
 0x896   : > { %7992 = vmatpush1.bf16.msra.mxu1 %v12672_v19  ;;  %v14269_v19 = vld [vmem:[%s14961_s30 + $0x94] ss:$12 sps:$4 sm:$0xff]  }
 0x897   : > { %8078 = vmatpush1.bf16.msra.mxu0 %v12674_v8  ;;  %7993 = vmatprep.subr.bf16.mxu1 %v12689_v20  ;;  %v14270_v8 = vld [vmem:[%s14961_s30 + $0x158] ss:$12 sps:$4 sm:$0xff]   ;;  %v14267_v20 = vld [vmem:[%s14961_s30 + $0x90] ss:$12 sps:$4 sm:$0xff]  }
 0x898   : > { %8079 = vmatprep.subr.bf16.mxu0 %v12691_v23  ;;  %v14271_v23 = vld [vmem:[%s14961_s30 + $0x98] ss:$12 sps:$4 sm:$0xff]  }
 0x89a   : > { %7994 = vmatpush1.bf16.msra.mxu1 %v12688_v39  ;;  %v5526_v39 = vrot.slane %v16114_v18, %v15376_v38 }
 0x89b   : > { %8080 = vmatpush1.bf16.msra.mxu0 %v12690_v6  ;;  %7995 = vmatprep.subr.bf16.mxu1 %v12705_v21  ;;  %v14272_v6 = vld [vmem:[%s14961_s30 + $0xa8] ss:$12 sps:$4 sm:$0xff]   ;;  %v5534_v21 = vrot.slane %v16114_v18, %v15396_v51 }
 0x89c   : > { %8081 = vmatprep.subr.bf16.mxu0 %v12707_v40  ;;  %v14276_v40 = vld [vmem:[%s14961_s30 + $0xb0] ss:$12 sps:$4 sm:$0xff]  }
 0x89e   : > { %7996 = vmatpush1.bf16.msra.mxu1 %v12704_v49 }
 0x89f   : > { %8082 = vmatpush1.bf16.msra.mxu0 %v12706_v59  ;;  %7997 = vmatprep.subr.bf16.mxu1 %v12721_v45 }
 0x8a0   : > { %8083 = vmatprep.subr.bf16.mxu0 %v12723_v26 }
 0x8a2   : > { %7998 = vmatpush1.bf16.msra.mxu1 %v12720_v12 }
 0x8a3   : > { %8084 = vmatpush1.bf16.msra.mxu0 %v12722_v61  ;;  %10739 = vmatprep.subr.bf16.mxu1 %v14239_v32  ;;  %v14277_v32 = vld [vmem:[%s14961_s30 + $0xc0] ss:$12 sps:$4 sm:$0xff]  }
 0x8a4   : > { %13220 = vmatprep.subr.bf16.mxu0 %v14240_v16 }
 0x8a5   : > { %12730 = vmatmul.mubr.msk.bf16.vlgmr.msra.gmra.mrb[44].mxu1 %vm2423_vm1, %v15877_v11 }
 0x8a6   : > { %12731 = vmatmul.mubr.msk.bf16.vlgmr.msra.gmra.mrb[52].mxu0 %vm2423_vm1, %v15877_v11  ;;  %10740 = vmatpush1.bf16.msra.mxu1 %v14237_v53  ;;  %v14247_v11 = vld [vmem:[%s14961_s30 + $0x30] ss:$12 sps:$4 sm:$0xff]  }
 0x8a7   : > { %10771 = vmatprep.mubr.bf16.mxu1 %v16140_v52  ;;  %13221 = vmatpush3.bf16.msra.mxu0 %v14241_v62 }
 0x8a8   : > { %11115 = vmatprep.mubr.bf16.mxu0 %v16140_v52  ;;  %10741 = vmatprep.subr.bf16.mxu1 %v14244_v57  ;;  %v14252_v52 = vld [vmem:[%s14961_s30 + $0x48] ss:$12 sps:$4 sm:$0xff]  }
 0x8a9   : > { %13222 = vmatprep.subr.bf16.mxu0 %v14245_v14  ;;  %v14281_v57 = vld [vmem:[%s14961_s30 + $0x188] ss:$12 sps:$4 sm:$0xff]  }
 0x8aa   : > { %10742 = vmatpush1.bf16.msra.mxu1 %v14242_v54 }
 0x8ab   : > { %13223 = vmatpush3.bf16.msra.mxu0 %v14246_v60  ;;  %10743 = vmatprep.subr.bf16.mxu1 %v14249_v0  ;;  %v14284_v0 = vld [vmem:[%s14961_s30 + $0xdc] ss:$12 sps:$4 sm:$0xff]  }
 0x8ac   : > { %13224 = vmatprep.subr.bf16.mxu0 %v14250_v34  ;;  %v14285_v34 = vld [vmem:[%s14961_s30 + $0x260] ss:$12 sps:$4 sm:$0xff]  }
 0x8ae   : > { %10744 = vmatpush1.bf16.msra.mxu1 %v14247_v11 }
 0x8af   : > { %13225 = vmatpush3.bf16.msra.mxu0 %v14251_v35  ;;  %10745 = vmatprep.subr.bf16.mxu1 %v14254_v43 }
 0x8b0   : > { %13226 = vmatprep.subr.bf16.mxu0 %v14255_v29 }
 0x8b2   : > { %10746 = vmatpush1.bf16.msra.mxu1 %v14252_v52 }
 0x8b3   : > { %13227 = vmatpush3.bf16.msra.mxu0 %v14256_v36  ;;  %10747 = vmatprep.subr.bf16.mxu1 %v14259_v30 }
 0x8b4   : > { %13228 = vmatprep.subr.bf16.mxu0 %v14260_v56  ;;  %v14282_v56 = vld [vmem:[%s14961_s30 + $0xd8] ss:$12 sps:$4 sm:$0xff]  }
 0x8b6   : > { %10748 = vmatpush1.bf16.msra.mxu1 %v14257_v1 }
 0x8b7   : > { %13229 = vmatpush3.bf16.msra.mxu0 %v14261_v3  ;;  %10749 = vmatprep.subr.bf16.mxu1 %v14264_v7 }
 0x8b8   : > { %13230 = vmatprep.subr.bf16.mxu0 %v14265_v5  ;;  %v14286_v5 = vld [vmem:[%s14961_s30 + $0x1a0] ss:$12 sps:$4 sm:$0xff]  }
 0x8ba   : > { %10750 = vmatpush1.bf16.msra.mxu1 %v14262_v9  ;;  %v14289_v9 = vld [vmem:[%s14961_s30 + $0xf4] ss:$12 sps:$4 sm:$0xff]  }
 0x8bb   : > { %13231 = vmatpush3.bf16.msra.mxu0 %v14266_v17  ;;  %10751 = vmatprep.subr.bf16.mxu1 %v14269_v19 }
 0x8bc   : > { %13232 = vmatprep.subr.bf16.mxu0 %v14270_v8  ;;  %v14290_v8 = vld [vmem:[%s14961_s30 + $0x278] ss:$12 sps:$4 sm:$0xff]  }
 0x8be   : > { %10752 = vmatpush1.bf16.msra.mxu1 %v14267_v20 }
 0x8bf   : > { %13233 = vmatpush3.bf16.msra.mxu0 %v14271_v23  ;;  %10753 = vmatprep.subr.bf16.mxu1 %v14274_v37  ;;  %v14287_v23 = vld [vmem:[%s14961_s30 + $0xf0] ss:$12 sps:$4 sm:$0xff]   ;;  %v14291_v37 = vld [vmem:[%s14961_s30 + $0x1b8] ss:$12 sps:$4 sm:$0xff]  }
 0x8c0   : > { %v7675_v10 = vpop.f32.mrb[36].mxu1  ;;  %13234 = vmatprep.subr.bf16.mxu0 %v14275_v33  ;;  %v14294_v33 = vld [vmem:[%s14961_s30 + $0x10c] ss:$12 sps:$4 sm:$0xff]  }
 0x8c1   : > { %v13564_v58 = vadd.f32 %v7675_v10, %v5522_v25  ;;  %v7761_v49 = vpop.f32.mrb[44].mxu0  ;;  %v7677_v59 = vpop.f32.mrb[37].mxu1  ;;  %v14304_v10 = vld [vmem:[%s14961_s30 + $0x13c] ss:$12 sps:$4 sm:$0xff]  }
 0x8c2   : > { %v13568_v45 = vadd.f32 %v7761_v49, %v5530_v22  ;;  %v13565_v26 = vadd.f32 %v7677_v59, %v5526_v39  ;;  %v7763_v12 = vpop.f32.mrb[45].mxu0  ;;  %v7679_v61 = vpop.f32.mrb[38].mxu1  ;;  %10754 = vmatpush1.bf16.msra.mxu1 %v14272_v6  ;;  %v14299_v6 = vld [vmem:[%s14961_s30 + $0x124] ss:$12 sps:$4 sm:$0xff]   ;;  %v14306_v49 = vld [vmem:[%s14961_s30 + $0x200] ss:$12 sps:$4 sm:$0xff]  }
 0x8c3   : > { %v13569_v16 = vadd.f32 %v7763_v12, %v5534_v21  ;;  %v13566_v18 = vadd.f32 %v7679_v61, %v5522_v25  ;;  %v7765_v53 = vpop.f32.mrb[46].mxu0  ;;  %13235 = vmatpush3.bf16.msra.mxu0 %v14276_v40  ;;  %v7681_v62 = vpop.f32.mrb[39].mxu1  ;;  %10755 = vmatprep.subr.bf16.mxu1 %v14279_v41  ;;  %v8118_v11 = vmax.f32 %v13564_v58, 0.0  ;;  %v14295_v25 = vld [vmem:[%s14961_s30 + $0x290] ss:$12 sps:$4 sm:$0xff]  }
 0x8c4   : > { %v13570_v14 = vadd.f32 %v7765_v53, %v5530_v22  ;;  %v13567_v54 = vadd.f32 %v7681_v62, %v5526_v39  ;;  %v7767_v60 = vpop.f32.mrb[47].mxu0  ;;  %13242 = vmatprep.subr.bf16.mxu0 %v14280_v24  ;;  %v8120_v29 = vmax.f32 %v13568_v45, 0.0  ;;  %v8119_v52 = vmax.f32 %v13565_v26, 0.0  ;;  %v14292_v22 = vld [vmem:[%s14961_s30 + $0x108] ss:$12 sps:$4 sm:$0xff]  }
 0x8c5   : > { %v8134_v35 = vmax.f32 %v13566_v18, 0.0  ;;  %v13571_v43 = vadd.f32 %v7767_v60, %v5534_v21  ;;  %v8121_v1 = vmax.f32 %v13569_v16, 0.0  ;;  %v14296_v39 = vld [vmem:[%s14961_s30 + $0x1d0] ss:$12 sps:$4 sm:$0xff]   ;;  %v14300_v21 = vld [vmem:[%s14961_s30 + $0x2a8] ss:$12 sps:$4 sm:$0xff]  }
 0x8c6   : > { %v8136_v36 = vmax.f32 %v13570_v14, 0.0  ;;  %v8135_v30 = vmax.f32 %v13567_v54, 0.0  ;;  %11116 = vmatmul.mubr.bf16.vlgmr.msra.gmra.mrb[56].mxu0 %v16136_v63  ;;  %10756 = vmatpush1.bf16.msra.mxu1 %v14277_v32  ;;  %v14297_v40 = vld [vmem:[%s14961_s30 + $0x120] ss:$12 sps:$4 sm:$0xff]   ;;  %v14301_v41 = vld [vmem:[%s14961_s30 + $0x1e8] ss:$12 sps:$4 sm:$0xff]  }
 0x8c7   : > { %v16250_v3 = vpack.c.bf16 %v8134_v35, %v8118_v11  ;;  %v8137_v7 = vmax.f32 %v13571_v43, 0.0  ;;  %13243 = vmatpush3.bf16.msra.mxu0 %v14281_v57  ;;  %11156 = vmatprep.mubr.bf16.mxu0 %v16142_v42  ;;  %v14305_v24 = vld [vmem:[%s14961_s30 + $0x2c0] ss:$12 sps:$4 sm:$0xff]   ;;  %v14302_v58 = vld [vmem:[%s14961_s30 + $0x138] ss:$12 sps:$4 sm:$0xff]  }
 0x8c8   : > { %v16255_v17 = vpack.c.bf16 %v8136_v36, %v8120_v29  ;;  %v16257_v19 = vpack.c.bf16 %v8135_v30, %v8119_v52  ;;  %10757 = vmatprep.subr.bf16.mxu1 %v14284_v0  ;;  %13244 = vmatprep.subr.bf16.mxu0 %v14285_v34  ;;  %v14309_v59 = vld [vmem:[%s14961_s30 + $0x154] ss:$12 sps:$4 sm:$0xff]   ;;  %v14310_v45 = vld [vmem:[%s14961_s30 + $0x2d8] ss:$12 sps:$4 sm:$0xff]   ;;  %v14307_v26 = vld [vmem:[%s14961_s30 + $0x150] ss:$12 sps:$4 sm:$0xff]  }
 0x8c9   : > { %v16260_v20 = vpack.c.bf16 %v8137_v7, %v8121_v1  ;;  %v14311_v12 = vld [vmem:[%s14961_s30 + $0x218] ss:$12 sps:$4 sm:$0xff]   ;;  %v14315_v32 = vld [vmem:[%s14961_s30 + $0x2f0] ss:$12 sps:$4 sm:$0xff]   ;;  %v14312_v16 = vld [vmem:[%s14961_s30 + $0x168] ss:$12 sps:$4 sm:$0xff]  }
 0x8ca   : > { %10758 = vmatpush1.bf16.msra.mxu1 %v14282_v56  ;;  %v14314_v61 = vld [vmem:[%s14961_s30 + $0x16c] ss:$12 sps:$4 sm:$0xff]   ;;  %v14316_v18 = vld [vmem:[%s14961_s30 + $0x230] ss:$12 sps:$4 sm:$0xff]   ;;  %v14320_v62 = vld [vmem:[%s14961_s30 + $0x3c8] ss:$12 sps:$4 sm:$0xff]  }
 0x8cb   : > { %13245 = vmatpush3.bf16.msra.mxu0 %v14286_v5  ;;  %10759 = vmatprep.subr.bf16.mxu1 %v14289_v9  ;;  %v14319_v53 = vld [vmem:[%s14961_s30 + $0x184] ss:$12 sps:$4 sm:$0xff]   ;;  %v14317_v57 = vld [vmem:[%s14961_s30 + $0x180] ss:$12 sps:$4 sm:$0xff]   ;;  %v14321_v14 = vld [vmem:[%s14961_s30 + $0x308] ss:$12 sps:$4 sm:$0xff]  }
 0x8cc   : > { %13246 = vmatprep.subr.bf16.mxu0 %v14290_v8  ;;  %v14324_v54 = vld [vmem:[%s14961_s30 + $0x19c] ss:$12 sps:$4 sm:$0xff]   ;;  %v14325_v60 = vld [vmem:[%s14961_s30 + $0x3e0] ss:$12 sps:$4 sm:$0xff]   ;;  %v14322_v0 = vld [vmem:[%s14961_s30 + $0x198] ss:$12 sps:$4 sm:$0xff]  }
 0x8cd   : > { %v14326_v34 = vld [vmem:[%s14961_s30 + $0x320] ss:$12 sps:$4 sm:$0xff]   ;;  %v14327_v35 = vld [vmem:[%s14961_s30 + $0x1b0] ss:$12 sps:$4 sm:$0xff]   ;;  %v14331_v43 = vld [vmem:[%s14961_s30 + $0x338] ss:$12 sps:$4 sm:$0xff]  }
 0x8ce   : > { %10760 = vmatpush1.bf16.msra.mxu1 %v14287_v23  ;;  %v14329_v11 = vld [vmem:[%s14961_s30 + $0x1b4] ss:$12 sps:$4 sm:$0xff]   ;;  %v14335_v29 = vld [vmem:[%s14961_s30 + $0x410] ss:$12 sps:$4 sm:$0xff]   ;;  %v14342_v8 = vld [vmem:[%s14961_s30 + $0x1f8] ss:$12 sps:$4 sm:$0xff]  }
 0x8cf   : > { %13247 = vmatpush3.bf16.msra.mxu0 %v14291_v37  ;;  %10761 = vmatprep.subr.bf16.mxu1 %v14294_v33  ;;  %v14332_v52 = vld [vmem:[%s14961_s30 + $0x1c8] ss:$12 sps:$4 sm:$0xff]   ;;  %v14336_v36 = vld [vmem:[%s14961_s30 + $0x350] ss:$12 sps:$4 sm:$0xff]   ;;  %v14337_v1 = vld [vmem:[%s14961_s30 + $0x1e0] ss:$12 sps:$4 sm:$0xff]  }
 0x8d0   : > { %13248 = vmatprep.subr.bf16.mxu0 %v14295_v25  ;;  %v14339_v30 = vld [vmem:[%s14961_s30 + $0x1e4] ss:$12 sps:$4 sm:$0xff]   ;;  %v14340_v56 = vld [vmem:[%s14961_s30 + $0x428] ss:$12 sps:$4 sm:$0xff]   ;;  %v14345_v9 = vld [vmem:[%s14961_s30 + $0x440] ss:$12 sps:$4 sm:$0xff]  }
 0x8d1   : > { %v14341_v7 = vld [vmem:[%s14961_s30 + $0x368] ss:$12 sps:$4 sm:$0xff]   ;;  %v14346_v23 = vld [vmem:[%s14961_s30 + $0x380] ss:$12 sps:$4 sm:$0xff]   ;;  %v14350_v33 = vld [vmem:[%s14961_s30 + $0x458] ss:$12 sps:$4 sm:$0xff]  }
 0x8d2   : > { %10762 = vmatpush1.bf16.msra.mxu1 %v14292_v22  ;;  %v14344_v5 = vld [vmem:[%s14961_s30 + $0x1fc] ss:$12 sps:$4 sm:$0xff]   ;;  %v14349_v37 = vld [vmem:[%s14961_s30 + $0x214] ss:$12 sps:$4 sm:$0xff]   ;;  %v14351_v22 = vld [vmem:[%s14961_s30 + $0x398] ss:$12 sps:$4 sm:$0xff]  }
 0x8d3   : > { %13249 = vmatpush3.bf16.msra.mxu0 %v14296_v39  ;;  %10763 = vmatprep.subr.bf16.mxu1 %v14299_v6  ;;  %v14347_v25 = vld [vmem:[%s14961_s30 + $0x210] ss:$12 sps:$4 sm:$0xff]   ;;  %v14354_v39 = vld [vmem:[%s14961_s30 + $0x22c] ss:$12 sps:$4 sm:$0xff]  }
 0x8d4   : > { %13250 = vmatprep.subr.bf16.mxu0 %v14300_v21  ;;  %v14355_v6 = vld [vmem:[%s14961_s30 + $0x470] ss:$12 sps:$4 sm:$0xff]   ;;  %v14352_v21 = vld [vmem:[%s14961_s30 + $0x228] ss:$12 sps:$4 sm:$0xff]  }
 0x8d6   : > { %10764 = vmatpush1.bf16.msra.mxu1 %v14297_v40  ;;  %v14356_v40 = vld [vmem:[%s14961_s30 + $0x3b0] ss:$12 sps:$4 sm:$0xff]  }
 0x8d7   : > { %13251 = vmatpush3.bf16.msra.mxu0 %v14301_v41  ;;  %10765 = vmatprep.subr.bf16.mxu1 %v14304_v10  ;;  %v14359_v41 = vld [vmem:[%s14961_s30 + $0x244] ss:$12 sps:$4 sm:$0xff]   ;;  %v14360_v10 = vld [vmem:[%s14961_s30 + $0x548] ss:$12 sps:$4 sm:$0xff]  }
 0x8d8   : > { %13252 = vmatprep.subr.bf16.mxu0 %v14305_v24  ;;  %v14357_v24 = vld [vmem:[%s14961_s30 + $0x240] ss:$12 sps:$4 sm:$0xff]  }
 0x8da   : > { %10766 = vmatpush1.bf16.msra.mxu1 %v14302_v58  ;;  %v14361_v58 = vld [vmem:[%s14961_s30 + $0x488] ss:$12 sps:$4 sm:$0xff]  }
 0x8db   : > { %13253 = vmatpush3.bf16.msra.mxu0 %v14306_v49  ;;  %10767 = vmatprep.subr.bf16.mxu1 %v14309_v59  ;;  %v14364_v49 = vld [vmem:[%s14961_s30 + $0x25c] ss:$12 sps:$4 sm:$0xff]   ;;  %v14365_v59 = vld [vmem:[%s14961_s30 + $0x560] ss:$12 sps:$4 sm:$0xff]  }
 0x8dc   : > { %13254 = vmatprep.subr.bf16.mxu0 %v14310_v45  ;;  %v14362_v45 = vld [vmem:[%s14961_s30 + $0x258] ss:$12 sps:$4 sm:$0xff]  }
 0x8de   : > { %10768 = vmatpush1.bf16.msra.mxu1 %v14307_v26  ;;  %v14366_v26 = vld [vmem:[%s14961_s30 + $0x4a0] ss:$12 sps:$4 sm:$0xff]  }
 0x8df   : > { %13255 = vmatpush3.bf16.msra.mxu0 %v14311_v12  ;;  %10769 = vmatprep.subr.bf16.mxu1 %v14314_v61  ;;  %v14369_v12 = vld [vmem:[%s14961_s30 + $0x274] ss:$12 sps:$4 sm:$0xff]   ;;  %v14370_v61 = vld [vmem:[%s14961_s30 + $0x578] ss:$12 sps:$4 sm:$0xff]  }
 0x8e0   : > { %13256 = vmatprep.subr.bf16.mxu0 %v14315_v32  ;;  %v14367_v32 = vld [vmem:[%s14961_s30 + $0x270] ss:$12 sps:$4 sm:$0xff]  }
 0x8e2   : > { %10770 = vmatpush1.bf16.msra.mxu1 %v14312_v16  ;;  %v14371_v16 = vld [vmem:[%s14961_s30 + $0x4b8] ss:$12 sps:$4 sm:$0xff]  }
 0x8e3   : > { %13257 = vmatpush3.bf16.msra.mxu0 %v14316_v18  ;;  %10782 = vmatprep.subr.bf16.mxu1 %v14319_v53  ;;  %v14374_v18 = vld [vmem:[%s14961_s30 + $0x28c] ss:$12 sps:$4 sm:$0xff]   ;;  %v14375_v53 = vld [vmem:[%s14961_s30 + $0x590] ss:$12 sps:$4 sm:$0xff]  }
 0x8e4   : > { %13264 = vmatprep.subr.bf16.mxu0 %v14320_v62  ;;  %v14372_v62 = vld [vmem:[%s14961_s30 + $0x288] ss:$12 sps:$4 sm:$0xff]  }
 0x8e5   : > { %10772 = vmatmul.mubr.bf16.vlgmr.msra.gmra.mrb[48].mxu1 %v16136_v63  ;;  %v14330_v63 = vld [vmem:[%s14961_s30 + $0x3f8] ss:$12 sps:$4 sm:$0xff]  }
 0x8e6   : > { %11157 = vmatmul.mubr.bf16.vlgmr.msra.gmra.mrb[60].mxu0 %v16138_v48  ;;  %10783 = vmatpush1.bf16.msra.mxu1 %v14317_v57  ;;  %v14376_v57 = vld [vmem:[%s14961_s30 + $0x4d0] ss:$12 sps:$4 sm:$0xff]  }
 0x8e7   : > { %10814 = vmatprep.mubr.bf16.mxu1 %v16142_v42  ;;  %13265 = vmatpush3.bf16.msra.mxu0 %v14321_v14  ;;  %v14334_v42 = vld [vmem:[%s14961_s30 + $0x1cc] ss:$12 sps:$4 sm:$0xff]   ;;  %v14379_v14 = vld [vmem:[%s14961_s30 + $0x2a4] ss:$12 sps:$4 sm:$0xff]  }
 0x8e8   : > { %11197 = vmatprep.mubr.bf16.mxu0 %v16257_v19  ;;  %10784 = vmatprep.subr.bf16.mxu1 %v14324_v54  ;;  %v14380_v54 = vld [vmem:[%s14961_s30 + $0x5a8] ss:$12 sps:$4 sm:$0xff]  }
 0x8e9   : > { %13266 = vmatprep.subr.bf16.mxu0 %v14325_v60  ;;  %v14377_v60 = vld [vmem:[%s14961_s30 + $0x2a0] ss:$12 sps:$4 sm:$0xff]  }
 0x8ea   : > { %10785 = vmatpush1.bf16.msra.mxu1 %v14322_v0  ;;  %v14381_v0 = vld [vmem:[%s14961_s30 + $0x4e8] ss:$12 sps:$4 sm:$0xff]  }
 0x8eb   : > { %13267 = vmatpush3.bf16.msra.mxu0 %v14326_v34  ;;  %10786 = vmatprep.subr.bf16.mxu1 %v14329_v11  ;;  %v14384_v34 = vld [vmem:[%s14961_s30 + $0x2bc] ss:$12 sps:$4 sm:$0xff]   ;;  %v14385_v11 = vld [vmem:[%s14961_s30 + $0x5c0] ss:$12 sps:$4 sm:$0xff]  }
 0x8ec   : > { %13268 = vmatprep.subr.bf16.mxu0 %v14330_v63  ;;  %v14382_v63 = vld [vmem:[%s14961_s30 + $0x2b8] ss:$12 sps:$4 sm:$0xff]  }
 0x8ee   : > { %10787 = vmatpush1.bf16.msra.mxu1 %v14327_v35  ;;  %v16346_v35 = vld [vmem:[%s16843_s27 + $0x8] sm:$0xff] }
 0x8ef   : > { %13269 = vmatpush3.bf16.msra.mxu0 %v14331_v43  ;;  %10788 = vmatprep.subr.bf16.mxu1 %v14334_v42  ;;  %v14386_v43 = vld [vmem:[%s14961_s30 + $0x500] ss:$12 sps:$4 sm:$0xff]  }
 0x8f0   : > { %13270 = vmatprep.subr.bf16.mxu0 %v14335_v29  ;;  %v14389_v42 = vld [vmem:[%s14961_s30 + $0x2d4] ss:$12 sps:$4 sm:$0xff]   ;;  %v14390_v29 = vld [vmem:[%s14961_s30 + $0x5d8] ss:$12 sps:$4 sm:$0xff]  }
 0x8f2   : > { %10789 = vmatpush1.bf16.msra.mxu1 %v14332_v52  ;;  %v5538_v52 = vrot.slane %v16346_v35, %v15362_v27 }
 0x8f3   : > { %13271 = vmatpush3.bf16.msra.mxu0 %v14336_v36  ;;  %10790 = vmatprep.subr.bf16.mxu1 %v14339_v30  ;;  %v5546_v36 = vrot.slane %v16346_v35, %v15282_v13  ;;  %v5542_v30 = vrot.slane %v16346_v35, %v15371_v31 }
 0x8f4   : > { %13272 = vmatprep.subr.bf16.mxu0 %v14340_v56  ;;  %v14387_v56 = vld [vmem:[%s14961_s30 + $0x2d0] ss:$12 sps:$4 sm:$0xff]  }
 0x8f6   : > { %10791 = vmatpush1.bf16.msra.mxu1 %v14337_v1  ;;  %v5550_v1 = vrot.slane %v16346_v35, %v15288_v15 }
 0x8f7   : > { %13273 = vmatpush3.bf16.msra.mxu0 %v14341_v7  ;;  %10792 = vmatprep.subr.bf16.mxu1 %v14344_v5  ;;  %v14391_v7 = vld [vmem:[%s14961_s30 + $0x518] ss:$12 sps:$4 sm:$0xff]  }
 0x8f8   : > { %13274 = vmatprep.subr.bf16.mxu0 %v14345_v9  ;;  %v14394_v5 = vld [vmem:[%s14961_s30 + $0x2ec] ss:$12 sps:$4 sm:$0xff]  }
 0x8fa   : > { %10793 = vmatpush1.bf16.msra.mxu1 %v14342_v8  ;;  %v14395_v8 = vld [vmem:[%s14961_s30 + $0x5f0] ss:$12 sps:$4 sm:$0xff]  }
 0x8fb   : > { %13275 = vmatpush3.bf16.msra.mxu0 %v14346_v23  ;;  %10794 = vmatprep.subr.bf16.mxu1 %v14349_v37 }
 0x8fc   : > { %13276 = vmatprep.subr.bf16.mxu0 %v14350_v33 }
 0x8fe   : > { %10795 = vmatpush1.bf16.msra.mxu1 %v14347_v25 }
 0x8ff   : > { %13277 = vmatpush3.bf16.msra.mxu0 %v14351_v22  ;;  %10796 = vmatprep.subr.bf16.mxu1 %v14354_v39 }
 0x900   : > { %13278 = vmatprep.subr.bf16.mxu0 %v14355_v6 }
 0x902   : > { %10797 = vmatpush1.bf16.msra.mxu1 %v14352_v21  ;;  %v14392_v21 = vld [vmem:[%s14961_s30 + $0x2e8] ss:$12 sps:$4 sm:$0xff]  }
 0x903   : > { %13279 = vmatpush3.bf16.msra.mxu0 %v14356_v40  ;;  %10798 = vmatprep.subr.bf16.mxu1 %v14359_v41 }
 0x904   : > { %13286 = vmatprep.subr.bf16.mxu0 %v14360_v10 }
 0x906   : > { %11198 = vmatmul.mubr.bf16.vlgmr.msra.gmra.mrb[64].mxu0 %v16250_v3  ;;  %10799 = vmatpush1.bf16.msra.mxu1 %v14357_v24  ;;  %v14396_v24 = vld [vmem:[%s14961_s30 + $0x530] ss:$12 sps:$4 sm:$0xff]  }
 0x907   : > { %13287 = vmatpush3.bf16.msra.mxu0 %v14361_v58  ;;  %11238 = vmatprep.mubr.bf16.mxu0 %v16260_v20  ;;  %v14399_v58 = vld [vmem:[%s14961_s30 + $0x304] ss:$12 sps:$4 sm:$0xff]  }
 0x908   : > { %10800 = vmatprep.subr.bf16.mxu1 %v14364_v49  ;;  %13288 = vmatprep.subr.bf16.mxu0 %v14365_v59 }
 0x90a   : > { %10801 = vmatpush1.bf16.msra.mxu1 %v14362_v45 }
 0x90b   : > { %13289 = vmatpush3.bf16.msra.mxu0 %v14366_v26  ;;  %10802 = vmatprep.subr.bf16.mxu1 %v14369_v12  ;;  %v14400_v26 = vld [vmem:[%s14961_s30 + $0x6c8] ss:$12 sps:$4 sm:$0xff]  }
 0x90c   : > { %13290 = vmatprep.subr.bf16.mxu0 %v14370_v61 }
 0x90e   : > { %10803 = vmatpush1.bf16.msra.mxu1 %v14367_v32 }
 0x90f   : > { %13291 = vmatpush3.bf16.msra.mxu0 %v14371_v16  ;;  %10804 = vmatprep.subr.bf16.mxu1 %v14374_v18 }
 0x910   : > { %13292 = vmatprep.subr.bf16.mxu0 %v14375_v53 }
 0x912   : > { %10805 = vmatpush1.bf16.msra.mxu1 %v14372_v62 }
 0x913   : > { %13293 = vmatpush3.bf16.msra.mxu0 %v14376_v57  ;;  %10806 = vmatprep.subr.bf16.mxu1 %v14379_v14  ;;  %v14397_v57 = vld [vmem:[%s14961_s30 + $0x300] ss:$12 sps:$4 sm:$0xff]  }
 0x914   : > { %13294 = vmatprep.subr.bf16.mxu0 %v14380_v54 }
 0x916   : > { %10807 = vmatpush1.bf16.msra.mxu1 %v14377_v60 }
 0x917   : > { %13295 = vmatpush3.bf16.msra.mxu0 %v14381_v0  ;;  %10808 = vmatprep.subr.bf16.mxu1 %v14384_v34  ;;  %v14401_v0 = vld [vmem:[%s14961_s30 + $0x608] ss:$12 sps:$4 sm:$0xff]  }
 0x918   : > { %13296 = vmatprep.subr.bf16.mxu0 %v14385_v11 }
 0x91a   : > { %10809 = vmatpush1.bf16.msra.mxu1 %v14382_v63  ;;  %v14404_v63 = vld [vmem:[%s14961_s30 + $0x31c] ss:$12 sps:$4 sm:$0xff]  }
 0x91b   : > { %13297 = vmatpush3.bf16.msra.mxu0 %v14386_v43  ;;  %10810 = vmatprep.subr.bf16.mxu1 %v14389_v42  ;;  %v14405_v42 = vld [vmem:[%s14961_s30 + $0x6e0] ss:$12 sps:$4 sm:$0xff]  }
 0x91c   : > { %v7847_v9 = vpop.f32.mrb[40].mxu1  ;;  %13298 = vmatprep.subr.bf16.mxu0 %v14390_v29  ;;  %v14402_v29 = vld [vmem:[%s14961_s30 + $0x318] ss:$12 sps:$4 sm:$0xff]  }
 0x91d   : > { %v13572_v23 = vadd.f32 %v7847_v9, %v5538_v52  ;;  %v7933_v37 = vpop.f32.mrb[48].mxu0  ;;  %v7849_v33 = vpop.f32.mrb[41].mxu1  ;;  %v14419_v9 = vld [vmem:[%s14961_s30 + $0x364] ss:$12 sps:$4 sm:$0xff]  }
 0x91e   : > { %v13576_v25 = vadd.f32 %v7933_v37, %v5546_v36  ;;  %v13573_v22 = vadd.f32 %v7849_v33, %v5542_v30  ;;  %v7935_v39 = vpop.f32.mrb[49].mxu0  ;;  %v7851_v6 = vpop.f32.mrb[42].mxu1  ;;  %10811 = vmatpush1.bf16.msra.mxu1 %v14387_v56  ;;  %v14411_v56 = vld [vmem:[%s14961_s30 + $0x638] ss:$12 sps:$4 sm:$0xff]   ;;  %v14421_v37 = vld [vmem:[%s14961_s30 + $0x668] ss:$12 sps:$4 sm:$0xff]  }
 0x91f   : > { %v13577_v40 = vadd.f32 %v7935_v39, %v5550_v1  ;;  %v13574_v15 = vadd.f32 %v7851_v6, %v5538_v52  ;;  %v7937_v41 = vpop.f32.mrb[50].mxu0  ;;  %13299 = vmatpush3.bf16.msra.mxu0 %v14391_v7  ;;  %v7853_v10 = vpop.f32.mrb[43].mxu1  ;;  %10812 = vmatprep.subr.bf16.mxu1 %v14394_v5  ;;  %v8122_v12 = vmax.f32 %v13572_v23, 0.0  ;;  %v14406_v52 = vld [vmem:[%s14961_s30 + $0x620] ss:$12 sps:$4 sm:$0xff]  }
 0x920   : > { %v13578_v49 = vadd.f32 %v7937_v41, %v5546_v36  ;;  %v13575_v59 = vadd.f32 %v7853_v10, %v5542_v30  ;;  %v7939_v45 = vpop.f32.mrb[51].mxu0  ;;  %13300 = vmatprep.subr.bf16.mxu0 %v14395_v8  ;;  %v8124_v16 = vmax.f32 %v13576_v25, 0.0  ;;  %v8123_v18 = vmax.f32 %v13573_v22, 0.0  ;;  %v14409_v36 = vld [vmem:[%s14961_s30 + $0x334] ss:$12 sps:$4 sm:$0xff]  }
 0x921   : > { %v8138_v61 = vmax.f32 %v13574_v15, 0.0  ;;  %v13579_v32 = vadd.f32 %v7939_v45, %v5550_v1  ;;  %v8125_v14 = vmax.f32 %v13577_v40, 0.0  ;;  %v14407_v30 = vld [vmem:[%s14961_s30 + $0x330] ss:$12 sps:$4 sm:$0xff]   ;;  %v14412_v7 = vld [vmem:[%s14961_s30 + $0x348] ss:$12 sps:$4 sm:$0xff]  }
 0x922   : > { %v8140_v53 = vmax.f32 %v13578_v49, 0.0  ;;  %v8139_v62 = vmax.f32 %v13575_v59, 0.0  ;;  %10813 = vmatpush1.bf16.msra.mxu1 %v14392_v21  ;;  %v14415_v1 = vld [vmem:[%s14961_s30 + $0x710] ss:$12 sps:$4 sm:$0xff]   ;;  %v14420_v8 = vld [vmem:[%s14961_s30 + $0x728] ss:$12 sps:$4 sm:$0xff]  }
 0x923   : > { %v16368_v54 = vpack.c.bf16 %v8138_v61, %v8122_v12  ;;  %v8141_v60 = vmax.f32 %v13579_v32, 0.0  ;;  %13301 = vmatpush3.bf16.msra.mxu0 %v14396_v24  ;;  %10825 = vmatprep.subr.bf16.mxu1 %v14399_v58  ;;  %v14416_v5 = vld [vmem:[%s14961_s30 + $0x650] ss:$12 sps:$4 sm:$0xff]   ;;  %v14417_v23 = vld [vmem:[%s14961_s30 + $0x360] ss:$12 sps:$4 sm:$0xff]  }
 0x924   : > { %v16371_v34 = vpack.c.bf16 %v8140_v53, %v8124_v16  ;;  %v16373_v11 = vpack.c.bf16 %v8139_v62, %v8123_v18  ;;  %13308 = vmatprep.subr.bf16.mxu0 %v14400_v26  ;;  %v14424_v33 = vld [vmem:[%s14961_s30 + $0x37c] ss:$12 sps:$4 sm:$0xff]   ;;  %v14425_v25 = vld [vmem:[%s14961_s30 + $0x740] ss:$12 sps:$4 sm:$0xff]   ;;  %v14422_v22 = vld [vmem:[%s14961_s30 + $0x378] ss:$12 sps:$4 sm:$0xff]  }
 0x925   : > { %v16376_v43 = vpack.c.bf16 %v8141_v60, %v8125_v14  ;;  %10815 = vmatmul.mubr.bf16.vlgmr.msra.gmra.mrb[48].mxu1 %v16138_v48  ;;  %v14410_v48 = vld [vmem:[%s14961_s30 + $0x6f8] ss:$12 sps:$4 sm:$0xff]   ;;  %v14426_v39 = vld [vmem:[%s14961_s30 + $0x680] ss:$12 sps:$4 sm:$0xff]   ;;  %v14427_v40 = vld [vmem:[%s14961_s30 + $0x390] ss:$12 sps:$4 sm:$0xff]  }
 0x926   : > { %11239 = vmatmul.mubr.bf16.vlgmr.msra.gmra.mrb[68].mxu0 %v16255_v17  ;;  %10826 = vmatpush1.bf16.msra.mxu1 %v14397_v57  ;;  %v14429_v6 = vld [vmem:[%s14961_s30 + $0x394] ss:$12 sps:$4 sm:$0xff]   ;;  %v14430_v21 = vld [vmem:[%s14961_s30 + $0x758] ss:$12 sps:$4 sm:$0xff]   ;;  %v14435_v10 = vld [vmem:[%s14961_s30 + $0x770] ss:$12 sps:$4 sm:$0xff]  }
 0x927   : > { %10857 = vmatprep.mubr.bf16.mxu1 %v16257_v19  ;;  %13309 = vmatpush3.bf16.msra.mxu0 %v14401_v0  ;;  %v14414_v19 = vld [vmem:[%s14961_s30 + $0x34c] ss:$12 sps:$4 sm:$0xff]   ;;  %v14432_v24 = vld [vmem:[%s14961_s30 + $0x3a8] ss:$12 sps:$4 sm:$0xff]   ;;  %v14436_v58 = vld [vmem:[%s14961_s30 + $0x6b0] ss:$12 sps:$4 sm:$0xff]  }
 0x928   : > { %11279 = vmatprep.mubr.bf16.mxu0 %v16373_v11  ;;  %10827 = vmatprep.subr.bf16.mxu1 %v14404_v63  ;;  %v14431_v15 = vld [vmem:[%s14961_s30 + $0x698] ss:$12 sps:$4 sm:$0xff]   ;;  %v14440_v59 = vld [vmem:[%s14961_s30 + $0x848] ss:$12 sps:$4 sm:$0xff]   ;;  %v14437_v45 = vld [vmem:[%s14961_s30 + $0x3c0] ss:$12 sps:$4 sm:$0xff]  }
 0x929   : > { %13310 = vmatprep.subr.bf16.mxu0 %v14405_v42  ;;  %v14434_v41 = vld [vmem:[%s14961_s30 + $0x3ac] ss:$12 sps:$4 sm:$0xff]   ;;  %v14439_v49 = vld [vmem:[%s14961_s30 + $0x3c4] ss:$12 sps:$4 sm:$0xff]   ;;  %v14441_v26 = vld [vmem:[%s14961_s30 + $0x788] ss:$12 sps:$4 sm:$0xff]  }
 0x92a   : > { %10828 = vmatpush1.bf16.msra.mxu1 %v14402_v29  ;;  %v14444_v12 = vld [vmem:[%s14961_s30 + $0x3dc] ss:$12 sps:$4 sm:$0xff]   ;;  %v14445_v61 = vld [vmem:[%s14961_s30 + $0x860] ss:$12 sps:$4 sm:$0xff]   ;;  %v14442_v32 = vld [vmem:[%s14961_s30 + $0x3d8] ss:$12 sps:$4 sm:$0xff]  }
 0x92b   : > { %13311 = vmatpush3.bf16.msra.mxu0 %v14406_v52  ;;  %10829 = vmatprep.subr.bf16.mxu1 %v14409_v36  ;;  %v14446_v16 = vld [vmem:[%s14961_s30 + $0x7a0] ss:$12 sps:$4 sm:$0xff]   ;;  %v14450_v53 = vld [vmem:[%s14961_s30 + $0x878] ss:$12 sps:$4 sm:$0xff]   ;;  %v14447_v62 = vld [vmem:[%s14961_s30 + $0x3f0] ss:$12 sps:$4 sm:$0xff]  }
 0x92c   : > { %13312 = vmatprep.subr.bf16.mxu0 %v14410_v48  ;;  %v14449_v18 = vld [vmem:[%s14961_s30 + $0x3f4] ss:$12 sps:$4 sm:$0xff]   ;;  %v14451_v57 = vld [vmem:[%s14961_s30 + $0x7b8] ss:$12 sps:$4 sm:$0xff]   ;;  %v14455_v60 = vld [vmem:[%s14961_s30 + $0x890] ss:$12 sps:$4 sm:$0xff]  }
 0x92d   : > { %v14454_v14 = vld [vmem:[%s14961_s30 + $0x40c] ss:$12 sps:$4 sm:$0xff]   ;;  %v14452_v0 = vld [vmem:[%s14961_s30 + $0x408] ss:$12 sps:$4 sm:$0xff]   ;;  %v14456_v63 = vld [vmem:[%s14961_s30 + $0x7d0] ss:$12 sps:$4 sm:$0xff]  }
 0x92e   : > { %10830 = vmatpush1.bf16.msra.mxu1 %v14407_v30  ;;  %v14459_v42 = vld [vmem:[%s14961_s30 + $0x424] ss:$12 sps:$4 sm:$0xff]   ;;  %v14460_v29 = vld [vmem:[%s14961_s30 + $0x8a8] ss:$12 sps:$4 sm:$0xff]   ;;  %v14457_v52 = vld [vmem:[%s14961_s30 + $0x420] ss:$12 sps:$4 sm:$0xff]  }
 0x92f   : > { %13313 = vmatpush3.bf16.msra.mxu0 %v14411_v56  ;;  %10831 = vmatprep.subr.bf16.mxu1 %v14414_v19  ;;  %v14461_v36 = vld [vmem:[%s14961_s30 + $0x7e8] ss:$12 sps:$4 sm:$0xff]   ;;  %v14465_v30 = vld [vmem:[%s14961_s30 + $0x8c0] ss:$12 sps:$4 sm:$0xff]   ;;  %v14462_v56 = vld [vmem:[%s14961_s30 + $0x438] ss:$12 sps:$4 sm:$0xff]  }
 0x930   : > { %13314 = vmatprep.subr.bf16.mxu0 %v14415_v1  ;;  %v14464_v48 = vld [vmem:[%s14961_s30 + $0x43c] ss:$12 sps:$4 sm:$0xff]   ;;  %v14466_v19 = vld [vmem:[%s14961_s30 + $0x800] ss:$12 sps:$4 sm:$0xff]  }
 0x931   : > { %v14469_v1 = vld [vmem:[%s14961_s30 + $0x454] ss:$12 sps:$4 sm:$0xff]  }
 0x932   : > { %10832 = vmatpush1.bf16.msra.mxu1 %v14412_v7  ;;  %v14470_v7 = vld [vmem:[%s14961_s30 + $0x8d8] ss:$12 sps:$4 sm:$0xff]  }
 0x933   : > { %13315 = vmatpush3.bf16.msra.mxu0 %v14416_v5  ;;  %10833 = vmatprep.subr.bf16.mxu1 %v14419_v9  ;;  %v14467_v5 = vld [vmem:[%s14961_s30 + $0x450] ss:$12 sps:$4 sm:$0xff]   ;;  %v14471_v9 = vld [vmem:[%s14961_s30 + $0x818] ss:$12 sps:$4 sm:$0xff]  }
 0x934   : > { %13316 = vmatprep.subr.bf16.mxu0 %v14420_v8  ;;  %v14474_v8 = vld [vmem:[%s14961_s30 + $0x46c] ss:$12 sps:$4 sm:$0xff]  }
 0x936   : > { %10834 = vmatpush1.bf16.msra.mxu1 %v14417_v23  ;;  %v14475_v23 = vld [vmem:[%s14961_s30 + $0x8f0] ss:$12 sps:$4 sm:$0xff]  }
 0x937   : > { %13317 = vmatpush3.bf16.msra.mxu0 %v14421_v37  ;;  %10835 = vmatprep.subr.bf16.mxu1 %v14424_v33  ;;  %v14472_v37 = vld [vmem:[%s14961_s30 + $0x468] ss:$12 sps:$4 sm:$0xff]   ;;  %v14476_v33 = vld [vmem:[%s14961_s30 + $0x830] ss:$12 sps:$4 sm:$0xff]  }
 0x938   : > { %13318 = vmatprep.subr.bf16.mxu0 %v14425_v25  ;;  %v14479_v25 = vld [vmem:[%s14961_s30 + $0x484] ss:$12 sps:$4 sm:$0xff]  }
 0x93a   : > { %10836 = vmatpush1.bf16.msra.mxu1 %v14422_v22  ;;  %v14480_v22 = vld [vmem:[%s14961_s30 + $0x9c8] ss:$12 sps:$4 sm:$0xff]  }
 0x93b   : > { %13319 = vmatpush3.bf16.msra.mxu0 %v14426_v39  ;;  %10837 = vmatprep.subr.bf16.mxu1 %v14429_v6  ;;  %v14477_v39 = vld [vmem:[%s14961_s30 + $0x480] ss:$12 sps:$4 sm:$0xff]   ;;  %v14481_v6 = vld [vmem:[%s14961_s30 + $0x908] ss:$12 sps:$4 sm:$0xff]  }
 0x93c   : > { %13320 = vmatprep.subr.bf16.mxu0 %v14430_v21  ;;  %v14484_v21 = vld [vmem:[%s14961_s30 + $0x49c] ss:$12 sps:$4 sm:$0xff]  }
 0x93e   : > { %10838 = vmatpush1.bf16.msra.mxu1 %v14427_v40  ;;  %v14485_v40 = vld [vmem:[%s14961_s30 + $0x9e0] ss:$12 sps:$4 sm:$0xff]  }
 0x93f   : > { %13321 = vmatpush3.bf16.msra.mxu0 %v14431_v15  ;;  %10839 = vmatprep.subr.bf16.mxu1 %v14434_v41  ;;  %v14482_v15 = vld [vmem:[%s14961_s30 + $0x498] ss:$12 sps:$4 sm:$0xff]   ;;  %v14486_v41 = vld [vmem:[%s14961_s30 + $0x920] ss:$12 sps:$4 sm:$0xff]  }
 0x940   : > { %13322 = vmatprep.subr.bf16.mxu0 %v14435_v10  ;;  %v14489_v10 = vld [vmem:[%s14961_s30 + $0x4b4] ss:$12 sps:$4 sm:$0xff]  }
 0x942   : > { %10840 = vmatpush1.bf16.msra.mxu1 %v14432_v24  ;;  %v14490_v24 = vld [vmem:[%s14961_s30 + $0x9f8] ss:$12 sps:$4 sm:$0xff]  }
 0x943   : > { %13323 = vmatpush3.bf16.msra.mxu0 %v14436_v58  ;;  %10841 = vmatprep.subr.bf16.mxu1 %v14439_v49  ;;  %v14491_v58 = vld [vmem:[%s14961_s30 + $0x938] ss:$12 sps:$4 sm:$0xff]  }
 0x944   : > { %13330 = vmatprep.subr.bf16.mxu0 %v14440_v59  ;;  %v14494_v49 = vld [vmem:[%s14961_s30 + $0x4cc] ss:$12 sps:$4 sm:$0xff]   ;;  %v14492_v59 = vld [vmem:[%s14961_s30 + $0x4c8] ss:$12 sps:$4 sm:$0xff]  }
 0x946   : > { %11280 = vmatmul.mubr.bf16.vlgmr.msra.gmra.mrb[72].mxu0 %v16368_v54  ;;  %10842 = vmatpush1.bf16.msra.mxu1 %v14437_v45  ;;  %v14496_v45 = vld [vmem:[%s14961_s30 + $0x950] ss:$12 sps:$4 sm:$0xff]  }
 0x947   : > { %13331 = vmatpush3.bf16.msra.mxu0 %v14441_v26  ;;  %11320 = vmatprep.mubr.bf16.mxu0 %v16376_v43  ;;  %v14499_v26 = vld [vmem:[%s14961_s30 + $0x4e4] ss:$12 sps:$4 sm:$0xff]  }
 0x948   : > { %10843 = vmatprep.subr.bf16.mxu1 %v14444_v12  ;;  %13332 = vmatprep.subr.bf16.mxu0 %v14445_v61  ;;  %v14500_v12 = vld [vmem:[%s14961_s30 + $0xa28] ss:$12 sps:$4 sm:$0xff]   ;;  %v14497_v61 = vld [vmem:[%s14961_s30 + $0x4e0] ss:$12 sps:$4 sm:$0xff]  }
 0x94a   : > { %10844 = vmatpush1.bf16.msra.mxu1 %v14442_v32  ;;  %v14501_v32 = vld [vmem:[%s14961_s30 + $0x968] ss:$12 sps:$4 sm:$0xff]  }
 0x94b   : > { %13333 = vmatpush3.bf16.msra.mxu0 %v14446_v16  ;;  %10845 = vmatprep.subr.bf16.mxu1 %v14449_v18  ;;  %v14504_v16 = vld [vmem:[%s14961_s30 + $0x4fc] ss:$12 sps:$4 sm:$0xff]   ;;  %v14505_v18 = vld [vmem:[%s14961_s30 + $0xa40] ss:$12 sps:$4 sm:$0xff]  }
 0x94c   : > { %13334 = vmatprep.subr.bf16.mxu0 %v14450_v53  ;;  %v5554_v53 = vrot.slane %v16346_v35, %v15365_v28 }
 0x94e   : > { %10846 = vmatpush1.bf16.msra.mxu1 %v14447_v62  ;;  %v5562_v62 = vrot.slane %v16346_v35, %v15385_v44 }
 0x94f   : > { %13335 = vmatpush3.bf16.msra.mxu0 %v14451_v57  ;;  %10847 = vmatprep.subr.bf16.mxu1 %v14454_v14  ;;  %v5558_v57 = vrot.slane %v16346_v35, %v15376_v38  ;;  %v14502_v14 = vld [vmem:[%s14961_s30 + $0x4f8] ss:$12 sps:$4 sm:$0xff]  }
 0x950   : > { %13336 = vmatprep.subr.bf16.mxu0 %v14455_v60  ;;  %v5566_v60 = vrot.slane %v16346_v35, %v15396_v51 }
 0x952   : > { %10848 = vmatpush1.bf16.msra.mxu1 %v14452_v0  ;;  %v14506_v0 = vld [vmem:[%s14961_s30 + $0x980] ss:$12 sps:$4 sm:$0xff]  }
 0x953   : > { %13337 = vmatpush3.bf16.msra.mxu0 %v14456_v63  ;;  %10849 = vmatprep.subr.bf16.mxu1 %v14459_v42  ;;  %v14509_v63 = vld [vmem:[%s14961_s30 + $0x514] ss:$12 sps:$4 sm:$0xff]  }
 0x954   : > { %13338 = vmatprep.subr.bf16.mxu0 %v14460_v29  ;;  %v14510_v29 = vld [vmem:[%s14961_s30 + $0xa58] ss:$12 sps:$4 sm:$0xff]  }
 0x956   : > { %10850 = vmatpush1.bf16.msra.mxu1 %v14457_v52 }
 0x957   : > { %13339 = vmatpush3.bf16.msra.mxu0 %v14461_v36  ;;  %10851 = vmatprep.subr.bf16.mxu1 %v14464_v48 }
 0x958   : > { %13340 = vmatprep.subr.bf16.mxu0 %v14465_v30 }
 0x95a   : > { %10852 = vmatpush1.bf16.msra.mxu1 %v14462_v56  ;;  %v14507_v56 = vld [vmem:[%s14961_s30 + $0x510] ss:$12 sps:$4 sm:$0xff]  }
 0x95b   : > { %13341 = vmatpush3.bf16.msra.mxu0 %v14466_v19  ;;  %10853 = vmatprep.subr.bf16.mxu1 %v14469_v1 }
 0x95c   : > { %13342 = vmatprep.subr.bf16.mxu0 %v14470_v7  ;;  %v14511_v7 = vld [vmem:[%s14961_s30 + $0x998] ss:$12 sps:$4 sm:$0xff]  }
 0x95e   : > { %10854 = vmatpush1.bf16.msra.mxu1 %v14467_v5  ;;  %v14514_v5 = vld [vmem:[%s14961_s30 + $0x52c] ss:$12 sps:$4 sm:$0xff]  }
 0x95f   : > { %13343 = vmatpush3.bf16.msra.mxu0 %v14471_v9  ;;  %10855 = vmatprep.subr.bf16.mxu1 %v14474_v8 }
 0x960   : > { %13344 = vmatprep.subr.bf16.mxu0 %v14475_v23 }
 0x962   : > { %10856 = vmatpush1.bf16.msra.mxu1 %v14472_v37  ;;  %v14515_v37 = vld [vmem:[%s14961_s30 + $0xa70] ss:$12 sps:$4 sm:$0xff]  }
 0x963   : > { %13345 = vmatpush3.bf16.msra.mxu0 %v14476_v33  ;;  %10868 = vmatprep.subr.bf16.mxu1 %v14479_v25 }
 0x964   : > { %13352 = vmatprep.subr.bf16.mxu0 %v14480_v22 }
 0x965   : > { %10858 = vmatmul.mubr.bf16.vlgmr.msra.gmra.mrb[48].mxu1 %v16250_v3  ;;  %v14487_v3 = vld [vmem:[%s14961_s30 + $0x4b0] ss:$12 sps:$4 sm:$0xff]  }
 0x966   : > { %11321 = vmatmul.mubr.bf16.vlgmr.msra.gmra.mrb[76].mxu0 %v16371_v34  ;;  %10869 = vmatpush1.bf16.msra.mxu1 %v14477_v39 }
 0x967   : > { %10900 = vmatprep.mubr.bf16.mxu1 %v16260_v20  ;;  %13353 = vmatpush3.bf16.msra.mxu0 %v14481_v6  ;;  %v14495_v20 = vld [vmem:[%s14961_s30 + $0xa10] ss:$12 sps:$4 sm:$0xff]  }
 0x968   : > { %10870 = vmatprep.subr.bf16.mxu1 %v14484_v21  ;;  %13354 = vmatprep.subr.bf16.mxu0 %v14485_v40 }
 0x96a   : > { %10871 = vmatpush1.bf16.msra.mxu1 %v14482_v15  ;;  %v14512_v15 = vld [vmem:[%s14961_s30 + $0x528] ss:$12 sps:$4 sm:$0xff]  }
 0x96b   : > { %13355 = vmatpush3.bf16.msra.mxu0 %v14486_v41  ;;  %10872 = vmatprep.subr.bf16.mxu1 %v14489_v10 }
 0x96c   : > { %13356 = vmatprep.subr.bf16.mxu0 %v14490_v24 }
 0x96e   : > { %10873 = vmatpush1.bf16.msra.mxu1 %v14487_v3  ;;  %v14516_v3 = vld [vmem:[%s14961_s30 + $0x9b0] ss:$12 sps:$4 sm:$0xff]  }
 0x96f   : > { %13357 = vmatpush3.bf16.msra.mxu0 %v14491_v58  ;;  %10874 = vmatprep.subr.bf16.mxu1 %v14494_v49  ;;  %v14519_v58 = vld [vmem:[%s14961_s30 + $0x544] ss:$12 sps:$4 sm:$0xff]  }
 0x970   : > { %13358 = vmatprep.subr.bf16.mxu0 %v14495_v20 }
 0x972   : > { %10875 = vmatpush1.bf16.msra.mxu1 %v14492_v59  ;;  %v14520_v59 = vld [vmem:[%s14961_s30 + $0xb48] ss:$12 sps:$4 sm:$0xff]  }
 0x973   : > { %13359 = vmatpush3.bf16.msra.mxu0 %v14496_v45  ;;  %10876 = vmatprep.subr.bf16.mxu1 %v14499_v26  ;;  %v14517_v26 = vld [vmem:[%s14961_s30 + $0x540] ss:$12 sps:$4 sm:$0xff]  }
 0x974   : > { %13360 = vmatprep.subr.bf16.mxu0 %v14500_v12  ;;  %v14521_v12 = vld [vmem:[%s14961_s30 + $0xa88] ss:$12 sps:$4 sm:$0xff]  }
 0x976   : > { %10877 = vmatpush1.bf16.msra.mxu1 %v14497_v61  ;;  %v14524_v61 = vld [vmem:[%s14961_s30 + $0x55c] ss:$12 sps:$4 sm:$0xff]  }
 0x977   : > { %13361 = vmatpush3.bf16.msra.mxu0 %v14501_v32  ;;  %10878 = vmatprep.subr.bf16.mxu1 %v14504_v16  ;;  %v14525_v32 = vld [vmem:[%s14961_s30 + $0xb60] ss:$12 sps:$4 sm:$0xff]   ;;  %v14522_v16 = vld [vmem:[%s14961_s30 + $0x558] ss:$12 sps:$4 sm:$0xff]  }
 0x978   : > { %v8019_v42 = vpop.f32.mrb[44].mxu1  ;;  %13362 = vmatprep.subr.bf16.mxu0 %v14505_v18  ;;  %v14526_v18 = vld [vmem:[%s14961_s30 + $0xaa0] ss:$12 sps:$4 sm:$0xff]  }
 0x979   : > { %v13580_v28 = vadd.f32 %v8019_v42, %v5554_v53  ;;  %v8105_v52 = vpop.f32.mrb[52].mxu0  ;;  %v8021_v44 = vpop.f32.mrb[45].mxu1  ;;  %v14536_v42 = vld [vmem:[%s14961_s30 + $0xad0] ss:$12 sps:$4 sm:$0xff]  }
 0x97a   : > { %v13584_v36 = vadd.f32 %v8105_v52, %v5562_v62  ;;  %v13581_v48 = vadd.f32 %v8021_v44, %v5558_v57  ;;  %v8107_v38 = vpop.f32.mrb[53].mxu0  ;;  %v8023_v30 = vpop.f32.mrb[46].mxu1  ;;  %10879 = vmatpush1.bf16.msra.mxu1 %v14502_v14  ;;  %v14531_v14 = vld [vmem:[%s14961_s30 + $0xab8] ss:$12 sps:$4 sm:$0xff]   ;;  %v14537_v52 = vld [vmem:[%s14961_s30 + $0x5a0] ss:$12 sps:$4 sm:$0xff]  }
 0x97b   : > { %v13585_v19 = vadd.f32 %v8107_v38, %v5566_v60  ;;  %v13582_v51 = vadd.f32 %v8023_v30, %v5554_v53  ;;  %v8109_v35 = vpop.f32.mrb[54].mxu0  ;;  %13363 = vmatpush3.bf16.msra.mxu0 %v14506_v0  ;;  %v8025_v1 = vpop.f32.mrb[47].mxu1  ;;  %10880 = vmatprep.subr.bf16.mxu1 %v14509_v63  ;;  %v8126_v33 = vmax.f32 %v13580_v28, 0.0  ;;  %v14529_v53 = vld [vmem:[%s14961_s30 + $0x574] ss:$12 sps:$4 sm:$0xff]  }
 0x97c   : > { %v13586_v9 = vadd.f32 %v8109_v35, %v5562_v62  ;;  %v13583_v8 = vadd.f32 %v8025_v1, %v5558_v57  ;;  %v8111_v23 = vpop.f32.mrb[55].mxu0  ;;  %13364 = vmatprep.subr.bf16.mxu0 %v14510_v29  ;;  %v8128_v39 = vmax.f32 %v13584_v36, 0.0  ;;  %v8127_v6 = vmax.f32 %v13581_v48, 0.0  ;;  %v14530_v62 = vld [vmem:[%s14961_s30 + $0xb78] ss:$12 sps:$4 sm:$0xff]  }
 0x97d   : > { %v8142_v25 = vmax.f32 %v13582_v51, 0.0  ;;  %v13587_v22 = vadd.f32 %v8111_v23, %v5566_v60  ;;  %v8129_v41 = vmax.f32 %v13585_v19, 0.0  ;;  %v14527_v57 = vld [vmem:[%s14961_s30 + $0x570] ss:$12 sps:$4 sm:$0xff]   ;;  %v14534_v60 = vld [vmem:[%s14961_s30 + $0x58c] ss:$12 sps:$4 sm:$0xff]  }
 0x97e   : > { %v8144_v21 = vmax.f32 %v13586_v9, 0.0  ;;  %v8143_v40 = vmax.f32 %v13583_v8, 0.0  ;;  %10881 = vmatpush1.bf16.msra.mxu1 %v14507_v56  ;;  %v14535_v0 = vld [vmem:[%s14961_s30 + $0xb90] ss:$12 sps:$4 sm:$0xff]   ;;  %v14532_v63 = vld [vmem:[%s14961_s30 + $0x588] ss:$12 sps:$4 sm:$0xff]  }
 0x97f   : > { %v16485_v10 = vpack.c.bf16 %v8142_v25, %v8126_v33  ;;  %v8145_v24 = vmax.f32 %v13587_v22, 0.0  ;;  %13365 = vmatpush3.bf16.msra.mxu0 %v14511_v7  ;;  %10882 = vmatprep.subr.bf16.mxu1 %v14514_v5  ;;  %v14539_v29 = vld [vmem:[%s14961_s30 + $0x5a4] ss:$12 sps:$4 sm:$0xff]   ;;  %v14540_v28 = vld [vmem:[%s14961_s30 + $0xba8] ss:$12 sps:$4 sm:$0xff]  }
 0x980   : > { %v16489_v49 = vpack.c.bf16 %v8144_v21, %v8128_v39  ;;  %v16491_v20 = vpack.c.bf16 %v8143_v40, %v8127_v6  ;;  %13366 = vmatprep.subr.bf16.mxu0 %v14515_v37  ;;  %v14541_v44 = vld [vmem:[%s14961_s30 + $0xae8] ss:$12 sps:$4 sm:$0xff]   ;;  %v14545_v48 = vld [vmem:[%s14961_s30 + $0xbc0] ss:$12 sps:$4 sm:$0xff]   ;;  %v14542_v38 = vld [vmem:[%s14961_s30 + $0x5b8] ss:$12 sps:$4 sm:$0xff]  }
 0x981   : > { %v16494_v45 = vpack.c.bf16 %v8145_v24, %v8129_v41  ;;  %v14544_v36 = vld [vmem:[%s14961_s30 + $0x5bc] ss:$12 sps:$4 sm:$0xff]   ;;  %v14546_v30 = vld [vmem:[%s14961_s30 + $0xb00] ss:$12 sps:$4 sm:$0xff]   ;;  %v14550_v19 = vld [vmem:[%s14961_s30 + $0xbd8] ss:$12 sps:$4 sm:$0xff]  }
 0x982   : > { %10883 = vmatpush1.bf16.msra.mxu1 %v14512_v15  ;;  %11361 = vmatprep.mubr.bf16.mxu0 %v16491_v20  ;;  %v14549_v56 = vld [vmem:[%s14961_s30 + $0x5d4] ss:$12 sps:$4 sm:$0xff]   ;;  %v14547_v1 = vld [vmem:[%s14961_s30 + $0x5d0] ss:$12 sps:$4 sm:$0xff]   ;;  %v14551_v9 = vld [vmem:[%s14961_s30 + $0xb18] ss:$12 sps:$4 sm:$0xff]  }
 0x983   : > { %13367 = vmatpush3.bf16.msra.mxu0 %v14516_v3  ;;  %10884 = vmatprep.subr.bf16.mxu1 %v14519_v58  ;;  %v14554_v8 = vld [vmem:[%s14961_s30 + $0x5ec] ss:$12 sps:$4 sm:$0xff]   ;;  %v14555_v37 = vld [vmem:[%s14961_s30 + $0xbf0] ss:$12 sps:$4 sm:$0xff]   ;;  %v14552_v25 = vld [vmem:[%s14961_s30 + $0x5e8] ss:$12 sps:$4 sm:$0xff]  }
 0x984   : > { %13374 = vmatprep.subr.bf16.mxu0 %v14520_v59  ;;  %v14556_v22 = vld [vmem:[%s14961_s30 + $0xb30] ss:$12 sps:$4 sm:$0xff]   ;;  %v14557_v6 = vld [vmem:[%s14961_s30 + $0x600] ss:$12 sps:$4 sm:$0xff]   ;;  %v14560_v40 = vld [vmem:[%s14961_s30 + $0x618] ss:$12 sps:$4 sm:$0xff]  }
 0x985   : > { %v14559_v39 = vld [vmem:[%s14961_s30 + $0x604] ss:$12 sps:$4 sm:$0xff]   ;;  %v14562_v21 = vld [vmem:[%s14961_s30 + $0x61c] ss:$12 sps:$4 sm:$0xff]   ;;  %v14565_v15 = vld [vmem:[%s14961_s30 + $0x634] ss:$12 sps:$4 sm:$0xff]  }
 0x986   : > { %11362 = vmatmul.mubr.bf16.vlgmr.msra.gmra.mrb[80].mxu0 %v16485_v10  ;;  %10885 = vmatpush1.bf16.msra.mxu1 %v14517_v26  ;;  %v14563_v41 = vld [vmem:[%s14961_s30 + $0x630] ss:$12 sps:$4 sm:$0xff]   ;;  %v14568_v24 = vld [vmem:[%s14961_s30 + $0x64c] ss:$12 sps:$4 sm:$0xff]   ;;  %v14566_v3 = vld [vmem:[%s14961_s30 + $0x648] ss:$12 sps:$4 sm:$0xff]  }
 0x987   : > { %13375 = vmatpush3.bf16.msra.mxu0 %v14521_v12  ;;  %11402 = vmatprep.mubr.bf16.mxu0 %v16494_v45  ;;  %v14569_v58 = vld [vmem:[%s14961_s30 + $0x660] ss:$12 sps:$4 sm:$0xff]   ;;  %v14574_v59 = vld [vmem:[%s14961_s30 + $0x67c] ss:$12 sps:$4 sm:$0xff]   ;;  %v14572_v26 = vld [vmem:[%s14961_s30 + $0x678] ss:$12 sps:$4 sm:$0xff]  }
 0x988   : > { %10886 = vmatprep.subr.bf16.mxu1 %v14524_v61  ;;  %13376 = vmatprep.subr.bf16.mxu0 %v14525_v32  ;;  %v14577_v61 = vld [vmem:[%s14961_s30 + $0x694] ss:$12 sps:$4 sm:$0xff]  }
 0x98a   : > { %10887 = vmatpush1.bf16.msra.mxu1 %v14522_v16 }
 0x98b   : > { %13377 = vmatpush3.bf16.msra.mxu0 %v14526_v18  ;;  %10888 = vmatprep.subr.bf16.mxu1 %v14529_v53  ;;  %v14575_v18 = vld [vmem:[%s14961_s30 + $0x690] ss:$12 sps:$4 sm:$0xff]  }
 0x98c   : > { %13378 = vmatprep.subr.bf16.mxu0 %v14530_v62 }
 0x98e   : > { %10889 = vmatpush1.bf16.msra.mxu1 %v14527_v57 }
 0x98f   : > { %13379 = vmatpush3.bf16.msra.mxu0 %v14531_v14  ;;  %10890 = vmatprep.subr.bf16.mxu1 %v14534_v60  ;;  %v14580_v14 = vld [vmem:[%s14961_s30 + $0x6ac] ss:$12 sps:$4 sm:$0xff]  }
 0x990   : > { %13380 = vmatprep.subr.bf16.mxu0 %v14535_v0 }
 0x992   : > { %10891 = vmatpush1.bf16.msra.mxu1 %v14532_v63 }
 0x993   : > { %13381 = vmatpush3.bf16.msra.mxu0 %v14536_v42  ;;  %10892 = vmatprep.subr.bf16.mxu1 %v14539_v29  ;;  %v14578_v29 = vld [vmem:[%s14961_s30 + $0x6a8] ss:$12 sps:$4 sm:$0xff]  }
 0x994   : > { %13382 = vmatprep.subr.bf16.mxu0 %v14540_v28 }
 0x996   : > { %10893 = vmatpush1.bf16.msra.mxu1 %v14537_v52  ;;  %v14583_v52 = vld [vmem:[%s14961_s30 + $0x6c4] ss:$12 sps:$4 sm:$0xff]  }
 0x997   : > { %13383 = vmatpush3.bf16.msra.mxu0 %v14541_v44  ;;  %10894 = vmatprep.subr.bf16.mxu1 %v14544_v36  ;;  %v14581_v44 = vld [vmem:[%s14961_s30 + $0x6c0] ss:$12 sps:$4 sm:$0xff]   ;;  %v14586_v36 = vld [vmem:[%s14961_s30 + $0x6dc] ss:$12 sps:$4 sm:$0xff]  }
 0x998   : > { %13384 = vmatprep.subr.bf16.mxu0 %v14545_v48  ;;  %v14584_v48 = vld [vmem:[%s14961_s30 + $0x6d8] ss:$12 sps:$4 sm:$0xff]  }
 0x999   : > { %v13236_v51 = vpop.f32.mrb[56].mxu0 }
 0x99a   : > { %v13237_v35 = vpop.f32.mrb[57].mxu0  ;;  %10895 = vmatpush1.bf16.msra.mxu1 %v14542_v38  ;;  %v14589_v38 = vld [vmem:[%s14961_s30 + $0x6f4] ss:$12 sps:$4 sm:$0xff]  }
 0x99b   : > { %v13238_v7 = vadd.f32 %v13237_v35, %v13236_v51  ;;  %v13239_v5 = vpop.f32.mrb[58].mxu0  ;;  %13385 = vmatpush3.bf16.msra.mxu0 %v14546_v30  ;;  %10896 = vmatprep.subr.bf16.mxu1 %v14549_v56  ;;  %v14587_v30 = vld [vmem:[%s14961_s30 + $0x6f0] ss:$12 sps:$4 sm:$0xff]   ;;  %v14592_v56 = vld [vmem:[%s14961_s30 + $0x70c] ss:$12 sps:$4 sm:$0xff]  }
 0x99c   : > { %v13240_v23 = vpop.f32.mrb[59].mxu0  ;;  %13386 = vmatprep.subr.bf16.mxu0 %v14550_v19  ;;  %v14590_v19 = vld [vmem:[%s14961_s30 + $0x708] ss:$12 sps:$4 sm:$0xff]   ;;  %v14595_v51 = vld [vmem:[%s14961_s30 + $0x724] ss:$12 sps:$4 sm:$0xff]  }
 0x99d   : > { %v13241_v33 = vadd.f32 %v13240_v23, %v13239_v5  ;;  %v14593_v35 = vld [vmem:[%s14961_s30 + $0x720] ss:$12 sps:$4 sm:$0xff]   ;;  %v14599_v23 = vld [vmem:[%s14961_s30 + $0x750] ss:$12 sps:$4 sm:$0xff]  }
 0x99e   : > { %10897 = vmatpush1.bf16.msra.mxu1 %v14547_v1  ;;  %v14598_v1 = vld [vmem:[%s14961_s30 + $0x73c] ss:$12 sps:$4 sm:$0xff]   ;;  %v14601_v5 = vld [vmem:[%s14961_s30 + $0x754] ss:$12 sps:$4 sm:$0xff]  }
 0x99f   : > { %13387 = vmatpush3.bf16.msra.mxu0 %v14551_v9  ;;  %10898 = vmatprep.subr.bf16.mxu1 %v14554_v8 }
 0x9a0   : > { %13388 = vmatprep.subr.bf16.mxu0 %v14555_v37 }
 0x9a2   : > { %10899 = vmatpush1.bf16.msra.mxu1 %v14552_v25  ;;  %v14604_v25 = vld [vmem:[%s14961_s30 + $0x76c] ss:$12 sps:$4 sm:$0xff]  }
 0x9a3   : > { %13389 = vmatpush3.bf16.msra.mxu0 %v14556_v22  ;;  %10911 = vmatprep.subr.bf16.mxu1 %v14559_v39 }
 0x9a5   : > { %10901 = vmatmul.mubr.bf16.vlgmr.msra.gmra.mrb[48].mxu1 %v16255_v17  ;;  %v14571_v17 = vld [vmem:[%s14961_s30 + $0x664] ss:$12 sps:$4 sm:$0xff]  }
 0x9a6   : > { %11403 = vmatmul.mubr.bf16.vlgmr.msra.gmra.mrb[84].mxu0 %v16489_v49  ;;  %10912 = vmatpush1.bf16.msra.mxu1 %v14557_v6 }
 0x9a7   : > { %10943 = vmatprep.mubr.bf16.mxu1 %v16373_v11  ;;  %10913 = vmatprep.subr.bf16.mxu1 %v14562_v21  ;;  %v16548_v11 = vld [vmem:[%s659_s1] sm:$0x7]  ;;  %v14602_v21 = vld [vmem:[%s14961_s30 + $0x768] ss:$12 sps:$4 sm:$0xff]  }
 0x9a8   : > { %v8687_v12 = vrot.slane %v16548_v11, %v15282_v13 }
 0x9aa   : > { %10914 = vmatpush1.bf16.msra.mxu1 %v14560_v40  ;;  %v11118_v53 = vadd.f32 %v13238_v7, %v8687_v12  ;;  %v11121_v0 = vadd.f32 %v13241_v33, %v8687_v12  ;;  %v14596_v7 = vld [vmem:[%s14961_s30 + $0x738] ss:$12 sps:$4 sm:$0xff]  }
 0x9ab   : > { %10915 = vmatprep.subr.bf16.mxu1 %v14565_v15  ;;  %v14607_v15 = vld [vmem:[%s14961_s30 + $0x784] ss:$12 sps:$4 sm:$0xff]  }
 0x9ac   : > { %v14619_v12 = vld [vmem:[%s14961_s30 + $0x7e4] ss:$12 sps:$4 sm:$0xff]  }
 0x9ae   : > { %10916 = vmatpush1.bf16.msra.mxu1 %v14563_v41  ;;  %v14605_v41 = vld [vmem:[%s14961_s30 + $0x780] ss:$12 sps:$4 sm:$0xff]  }
 0x9af   : > { %10917 = vmatprep.subr.bf16.mxu1 %v14568_v24  ;;  %v14610_v24 = vld [vmem:[%s14961_s30 + $0x79c] ss:$12 sps:$4 sm:$0xff]  }
 0x9b2   : > { %10918 = vmatpush1.bf16.msra.mxu1 %v14566_v3  ;;  %v14608_v3 = vld [vmem:[%s14961_s30 + $0x798] ss:$12 sps:$4 sm:$0xff]  }
 0x9b3   : > { %10919 = vmatprep.subr.bf16.mxu1 %v14571_v17  ;;  %v14613_v17 = vld [vmem:[%s14961_s30 + $0x7b4] ss:$12 sps:$4 sm:$0xff]  }
 0x9b6   : > { %10920 = vmatpush1.bf16.msra.mxu1 %v14569_v58  ;;  %v14611_v58 = vld [vmem:[%s14961_s30 + $0x7b0] ss:$12 sps:$4 sm:$0xff]  }
 0x9b7   : > { %10921 = vmatprep.subr.bf16.mxu1 %v14574_v59  ;;  %v14616_v59 = vld [vmem:[%s14961_s30 + $0x7cc] ss:$12 sps:$4 sm:$0xff]  }
 0x9b9   : > { %v13258_v32 = vpop.f32.mrb[60].mxu0 }
 0x9ba   : > { %v13259_v16 = vpop.f32.mrb[61].mxu0  ;;  %10922 = vmatpush1.bf16.msra.mxu1 %v14572_v26  ;;  %v14614_v26 = vld [vmem:[%s14961_s30 + $0x7c8] ss:$12 sps:$4 sm:$0xff]  }
 0x9bb   : > { %v13260_v62 = vadd.f32 %v13259_v16, %v13258_v32  ;;  %v13261_v57 = vpop.f32.mrb[62].mxu0  ;;  %10923 = vmatprep.subr.bf16.mxu1 %v14577_v61  ;;  %v14622_v61 = vld [vmem:[%s14961_s30 + $0x7fc] ss:$12 sps:$4 sm:$0xff]   ;;  %v14625_v32 = vld [vmem:[%s14961_s30 + $0x814] ss:$12 sps:$4 sm:$0xff]  }
 0x9bc   : > { %v13262_v60 = vpop.f32.mrb[63].mxu0 }
 0x9bd   : > { %v11159_v63 = vadd.f32 %v13260_v62, %v11118_v53  ;;  %v13263_v42 = vadd.f32 %v13262_v60, %v13261_v57  ;;  %v14623_v53 = vld [vmem:[%s14961_s30 + $0x810] ss:$12 sps:$4 sm:$0xff]  }
 0x9be   : > { %10924 = vmatpush1.bf16.msra.mxu1 %v14575_v18 }
 0x9bf   : > { %v11162_v28 = vadd.f32 %v13263_v42, %v11121_v0  ;;  %10925 = vmatprep.subr.bf16.mxu1 %v14580_v14  ;;  %v14628_v14 = vld [vmem:[%s14961_s30 + $0x82c] ss:$12 sps:$4 sm:$0xff]   ;;  %v14626_v42 = vld [vmem:[%s14961_s30 + $0x828] ss:$12 sps:$4 sm:$0xff]  }
 0x9c2   : > { %10926 = vmatpush1.bf16.msra.mxu1 %v14578_v29 }
 0x9c3   : > { %10927 = vmatprep.subr.bf16.mxu1 %v14583_v52  ;;  %v14629_v52 = vld [vmem:[%s14961_s30 + $0x840] ss:$12 sps:$4 sm:$0xff]  }
 0x9c6   : > { %10928 = vmatpush1.bf16.msra.mxu1 %v14581_v44  ;;  %v14634_v44 = vld [vmem:[%s14961_s30 + $0x85c] ss:$12 sps:$4 sm:$0xff]  }
 0x9c7   : > { %10929 = vmatprep.subr.bf16.mxu1 %v14586_v36  ;;  %v14632_v36 = vld [vmem:[%s14961_s30 + $0x858] ss:$12 sps:$4 sm:$0xff]  }
 0x9ca   : > { %10930 = vmatpush1.bf16.msra.mxu1 %v14584_v48  ;;  %v14637_v48 = vld [vmem:[%s14961_s30 + $0x874] ss:$12 sps:$4 sm:$0xff]  }
 0x9cb   : > { %10931 = vmatprep.subr.bf16.mxu1 %v14589_v38  ;;  %v14635_v38 = vld [vmem:[%s14961_s30 + $0x870] ss:$12 sps:$4 sm:$0xff]  }
 0x9ce   : > { %10932 = vmatpush1.bf16.msra.mxu1 %v14587_v30  ;;  %v14640_v30 = vld [vmem:[%s14961_s30 + $0x88c] ss:$12 sps:$4 sm:$0xff]  }
 0x9cf   : > { %10933 = vmatprep.subr.bf16.mxu1 %v14592_v56  ;;  %v14638_v56 = vld [vmem:[%s14961_s30 + $0x888] ss:$12 sps:$4 sm:$0xff]  }
 0x9d2   : > { %10934 = vmatpush1.bf16.msra.mxu1 %v14590_v19  ;;  %v14643_v19 = vld [vmem:[%s14961_s30 + $0x8a4] ss:$12 sps:$4 sm:$0xff]  }
 0x9d3   : > { %10935 = vmatprep.subr.bf16.mxu1 %v14595_v51  ;;  %v14641_v51 = vld [vmem:[%s14961_s30 + $0x8a0] ss:$12 sps:$4 sm:$0xff]  }
 0x9d6   : > { %10936 = vmatpush1.bf16.msra.mxu1 %v14593_v35  ;;  %v14646_v35 = vld [vmem:[%s14961_s30 + $0x8bc] ss:$12 sps:$4 sm:$0xff]  }
 0x9d7   : > { %10937 = vmatprep.subr.bf16.mxu1 %v14598_v1  ;;  %v14644_v1 = vld [vmem:[%s14961_s30 + $0x8b8] ss:$12 sps:$4 sm:$0xff]  }
 0x9d9   : > { %v13280_v9 = vpop.f32.mrb[64].mxu0 }
 0x9da   : > { %v13281_v8 = vpop.f32.mrb[65].mxu0  ;;  %10938 = vmatpush1.bf16.msra.mxu1 %v14596_v7  ;;  %v14649_v7 = vld [vmem:[%s14961_s30 + $0x8d4] ss:$12 sps:$4 sm:$0xff]  }
 0x9db   : > { %v13282_v37 = vadd.f32 %v13281_v8, %v13280_v9  ;;  %v13283_v33 = vpop.f32.mrb[66].mxu0  ;;  %10939 = vmatprep.subr.bf16.mxu1 %v14601_v5  ;;  %v14647_v8 = vld [vmem:[%s14961_s30 + $0x8d0] ss:$12 sps:$4 sm:$0xff]  }
 0x9dc   : > { %v13284_v22 = vpop.f32.mrb[67].mxu0 }
 0x9dd   : > { %v11200_v39 = vadd.f32 %v13282_v37, %v11159_v63  ;;  %v13285_v6 = vadd.f32 %v13284_v22, %v13283_v33  ;;  %v14652_v33 = vld [vmem:[%s14961_s30 + $0x8ec] ss:$12 sps:$4 sm:$0xff]  }
 0x9de   : > { %10940 = vmatpush1.bf16.msra.mxu1 %v14599_v23 }
 0x9df   : > { %v11203_v40 = vadd.f32 %v13285_v6, %v11162_v28  ;;  %10941 = vmatprep.subr.bf16.mxu1 %v14604_v25  ;;  %v14631_v28 = vld [vmem:[%s14961_s30 + $0x844] ss:$12 sps:$4 sm:$0xff]   ;;  %v14650_v6 = vld [vmem:[%s14961_s30 + $0x8e8] ss:$12 sps:$4 sm:$0xff]  }
 0x9e2   : > { %10942 = vmatpush1.bf16.msra.mxu1 %v14602_v21 }
 0x9e3   : > { %10954 = vmatprep.subr.bf16.mxu1 %v14607_v15  ;;  %v14653_v15 = vld [vmem:[%s14961_s30 + $0x900] ss:$12 sps:$4 sm:$0xff]  }
 0x9e5   : > { %10944 = vmatmul.mubr.bf16.vlgmr.msra.gmra.mrb[48].mxu1 %v16368_v54  ;;  %v14617_v54 = vld [vmem:[%s14961_s30 + $0x7e0] ss:$12 sps:$4 sm:$0xff]  }
 0x9e6   : > { %10955 = vmatpush1.bf16.msra.mxu1 %v14605_v41  ;;  %10986 = vmatprep.mubr.bf16.mxu1 %v16376_v43  ;;  %v14620_v43 = vld [vmem:[%s14961_s30 + $0x7f8] ss:$12 sps:$4 sm:$0xff]   ;;  %v14658_v41 = vld [vmem:[%s14961_s30 + $0x91c] ss:$12 sps:$4 sm:$0xff]  }
 0x9e7   : > { %10956 = vmatprep.subr.bf16.mxu1 %v14610_v24  ;;  %v14656_v24 = vld [vmem:[%s14961_s30 + $0x918] ss:$12 sps:$4 sm:$0xff]  }
 0x9ea   : > { %10957 = vmatpush1.bf16.msra.mxu1 %v14608_v3  ;;  %v14661_v3 = vld [vmem:[%s14961_s30 + $0x934] ss:$12 sps:$4 sm:$0xff]  }
 0x9eb   : > { %10958 = vmatprep.subr.bf16.mxu1 %v14613_v17  ;;  %v14659_v17 = vld [vmem:[%s14961_s30 + $0x930] ss:$12 sps:$4 sm:$0xff]  }
 0x9ee   : > { %10959 = vmatpush1.bf16.msra.mxu1 %v14611_v58  ;;  %v14664_v58 = vld [vmem:[%s14961_s30 + $0x94c] ss:$12 sps:$4 sm:$0xff]  }
 0x9ef   : > { %10960 = vmatprep.subr.bf16.mxu1 %v14616_v59  ;;  %v14662_v59 = vld [vmem:[%s14961_s30 + $0x948] ss:$12 sps:$4 sm:$0xff]  }
 0x9f2   : > { %10961 = vmatpush1.bf16.msra.mxu1 %v14614_v26  ;;  %v14667_v26 = vld [vmem:[%s14961_s30 + $0x964] ss:$12 sps:$4 sm:$0xff]  }
 0x9f3   : > { %10962 = vmatprep.subr.bf16.mxu1 %v14619_v12  ;;  %v14670_v12 = vld [vmem:[%s14961_s30 + $0x97c] ss:$12 sps:$4 sm:$0xff]  }
 0x9f6   : > { %10963 = vmatpush1.bf16.msra.mxu1 %v14617_v54  ;;  %v14673_v54 = vld [vmem:[%s14961_s30 + $0x994] ss:$12 sps:$4 sm:$0xff]  }
 0x9f7   : > { %10964 = vmatprep.subr.bf16.mxu1 %v14622_v61 }
 0x9f9   : > { %v13302_v16 = vpop.f32.mrb[68].mxu0 }
 0x9fa   : > { %v13303_v18 = vpop.f32.mrb[69].mxu0  ;;  %10965 = vmatpush1.bf16.msra.mxu1 %v14620_v43 }
 0x9fb   : > { %v13304_v62 = vadd.f32 %v13303_v18, %v13302_v16  ;;  %v13305_v57 = vpop.f32.mrb[70].mxu0  ;;  %10966 = vmatprep.subr.bf16.mxu1 %v14625_v32  ;;  %v14671_v32 = vld [vmem:[%s14961_s30 + $0x990] ss:$12 sps:$4 sm:$0xff]  }
 0x9fc   : > { %v13306_v60 = vpop.f32.mrb[71].mxu0 }
 0x9fd   : > { %v11241_v0 = vadd.f32 %v13304_v62, %v11200_v39  ;;  %v13307_v63 = vadd.f32 %v13306_v60, %v13305_v57  ;;  %v14674_v60 = vld [vmem:[%s14961_s30 + $0x9a8] ss:$12 sps:$4 sm:$0xff]  }
 0x9fe   : > { %10967 = vmatpush1.bf16.msra.mxu1 %v14623_v53  ;;  %v14676_v53 = vld [vmem:[%s14961_s30 + $0x9ac] ss:$12 sps:$4 sm:$0xff]  }
 0x9ff   : > { %v11244_v29 = vadd.f32 %v13307_v63, %v11203_v40  ;;  %10968 = vmatprep.subr.bf16.mxu1 %v14628_v14  ;;  %v14655_v40 = vld [vmem:[%s14961_s30 + $0x904] ss:$12 sps:$4 sm:$0xff]  }
 0xa00   : > { %v14679_v63 = vld [vmem:[%s14961_s30 + $0x9c4] ss:$12 sps:$4 sm:$0xff]  }
 0xa02   : > { %10969 = vmatpush1.bf16.msra.mxu1 %v14626_v42  ;;  %v14677_v42 = vld [vmem:[%s14961_s30 + $0x9c0] ss:$12 sps:$4 sm:$0xff]  }
 0xa03   : > { %10970 = vmatprep.subr.bf16.mxu1 %v14631_v28  ;;  %v14680_v28 = vld [vmem:[%s14961_s30 + $0x9d8] ss:$12 sps:$4 sm:$0xff]  }
 0xa06   : > { %10971 = vmatpush1.bf16.msra.mxu1 %v14629_v52  ;;  %v14685_v52 = vld [vmem:[%s14961_s30 + $0x9f4] ss:$12 sps:$4 sm:$0xff]  }
 0xa07   : > { %10972 = vmatprep.subr.bf16.mxu1 %v14634_v44  ;;  %v14683_v44 = vld [vmem:[%s14961_s30 + $0x9f0] ss:$12 sps:$4 sm:$0xff]  }
 0xa0a   : > { %10973 = vmatpush1.bf16.msra.mxu1 %v14632_v36  ;;  %v14688_v36 = vld [vmem:[%s14961_s30 + $0xa0c] ss:$12 sps:$4 sm:$0xff]  }
 0xa0b   : > { %10974 = vmatprep.subr.bf16.mxu1 %v14637_v48  ;;  %v14686_v48 = vld [vmem:[%s14961_s30 + $0xa08] ss:$12 sps:$4 sm:$0xff]  }
 0xa0e   : > { %10975 = vmatpush1.bf16.msra.mxu1 %v14635_v38  ;;  %v14691_v38 = vld [vmem:[%s14961_s30 + $0xa24] ss:$12 sps:$4 sm:$0xff]  }
 0xa0f   : > { %10976 = vmatprep.subr.bf16.mxu1 %v14640_v30  ;;  %v14689_v30 = vld [vmem:[%s14961_s30 + $0xa20] ss:$12 sps:$4 sm:$0xff]  }
 0xa12   : > { %10977 = vmatpush1.bf16.msra.mxu1 %v14638_v56  ;;  %v14694_v56 = vld [vmem:[%s14961_s30 + $0xa3c] ss:$12 sps:$4 sm:$0xff]  }
 0xa13   : > { %10978 = vmatprep.subr.bf16.mxu1 %v14643_v19  ;;  %v14692_v19 = vld [vmem:[%s14961_s30 + $0xa38] ss:$12 sps:$4 sm:$0xff]  }
 0xa16   : > { %10979 = vmatpush1.bf16.msra.mxu1 %v14641_v51  ;;  %v14697_v51 = vld [vmem:[%s14961_s30 + $0xa54] ss:$12 sps:$4 sm:$0xff]  }
 0xa17   : > { %10980 = vmatprep.subr.bf16.mxu1 %v14646_v35 }
 0xa19   : > { %v13324_v5 = vpop.f32.mrb[72].mxu0 }
 0xa1a   : > { %v13325_v9 = vpop.f32.mrb[73].mxu0  ;;  %10981 = vmatpush1.bf16.msra.mxu1 %v14644_v1 }
 0xa1b   : > { %v13326_v23 = vadd.f32 %v13325_v9, %v13324_v5  ;;  %v13327_v37 = vpop.f32.mrb[74].mxu0  ;;  %10982 = vmatprep.subr.bf16.mxu1 %v14649_v7  ;;  %v14695_v7 = vld [vmem:[%s14961_s30 + $0xa50] ss:$12 sps:$4 sm:$0xff]  }
 0xa1c   : > { %v13328_v25 = vpop.f32.mrb[75].mxu0 }
 0xa1d   : > { %v11282_v22 = vadd.f32 %v13326_v23, %v11241_v0  ;;  %v13329_v39 = vadd.f32 %v13328_v25, %v13327_v37  ;;  %v14698_v25 = vld [vmem:[%s14961_s30 + $0xa68] ss:$12 sps:$4 sm:$0xff]  }
 0xa1e   : > { %10983 = vmatpush1.bf16.msra.mxu1 %v14647_v8  ;;  %v14700_v8 = vld [vmem:[%s14961_s30 + $0xa6c] ss:$12 sps:$4 sm:$0xff]  }
 0xa1f   : > { %v11285_v21 = vadd.f32 %v13329_v39, %v11244_v29  ;;  %10984 = vmatprep.subr.bf16.mxu1 %v14652_v33  ;;  %v14682_v29 = vld [vmem:[%s14961_s30 + $0x9dc] ss:$12 sps:$4 sm:$0xff]   ;;  %v14703_v39 = vld [vmem:[%s14961_s30 + $0xa84] ss:$12 sps:$4 sm:$0xff]  }
 0xa22   : > { %10985 = vmatpush1.bf16.msra.mxu1 %v14650_v6  ;;  %v14701_v6 = vld [vmem:[%s14961_s30 + $0xa80] ss:$12 sps:$4 sm:$0xff]  }
 0xa23   : > { %10997 = vmatprep.subr.bf16.mxu1 %v14655_v40  ;;  %v14704_v40 = vld [vmem:[%s14961_s30 + $0xa98] ss:$12 sps:$4 sm:$0xff]  }
 0xa25   : > { %10987 = vmatmul.mubr.bf16.vlgmr.msra.gmra.mrb[48].mxu1 %v16371_v34  ;;  %v14665_v34 = vld [vmem:[%s14961_s30 + $0x960] ss:$12 sps:$4 sm:$0xff]  }
 0xa26   : > { %10998 = vmatpush1.bf16.msra.mxu1 %v14653_v15  ;;  %11029 = vmatprep.mubr.bf16.mxu1 %v16491_v20  ;;  %v14668_v20 = vld [vmem:[%s14961_s30 + $0x978] ss:$12 sps:$4 sm:$0xff]   ;;  %v14709_v15 = vld [vmem:[%s14961_s30 + $0xab4] ss:$12 sps:$4 sm:$0xff]  }
 0xa27   : > { %10999 = vmatprep.subr.bf16.mxu1 %v14658_v41  ;;  %v14707_v41 = vld [vmem:[%s14961_s30 + $0xab0] ss:$12 sps:$4 sm:$0xff]  }
 0xa2a   : > { %11000 = vmatpush1.bf16.msra.mxu1 %v14656_v24  ;;  %v14712_v24 = vld [vmem:[%s14961_s30 + $0xacc] ss:$12 sps:$4 sm:$0xff]  }
 0xa2b   : > { %11001 = vmatprep.subr.bf16.mxu1 %v14661_v3  ;;  %v14710_v3 = vld [vmem:[%s14961_s30 + $0xac8] ss:$12 sps:$4 sm:$0xff]  }
 0xa2e   : > { %11002 = vmatpush1.bf16.msra.mxu1 %v14659_v17  ;;  %v14715_v17 = vld [vmem:[%s14961_s30 + $0xae4] ss:$12 sps:$4 sm:$0xff]  }
 0xa2f   : > { %11003 = vmatprep.subr.bf16.mxu1 %v14664_v58  ;;  %v14718_v58 = vld [vmem:[%s14961_s30 + $0xafc] ss:$12 sps:$4 sm:$0xff]  }
 0xa32   : > { %11004 = vmatpush1.bf16.msra.mxu1 %v14662_v59  ;;  %v14721_v59 = vld [vmem:[%s14961_s30 + $0xb14] ss:$12 sps:$4 sm:$0xff]  }
 0xa33   : > { %11005 = vmatprep.subr.bf16.mxu1 %v14667_v26 }
 0xa36   : > { %11006 = vmatpush1.bf16.msra.mxu1 %v14665_v34 }
 0xa37   : > { %11007 = vmatprep.subr.bf16.mxu1 %v14670_v12  ;;  %v14719_v12 = vld [vmem:[%s14961_s30 + $0xb10] ss:$12 sps:$4 sm:$0xff]  }
 0xa39   : > { %v13346_v61 = vpop.f32.mrb[76].mxu0 }
 0xa3a   : > { %v13347_v43 = vpop.f32.mrb[77].mxu0  ;;  %11008 = vmatpush1.bf16.msra.mxu1 %v14668_v20 }
 0xa3b   : > { %v13348_v16 = vadd.f32 %v13347_v43, %v13346_v61  ;;  %v13349_v18 = vpop.f32.mrb[78].mxu0  ;;  %11009 = vmatprep.subr.bf16.mxu1 %v14673_v54  ;;  %v14724_v61 = vld [vmem:[%s14961_s30 + $0xb2c] ss:$12 sps:$4 sm:$0xff]  }
 0xa3c   : > { %v13350_v62 = vpop.f32.mrb[79].mxu0 }
 0xa3d   : > { %v11323_v57 = vadd.f32 %v13348_v16, %v11282_v22  ;;  %v13351_v14 = vadd.f32 %v13350_v62, %v13349_v18  ;;  %v14722_v18 = vld [vmem:[%s14961_s30 + $0xb28] ss:$12 sps:$4 sm:$0xff]   ;;  %v14727_v62 = vld [vmem:[%s14961_s30 + $0xb44] ss:$12 sps:$4 sm:$0xff]  }
 0xa3e   : > { %11010 = vmatpush1.bf16.msra.mxu1 %v14671_v32 }
 0xa3f   : > { %v11326_v0 = vadd.f32 %v13351_v14, %v11285_v21  ;;  %11011 = vmatprep.subr.bf16.mxu1 %v14676_v53  ;;  %v14706_v21 = vld [vmem:[%s14961_s30 + $0xa9c] ss:$12 sps:$4 sm:$0xff]  }
 0xa40   : > { %v14730_v14 = vld [vmem:[%s14961_s30 + $0xb5c] ss:$12 sps:$4 sm:$0xff]  }
 0xa42   : > { %11012 = vmatpush1.bf16.msra.mxu1 %v14674_v60  ;;  %v14728_v60 = vld [vmem:[%s14961_s30 + $0xb58] ss:$12 sps:$4 sm:$0xff]  }
 0xa43   : > { %11013 = vmatprep.subr.bf16.mxu1 %v14679_v63  ;;  %v14731_v63 = vld [vmem:[%s14961_s30 + $0xb70] ss:$12 sps:$4 sm:$0xff]  }
 0xa46   : > { %11014 = vmatpush1.bf16.msra.mxu1 %v14677_v42  ;;  %v14736_v42 = vld [vmem:[%s14961_s30 + $0xb8c] ss:$12 sps:$4 sm:$0xff]  }
 0xa47   : > { %11015 = vmatprep.subr.bf16.mxu1 %v14682_v29  ;;  %v14734_v29 = vld [vmem:[%s14961_s30 + $0xb88] ss:$12 sps:$4 sm:$0xff]  }
 0xa4a   : > { %11016 = vmatpush1.bf16.msra.mxu1 %v14680_v28  ;;  %v14739_v28 = vld [vmem:[%s14961_s30 + $0xba4] ss:$12 sps:$4 sm:$0xff]  }
 0xa4b   : > { %11017 = vmatprep.subr.bf16.mxu1 %v14685_v52  ;;  %v14737_v52 = vld [vmem:[%s14961_s30 + $0xba0] ss:$12 sps:$4 sm:$0xff]  }
 0xa4e   : > { %11018 = vmatpush1.bf16.msra.mxu1 %v14683_v44  ;;  %v14742_v44 = vld [vmem:[%s14961_s30 + $0xbbc] ss:$12 sps:$4 sm:$0xff]  }
 0xa4f   : > { %11019 = vmatprep.subr.bf16.mxu1 %v14688_v36  ;;  %v14740_v36 = vld [vmem:[%s14961_s30 + $0xbb8] ss:$12 sps:$4 sm:$0xff]  }
 0xa52   : > { %11020 = vmatpush1.bf16.msra.mxu1 %v14686_v48  ;;  %v14745_v48 = vld [vmem:[%s14961_s30 + $0xbd4] ss:$12 sps:$4 sm:$0xff]  }
 0xa53   : > { %11021 = vmatprep.subr.bf16.mxu1 %v14691_v38  ;;  %v14743_v38 = vld [vmem:[%s14961_s30 + $0xbd0] ss:$12 sps:$4 sm:$0xff]  }
 0xa56   : > { %11022 = vmatpush1.bf16.msra.mxu1 %v14689_v30  ;;  %v14748_v30 = vld [vmem:[%s14961_s30 + $0xbec] ss:$12 sps:$4 sm:$0xff]  }
 0xa57   : > { %11023 = vmatprep.subr.bf16.mxu1 %v14694_v56  ;;  %v14746_v56 = vld [vmem:[%s14961_s30 + $0xbe8] ss:$12 sps:$4 sm:$0xff]  }
 0xa59   : > { %v13368_v35 = vpop.f32.mrb[80].mxu0 }
 0xa5a   : > { %v13369_v1 = vpop.f32.mrb[81].mxu0  ;;  %11024 = vmatpush1.bf16.msra.mxu1 %v14692_v19  ;;  %v8679_v19 = vrot.slane %v16548_v11, %v15362_v27 }
 0xa5b   : > { %v13370_v5 = vadd.f32 %v13369_v1, %v13368_v35  ;;  %v13371_v9 = vpop.f32.mrb[82].mxu0  ;;  %11025 = vmatprep.subr.bf16.mxu1 %v14697_v51  ;;  %v8683_v51 = vrot.slane %v16548_v11, %v15371_v31 }
 0xa5c   : > { %v13372_v23 = vpop.f32.mrb[83].mxu0 }
 0xa5d   : > { %v11364_v37 = vadd.f32 %v13370_v5, %v11323_v57  ;;  %v13373_v33 = vadd.f32 %v13372_v23, %v13371_v9  ;;  %v14725_v57 = vld [vmem:[%s14961_s30 + $0xb40] ss:$12 sps:$4 sm:$0xff]  }
 0xa5e   : > { %11026 = vmatpush1.bf16.msra.mxu1 %v14695_v7 }
 0xa5f   : > { %v11367_v22 = vadd.f32 %v13373_v33, %v11326_v0  ;;  %11027 = vmatprep.subr.bf16.mxu1 %v14700_v8  ;;  %v14733_v0 = vld [vmem:[%s14961_s30 + $0xb74] ss:$12 sps:$4 sm:$0xff]  }
 0xa62   : > { %11028 = vmatpush1.bf16.msra.mxu1 %v14698_v25 }
 0xa63   : > { %11040 = vmatprep.subr.bf16.mxu1 %v14703_v39 }
 0xa65   : > { %11030 = vmatmul.mubr.bf16.vlgmr.msra.gmra.mrb[48].mxu1 %v16485_v10  ;;  %v14713_v10 = vld [vmem:[%s14961_s30 + $0xae0] ss:$12 sps:$4 sm:$0xff]  }
 0xa66   : > { %11041 = vmatpush1.bf16.msra.mxu1 %v14701_v6  ;;  %11072 = vmatprep.mubr.bf16.mxu1 %v16494_v45  ;;  %v14716_v45 = vld [vmem:[%s14961_s30 + $0xaf8] ss:$12 sps:$4 sm:$0xff]  }
 0xa67   : > { %11042 = vmatprep.subr.bf16.mxu1 %v14706_v21 }
 0xa6a   : > { %11043 = vmatpush1.bf16.msra.mxu1 %v14704_v40 }
 0xa6b   : > { %11044 = vmatprep.subr.bf16.mxu1 %v14709_v15 }
 0xa6e   : > { %11045 = vmatpush1.bf16.msra.mxu1 %v14707_v41 }
 0xa6f   : > { %11046 = vmatprep.subr.bf16.mxu1 %v14712_v24 }
 0xa72   : > { %11047 = vmatpush1.bf16.msra.mxu1 %v14710_v3 }
 0xa73   : > { %11048 = vmatprep.subr.bf16.mxu1 %v14715_v17 }
 0xa76   : > { %11049 = vmatpush1.bf16.msra.mxu1 %v14713_v10 }
 0xa77   : > { %11050 = vmatprep.subr.bf16.mxu1 %v14718_v58 }
 0xa79   : > { %v13390_v26 = vpop.f32.mrb[84].mxu0 }
 0xa7a   : > { %v13391_v34 = vpop.f32.mrb[85].mxu0  ;;  %11051 = vmatpush1.bf16.msra.mxu1 %v14716_v45 }
 0xa7b   : > { %v13392_v20 = vadd.f32 %v13391_v34, %v13390_v26  ;;  %v13393_v54 = vpop.f32.mrb[86].mxu0  ;;  %11052 = vmatprep.subr.bf16.mxu1 %v14721_v59 }
 0xa7c   : > { %v13394_v43 = vpop.f32.mrb[87].mxu0 }
 0xa7d   : > { %v11405_v32 = vadd.f32 %v13392_v20, %v11364_v37  ;;  %v13395_v16 = vadd.f32 %v13394_v43, %v13393_v54 }
 0xa7e   : > { %11053 = vmatpush1.bf16.msra.mxu1 %v14719_v12 }
 0xa7f   : > { %v11408_v53 = vadd.f32 %v13395_v16, %v11367_v22  ;;  %11054 = vmatprep.subr.bf16.mxu1 %v14724_v61  ;;  %v11413_v33 = vadd.f32 %v11405_v32, %v15870_v2 }
 0xa81   : > { %v11416_v39 = vadd.f32 %v11408_v53, %v15867_v55  ;;  %v11420_v21 = vsel %vm2423_vm1, %v11413_v33, 0.0 }
 0xa82   : > { %11055 = vmatpush1.bf16.msra.mxu1 %v14722_v18 }
 0xa83   : > { %11056 = vmatprep.subr.bf16.mxu1 %v14727_v62 }
 0xa86   : > { %11057 = vmatpush1.bf16.msra.mxu1 %v14725_v57 }
 0xa87   : > { %11058 = vmatprep.subr.bf16.mxu1 %v14730_v14 }
 0xa8a   : > { %11059 = vmatpush1.bf16.msra.mxu1 %v14728_v60 }
 0xa8b   : > { %11060 = vmatprep.subr.bf16.mxu1 %v14733_v0 }
 0xa8e   : > { %11061 = vmatpush1.bf16.msra.mxu1 %v14731_v63  ;;  %v11417_v63 = vld [vmem:[%s671_s16] sm:$0x7] }
 0xa8f   : > { %11062 = vmatprep.subr.bf16.mxu1 %v14736_v42  ;;  %v11418_v42 = vld [vmem:[%s675_s14] sm:$0x7]  ;;  %s16844_s14 = sld [smem:[#allocation11_spill]] (!%p13116_p5) }
 0xa92   : > { %11063 = vmatpush1.bf16.msra.mxu1 %v14734_v29  ;;  %v11469_v29 = vrot.slane %v11417_v63, %v15362_v27 }
 0xa93   : > { %11064 = vmatprep.subr.bf16.mxu1 %v14739_v28  ;;  %v11473_v28 = vrot.slane %v11417_v63, %v15371_v31 }
 0xa96   : > { %11065 = vmatpush1.bf16.msra.mxu1 %v14737_v52  ;;  %v11477_v52 = vrot.slane %v11417_v63, %v15282_v13 }
 0xa97   : > { %11066 = vmatprep.subr.bf16.mxu1 %v14742_v44 }
 0xa9a   : > { %11067 = vmatpush1.bf16.msra.mxu1 %v14740_v36  ;;  %v11491_v36 = vrot.slane %v11418_v42, %v15362_v27 }
 0xa9b   : > { %11068 = vmatprep.subr.bf16.mxu1 %v14745_v48  ;;  %v11495_v48 = vrot.slane %v11418_v42, %v15371_v31 }
 0xa9e   : > { %11069 = vmatpush1.bf16.msra.mxu1 %v14743_v38 }
 0xa9f   : > { %11070 = vmatprep.subr.bf16.mxu1 %v14748_v30  ;;  %v11499_v30 = vrot.slane %v11418_v42, %v15282_v13 }
 0xaa2   : > { %11071 = vmatpush1.bf16.msra.mxu1 %v14746_v56 }
 0xaa5   : > { %11073 = vmatmul.mubr.bf16.vlgmr.msra.gmra.mrb[48].mxu1 %v16489_v49 }
 0xb78   : > { %v11074_v35 = vpop.f32.mrb[48].mxu1 }
 0xb79   : > { %v13588_v1 = vadd.f32 %v11074_v35, %v8679_v19  ;;  %v11076_v7 = vpop.f32.mrb[49].mxu1 }
 0xb7a   : > { %v13589_v5 = vadd.f32 %v11076_v7, %v8683_v51  ;;  %v11078_v9 = vpop.f32.mrb[50].mxu1 }
 0xb7b   : > { %v11411_v8 = vadd.f32 %v13588_v1, %v15810_v46  ;;  %v13590_v23 = vadd.f32 %v11078_v9, %v8679_v19  ;;  %v11080_v37 = vpop.f32.mrb[51].mxu1  ;;  %v11425_v46 = vsel %vm2423_vm1, %v11416_v39, 0.0 }
 0xb7c   : > { %v11412_v25 = vadd.f32 %v13589_v5, %v15812_v50  ;;  %v13591_v49 = vadd.f32 %v11080_v37, %v8683_v51 }
 0xb7d   : > { %v11414_v22 = vadd.f32 %v13590_v23, %v15814_v47 }
 0xb7e   : > { %v11415_v11 = vadd.f32 %v13591_v49, %v15816_v4  ;;  %v11419_v6 = vadd.f32 %v11412_v25, %v11411_v8 }
 0xb80   : > { %v11421_v40 = vadd.f32 %v11420_v21, %v11419_v6  ;;  %v11424_v15 = vadd.f32 %v11415_v11, %v11414_v22  ;;  %v14796_v6 = vld [vmem:[%s16844_s14] sm:$0xff] (!%p13116_p5)   ;;  %v14829_v21 = vmov (!%p13116_p5), 0.0  }
 0xb81   : > { %13506 = vmatprep.subr.bf16.mxu1 (!%p13116_p5), %v14829_v21  ;;  %13520 = vmatprep.mubr.msk.bf16.mxu1 (!%p13116_p5), %vm14830_vm4, %v14829_v21 }
 0xb82   : > { %11422 = vadd.xlane.f32.xlu0 %v11421_v40  ;;  %v11426_v41 = vadd.f32 %v11425_v46, %v11424_v15  ;;  %v14797_v40 = vld [vmem:[%s16844_s14 + $0x48] sm:$0xff] (!%p13116_p5)   ;;  %v14799_v46 = vld [vmem:[%s16844_s14 + $0x80] sm:$0xff] (!%p13116_p5)  }
 0xb83   : > { %v14798_v15 = vld [vmem:[%s16844_s14 + $0x8] sm:$0xff] (!%p13116_p5)   ;;  %13507 = vmatpush3.bf16.msra.mxu1 (!%p13116_p5), %v14799_v46 }
 0xb84   : > { %11427 = vadd.xlane.f32.xlu1 %v11426_v41  ;;  %v14800_v41 = vld [vmem:[%s16844_s14 + $0x50] sm:$0xff] (!%p13116_p5)   ;;  %13508 = vmatprep.subr.bf16.mxu1 (!%p13116_p5), %v14829_v21 }
 0xc0f   : > { %v11423_v2 = vpop.xlane.xlu0 %11422 }
 0xc10   : > { %v11429_v24 = vmul.f32 0.0027173914, %v11423_v2  ;;  %v14801_v2 = vld [vmem:[%s16844_s14 + $0x10] sm:$0xff] (!%p13116_p5)  }
 0xc11   : > { %v11428_v50 = vpop.xlane.xlu1 %11427 }
 0xc12   : > { %v11431_v3 = vsub.f32 %v11411_v8, %v11429_v24  ;;  %v11432_v17 = vsub.f32 %v11412_v25, %v11429_v24  ;;  %v11433_v47 = vsub.f32 %v11413_v33, %v11429_v24  ;;  %v11430_v10 = vmul.f32 0.0027173914, %v11428_v50  ;;  %v14802_v24 = vld [vmem:[%s16844_s14 + $0x88] sm:$0xff] (!%p13116_p5)   ;;  %v14803_v50 = vld [vmem:[%s16844_s14 + $0x58] sm:$0xff] (!%p13116_p5)  }
 0xc13   : > { %13509 = vmatpush3.bf16.msra.mxu1 (!%p13116_p5), %v14802_v24 }
 0xc14   : > { %v11434_v55 = vsub.f32 %v11414_v22, %v11430_v10  ;;  %v11435_v58 = vsub.f32 %v11415_v11, %v11430_v10  ;;  %v11436_v4 = vsub.f32 %v11416_v39, %v11430_v10  ;;  %v11437_v45 = vmul.f32 %v11431_v3, %v11431_v3  ;;  %v14795_v39 = vld [vmem:[%s16844_s14 + $0x40] sm:$0xff] (!%p13116_p5)   ;;  %13510 = vmatprep.subr.bf16.mxu1 (!%p13116_p5), %v14829_v21  ;;  %v14808_v10 = vld [vmem:[%s16844_s14 + $0x98] sm:$0xff] (!%p13116_p5)  }
 0xc15   : > { %v11438_v59 = vmul.f32 %v11432_v17, %v11432_v17  ;;  %v11439_v26 = vmul.f32 %v11433_v47, %v11433_v47  ;;  %13396 = vmatprep.subr.bf16.mxu0 (!%p13116_p5), %v14795_v39 }
 0xc16   : > { %v11440_v34 = vmul.f32 %v11434_v55, %v11434_v55  ;;  %v11441_v12 = vmul.f32 %v11435_v58, %v11435_v58  ;;  %v11442_v20 = vmul.f32 %v11436_v4, %v11436_v4  ;;  %13397 = vmatpush3.bf16.msra.mxu0 (!%p13116_p5), %v14796_v6 }
 0xc17   : > { %v11443_v54 = vadd.f32 %v11438_v59, %v11437_v45  ;;  %v11444_v61 = vsel %vm2423_vm1, %v11439_v26, 0.0  ;;  %13398 = vmatprep.subr.bf16.mxu0 (!%p13116_p5), %v14797_v40  ;;  %v14810_v45 = vld [vmem:[%s16844_s14 + $0x28] sm:$0xff] (!%p13116_p5)   ;;  %v14812_v59 = vld [vmem:[%s16844_s14 + $0x70] sm:$0xff] (!%p13116_p5)  }
 0xc18   : > { %v11448_v43 = vadd.f32 %v11441_v12, %v11440_v34  ;;  %v11449_v32 = vsel %vm2423_vm1, %v11442_v20, 0.0  ;;  %v14814_v26 = vld [vmem:[%s16844_s14 + $0xa8] sm:$0xff] (!%p13116_p5)   ;;  %v14813_v34 = vld [vmem:[%s16844_s14 + $0x30] sm:$0xff] (!%p13116_p5)   ;;  %v14815_v12 = vld [vmem:[%s16844_s14 + $0x78] sm:$0xff] (!%p13116_p5)  }
 0xc19   : > { %v11445_v16 = vadd.f32 %v11444_v61, %v11443_v54  ;;  %v14817_v20 = vld [vmem:[%s16844_s14 + $0xb0] sm:$0xff] (!%p13116_p5)   ;;  %v14816_v54 = vld [vmem:[%s16844_s14 + $0x38] sm:$0xff] (!%p13116_p5)  }
 0xc1a   : > { %v11450_v18 = vadd.f32 %v11449_v32, %v11448_v43  ;;  %13399 = vmatpush3.bf16.msra.mxu0 (!%p13116_p5), %v14798_v15 }
 0xc1b   : > { %11446 = vadd.xlane.f32.xlu0 %v11445_v16  ;;  %13400 = vmatprep.subr.bf16.mxu0 (!%p13116_p5), %v14800_v41 }
 0xc1c   : > { %11451 = vadd.xlane.f32.xlu1 %v11450_v18 }
 0xc1e   : > { %13401 = vmatpush3.bf16.msra.mxu0 (!%p13116_p5), %v14801_v2 }
 0xc1f   : > { %13402 = vmatprep.subr.bf16.mxu0 (!%p13116_p5), %v14803_v50 }
 0xca8   : > { %v11447_v53 = vpop.xlane.xlu0 %11446 }
 0xca9   : > { %v11453_v62 = vmul.f32 0.0027173914, %v11447_v53  ;;  %v11452_v57 = vpop.xlane.xlu1 %11451 }
 0xcaa   : > { %v11454_v14 = vmul.f32 0.0027173914, %v11452_v57 }
 0xcab   : > { %v11455_v60 = vadd.f32 1e-05, %v11453_v62  ;;  %v13117_v62 = vld [vmem:[%s16845_s21] ss:$0 sm:$0xff] (!%p13116_p5) }
 0xcac   : > { %v11456_v0 = vadd.f32 1e-05, %v11454_v14 }
 0xcad   : > { %14785 = vrsqrt.f32 %v11455_v60 }
 0xcae   : > { %14787 = vrsqrt.f32 %v11456_v0 }
 0xcb7   : > { %v14786_v44 = vpop.eup %14785 }
 0xcb8   : > { %v14788_v38 = vpop.eup %14787  ;;  %v11459_v56 = vmul.f32 %v14786_v44, %v11431_v3  ;;  %v11460_v19 = vmul.f32 %v14786_v44, %v11432_v17  ;;  %v11461_v51 = vmul.f32 %v14786_v44, %v11433_v47  ;;  %v14805_v3 = vld [vmem:[%s16844_s14 + $0x90] sm:$0xff] (!%p13116_p5)   ;;  %v14804_v17 = vld [vmem:[%s16844_s14 + $0x18] sm:$0xff] (!%p13116_p5)   ;;  %v14806_v47 = vld [vmem:[%s16844_s14 + $0x60] sm:$0xff] (!%p13116_p5)  }
 0xcb9   : > { %v11462_v35 = vmul.f32 %v14788_v38, %v11434_v55  ;;  %v11463_v1 = vmul.f32 %v14788_v38, %v11435_v58  ;;  %v11464_v7 = vmul.f32 %v14788_v38, %v11436_v4  ;;  %13511 = vmatpush3.bf16.msra.mxu1 (!%p13116_p5), %v14805_v3  ;;  %13403 = vmatpush3.bf16.msra.mxu0 (!%p13116_p5), %v14804_v17  ;;  %v14807_v55 = vld [vmem:[%s16844_s14 + $0x20] sm:$0xff] (!%p13116_p5)   ;;  %v14809_v58 = vld [vmem:[%s16844_s14 + $0x68] sm:$0xff] (!%p13116_p5)  }
 0xcba   : > { %v11481_v5 = vmul.f32 %v11469_v29, %v11459_v56  ;;  %v11482_v9 = vmul.f32 %v11473_v28, %v11460_v19  ;;  %v11483_v8 = vmul.f32 %v11477_v52, %v11461_v51  ;;  %11518 = sbr.rel (%p13116_p5) target bundleno = 3499 (0xdab), region = 88  ;;  %13512 = vmatprep.subr.bf16.mxu1 (!%p13116_p5), %v14829_v21  ;;  %13404 = vmatprep.subr.bf16.mxu0 (!%p13116_p5), %v14806_v47  ;;  %v14811_v4 = vld [vmem:[%s16844_s14 + $0xa0] sm:$0xff] (!%p13116_p5)  }
 0xcbb   : > { %v11484_v23 = vmul.f32 %v11469_v29, %v11462_v35  ;;  %v11485_v37 = vmul.f32 %v11473_v28, %v11463_v1  ;;  %v11486_v33 = vmul.f32 %v11477_v52, %v11464_v7 }
 0xcbc   : > { %v16706_v25 = vadd.f32 %v11491_v36, %v11481_v5  ;;  %v11504_v27 = vadd.f32 %v11495_v48, %v11482_v9  ;;  %v16708_v49 = vadd.f32 %v11499_v30, %v11483_v8 }
 0xcbd   : > { %v16710_v31 = vadd.f32 %v11491_v36, %v11484_v23  ;;  %v11507_v13 = vadd.f32 %v11495_v48, %v11485_v37  ;;  %v16712_v22 = vadd.f32 %v11499_v30, %v11486_v33  ;;  %13513 = vmatpush3.bf16.msra.mxu1 (!%p13116_p5), %v14808_v10  ;;  %13405 = vmatpush3.bf16.msra.mxu0 (!%p13116_p5), %v14807_v55 }
 0xcbe   : > { %11509 = vst [vmem:[#allocation2] sm:$0xff] %v16706_v25  ;;  %11510 = vst [vmem:[#allocation2 + $0x8] sm:$0xff] %v11504_v27  ;;  %13514 = vmatprep.subr.bf16.mxu1 (!%p13116_p5), %v14829_v21  ;;  %13406 = vmatprep.subr.bf16.mxu0 (!%p13116_p5), %v14809_v58 }
 0xcbf   : > { %11511 = vst.msk [vmem:[#allocation2 + $0x10] sm:$0xff] %vm2423_vm1, %v16708_v49  ;;  %11512 = vst [vmem:[#allocation2 + $0x18] sm:$0xff] %v16710_v31  ;;  %v11520_v11 = vpack.c.bf16 (!%p13116_p5), %v11507_v13, %v11504_v27  ;;  %v11521_v61 = vpack.c.bf16 (!%p13116_p5), %v16712_v22, %v16708_v49  ;;  %v11519_v43 = vpack.c.bf16 (!%p13116_p5), %v16710_v31, %v16706_v25 }
 0xcc0   : > { %11513 = vst [vmem:[#allocation2 + $0x20] sm:$0xff] %v11507_v13  ;;  %11514 = vst.msk [vmem:[#allocation2 + $0x28] sm:$0xff] %vm2423_vm1, %v16712_v22 }
 0xcc1   : > { %11748 = vmatprep.mubr.bf16.mxu0 %v11520_v11  ;;  %13515 = vmatpush3.bf16.msra.mxu1 %v14811_v4 }
 0xcc2   : > { %13407 = vmatpush3.bf16.msra.mxu0 %v14810_v45  ;;  %13516 = vmatprep.subr.bf16.mxu1 %v14829_v21 }
 0xcc3   : > { %13408 = vmatprep.subr.bf16.mxu0 %v14812_v59 }
 0xcc5   : > { %13517 = vmatpush3.bf16.msra.mxu1 %v14814_v26 }
 0xcc6   : > { %13409 = vmatpush3.bf16.msra.mxu0 %v14813_v34  ;;  %13518 = vmatprep.subr.bf16.mxu1 %v14829_v21 }
 0xcc7   : > { %13410 = vmatprep.subr.bf16.mxu0 %v14815_v12 }
 0xcc9   : > { %13519 = vmatpush3.bf16.msra.mxu1 %v14817_v20 }
 0xcca   : > { %13411 = vmatpush3.bf16.msra.mxu0 %v14816_v54 }
 0xccc   : > { %13521 = vmatmul.mubr.msk.bf16.vlgmr.msra.gmra.mrb[0].mxu1 %vm2423_vm1, %v11521_v61 }
 0xccd   : > { %11749 = vmatmul.mubr.bf16.vlgmr.msra.gmra.mrb[0].mxu0 %v11519_v43 }
 0xd9f   : > { %v11791_v32 = vpop.f32.mrb[0].mxu1 }
 0xda0   : > { %v13412_v16 = vpop.f32.mrb[0].mxu0  ;;  %v13522_v18 = vpop.f32.mrb[1].mxu1 }
 0xda1   : > { %v13413_v53 = vpop.f32.mrb[1].mxu0  ;;  %v11794_v57 = vpop.f32.mrb[2].mxu1 }
 0xda2   : > { %v13414_v14 = vadd.f32 %v13413_v53, %v13412_v16  ;;  %v13415_v60 = vpop.f32.mrb[2].mxu0  ;;  %v13523_v0 = vpop.f32.mrb[3].mxu1 }
 0xda3   : > { %v13416_v63 = vpop.f32.mrb[3].mxu0 }
 0xda4   : > { %v11751_v42 = vadd.f32 %v13414_v14, %v13117_v62  ;;  %v13417_v29 = vadd.f32 %v13416_v63, %v13415_v60 }
 0xda6   : > { %v11792_v28 = vadd.f32 %v11791_v32, %v11751_v42  ;;  %v11754_v52 = vadd.f32 %v13417_v29, %v13117_v62 }
 0xda8   : > { %11798 = vst [vmem:[%s16846_s2] sm:$0xff] %v11792_v28  ;;  %v11795_v44 = vadd.f32 %v11794_v57, %v11754_v52 }
 0xdaa   : > { %11799 = vst [vmem:[%s16846_s2 + $0x8] sm:$0xff] %v11795_v44 }
 0xdab PF: > { %s16847_s6 = sld [smem:[#allocation4_spill]] }
 0xdb1   : > { %s25_s18 = sadd.s32 1, %s16847_s6  }
 0xdb2   : > { %p22_p6 = scmp.ge.s32.totalorder %s25_s18, 4  }
 0xdb4   :  { %24 = sbr.rel (!%p22_p6) target bundleno = 9 (0x9), region = 147 }

</bundles_post_ra>
